<compile_context>
chip_gen: v5e
topology: v5e:2x2
jax: 0.10.0
libtpu: 0.0.40
codegen_flags: <defaults>
</compile_context>

<pallas_src>
import math

import numpy as np
import jax
import jax.numpy as jnp
from jax.experimental import pallas as pl
from jax.experimental.pallas import tpu as pltpu

# Problem constants (from the PyTorch module: input (N, 3, 10, 10)).
H = 10
W = 10
HW = H * W
CIN = 3
CMID = 8
COUT = 8

NTAPS = 9                     # 3x3 kernel
CPAD = 8                      # channel slot width per tap in the patch matrix
BIAS_ROW = NTAPS * CPAD       # 72: all-ones row -> bias folded into the matmul
KDIM = 80                     # 72 tap*channel rows + 1 bias row + 7 zero rows

BLOCK_B = 32                  # samples per grid step (32*100 = 3200 = 25*128)
BHW = BLOCK_B * HW            # lane width of one block (multiple of 128)
GUARD = 128                   # zero guard band on each side of the staging buf
XE_LANES = GUARD + BHW + GUARD  # 3456 = 27*128


def _fused_conv_kernel(m_ref, x_ref, w1_ref, w2_ref, o_ref, xe_ref, p_ref):
    """Fused Conv3x3(3->8) + Conv3x3(8->8), 'same' padding, BLOCK_B samples.

    m_ref : (72, BHW)        f32  per-tap validity masks, each tap repeated
                                   over the 8 channel slots and tiled over B
    x_ref : (CPAD, BHW)      f32  input block: 8 channel slots (3 real + 5
                                   zero) in sublanes, B*H*W pixels in lanes
    w1_ref: (CMID, KDIM)     f32  flattened conv1 weights (+ bias column)
    w2_ref: (COUT, KDIM)     f32  flattened conv2 weights (+ bias column)
    o_ref : (COUT, BHW)      f32  output block
    xe_ref: (CPAD, XE_LANES) f32  staging buffer with zero guard bands
    p_ref : (KDIM, BHW)      f32  im2col patch matrix (one matmul per layer)

    Every value read by this step is (re)written by this step, so grid steps
    are independent -> safe under megacore "parallel" splitting.
    """
    f32 = jnp.float32

    # Bias / zero rows of the patch matrix (rows 72..79): cheap (~25 vregs).
    p_ref[BIAS_ROW:BIAS_ROW + 1, :] = jnp.ones((1, BHW), f32)
    p_ref[BIAS_ROW + 1:KDIM, :] = jnp.zeros((KDIM - BIAS_ROW - 1, BHW), f32)

    # Zero the guard bands of the staging buffer.  Tap reads that cross the
    # block edge land here; they are masked to zero but must be finite.
    xe_ref[:, 0:GUARD] = jnp.zeros((CPAD, GUARD), f32)
    xe_ref[:, GUARD + BHW:] = jnp.zeros((CPAD, XE_LANES - GUARD - BHW), f32)

    def fill_taps(a8):
        # a8: (CPAD, BHW).  Scatter the 9 shifted + masked copies into p_ref.
        xe_ref[:, GUARD:GUARD + BHW] = a8
        t = 0
        for dy in (-1, 0, 1):
            for dx in (-1, 0, 1):
                d = dy * W + dx                                   # lane shift
                piece = xe_ref[:, GUARD + d:GUARD + d + BHW]      # shifted load
                piece = piece * m_ref[t * CPAD:(t + 1) * CPAD, :]  # border mask
                p_ref[t * CPAD:(t + 1) * CPAD, :] = piece
                t += 1

    # Layer 1: Conv2d(3 -> 8) + bias as one (CMID,KDIM) x (KDIM,BHW) matmul.
    fill_taps(x_ref[...])
    mid = jnp.dot(w1_ref[...], p_ref[...], preferred_element_type=f32)

    # Layer 2: Conv2d(8 -> 8) + bias; intermediate never leaves VMEM.
    fill_taps(mid)
    out = jnp.dot(w2_ref[...], p_ref[...], preferred_element_type=f32)
    o_ref[...] = out.astype(o_ref.dtype)


def _build_tap_masks(h, w):
    """(9, h*w) {0,1} mask: tap (dy, dx) valid at pixel (y, x)."""
    m = np.zeros((NTAPS, h * w), np.float32)
    yy, xx = np.meshgrid(np.arange(h), np.arange(w), indexing="ij")
    t = 0
    for dy in (-1, 0, 1):
        for dx in (-1, 0, 1):
            valid = ((yy + dy >= 0) & (yy + dy < h) &
                     (xx + dx >= 0) & (xx + dx < w))
            m[t] = valid.reshape(-1).astype(np.float32)
            t += 1
    return m


# Pre-expanded mask: each tap row repeated over the 8 channel slots, then
# tiled over the BLOCK_B samples packed along the lane axis -> (72, BHW).
_TAP_MASKS = jnp.asarray(
    np.tile(np.repeat(_build_tap_masks(H, W), CPAD, axis=0), (1, BLOCK_B)))


def _flatten_conv_weights(w_oihw, b):
    """(O, I, 3, 3) + (O,) -> (O, KDIM) matching the kernel patch-row layout:
       column (kh*3 + kw) * CPAD + ci  <-  w[o, ci, kh, kw];  column 72 <- bias."""
    O, I, KH, KW = w_oihw.shape
    wt = jnp.transpose(w_oihw, (0, 2, 3, 1)).astype(jnp.float32)      # (O,KH,KW,I)
    wt = jnp.pad(wt, ((0, 0), (0, 0), (0, 0), (0, CPAD - I)))         # (O,KH,KW,8)
    wflat = wt.reshape(O, KH * KW * CPAD)                             # (O, 72)
    bias_col = b.reshape(O, 1).astype(jnp.float32)
    zpad = jnp.zeros((O, KDIM - KH * KW * CPAD - 1), jnp.float32)     # (O, 7)
    return jnp.concatenate([wflat, bias_col, zpad], axis=1)           # (O, 80)


@jax.jit
def model_forward(x, params):
    """x: (N, 3, H, W) float32 -> (N, 8, H, W) float32, both convs fused."""
    (w1, b1), (w2, b2) = params
    N = x.shape[0]
    G = pl.cdiv(N, BLOCK_B)
    n_pad = G * BLOCK_B - N

    # (N,3,H,W) -> (G, 8 channel slots, BLOCK_B*HW) with samples packed along
    # the lane axis (lane-dense, multiple of 128).
    xf = x.reshape(N, CIN, HW).astype(jnp.float32)
    xf = jnp.pad(xf, ((0, n_pad), (0, CPAD - CIN), (0, 0)))
    xf = xf.reshape(G, BLOCK_B, CPAD, HW).transpose(0, 2, 1, 3).reshape(G, CPAD, BHW)

    w1f = _flatten_conv_weights(w1, b1)                  # (CMID, KDIM)
    w2f = _flatten_conv_weights(w2, b2)                  # (COUT, KDIM)

    out_blocks = pl.pallas_call(
        _fused_conv_kernel,
        out_shape=jax.ShapeDtypeStruct((G, COUT, BHW), jnp.float32),
        grid=(G,),
        in_specs=[
            pl.BlockSpec((NTAPS * CPAD, BHW), lambda g: (0, 0)),
            pl.BlockSpec((pl.Squeezed(), CPAD, BHW), lambda g: (g, 0, 0)),
            pl.BlockSpec((CMID, KDIM), lambda g: (0, 0)),
            pl.BlockSpec((COUT, KDIM), lambda g: (0, 0)),
        ],
        out_specs=pl.BlockSpec((pl.Squeezed(), COUT, BHW), lambda g: (g, 0, 0)),
        scratch_shapes=[
            pltpu.VMEM((CPAD, XE_LANES), jnp.float32),
            pltpu.VMEM((KDIM, BHW), jnp.float32),
        ],
        compiler_params=pltpu.CompilerParams(
            dimension_semantics=("parallel",)),
    )(_TAP_MASKS, xf, w1f, w2f)

    # (G, COUT, BLOCK_B*HW) -> (N, COUT, H, W)
    out = out_blocks.reshape(G, COUT, BLOCK_B, HW).transpose(0, 2, 1, 3)
    out = out.reshape(G * BLOCK_B, COUT, HW)[:N]
    return out.reshape(N, COUT, H, W)


def init_conv_params(key, cout, cin, k):
    """Deterministic init mimicking PyTorch Conv2d defaults (U[-1/sqrt(fan_in), ...])."""
    kw_, kb_ = jax.random.split(key)
    bound = 1.0 / math.sqrt(cin * k * k)
    w = jax.random.uniform(kw_, (cout, cin, k, k), jnp.float32, -bound, bound)
    b = jax.random.uniform(kb_, (cout,), jnp.float32, -bound, bound)
    return w, b


def _reference_conv(x, w, b):
    y = jax.lax.conv_general_dilated(
        x, w, window_strides=(1, 1), padding="SAME",
        dimension_numbers=("NCHW", "OIHW", "NCHW"),
        precision=jax.lax.Precision.HIGHEST)
    return y + b.reshape(1, -1, 1, 1)


if __name__ == "__main__":
    key = jax.random.PRNGKey(0)
    kx, ka, kb = jax.random.split(key, 3)

    # Input consistent with the PyTorch module: (1, 3, 10, 10)
    x = jax.random.normal(kx, (1, CIN, H, W), dtype=jnp.float32)

    params = (
        init_conv_params(ka, cout=CMID, cin=CIN, k=3),   # ModelA.conv : 3 -> 8
        init_conv_params(kb, cout=COUT, cin=CMID, k=3),  # Model.conv  : 8 -> 8
    )

    out = jax.block_until_ready(model_forward(x, params))
    assert out.shape == (1, COUT, H, W), out.shape

    # Numerical check against XLA's reference convolution (f32 MXU vs HIGHEST
    # precision reference -> ~1e-6..1e-5 expected; 1e-3 gives safe headroom).
    ref = _reference_conv(_reference_conv(x, *params[0]), *params[1])
    max_err = float(jnp.max(jnp.abs(out - ref)))
    assert max_err < 1e-3, max_err

    print("KERNEL_OK")
</pallas_src>

<mosaic_0001>
module attributes {stable_mosaic.version = 11 : i64} {
  func.func @_fused_conv_kernel(%arg0: i32, %arg1: memref<72x3200xf32, #tpu.memory_space<vmem>>, %arg2: memref<1x8x3200xf32, #tpu.memory_space<vmem>>, %arg3: memref<8x80xf32, #tpu.memory_space<vmem>>, %arg4: memref<8x80xf32, #tpu.memory_space<vmem>>, %arg5: memref<1x8x3200xf32, #tpu.memory_space<vmem>>, %arg6: memref<8x3456xf32, #tpu.memory_space<vmem>>, %arg7: memref<80x3200xf32, #tpu.memory_space<vmem>>) attributes {dimension_semantics = [#tpu.dimension_semantics<parallel>], iteration_bounds = array<i64: 1>, scalar_prefetch = 0 : i64, scratch_operands = 2 : i64, tpu.core_type = #tpu.core_type<tc>, window_params = [{pipeline_mode = #tpu.pipeline_mode<synchronous>, transform_indices = @transform_0, window_bounds = array<i64: 72, 3200>}, {transform_indices = @transform_1, window_bounds = array<i64: 1, 8, 3200>}, {pipeline_mode = #tpu.pipeline_mode<synchronous>, transform_indices = @transform_2, window_bounds = array<i64: 8, 80>}, {pipeline_mode = #tpu.pipeline_mode<synchronous>, transform_indices = @transform_3, window_bounds = array<i64: 8, 80>}, {transform_indices = @transform_4, window_bounds = array<i64: 1, 8, 3200>}]} {
    %cst = arith.constant 1.000000e+00 : f32
    %0 = vector.broadcast %cst : f32 to vector<1x3200xf32>
    %c72 = arith.constant 72 : index
    %c0 = arith.constant 0 : index
    %1 = vector.load %arg7[%c72, %c0] : memref<80x3200xf32, #tpu.memory_space<vmem>>, vector<1x3200xf32>
    tpu.vector_store %arg7[%c72, %c0], %0 {strides = array<i32>} : memref<80x3200xf32, #tpu.memory_space<vmem>>, vector<1x3200xf32>,
    %cst_0 = arith.constant 0.000000e+00 : f32
    %2 = vector.broadcast %cst_0 : f32 to vector<7x3200xf32>
    %c73 = arith.constant 73 : index
    %c0_1 = arith.constant 0 : index
    %3 = vector.load %arg7[%c73, %c0_1] : memref<80x3200xf32, #tpu.memory_space<vmem>>, vector<7x3200xf32>
    tpu.vector_store %arg7[%c73, %c0_1], %2 {strides = array<i32>} : memref<80x3200xf32, #tpu.memory_space<vmem>>, vector<7x3200xf32>,
    %cst_2 = arith.constant 0.000000e+00 : f32
    %4 = vector.broadcast %cst_2 : f32 to vector<8x128xf32>
    %c0_3 = arith.constant 0 : index
    %c0_4 = arith.constant 0 : index
    %5 = vector.load %arg6[%c0_3, %c0_4] : memref<8x3456xf32, #tpu.memory_space<vmem>>, vector<8x128xf32>
    tpu.vector_store %arg6[%c0_3, %c0_4], %4 {strides = array<i32>} : memref<8x3456xf32, #tpu.memory_space<vmem>>, vector<8x128xf32>,
    %cst_5 = arith.constant 0.000000e+00 : f32
    %6 = vector.broadcast %cst_5 : f32 to vector<8x128xf32>
    %c0_6 = arith.constant 0 : index
    %c3328 = arith.constant 3328 : index
    %7 = vector.load %arg6[%c0_6, %c3328] : memref<8x3456xf32, #tpu.memory_space<vmem>>, vector<8x128xf32>
    tpu.vector_store %arg6[%c0_6, %c3328], %6 {strides = array<i32>} : memref<8x3456xf32, #tpu.memory_space<vmem>>, vector<8x128xf32>,
    %c0_7 = arith.constant 0 : index
    %c0_8 = arith.constant 0 : index
    %c0_9 = arith.constant 0 : index
    %8 = vector.load %arg2[%c0_7, %c0_8, %c0_9] : memref<1x8x3200xf32, #tpu.memory_space<vmem>>, vector<1x8x3200xf32>
    %9 = vector.shape_cast %8 : vector<1x8x3200xf32> to vector<8x3200xf32>
    %c0_10 = arith.constant 0 : index
    %c128 = arith.constant 128 : index
    %10 = vector.load %arg6[%c0_10, %c128] : memref<8x3456xf32, #tpu.memory_space<vmem>>, vector<8x3200xf32>
    tpu.vector_store %arg6[%c0_10, %c128], %9 {strides = array<i32>} : memref<8x3456xf32, #tpu.memory_space<vmem>>, vector<8x3200xf32>,
    %c0_11 = arith.constant 0 : index
    %c117 = arith.constant 117 : index
    %11 = vector.load %arg6[%c0_11, %c117] : memref<8x3456xf32, #tpu.memory_space<vmem>>, vector<8x3200xf32>
    %c0_12 = arith.constant 0 : index
    %c0_13 = arith.constant 0 : index
    %12 = vector.load %arg1[%c0_12, %c0_13] : memref<72x3200xf32, #tpu.memory_space<vmem>>, vector<8x3200xf32>
    %13 = arith.mulf %11, %12 : vector<8x3200xf32>
    %c0_14 = arith.constant 0 : index
    %c0_15 = arith.constant 0 : index
    %14 = vector.load %arg7[%c0_14, %c0_15] : memref<80x3200xf32, #tpu.memory_space<vmem>>, vector<8x3200xf32>
    tpu.vector_store %arg7[%c0_14, %c0_15], %13 {strides = array<i32>} : memref<80x3200xf32, #tpu.memory_space<vmem>>, vector<8x3200xf32>,
    %c0_16 = arith.constant 0 : index
    %c118 = arith.constant 118 : index
    %15 = vector.load %arg6[%c0_16, %c118] : memref<8x3456xf32, #tpu.memory_space<vmem>>, vector<8x3200xf32>
    %c8 = arith.constant 8 : index
    %c0_17 = arith.constant 0 : index
    %16 = vector.load %arg1[%c8, %c0_17] : memref<72x3200xf32, #tpu.memory_space<vmem>>, vector<8x3200xf32>
    %17 = arith.mulf %15, %16 : vector<8x3200xf32>
    %c8_18 = arith.constant 8 : index
    %c0_19 = arith.constant 0 : index
    %18 = vector.load %arg7[%c8_18, %c0_19] : memref<80x3200xf32, #tpu.memory_space<vmem>>, vector<8x3200xf32>
    tpu.vector_store %arg7[%c8_18, %c0_19], %17 {strides = array<i32>} : memref<80x3200xf32, #tpu.memory_space<vmem>>, vector<8x3200xf32>,
    %c0_20 = arith.constant 0 : index
    %c119 = arith.constant 119 : index
    %19 = vector.load %arg6[%c0_20, %c119] : memref<8x3456xf32, #tpu.memory_space<vmem>>, vector<8x3200xf32>
    %c16 = arith.constant 16 : index
    %c0_21 = arith.constant 0 : index
    %20 = vector.load %arg1[%c16, %c0_21] : memref<72x3200xf32, #tpu.memory_space<vmem>>, vector<8x3200xf32>
    %21 = arith.mulf %19, %20 : vector<8x3200xf32>
    %c16_22 = arith.constant 16 : index
    %c0_23 = arith.constant 0 : index
    %22 = vector.load %arg7[%c16_22, %c0_23] : memref<80x3200xf32, #tpu.memory_space<vmem>>, vector<8x3200xf32>
    tpu.vector_store %arg7[%c16_22, %c0_23], %21 {strides = array<i32>} : memref<80x3200xf32, #tpu.memory_space<vmem>>, vector<8x3200xf32>,
    %c0_24 = arith.constant 0 : index
    %c127 = arith.constant 127 : index
    %23 = vector.load %arg6[%c0_24, %c127] : memref<8x3456xf32, #tpu.memory_space<vmem>>, vector<8x3200xf32>
    %c24 = arith.constant 24 : index
    %c0_25 = arith.constant 0 : index
    %24 = vector.load %arg1[%c24, %c0_25] : memref<72x3200xf32, #tpu.memory_space<vmem>>, vector<8x3200xf32>
    %25 = arith.mulf %23, %24 : vector<8x3200xf32>
    %c24_26 = arith.constant 24 : index
    %c0_27 = arith.constant 0 : index
    %26 = vector.load %arg7[%c24_26, %c0_27] : memref<80x3200xf32, #tpu.memory_space<vmem>>, vector<8x3200xf32>
    tpu.vector_store %arg7[%c24_26, %c0_27], %25 {strides = array<i32>} : memref<80x3200xf32, #tpu.memory_space<vmem>>, vector<8x3200xf32>,
    %c0_28 = arith.constant 0 : index
    %c128_29 = arith.constant 128 : index
    %27 = vector.load %arg6[%c0_28, %c128_29] : memref<8x3456xf32, #tpu.memory_space<vmem>>, vector<8x3200xf32>
    %c32 = arith.constant 32 : index
    %c0_30 = arith.constant 0 : index
    %28 = vector.load %arg1[%c32, %c0_30] : memref<72x3200xf32, #tpu.memory_space<vmem>>, vector<8x3200xf32>
    %29 = arith.mulf %27, %28 : vector<8x3200xf32>
    %c32_31 = arith.constant 32 : index
    %c0_32 = arith.constant 0 : index
    %30 = vector.load %arg7[%c32_31, %c0_32] : memref<80x3200xf32, #tpu.memory_space<vmem>>, vector<8x3200xf32>
    tpu.vector_store %arg7[%c32_31, %c0_32], %29 {strides = array<i32>} : memref<80x3200xf32, #tpu.memory_space<vmem>>, vector<8x3200xf32>,
    %c0_33 = arith.constant 0 : index
    %c129 = arith.constant 129 : index
    %31 = vector.load %arg6[%c0_33, %c129] : memref<8x3456xf32, #tpu.memory_space<vmem>>, vector<8x3200xf32>
    %c40 = arith.constant 40 : index
    %c0_34 = arith.constant 0 : index
    %32 = vector.load %arg1[%c40, %c0_34] : memref<72x3200xf32, #tpu.memory_space<vmem>>, vector<8x3200xf32>
    %33 = arith.mulf %31, %32 : vector<8x3200xf32>
    %c40_35 = arith.constant 40 : index
    %c0_36 = arith.constant 0 : index
    %34 = vector.load %arg7[%c40_35, %c0_36] : memref<80x3200xf32, #tpu.memory_space<vmem>>, vector<8x3200xf32>
    tpu.vector_store %arg7[%c40_35, %c0_36], %33 {strides = array<i32>} : memref<80x3200xf32, #tpu.memory_space<vmem>>, vector<8x3200xf32>,
    %c0_37 = arith.constant 0 : index
    %c137 = arith.constant 137 : index
    %35 = vector.load %arg6[%c0_37, %c137] : memref<8x3456xf32, #tpu.memory_space<vmem>>, vector<8x3200xf32>
    %c48 = arith.constant 48 : index
    %c0_38 = arith.constant 0 : index
    %36 = vector.load %arg1[%c48, %c0_38] : memref<72x3200xf32, #tpu.memory_space<vmem>>, vector<8x3200xf32>
    %37 = arith.mulf %35, %36 : vector<8x3200xf32>
    %c48_39 = arith.constant 48 : index
    %c0_40 = arith.constant 0 : index
    %38 = vector.load %arg7[%c48_39, %c0_40] : memref<80x3200xf32, #tpu.memory_space<vmem>>, vector<8x3200xf32>
    tpu.vector_store %arg7[%c48_39, %c0_40], %37 {strides = array<i32>} : memref<80x3200xf32, #tpu.memory_space<vmem>>, vector<8x3200xf32>,
    %c0_41 = arith.constant 0 : index
    %c138 = arith.constant 138 : index
    %39 = vector.load %arg6[%c0_41, %c138] : memref<8x3456xf32, #tpu.memory_space<vmem>>, vector<8x3200xf32>
    %c56 = arith.constant 56 : index
    %c0_42 = arith.constant 0 : index
    %40 = vector.load %arg1[%c56, %c0_42] : memref<72x3200xf32, #tpu.memory_space<vmem>>, vector<8x3200xf32>
    %41 = arith.mulf %39, %40 : vector<8x3200xf32>
    %c56_43 = arith.constant 56 : index
    %c0_44 = arith.constant 0 : index
    %42 = vector.load %arg7[%c56_43, %c0_44] : memref<80x3200xf32, #tpu.memory_space<vmem>>, vector<8x3200xf32>
    tpu.vector_store %arg7[%c56_43, %c0_44], %41 {strides = array<i32>} : memref<80x3200xf32, #tpu.memory_space<vmem>>, vector<8x3200xf32>,
    %c0_45 = arith.constant 0 : index
    %c139 = arith.constant 139 : index
    %43 = vector.load %arg6[%c0_45, %c139] : memref<8x3456xf32, #tpu.memory_space<vmem>>, vector<8x3200xf32>
    %c64 = arith.constant 64 : index
    %c0_46 = arith.constant 0 : index
    %44 = vector.load %arg1[%c64, %c0_46] : memref<72x3200xf32, #tpu.memory_space<vmem>>, vector<8x3200xf32>
    %45 = arith.mulf %43, %44 : vector<8x3200xf32>
    %c64_47 = arith.constant 64 : index
    %c0_48 = arith.constant 0 : index
    %46 = vector.load %arg7[%c64_47, %c0_48] : memref<80x3200xf32, #tpu.memory_space<vmem>>, vector<8x3200xf32>
    tpu.vector_store %arg7[%c64_47, %c0_48], %45 {strides = array<i32>} : memref<80x3200xf32, #tpu.memory_space<vmem>>, vector<8x3200xf32>,
    %c0_49 = arith.constant 0 : index
    %c0_50 = arith.constant 0 : index
    %47 = vector.load %arg3[%c0_49, %c0_50] : memref<8x80xf32, #tpu.memory_space<vmem>>, vector<8x80xf32>
    %c0_51 = arith.constant 0 : index
    %c0_52 = arith.constant 0 : index
    %48 = vector.load %arg7[%c0_51, %c0_52] : memref<80x3200xf32, #tpu.memory_space<vmem>>, vector<80x3200xf32>
    %cst_53 = arith.constant dense<0.000000e+00> : vector<8x3200xf32>
    %49 = tpu.matmul %47, %48, %cst_53 {dimension_numbers = #tpu.dot_dimension_numbers<[1], [0], [0], [1], [0, 0, 1, 1], [], []>} : vector<8x80xf32>, vector<80x3200xf32>, vector<8x3200xf32> -> vector<8x3200xf32>
    %c0_54 = arith.constant 0 : index
    %c128_55 = arith.constant 128 : index
    %50 = vector.load %arg6[%c0_54, %c128_55] : memref<8x3456xf32, #tpu.memory_space<vmem>>, vector<8x3200xf32>
    tpu.vector_store %arg6[%c0_54, %c128_55], %49 {strides = array<i32>} : memref<8x3456xf32, #tpu.memory_space<vmem>>, vector<8x3200xf32>,
    %c0_56 = arith.constant 0 : index
    %c117_57 = arith.constant 117 : index
    %51 = vector.load %arg6[%c0_56, %c117_57] : memref<8x3456xf32, #tpu.memory_space<vmem>>, vector<8x3200xf32>
    %c0_58 = arith.constant 0 : index
    %c0_59 = arith.constant 0 : index
    %52 = vector.load %arg1[%c0_58, %c0_59] : memref<72x3200xf32, #tpu.memory_space<vmem>>, vector<8x3200xf32>
    %53 = arith.mulf %51, %52 : vector<8x3200xf32>
    %c0_60 = arith.constant 0 : index
    %c0_61 = arith.constant 0 : index
    %54 = vector.load %arg7[%c0_60, %c0_61] : memref<80x3200xf32, #tpu.memory_space<vmem>>, vector<8x3200xf32>
    tpu.vector_store %arg7[%c0_60, %c0_61], %53 {strides = array<i32>} : memref<80x3200xf32, #tpu.memory_space<vmem>>, vector<8x3200xf32>,
    %c0_62 = arith.constant 0 : index
    %c118_63 = arith.constant 118 : index
    %55 = vector.load %arg6[%c0_62, %c118_63] : memref<8x3456xf32, #tpu.memory_space<vmem>>, vector<8x3200xf32>
    %c8_64 = arith.constant 8 : index
    %c0_65 = arith.constant 0 : index
    %56 = vector.load %arg1[%c8_64, %c0_65] : memref<72x3200xf32, #tpu.memory_space<vmem>>, vector<8x3200xf32>
    %57 = arith.mulf %55, %56 : vector<8x3200xf32>
    %c8_66 = arith.constant 8 : index
    %c0_67 = arith.constant 0 : index
    %58 = vector.load %arg7[%c8_66, %c0_67] : memref<80x3200xf32, #tpu.memory_space<vmem>>, vector<8x3200xf32>
    tpu.vector_store %arg7[%c8_66, %c0_67], %57 {strides = array<i32>} : memref<80x3200xf32, #tpu.memory_space<vmem>>, vector<8x3200xf32>,
    %c0_68 = arith.constant 0 : index
    %c119_69 = arith.constant 119 : index
    %59 = vector.load %arg6[%c0_68, %c119_69] : memref<8x3456xf32, #tpu.memory_space<vmem>>, vector<8x3200xf32>
    %c16_70 = arith.constant 16 : index
    %c0_71 = arith.constant 0 : index
    %60 = vector.load %arg1[%c16_70, %c0_71] : memref<72x3200xf32, #tpu.memory_space<vmem>>, vector<8x3200xf32>
    %61 = arith.mulf %59, %60 : vector<8x3200xf32>
    %c16_72 = arith.constant 16 : index
    %c0_73 = arith.constant 0 : index
    %62 = vector.load %arg7[%c16_72, %c0_73] : memref<80x3200xf32, #tpu.memory_space<vmem>>, vector<8x3200xf32>
    tpu.vector_store %arg7[%c16_72, %c0_73], %61 {strides = array<i32>} : memref<80x3200xf32, #tpu.memory_space<vmem>>, vector<8x3200xf32>,
    %c0_74 = arith.constant 0 : index
    %c127_75 = arith.constant 127 : index
    %63 = vector.load %arg6[%c0_74, %c127_75] : memref<8x3456xf32, #tpu.memory_space<vmem>>, vector<8x3200xf32>
    %c24_76 = arith.constant 24 : index
    %c0_77 = arith.constant 0 : index
    %64 = vector.load %arg1[%c24_76, %c0_77] : memref<72x3200xf32, #tpu.memory_space<vmem>>, vector<8x3200xf32>
    %65 = arith.mulf %63, %64 : vector<8x3200xf32>
    %c24_78 = arith.constant 24 : index
    %c0_79 = arith.constant 0 : index
    %66 = vector.load %arg7[%c24_78, %c0_79] : memref<80x3200xf32, #tpu.memory_space<vmem>>, vector<8x3200xf32>
    tpu.vector_store %arg7[%c24_78, %c0_79], %65 {strides = array<i32>} : memref<80x3200xf32, #tpu.memory_space<vmem>>, vector<8x3200xf32>,
    %c0_80 = arith.constant 0 : index
    %c128_81 = arith.constant 128 : index
    %67 = vector.load %arg6[%c0_80, %c128_81] : memref<8x3456xf32, #tpu.memory_space<vmem>>, vector<8x3200xf32>
    %c32_82 = arith.constant 32 : index
    %c0_83 = arith.constant 0 : index
    %68 = vector.load %arg1[%c32_82, %c0_83] : memref<72x3200xf32, #tpu.memory_space<vmem>>, vector<8x3200xf32>
    %69 = arith.mulf %67, %68 : vector<8x3200xf32>
    %c32_84 = arith.constant 32 : index
    %c0_85 = arith.constant 0 : index
    %70 = vector.load %arg7[%c32_84, %c0_85] : memref<80x3200xf32, #tpu.memory_space<vmem>>, vector<8x3200xf32>
    tpu.vector_store %arg7[%c32_84, %c0_85], %69 {strides = array<i32>} : memref<80x3200xf32, #tpu.memory_space<vmem>>, vector<8x3200xf32>,
    %c0_86 = arith.constant 0 : index
    %c129_87 = arith.constant 129 : index
    %71 = vector.load %arg6[%c0_86, %c129_87] : memref<8x3456xf32, #tpu.memory_space<vmem>>, vector<8x3200xf32>
    %c40_88 = arith.constant 40 : index
    %c0_89 = arith.constant 0 : index
    %72 = vector.load %arg1[%c40_88, %c0_89] : memref<72x3200xf32, #tpu.memory_space<vmem>>, vector<8x3200xf32>
    %73 = arith.mulf %71, %72 : vector<8x3200xf32>
    %c40_90 = arith.constant 40 : index
    %c0_91 = arith.constant 0 : index
    %74 = vector.load %arg7[%c40_90, %c0_91] : memref<80x3200xf32, #tpu.memory_space<vmem>>, vector<8x3200xf32>
    tpu.vector_store %arg7[%c40_90, %c0_91], %73 {strides = array<i32>} : memref<80x3200xf32, #tpu.memory_space<vmem>>, vector<8x3200xf32>,
    %c0_92 = arith.constant 0 : index
    %c137_93 = arith.constant 137 : index
    %75 = vector.load %arg6[%c0_92, %c137_93] : memref<8x3456xf32, #tpu.memory_space<vmem>>, vector<8x3200xf32>
    %c48_94 = arith.constant 48 : index
    %c0_95 = arith.constant 0 : index
    %76 = vector.load %arg1[%c48_94, %c0_95] : memref<72x3200xf32, #tpu.memory_space<vmem>>, vector<8x3200xf32>
    %77 = arith.mulf %75, %76 : vector<8x3200xf32>
    %c48_96 = arith.constant 48 : index
    %c0_97 = arith.constant 0 : index
    %78 = vector.load %arg7[%c48_96, %c0_97] : memref<80x3200xf32, #tpu.memory_space<vmem>>, vector<8x3200xf32>
    tpu.vector_store %arg7[%c48_96, %c0_97], %77 {strides = array<i32>} : memref<80x3200xf32, #tpu.memory_space<vmem>>, vector<8x3200xf32>,
    %c0_98 = arith.constant 0 : index
    %c138_99 = arith.constant 138 : index
    %79 = vector.load %arg6[%c0_98, %c138_99] : memref<8x3456xf32, #tpu.memory_space<vmem>>, vector<8x3200xf32>
    %c56_100 = arith.constant 56 : index
    %c0_101 = arith.constant 0 : index
    %80 = vector.load %arg1[%c56_100, %c0_101] : memref<72x3200xf32, #tpu.memory_space<vmem>>, vector<8x3200xf32>
    %81 = arith.mulf %79, %80 : vector<8x3200xf32>
    %c56_102 = arith.constant 56 : index
    %c0_103 = arith.constant 0 : index
    %82 = vector.load %arg7[%c56_102, %c0_103] : memref<80x3200xf32, #tpu.memory_space<vmem>>, vector<8x3200xf32>
    tpu.vector_store %arg7[%c56_102, %c0_103], %81 {strides = array<i32>} : memref<80x3200xf32, #tpu.memory_space<vmem>>, vector<8x3200xf32>,
    %c0_104 = arith.constant 0 : index
    %c139_105 = arith.constant 139 : index
    %83 = vector.load %arg6[%c0_104, %c139_105] : memref<8x3456xf32, #tpu.memory_space<vmem>>, vector<8x3200xf32>
    %c64_106 = arith.constant 64 : index
    %c0_107 = arith.constant 0 : index
    %84 = vector.load %arg1[%c64_106, %c0_107] : memref<72x3200xf32, #tpu.memory_space<vmem>>, vector<8x3200xf32>
    %85 = arith.mulf %83, %84 : vector<8x3200xf32>
    %c64_108 = arith.constant 64 : index
    %c0_109 = arith.constant 0 : index
    %86 = vector.load %arg7[%c64_108, %c0_109] : memref<80x3200xf32, #tpu.memory_space<vmem>>, vector<8x3200xf32>
    tpu.vector_store %arg7[%c64_108, %c0_109], %85 {strides = array<i32>} : memref<80x3200xf32, #tpu.memory_space<vmem>>, vector<8x3200xf32>,
    %c0_110 = arith.constant 0 : index
    %c0_111 = arith.constant 0 : index
    %87 = vector.load %arg4[%c0_110, %c0_111] : memref<8x80xf32, #tpu.memory_space<vmem>>, vector<8x80xf32>
    %c0_112 = arith.constant 0 : index
    %c0_113 = arith.constant 0 : index
    %88 = vector.load %arg7[%c0_112, %c0_113] : memref<80x3200xf32, #tpu.memory_space<vmem>>, vector<80x3200xf32>
    %cst_114 = arith.constant dense<0.000000e+00> : vector<8x3200xf32>
    %89 = tpu.matmul %87, %88, %cst_114 {dimension_numbers = #tpu.dot_dimension_numbers<[1], [0], [0], [1], [0, 0, 1, 1], [], []>} : vector<8x80xf32>, vector<80x3200xf32>, vector<8x3200xf32> -> vector<8x3200xf32>
    %c0_115 = arith.constant 0 : index
    %c0_116 = arith.constant 0 : index
    %c0_117 = arith.constant 0 : index
    %90 = vector.load %arg5[%c0_115, %c0_116, %c0_117] : memref<1x8x3200xf32, #tpu.memory_space<vmem>>, vector<1x8x3200xf32>
    %91 = vector.shape_cast %90 : vector<1x8x3200xf32> to vector<8x3200xf32>
    %92 = vector.shape_cast %89 : vector<8x3200xf32> to vector<1x8x3200xf32>
    tpu.vector_store %arg5[%c0_115, %c0_116, %c0_117], %92 {strides = array<i32>} : memref<1x8x3200xf32, #tpu.memory_space<vmem>>, vector<1x8x3200xf32>,
    return
  }
  func.func @transform_0(%arg0: i32) -> (i32, i32) {
    %c0_i32 = arith.constant 0 : i32
    %c0_i32_0 = arith.constant 0 : i32
    %c0_i32_1 = arith.constant 0 : i32
    return %c0_i32, %c0_i32_0 : i32, i32
  }
  func.func @transform_1(%arg0: i32) -> (i32, i32, i32) {
    %c0_i32 = arith.constant 0 : i32
    %c0_i32_0 = arith.constant 0 : i32
    %c0_i32_1 = arith.constant 0 : i32
    return %arg0, %c0_i32, %c0_i32_0 : i32, i32, i32
  }
  func.func @transform_2(%arg0: i32) -> (i32, i32) {
    %c0_i32 = arith.constant 0 : i32
    %c0_i32_0 = arith.constant 0 : i32
    %c0_i32_1 = arith.constant 0 : i32
    return %c0_i32, %c0_i32_0 : i32, i32
  }
  func.func @transform_3(%arg0: i32) -> (i32, i32) {
    %c0_i32 = arith.constant 0 : i32
    %c0_i32_0 = arith.constant 0 : i32
    %c0_i32_1 = arith.constant 0 : i32
    return %c0_i32, %c0_i32_0 : i32, i32
  }
  func.func @transform_4(%arg0: i32) -> (i32, i32, i32) {
    %c0_i32 = arith.constant 0 : i32
    %c0_i32_0 = arith.constant 0 : i32
    %c0_i32_1 = arith.constant 0 : i32
    return %arg0, %c0_i32, %c0_i32_0 : i32, i32, i32
  }
}

</mosaic_0001>

<bundles_post_ra>
// kernel: model_forward.1
= control target key start
LH: loop header
LB: loop body
LE: loop exit
PB: predicated region body
PF: predicated region fallthrough
CT: control target
= control target key end

     0   :  { %9 = vsyncpa [#allocation5], 0  ;;  %s7736_s18 = smov [#allocation4]   ;;  %s7737_s20 = smov 3200   ;;  %s10795_s0 = inlined_call_operand.hbm [shape: f32[72,3200], index: 0, kind: input, shape index: {}]   ;;  %s10796_s1 = inlined_call_operand.vmem [shape: f32[1,8,3200], index: 1, kind: input, shape index: {}]   ;;  %s10797_s2 = inlined_call_operand.vmem [shape: f32[8,80], index: 2, kind: input, shape index: {}]   ;;  %s10798_s3 = inlined_call_operand.vmem [shape: f32[8,80], index: 3, kind: input, shape index: {}]   ;;  %s10799_s4 = inlined_call_operand.vmem [shape: f32[1,8,3200], index: 4, kind: output, shape index: {}]  }
   0x1   :  { %s14_s17 = sshll.u32 %s10795_s0, 4  ;;  %s16_s19 = sshll.u32 %s7736_s18, 4  ;;  %s15_s17 = int_to_ptr.hbm [resolvable:$true] %s14_s17  ;;  %s17_s19 = int_to_ptr.vmem [resolvable:$true] %s16_s19 }
   0x2   :  { %s7738_s21 = smov 200  }
   0x3   :  { %22 = dma.hbm_to_vmem [thread:$0]  %s15_s17, 28800, %s17_s19, [#allocation5], %s7737_s20, %s7737_s20, %s7738_s21  }
   0x4   :  { %7734 = dma.done.wait [#allocation5], 28800  }
   0x5   :  { %7735 = vsyncadd [#allocation5], 4294938496  ;;  %v154_v0 = vld [vmem:[#allocation4 + $0x10] sm:$0xff]  ;;  %v152_v1 = vld [vmem:[#allocation4] sm:$0xff]  ;;  %s7739_s22 = smov 117   ;;  %s7740_s0 = smov 11  }
   0x6   :  { %206 = vrot.lane.b32.xlu1 %v154_v0, %s7739_s22  ;;  %202 = vrot.lane.b32.xlu0 %v152_v1, %s7739_s22  ;;  %v156_v2 = vld [vmem:[#allocation4 + $0x20] sm:$0xff]  ;;  %v155_v3 = vld [vmem:[#allocation4 + $0x18] sm:$0xff]  ;;  %v153_v4 = vld [vmem:[#allocation4 + $0x8] sm:$0xff]  ;;  %vm252_vm0 = vcmask 957440   ;;  %s7741_s23 = smov 118   ;;  %vm407_vm1 = vcmask 89088  }
   0x7   :  { %210 = vrot.lane.b32.xlu2 %v156_v2, %s7739_s22  ;;  %v157_v5 = vld [vmem:[#allocation4 + $0x28] sm:$0xff]  ;;  %v158_v6 = vld [vmem:[#allocation4 + $0x30] sm:$0xff]  ;;  %v159_v7 = vld [vmem:[#allocation4 + $0x38] sm:$0xff]  ;;  %vm609_vm2 = vcmask 965632   ;;  %s7742_s24 = smov 10   ;;  %s7743_s25 = smov 119  }
   0x8   :  { %v160_v8 = vld [vmem:[#allocation4 + $0x40] sm:$0xff]  ;;  %v161_v9 = vld [vmem:[#allocation4 + $0x48] sm:$0xff]  ;;  %v162_v10 = vld [vmem:[#allocation4 + $0x50] sm:$0xff]  ;;  %vm764_vm3 = vcmask 80896   ;;  %s7744_s26 = smov 9   ;;  %vm966_vm4 = vcmask 973824  }
   0x9   :  { %v163_v11 = vld [vmem:[#allocation4 + $0x58] sm:$0xff]  ;;  %v164_v12 = vld [vmem:[#allocation4 + $0x60] sm:$0xff]  ;;  %v165_v13 = vld [vmem:[#allocation4 + $0x68] sm:$0xff]  ;;  %s7745_s27 = smov 127   ;;  %vm1121_vm5 = vcmask 72704   ;;  %vm1323_vm6 = vcmask 1039360  }
   0xa   :  { %v166_v14 = vld [vmem:[#allocation4 + $0x70] sm:$0xff]  ;;  %v167_v15 = vld [vmem:[#allocation4 + $0x78] sm:$0xff]  ;;  %v168_v16 = vld [vmem:[#allocation4 + $0x80] sm:$0xff]  ;;  %s7746_s6 = smov 1   ;;  %vm1478_vm7 = vcmask 7168   ;;  %vm3325_vm8 = vcmask 654336  }
   0xb   :  { %v169_v17 = vld [vmem:[#allocation4 + $0x88] sm:$0xff]  ;;  %v170_v18 = vld [vmem:[#allocation4 + $0x90] sm:$0xff]  ;;  %v171_v19 = vld [vmem:[#allocation4 + $0x98] sm:$0xff] }
   0xc   :  { %v172_v20 = vld [vmem:[#allocation4 + $0xa0] sm:$0xff]  ;;  %v173_v21 = vld [vmem:[#allocation4 + $0xa8] sm:$0xff]  ;;  %v174_v22 = vld [vmem:[#allocation4 + $0xb0] sm:$0xff] }
   0xd   :  { %v175_v23 = vld [vmem:[#allocation4 + $0xb8] sm:$0xff]  ;;  %v176_v24 = vld [vmem:[#allocation4 + $0xc0] sm:$0xff]  ;;  %v7816_v32 = vld [vmem:[%s10796_s1] sm:$0xff] }
   0xe   :  { %208 = vrot.lane.b32.xlu1 %v155_v3, %s7739_s22  ;;  %204 = vrot.lane.b32.xlu0 %v153_v4, %s7739_s22  ;;  %v7806_v30 = vld [vmem:[%s10796_s1 + $0x10] sm:$0xff]  ;;  %v7811_v31 = vld [vmem:[%s10796_s1 + $0x8] sm:$0xff] }
   0xf   :  { %212 = vrot.lane.b32.xlu2 %v157_v5, %s7739_s22  ;;  %v7831_v43 = vld [vmem:[%s10796_s1 + $0x28] sm:$0xff]  ;;  %v7836_v44 = vld [vmem:[%s10796_s1 + $0x20] sm:$0xff]  ;;  %v7842_v47 = vld [vmem:[%s10796_s1 + $0x18] sm:$0xff] }
  0x10   :  { %v7855_v55 = vld [vmem:[%s10796_s1 + $0x38] sm:$0xff]  ;;  %v7861_v57 = vld [vmem:[%s10796_s1 + $0x30] sm:$0xff]  ;;  %v7866_v58 = vld [vmem:[%s10796_s1 + $0x40] sm:$0xff] }
  0x11   :  { %v7879_v3 = vld [vmem:[%s10796_s1 + $0x50] sm:$0xff]  ;;  %v7885_v5 = vld [vmem:[%s10796_s1 + $0x48] sm:$0xff] }
  0x16   :  { %214 = vrot.lane.b32.xlu0 %v158_v6, %s7739_s22  ;;  %216 = vrot.lane.b32.xlu1 %v159_v7, %s7739_s22  ;;  %v7890_v6 = vld [vmem:[%s10796_s1 + $0x58] sm:$0xff] }
  0x17   :  { %218 = vrot.lane.b32.xlu2 %v160_v8, %s7739_s22 }
  0x1e   :  { %220 = vrot.lane.b32.xlu0 %v161_v9, %s7739_s22  ;;  %222 = vrot.lane.b32.xlu1 %v162_v10, %s7739_s22 }
  0x1f   :  { %224 = vrot.lane.b32.xlu2 %v163_v11, %s7739_s22 }
  0x26   :  { %226 = vrot.lane.b32.xlu0 %v164_v12, %s7739_s22  ;;  %228 = vrot.lane.b32.xlu1 %v165_v13, %s7739_s22 }
  0x27   :  { %230 = vrot.lane.b32.xlu2 %v166_v14, %s7739_s22  ;;  %v7903_v14 = vld [vmem:[%s10796_s1 + $0x68] sm:$0xff] }
  0x2e   :  { %232 = vrot.lane.b32.xlu0 %v167_v15, %s7739_s22  ;;  %234 = vrot.lane.b32.xlu1 %v168_v16, %s7739_s22 }
  0x2f   :  { %236 = vrot.lane.b32.xlu2 %v169_v17, %s7739_s22  ;;  %v7909_v17 = vld [vmem:[%s10796_s1 + $0x60] sm:$0xff] }
  0x36   :  { %238 = vrot.lane.b32.xlu0 %v170_v18, %s7739_s22  ;;  %240 = vrot.lane.b32.xlu1 %v171_v19, %s7739_s22  ;;  %v7914_v18 = vld [vmem:[%s10796_s1 + $0x70] sm:$0xff] }
  0x37   :  { %242 = vrot.lane.b32.xlu2 %v172_v20, %s7739_s22 }
  0x3e   :  { %244 = vrot.lane.b32.xlu0 %v173_v21, %s7739_s22  ;;  %246 = vrot.lane.b32.xlu1 %v174_v22, %s7739_s22 }
  0x3f   :  { %248 = vrot.lane.b32.xlu2 %v175_v23, %s7739_s22 }
  0x46   :  { %250 = vrot.lane.b32.xlu0 %v176_v24, %s7739_s22 }
  0x61   :  { %v211_v25 = vpop.permute.xlu2 %210 }
  0x69   :  { %v213_v26 = vpop.permute.xlu2 %212 }
  0x6a   :  { %v257_v42 = vsel %vm252_vm0, %v211_v25, %v213_v26 }
  0x6b   :  { %v308_v52 = vmul.f32 %v257_v42, %v7836_v44 }
  0x71   :  { %v219_v33 = vpop.permute.xlu2 %218 }
  0x78   :  { %v207_v27 = vpop.permute.xlu1 %206  ;;  %v203_v28 = vpop.permute.xlu0 %202 }
  0x79   :  { %v303_v29 = vmul.f32 0.0, %v203_v28  ;;  %v225_v50 = vpop.permute.xlu2 %224 }
  0x7b   :  { %355 = vrot.lane.b32.xlu1 %v303_v29, %s7740_s0  ;;  %v7938_v29 = vld [vmem:[%s10796_s1 + $0x88] sm:$0xff] }
  0x80   :  { %v209_v34 = vpop.permute.xlu1 %208  ;;  %v205_v35 = vpop.permute.xlu0 %204 }
  0x81   :  { %v255_v36 = vsel %vm252_vm0, %v207_v27, %v209_v34  ;;  %v253_v37 = vsel %vm252_vm0, %v203_v28, %v205_v35  ;;  %v254_v38 = vsel %vm252_vm0, %v205_v35, %v207_v27  ;;  %v256_v45 = vsel %vm252_vm0, %v209_v34, %v211_v25  ;;  %v231_v1 = vpop.permute.xlu2 %230  ;;  %v7933_v28 = vld [vmem:[%s10796_s1 + $0x78] sm:$0xff] }
  0x82   :  { %v306_v39 = vmul.f32 %v255_v36, %v7806_v30  ;;  %v305_v40 = vmul.f32 %v254_v38, %v7811_v31  ;;  %v304_v41 = vmul.f32 %v253_v37, %v7816_v32  ;;  %v307_v53 = vmul.f32 %v256_v45, %v7842_v47  ;;  %v7957_v45 = vld [vmem:[%s10796_s1 + $0x90] sm:$0xff] }
  0x84   :  { %361 = vrot.lane.b32.xlu1 %v306_v39, %s7740_s0  ;;  %359 = vrot.lane.b32.xlu0 %v305_v40, %s7740_s0 }
  0x85   :  { %357 = vrot.lane.b32.xlu2 %v304_v41, %s7740_s0  ;;  %v7951_v41 = vld [vmem:[%s10796_s1 + $0x98] sm:$0xff] }
  0x88   :  { %v215_v46 = vpop.permute.xlu0 %214  ;;  %v217_v48 = vpop.permute.xlu1 %216 }
  0x89   :  { %v258_v49 = vsel %vm252_vm0, %v213_v26, %v215_v46  ;;  %v260_v54 = vsel %vm252_vm0, %v217_v48, %v219_v33  ;;  %v259_v56 = vsel %vm252_vm0, %v215_v46, %v217_v48  ;;  %v237_v15 = vpop.permute.xlu2 %236  ;;  %v7927_v26 = vld [vmem:[%s10796_s1 + $0x80] sm:$0xff] }
  0x8a   :  { %v309_v51 = vmul.f32 %v258_v49, %v7831_v43  ;;  %v311_v60 = vmul.f32 %v260_v54, %v7855_v55  ;;  %v310_v63 = vmul.f32 %v259_v56, %v7861_v57  ;;  %v7962_v46 = vld [vmem:[%s10796_s1 + $0xa0] sm:$0xff] }
  0x8c   :  { %367 = vrot.lane.b32.xlu1 %v309_v51, %s7740_s0  ;;  %365 = vrot.lane.b32.xlu0 %v308_v52, %s7740_s0 }
  0x8d   :  { %363 = vrot.lane.b32.xlu2 %v307_v53, %s7740_s0 }
  0x90   :  { %v221_v59 = vpop.permute.xlu0 %220  ;;  %v223_v61 = vpop.permute.xlu1 %222 }
  0x91   :  { %v261_v62 = vsel %vm252_vm0, %v219_v33, %v221_v59  ;;  %v263_v2 = vsel %vm252_vm0, %v223_v61, %v225_v50  ;;  %v262_v4 = vsel %vm252_vm0, %v221_v59, %v223_v61  ;;  %v243_v33 = vpop.permute.xlu2 %242  ;;  %v7975_v59 = vld [vmem:[%s10796_s1 + $0xb0] sm:$0xff]  ;;  %v7981_v61 = vld [vmem:[%s10796_s1 + $0xa8] sm:$0xff] }
  0x92   :  { %v312_v0 = vmul.f32 %v261_v62, %v7866_v58  ;;  %v314_v8 = vmul.f32 %v263_v2, %v7879_v3  ;;  %v313_v11 = vmul.f32 %v262_v4, %v7885_v5  ;;  %v7986_v62 = vld [vmem:[%s10796_s1 + $0xb8] sm:$0xff] }
  0x94   :  { %373 = vrot.lane.b32.xlu1 %v312_v0, %s7740_s0  ;;  %371 = vrot.lane.b32.xlu0 %v311_v60, %s7740_s0 }
  0x95   :  { %369 = vrot.lane.b32.xlu2 %v310_v63, %s7740_s0 }
  0x98   :  { %v227_v7 = vpop.permute.xlu0 %226  ;;  %v229_v9 = vpop.permute.xlu1 %228 }
  0x99   :  { %v264_v10 = vsel %vm252_vm0, %v225_v50, %v227_v7  ;;  %v266_v13 = vsel %vm252_vm0, %v229_v9, %v231_v1  ;;  %v265_v16 = vsel %vm252_vm0, %v227_v7, %v229_v9  ;;  %v249_v53 = vpop.permute.xlu2 %248  ;;  %v7998_v7 = vld [vmem:[%s10796_s1 + $0xc0] sm:$0xff] }
  0x9a   :  { %v315_v12 = vmul.f32 %v264_v10, %v7890_v6  ;;  %v317_v20 = vmul.f32 %v266_v13, %v7903_v14  ;;  %v316_v23 = vmul.f32 %v265_v16, %v7909_v17  ;;  %v510_v9 = vld [vmem:[#allocation4 + $0xd0] sm:$0xff]  ;;  %v509_v10 = vld [vmem:[#allocation4 + $0xc8] sm:$0xff]  ;;  %v511_v13 = vld [vmem:[#allocation4 + $0xd8] sm:$0xff] }
  0x9b   :  { %v515_v16 = vld [vmem:[#allocation4 + $0xf8] sm:$0xff] }
  0x9c   :  { %379 = vrot.lane.b32.xlu1 %v315_v12, %s7740_s0  ;;  %377 = vrot.lane.b32.xlu0 %v314_v8, %s7740_s0  ;;  %v512_v12 = vld [vmem:[#allocation4 + $0xe0] sm:$0xff] }
  0x9d   :  { %375 = vrot.lane.b32.xlu2 %v313_v11, %s7740_s0  ;;  %v513_v11 = vld [vmem:[#allocation4 + $0xe8] sm:$0xff] }
  0xa0   :  { %v233_v19 = vpop.permute.xlu0 %232  ;;  %v235_v21 = vpop.permute.xlu1 %234 }
  0xa1   :  { %v267_v22 = vsel %vm252_vm0, %v231_v1, %v233_v19  ;;  %v269_v25 = vsel %vm252_vm0, %v235_v21, %v237_v15  ;;  %v268_v27 = vsel %vm252_vm0, %v233_v19, %v235_v21  ;;  %v514_v19 = vld [vmem:[#allocation4 + $0xf0] sm:$0xff] }
  0xa2   :  { %v318_v24 = vmul.f32 %v267_v22, %v7914_v18  ;;  %v320_v35 = vmul.f32 %v269_v25, %v7927_v26  ;;  %v319_v38 = vmul.f32 %v268_v27, %v7933_v28  ;;  %v518_v21 = vld [vmem:[#allocation4 + $0x110] sm:$0xff]  ;;  %v517_v22 = vld [vmem:[#allocation4 + $0x108] sm:$0xff]  ;;  %v520_v27 = vld [vmem:[#allocation4 + $0x120] sm:$0xff] }
  0xa3   :  { %v521_v25 = vld [vmem:[#allocation4 + $0x128] sm:$0xff] }
  0xa4   :  { %385 = vrot.lane.b32.xlu1 %v318_v24, %s7740_s0  ;;  %383 = vrot.lane.b32.xlu0 %v317_v20, %s7740_s0  ;;  %v519_v20 = vld [vmem:[#allocation4 + $0x118] sm:$0xff]  ;;  %v522_v24 = vld [vmem:[#allocation4 + $0x130] sm:$0xff] }
  0xa5   :  { %381 = vrot.lane.b32.xlu2 %v316_v23, %s7740_s0 }
  0xa8   :  { %v239_v34 = vpop.permute.xlu0 %238  ;;  %v241_v36 = vpop.permute.xlu1 %240 }
  0xa9   :  { %v270_v37 = vsel %vm252_vm0, %v237_v15, %v239_v34  ;;  %v272_v40 = vsel %vm252_vm0, %v241_v36, %v243_v33  ;;  %v271_v42 = vsel %vm252_vm0, %v239_v34, %v241_v36  ;;  %v516_v15 = vld [vmem:[#allocation4 + $0x100] sm:$0xff]  ;;  %v525_v34 = vld [vmem:[#allocation4 + $0x148] sm:$0xff]  ;;  %v523_v36 = vld [vmem:[#allocation4 + $0x138] sm:$0xff] }
  0xaa   :  { %v321_v39 = vmul.f32 %v270_v37, %v7938_v29  ;;  %v323_v49 = vmul.f32 %v272_v40, %v7951_v41  ;;  %v322_v51 = vmul.f32 %v271_v42, %v7957_v45  ;;  %v528_v40 = vld [vmem:[#allocation4 + $0x160] sm:$0xff]  ;;  %v527_v42 = vld [vmem:[#allocation4 + $0x158] sm:$0xff] }
  0xac   :  { %391 = vrot.lane.b32.xlu1 %v321_v39, %s7740_s0  ;;  %389 = vrot.lane.b32.xlu0 %v320_v35, %s7740_s0  ;;  %v524_v35 = vld [vmem:[#allocation4 + $0x140] sm:$0xff] }
  0xad   :  { %387 = vrot.lane.b32.xlu2 %v319_v38, %s7740_s0 }
  0xb0   :  { %v245_v48 = vpop.permute.xlu0 %244  ;;  %v247_v54 = vpop.permute.xlu1 %246 }
  0xb1   :  { %v273_v50 = vsel %vm252_vm0, %v243_v33, %v245_v48  ;;  %v275_v56 = vsel %vm252_vm0, %v247_v54, %v249_v53  ;;  %v274_v60 = vsel %vm252_vm0, %v245_v48, %v247_v54  ;;  %v526_v48 = vld [vmem:[#allocation4 + $0x150] sm:$0xff] }
  0xb2   :  { %v324_v52 = vmul.f32 %v273_v50, %v7962_v46  ;;  %v326_v0 = vmul.f32 %v275_v56, %v7975_v59  ;;  %v325_v2 = vmul.f32 %v274_v60, %v7981_v61  ;;  %v531_v56 = vld [vmem:[#allocation4 + $0x178] sm:$0xff]  ;;  %v530_v60 = vld [vmem:[#allocation4 + $0x170] sm:$0xff] }
  0xb4   :  { %397 = vrot.lane.b32.xlu1 %v324_v52, %s7740_s0  ;;  %395 = vrot.lane.b32.xlu0 %v323_v49, %s7740_s0 }
  0xb5   :  { %393 = vrot.lane.b32.xlu2 %v322_v51, %s7740_s0 }
  0xb8   :  { %v251_v63 = vpop.permute.xlu0 %250 }
  0xb9   :  { %v276_v1 = vsel %vm252_vm0, %v249_v53, %v251_v63  ;;  %v328_v8 = vmul.f32 %v251_v63, %v7998_v7  ;;  %v529_v63 = vld [vmem:[#allocation4 + $0x168] sm:$0xff] }
  0xba   :  { %v327_v4 = vmul.f32 %v276_v1, %v7986_v62 }
  0xbc   :  { %403 = vrot.lane.b32.xlu1 %v327_v4, %s7740_s0  ;;  %401 = vrot.lane.b32.xlu0 %v326_v0, %s7740_s0 }
  0xbd   :  { %399 = vrot.lane.b32.xlu2 %v325_v2, %s7740_s0 }
  0xc4   :  { %561 = vrot.lane.b32.xlu1 %v510_v9, %s7741_s23  ;;  %559 = vrot.lane.b32.xlu0 %v509_v10, %s7741_s23  ;;  %v533_v10 = vld [vmem:[#allocation4 + $0x188] sm:$0xff] }
  0xc5   :  { %405 = vrot.lane.b32.xlu2 %v328_v8, %s7740_s0 }
  0xcc   :  { %567 = vrot.lane.b32.xlu1 %v513_v11, %s7741_s23  ;;  %565 = vrot.lane.b32.xlu0 %v512_v12, %s7741_s23  ;;  %v532_v11 = vld [vmem:[#allocation4 + $0x180] sm:$0xff] }
  0xcd   :  { %563 = vrot.lane.b32.xlu2 %v511_v13, %s7741_s23 }
  0xd4   :  { %573 = vrot.lane.b32.xlu1 %v516_v15, %s7741_s23  ;;  %571 = vrot.lane.b32.xlu0 %v515_v16, %s7741_s23 }
  0xd5   :  { %569 = vrot.lane.b32.xlu2 %v514_v19, %s7741_s23 }
  0xdc   :  { %579 = vrot.lane.b32.xlu1 %v519_v20, %s7741_s23  ;;  %577 = vrot.lane.b32.xlu0 %v518_v21, %s7741_s23 }
  0xdd   :  { %575 = vrot.lane.b32.xlu2 %v517_v22, %s7741_s23 }
  0xdf   :  { %v358_v23 = vpop.permute.xlu2 %357 }
  0xe4   :  { %585 = vrot.lane.b32.xlu1 %v522_v24, %s7741_s23  ;;  %583 = vrot.lane.b32.xlu0 %v521_v25, %s7741_s23 }
  0xe5   :  { %581 = vrot.lane.b32.xlu2 %v520_v27, %s7741_s23 }
  0xe7   :  { %v364_v33 = vpop.permute.xlu2 %363 }
  0xec   :  { %591 = vrot.lane.b32.xlu1 %v525_v34, %s7741_s23  ;;  %589 = vrot.lane.b32.xlu0 %v524_v35, %s7741_s23 }
  0xed   :  { %v356_v37 = vpop.permute.xlu1 %355  ;;  %587 = vrot.lane.b32.xlu2 %v523_v36, %s7741_s23 }
  0xee   :  { %v408_v38 = vsel %vm407_vm1, %v356_v37, %v358_v23 }
  0xef   :  { %458 = vst [vmem:[#allocation3] sm:$0xff] %v408_v38  ;;  %v370_v39 = vpop.permute.xlu2 %369 }
  0xf4   :  { %597 = vrot.lane.b32.xlu1 %v528_v40, %s7741_s23  ;;  %595 = vrot.lane.b32.xlu0 %v527_v42, %s7741_s23 }
  0xf5   :  { %593 = vrot.lane.b32.xlu2 %v526_v48, %s7741_s23 }
  0xf6   :  { %v362_v49 = vpop.permute.xlu1 %361  ;;  %v360_v50 = vpop.permute.xlu0 %359 }
  0xf7   :  { %v411_v51 = vsel %vm407_vm1, %v362_v49, %v364_v33  ;;  %v409_v52 = vsel %vm407_vm1, %v358_v23, %v360_v50  ;;  %v410_v53 = vsel %vm407_vm1, %v360_v50, %v362_v49  ;;  %v376_v54 = vpop.permute.xlu2 %375 }
  0xf8   :  { %461 = vst [vmem:[#allocation3 + $0x18] sm:$0xff] %v411_v51 }
  0xf9   :  { %459 = vst [vmem:[#allocation3 + $0x8] sm:$0xff] %v409_v52 }
  0xfa   :  { %460 = vst [vmem:[#allocation3 + $0x10] sm:$0xff] %v410_v53 }
  0xfc   :  { %603 = vrot.lane.b32.xlu1 %v531_v56, %s7741_s23  ;;  %601 = vrot.lane.b32.xlu0 %v530_v60, %s7741_s23 }
  0xfd   :  { %599 = vrot.lane.b32.xlu2 %v529_v63, %s7741_s23 }
  0xfe   :  { %v368_v0 = vpop.permute.xlu1 %367  ;;  %v366_v1 = vpop.permute.xlu0 %365 }
  0xff   :  { %v414_v2 = vsel %vm407_vm1, %v368_v0, %v370_v39  ;;  %v412_v4 = vsel %vm407_vm1, %v364_v33, %v366_v1  ;;  %v413_v8 = vsel %vm407_vm1, %v366_v1, %v368_v0  ;;  %v382_v9 = vpop.permute.xlu2 %381 }
 0x100   :  { %464 = vst [vmem:[#allocation3 + $0x30] sm:$0xff] %v414_v2 }
 0x101   :  { %462 = vst [vmem:[#allocation3 + $0x20] sm:$0xff] %v412_v4 }
 0x102   :  { %463 = vst [vmem:[#allocation3 + $0x28] sm:$0xff] %v413_v8 }
 0x104   :  { %607 = vrot.lane.b32.xlu0 %v533_v10, %s7741_s23 }
 0x105   :  { %605 = vrot.lane.b32.xlu2 %v532_v11, %s7741_s23 }
 0x106   :  { %v374_v12 = vpop.permute.xlu1 %373  ;;  %v372_v13 = vpop.permute.xlu0 %371 }
 0x107   :  { %v417_v15 = vsel %vm407_vm1, %v374_v12, %v376_v54  ;;  %v415_v16 = vsel %vm407_vm1, %v370_v39, %v372_v13  ;;  %v416_v19 = vsel %vm407_vm1, %v372_v13, %v374_v12  ;;  %v388_v20 = vpop.permute.xlu2 %387 }
 0x108   :  { %467 = vst [vmem:[#allocation3 + $0x48] sm:$0xff] %v417_v15 }
 0x109   :  { %465 = vst [vmem:[#allocation3 + $0x38] sm:$0xff] %v415_v16 }
 0x10a   :  { %466 = vst [vmem:[#allocation3 + $0x40] sm:$0xff] %v416_v19 }
 0x10e   :  { %v380_v21 = vpop.permute.xlu1 %379  ;;  %v378_v22 = vpop.permute.xlu0 %377 }
 0x10f   :  { %v420_v23 = vsel %vm407_vm1, %v380_v21, %v382_v9  ;;  %v418_v24 = vsel %vm407_vm1, %v376_v54, %v378_v22  ;;  %v419_v25 = vsel %vm407_vm1, %v378_v22, %v380_v21  ;;  %v394_v27 = vpop.permute.xlu2 %393 }
 0x110   :  { %470 = vst [vmem:[#allocation3 + $0x60] sm:$0xff] %v420_v23 }
 0x111   :  { %468 = vst [vmem:[#allocation3 + $0x50] sm:$0xff] %v418_v24 }
 0x112   :  { %469 = vst [vmem:[#allocation3 + $0x58] sm:$0xff] %v419_v25 }
 0x116   :  { %v386_v33 = vpop.permute.xlu1 %385  ;;  %v384_v34 = vpop.permute.xlu0 %383 }
 0x117   :  { %v423_v35 = vsel %vm407_vm1, %v386_v33, %v388_v20  ;;  %v421_v36 = vsel %vm407_vm1, %v382_v9, %v384_v34  ;;  %v422_v37 = vsel %vm407_vm1, %v384_v34, %v386_v33  ;;  %v400_v38 = vpop.permute.xlu2 %399 }
 0x118   :  { %473 = vst [vmem:[#allocation3 + $0x78] sm:$0xff] %v423_v35 }
 0x119   :  { %471 = vst [vmem:[#allocation3 + $0x68] sm:$0xff] %v421_v36 }
 0x11a   :  { %472 = vst [vmem:[#allocation3 + $0x70] sm:$0xff] %v422_v37 }
 0x11e   :  { %v392_v39 = vpop.permute.xlu1 %391  ;;  %v390_v40 = vpop.permute.xlu0 %389 }
 0x11f   :  { %v426_v42 = vsel %vm407_vm1, %v392_v39, %v394_v27  ;;  %v424_v48 = vsel %vm407_vm1, %v388_v20, %v390_v40  ;;  %v425_v49 = vsel %vm407_vm1, %v390_v40, %v392_v39  ;;  %v406_v50 = vpop.permute.xlu2 %405 }
 0x120   :  { %476 = vst [vmem:[#allocation3 + $0x90] sm:$0xff] %v426_v42 }
 0x121   :  { %474 = vst [vmem:[#allocation3 + $0x80] sm:$0xff] %v424_v48 }
 0x122   :  { %475 = vst [vmem:[#allocation3 + $0x88] sm:$0xff] %v425_v49 }
 0x126   :  { %v398_v51 = vpop.permute.xlu1 %397  ;;  %v396_v52 = vpop.permute.xlu0 %395 }
 0x127   :  { %v429_v53 = vsel %vm407_vm1, %v398_v51, %v400_v38  ;;  %v427_v54 = vsel %vm407_vm1, %v394_v27, %v396_v52  ;;  %v428_v56 = vsel %vm407_vm1, %v396_v52, %v398_v51  ;;  %v564_v60 = vpop.permute.xlu2 %563 }
 0x128   :  { %479 = vst [vmem:[#allocation3 + $0xa8] sm:$0xff] %v429_v53 }
 0x129   :  { %477 = vst [vmem:[#allocation3 + $0x98] sm:$0xff] %v427_v54 }
 0x12a   :  { %478 = vst [vmem:[#allocation3 + $0xa0] sm:$0xff] %v428_v56 }
 0x12e   :  { %v404_v63 = vpop.permute.xlu1 %403  ;;  %v402_v0 = vpop.permute.xlu0 %401 }
 0x12f   :  { %v432_v1 = vsel %vm407_vm1, %v404_v63, %v406_v50  ;;  %v430_v2 = vsel %vm407_vm1, %v400_v38, %v402_v0  ;;  %v431_v4 = vsel %vm407_vm1, %v402_v0, %v404_v63  ;;  %v570_v8 = vpop.permute.xlu2 %569 }
 0x130   :  { %482 = vst [vmem:[#allocation3 + $0xc0] sm:$0xff] %v432_v1 }
 0x131   :  { %480 = vst [vmem:[#allocation3 + $0xb0] sm:$0xff] %v430_v2 }
 0x132   :  { %481 = vst [vmem:[#allocation3 + $0xb8] sm:$0xff] %v431_v4 }
 0x136   :  { %v562_v9 = vpop.permute.xlu1 %561  ;;  %v560_v10 = vpop.permute.xlu0 %559 }
 0x137   :  { %v610_v11 = vsel %vm609_vm2, %v560_v10, %v562_v9  ;;  %v660_v12 = vmul.f32 0.0, %v560_v10  ;;  %v611_v13 = vsel %vm609_vm2, %v562_v9, %v564_v60  ;;  %v576_v19 = vpop.permute.xlu2 %575 }
 0x138   :  { %v661_v15 = vmul.f32 %v610_v11, %v7816_v32  ;;  %v662_v16 = vmul.f32 %v611_v13, %v7811_v31 }
 0x139   :  { %712 = vrot.lane.b32.xlu1 %v660_v12, %s7742_s24 }
 0x13a   :  { %714 = vrot.lane.b32.xlu2 %v661_v15, %s7742_s24  ;;  %716 = vrot.lane.b32.xlu0 %v662_v16, %s7742_s24 }
 0x13e   :  { %v568_v20 = vpop.permute.xlu1 %567  ;;  %v566_v21 = vpop.permute.xlu0 %565 }
 0x13f   :  { %v612_v22 = vsel %vm609_vm2, %v564_v60, %v566_v21  ;;  %v613_v23 = vsel %vm609_vm2, %v566_v21, %v568_v20  ;;  %v614_v24 = vsel %vm609_vm2, %v568_v20, %v570_v8  ;;  %v582_v34 = vpop.permute.xlu2 %581 }
 0x140   :  { %v664_v25 = vmul.f32 %v613_v23, %v7842_v47  ;;  %v663_v27 = vmul.f32 %v612_v22, %v7806_v30  ;;  %v665_v33 = vmul.f32 %v614_v24, %v7836_v44 }
 0x142   :  { %720 = vrot.lane.b32.xlu2 %v664_v25, %s7742_s24  ;;  %718 = vrot.lane.b32.xlu1 %v663_v27, %s7742_s24 }
 0x143   :  { %722 = vrot.lane.b32.xlu0 %v665_v33, %s7742_s24 }
 0x146   :  { %v574_v35 = vpop.permute.xlu1 %573  ;;  %v572_v36 = vpop.permute.xlu0 %571 }
 0x147   :  { %v615_v37 = vsel %vm609_vm2, %v570_v8, %v572_v36  ;;  %v616_v38 = vsel %vm609_vm2, %v572_v36, %v574_v35  ;;  %v617_v39 = vsel %vm609_vm2, %v574_v35, %v576_v19  ;;  %v588_v49 = vpop.permute.xlu2 %587 }
 0x148   :  { %v667_v40 = vmul.f32 %v616_v38, %v7861_v57  ;;  %v666_v42 = vmul.f32 %v615_v37, %v7831_v43  ;;  %v668_v48 = vmul.f32 %v617_v39, %v7855_v55 }
 0x14a   :  { %726 = vrot.lane.b32.xlu2 %v667_v40, %s7742_s24  ;;  %724 = vrot.lane.b32.xlu1 %v666_v42, %s7742_s24 }
 0x14b   :  { %728 = vrot.lane.b32.xlu0 %v668_v48, %s7742_s24 }
 0x14e   :  { %v580_v50 = vpop.permute.xlu1 %579  ;;  %v578_v51 = vpop.permute.xlu0 %577 }
 0x14f   :  { %v618_v52 = vsel %vm609_vm2, %v576_v19, %v578_v51  ;;  %v619_v53 = vsel %vm609_vm2, %v578_v51, %v580_v50  ;;  %v620_v54 = vsel %vm609_vm2, %v580_v50, %v582_v34  ;;  %v594_v12 = vpop.permute.xlu2 %593 }
 0x150   :  { %v670_v56 = vmul.f32 %v619_v53, %v7885_v5  ;;  %v669_v60 = vmul.f32 %v618_v52, %v7866_v58  ;;  %v671_v63 = vmul.f32 %v620_v54, %v7879_v3 }
 0x152   :  { %732 = vrot.lane.b32.xlu2 %v670_v56, %s7742_s24  ;;  %730 = vrot.lane.b32.xlu1 %v669_v60, %s7742_s24 }
 0x153   :  { %734 = vrot.lane.b32.xlu0 %v671_v63, %s7742_s24 }
 0x156   :  { %v586_v0 = vpop.permute.xlu1 %585  ;;  %v584_v1 = vpop.permute.xlu0 %583 }
 0x157   :  { %v621_v2 = vsel %vm609_vm2, %v582_v34, %v584_v1  ;;  %v622_v4 = vsel %vm609_vm2, %v584_v1, %v586_v0  ;;  %v623_v8 = vsel %vm609_vm2, %v586_v0, %v588_v49  ;;  %v600_v24 = vpop.permute.xlu2 %599  ;;  %v866_v0 = vld [vmem:[#allocation4 + $0x190] sm:$0xff]  ;;  %v867_v1 = vld [vmem:[#allocation4 + $0x198] sm:$0xff] }
 0x158   :  { %v673_v9 = vmul.f32 %v622_v4, %v7909_v17  ;;  %v672_v10 = vmul.f32 %v621_v2, %v7890_v6  ;;  %v674_v11 = vmul.f32 %v623_v8, %v7903_v14  ;;  %v868_v2 = vld [vmem:[#allocation4 + $0x1a0] sm:$0xff]  ;;  %v869_v4 = vld [vmem:[#allocation4 + $0x1a8] sm:$0xff]  ;;  %v870_v8 = vld [vmem:[#allocation4 + $0x1b0] sm:$0xff] }
 0x15a   :  { %738 = vrot.lane.b32.xlu2 %v673_v9, %s7742_s24  ;;  %736 = vrot.lane.b32.xlu1 %v672_v10, %s7742_s24  ;;  %v871_v9 = vld [vmem:[#allocation4 + $0x1b8] sm:$0xff]  ;;  %v872_v10 = vld [vmem:[#allocation4 + $0x1c0] sm:$0xff] }
 0x15b   :  { %740 = vrot.lane.b32.xlu0 %v674_v11, %s7742_s24  ;;  %v873_v11 = vld [vmem:[#allocation4 + $0x1c8] sm:$0xff] }
 0x15e   :  { %v592_v13 = vpop.permute.xlu1 %591  ;;  %v590_v15 = vpop.permute.xlu0 %589 }
 0x15f   :  { %v624_v16 = vsel %vm609_vm2, %v588_v49, %v590_v15  ;;  %v625_v19 = vsel %vm609_vm2, %v590_v15, %v592_v13  ;;  %v626_v20 = vsel %vm609_vm2, %v592_v13, %v594_v12  ;;  %v606_v39 = vpop.permute.xlu2 %605  ;;  %v875_v13 = vld [vmem:[#allocation4 + $0x1d8] sm:$0xff] }
 0x160   :  { %v676_v21 = vmul.f32 %v625_v19, %v7933_v28  ;;  %v675_v22 = vmul.f32 %v624_v16, %v7914_v18  ;;  %v677_v23 = vmul.f32 %v626_v20, %v7927_v26  ;;  %v876_v16 = vld [vmem:[#allocation4 + $0x1e0] sm:$0xff]  ;;  %v877_v19 = vld [vmem:[#allocation4 + $0x1e8] sm:$0xff]  ;;  %v878_v20 = vld [vmem:[#allocation4 + $0x1f0] sm:$0xff] }
 0x162   :  { %744 = vrot.lane.b32.xlu2 %v676_v21, %s7742_s24  ;;  %742 = vrot.lane.b32.xlu1 %v675_v22, %s7742_s24  ;;  %v879_v22 = vld [vmem:[#allocation4 + $0x1f8] sm:$0xff] }
 0x163   :  { %746 = vrot.lane.b32.xlu0 %v677_v23, %s7742_s24  ;;  %v880_v23 = vld [vmem:[#allocation4 + $0x200] sm:$0xff] }
 0x166   :  { %v598_v25 = vpop.permute.xlu1 %597  ;;  %v596_v27 = vpop.permute.xlu0 %595 }
 0x167   :  { %v627_v33 = vsel %vm609_vm2, %v594_v12, %v596_v27  ;;  %v628_v34 = vsel %vm609_vm2, %v596_v27, %v598_v25  ;;  %v629_v35 = vsel %vm609_vm2, %v598_v25, %v600_v24  ;;  %v874_v12 = vld [vmem:[#allocation4 + $0x1d0] sm:$0xff] }
 0x168   :  { %v679_v36 = vmul.f32 %v628_v34, %v7957_v45  ;;  %v678_v37 = vmul.f32 %v627_v33, %v7938_v29  ;;  %v680_v38 = vmul.f32 %v629_v35, %v7951_v41  ;;  %v882_v27 = vld [vmem:[#allocation4 + $0x210] sm:$0xff]  ;;  %v883_v33 = vld [vmem:[#allocation4 + $0x218] sm:$0xff]  ;;  %v884_v34 = vld [vmem:[#allocation4 + $0x220] sm:$0xff] }
 0x16a   :  { %750 = vrot.lane.b32.xlu2 %v679_v36, %s7742_s24  ;;  %748 = vrot.lane.b32.xlu1 %v678_v37, %s7742_s24 }
 0x16b   :  { %752 = vrot.lane.b32.xlu0 %v680_v38, %s7742_s24 }
 0x16e   :  { %v604_v40 = vpop.permute.xlu1 %603  ;;  %v602_v42 = vpop.permute.xlu0 %601 }
 0x16f   :  { %v630_v48 = vsel %vm609_vm2, %v600_v24, %v602_v42  ;;  %v631_v49 = vsel %vm609_vm2, %v602_v42, %v604_v40  ;;  %v632_v50 = vsel %vm609_vm2, %v604_v40, %v606_v39  ;;  %v881_v24 = vld [vmem:[#allocation4 + $0x208] sm:$0xff]  ;;  %v886_v42 = vld [vmem:[#allocation4 + $0x230] sm:$0xff] }
 0x170   :  { %v682_v51 = vmul.f32 %v631_v49, %v7981_v61  ;;  %v681_v52 = vmul.f32 %v630_v48, %v7962_v46  ;;  %v683_v53 = vmul.f32 %v632_v50, %v7975_v59  ;;  %v885_v40 = vld [vmem:[#allocation4 + $0x228] sm:$0xff]  ;;  %v887_v48 = vld [vmem:[#allocation4 + $0x238] sm:$0xff] }
 0x172   :  { %756 = vrot.lane.b32.xlu2 %v682_v51, %s7742_s24  ;;  %754 = vrot.lane.b32.xlu1 %v681_v52, %s7742_s24 }
 0x173   :  { %758 = vrot.lane.b32.xlu0 %v683_v53, %s7742_s24 }
 0x176   :  { %v608_v54 = vpop.permute.xlu0 %607 }
 0x177   :  { %v633_v56 = vsel %vm609_vm2, %v606_v39, %v608_v54  ;;  %v685_v60 = vmul.f32 %v608_v54, %v7998_v7 }
 0x178   :  { %v684_v63 = vmul.f32 %v633_v56, %v7986_v62  ;;  %v888_v56 = vld [vmem:[#allocation4 + $0x240] sm:$0xff] }
 0x17a   :  { %762 = vrot.lane.b32.xlu2 %v685_v60, %s7742_s24  ;;  %760 = vrot.lane.b32.xlu1 %v684_v63, %s7742_s24  ;;  %v889_v60 = vld [vmem:[#allocation4 + $0x248] sm:$0xff]  ;;  %v890_v63 = vld [vmem:[#allocation4 + $0x250] sm:$0xff] }
 0x17b   :  { %916 = vrot.lane.b32.xlu0 %v866_v0, %s7743_s25 }
 0x182   :  { %918 = vrot.lane.b32.xlu1 %v867_v1, %s7743_s25  ;;  %920 = vrot.lane.b32.xlu2 %v868_v2, %s7743_s25 }
 0x183   :  { %922 = vrot.lane.b32.xlu0 %v869_v4, %s7743_s25 }
 0x18a   :  { %924 = vrot.lane.b32.xlu1 %v870_v8, %s7743_s25  ;;  %926 = vrot.lane.b32.xlu2 %v871_v9, %s7743_s25 }
 0x18b   :  { %928 = vrot.lane.b32.xlu0 %v872_v10, %s7743_s25 }
 0x192   :  { %930 = vrot.lane.b32.xlu1 %v873_v11, %s7743_s25  ;;  %932 = vrot.lane.b32.xlu2 %v874_v12, %s7743_s25 }
 0x193   :  { %934 = vrot.lane.b32.xlu0 %v875_v13, %s7743_s25 }
 0x194   :  { %v715_v15 = vpop.permute.xlu2 %714 }
 0x19a   :  { %936 = vrot.lane.b32.xlu1 %v876_v16, %s7743_s25  ;;  %938 = vrot.lane.b32.xlu2 %v877_v19, %s7743_s25 }
 0x19b   :  { %940 = vrot.lane.b32.xlu0 %v878_v20, %s7743_s25 }
 0x19c   :  { %v721_v21 = vpop.permute.xlu2 %720 }
 0x1a2   :  { %942 = vrot.lane.b32.xlu1 %v879_v22, %s7743_s25  ;;  %944 = vrot.lane.b32.xlu2 %v880_v23, %s7743_s25 }
 0x1a3   :  { %946 = vrot.lane.b32.xlu0 %v881_v24, %s7743_s25 }
 0x1a4   :  { %v727_v25 = vpop.permute.xlu2 %726 }
 0x1aa   :  { %948 = vrot.lane.b32.xlu1 %v882_v27, %s7743_s25  ;;  %950 = vrot.lane.b32.xlu2 %v883_v33, %s7743_s25 }
 0x1ab   :  { %952 = vrot.lane.b32.xlu0 %v884_v34, %s7743_s25  ;;  %v713_v35 = vpop.permute.xlu1 %712 }
 0x1ac   :  { %v765_v36 = vsel %vm764_vm3, %v713_v35, %v715_v15  ;;  %v717_v37 = vpop.permute.xlu0 %716  ;;  %v733_v38 = vpop.permute.xlu2 %732 }
 0x1ad   :  { %815 = vst [vmem:[#allocation3 + $0xc8] sm:$0xff] %v765_v36  ;;  %v766_v39 = vsel %vm764_vm3, %v715_v15, %v717_v37 }
 0x1ae   :  { %816 = vst [vmem:[#allocation3 + $0xd0] sm:$0xff] %v766_v39 }
 0x1b2   :  { %954 = vrot.lane.b32.xlu1 %v885_v40, %s7743_s25  ;;  %956 = vrot.lane.b32.xlu2 %v886_v42, %s7743_s25 }
 0x1b3   :  { %958 = vrot.lane.b32.xlu0 %v887_v48, %s7743_s25 }
 0x1b4   :  { %v719_v49 = vpop.permute.xlu1 %718  ;;  %v739_v50 = vpop.permute.xlu2 %738 }
 0x1b5   :  { %v767_v51 = vsel %vm764_vm3, %v717_v37, %v719_v49  ;;  %v768_v52 = vsel %vm764_vm3, %v719_v49, %v721_v21  ;;  %v723_v53 = vpop.permute.xlu0 %722 }
 0x1b6   :  { %817 = vst [vmem:[#allocation3 + $0xd8] sm:$0xff] %v767_v51  ;;  %v769_v54 = vsel %vm764_vm3, %v721_v21, %v723_v53 }
 0x1b7   :  { %818 = vst [vmem:[#allocation3 + $0xe0] sm:$0xff] %v768_v52 }
 0x1b8   :  { %819 = vst [vmem:[#allocation3 + $0xe8] sm:$0xff] %v769_v54 }
 0x1ba   :  { %960 = vrot.lane.b32.xlu1 %v888_v56, %s7743_s25  ;;  %962 = vrot.lane.b32.xlu2 %v889_v60, %s7743_s25 }
 0x1bb   :  { %964 = vrot.lane.b32.xlu0 %v890_v63, %s7743_s25 }
 0x1bc   :  { %v725_v0 = vpop.permute.xlu1 %724  ;;  %v745_v9 = vpop.permute.xlu2 %744 }
 0x1bd   :  { %v770_v1 = vsel %vm764_vm3, %v723_v53, %v725_v0  ;;  %v771_v2 = vsel %vm764_vm3, %v725_v0, %v727_v25  ;;  %v729_v4 = vpop.permute.xlu0 %728 }
 0x1be   :  { %820 = vst [vmem:[#allocation3 + $0xf0] sm:$0xff] %v770_v1  ;;  %v772_v8 = vsel %vm764_vm3, %v727_v25, %v729_v4 }
 0x1bf   :  { %821 = vst [vmem:[#allocation3 + $0xf8] sm:$0xff] %v771_v2 }
 0x1c0   :  { %822 = vst [vmem:[#allocation3 + $0x100] sm:$0xff] %v772_v8 }
 0x1c4   :  { %v731_v10 = vpop.permute.xlu1 %730  ;;  %v751_v16 = vpop.permute.xlu2 %750 }
 0x1c5   :  { %v773_v11 = vsel %vm764_vm3, %v729_v4, %v731_v10  ;;  %v774_v12 = vsel %vm764_vm3, %v731_v10, %v733_v38  ;;  %v735_v13 = vpop.permute.xlu0 %734 }
 0x1c6   :  { %823 = vst [vmem:[#allocation3 + $0x108] sm:$0xff] %v773_v11  ;;  %v775_v15 = vsel %vm764_vm3, %v733_v38, %v735_v13 }
 0x1c7   :  { %824 = vst [vmem:[#allocation3 + $0x110] sm:$0xff] %v774_v12 }
 0x1c8   :  { %825 = vst [vmem:[#allocation3 + $0x118] sm:$0xff] %v775_v15 }
 0x1cc   :  { %v737_v19 = vpop.permute.xlu1 %736  ;;  %v757_v24 = vpop.permute.xlu2 %756 }
 0x1cd   :  { %v776_v20 = vsel %vm764_vm3, %v735_v13, %v737_v19  ;;  %v777_v21 = vsel %vm764_vm3, %v737_v19, %v739_v50  ;;  %v741_v22 = vpop.permute.xlu0 %740 }
 0x1ce   :  { %826 = vst [vmem:[#allocation3 + $0x120] sm:$0xff] %v776_v20  ;;  %v778_v23 = vsel %vm764_vm3, %v739_v50, %v741_v22 }
 0x1cf   :  { %827 = vst [vmem:[#allocation3 + $0x128] sm:$0xff] %v777_v21 }
 0x1d0   :  { %828 = vst [vmem:[#allocation3 + $0x130] sm:$0xff] %v778_v23 }
 0x1d4   :  { %v743_v25 = vpop.permute.xlu1 %742  ;;  %v763_v36 = vpop.permute.xlu2 %762 }
 0x1d5   :  { %v779_v27 = vsel %vm764_vm3, %v741_v22, %v743_v25  ;;  %v780_v33 = vsel %vm764_vm3, %v743_v25, %v745_v9  ;;  %v747_v34 = vpop.permute.xlu0 %746 }
 0x1d6   :  { %829 = vst [vmem:[#allocation3 + $0x138] sm:$0xff] %v779_v27  ;;  %v781_v35 = vsel %vm764_vm3, %v745_v9, %v747_v34 }
 0x1d7   :  { %830 = vst [vmem:[#allocation3 + $0x140] sm:$0xff] %v780_v33 }
 0x1d8   :  { %831 = vst [vmem:[#allocation3 + $0x148] sm:$0xff] %v781_v35 }
 0x1dc   :  { %v749_v37 = vpop.permute.xlu1 %748  ;;  %v921_v49 = vpop.permute.xlu2 %920 }
 0x1dd   :  { %v782_v38 = vsel %vm764_vm3, %v747_v34, %v749_v37  ;;  %v783_v39 = vsel %vm764_vm3, %v749_v37, %v751_v16  ;;  %v753_v40 = vpop.permute.xlu0 %752 }
 0x1de   :  { %832 = vst [vmem:[#allocation3 + $0x150] sm:$0xff] %v782_v38  ;;  %v784_v42 = vsel %vm764_vm3, %v751_v16, %v753_v40 }
 0x1df   :  { %833 = vst [vmem:[#allocation3 + $0x158] sm:$0xff] %v783_v39 }
 0x1e0   :  { %834 = vst [vmem:[#allocation3 + $0x160] sm:$0xff] %v784_v42 }
 0x1e4   :  { %v755_v48 = vpop.permute.xlu1 %754  ;;  %v927_v1 = vpop.permute.xlu2 %926 }
 0x1e5   :  { %v785_v50 = vsel %vm764_vm3, %v753_v40, %v755_v48  ;;  %v786_v51 = vsel %vm764_vm3, %v755_v48, %v757_v24  ;;  %v759_v52 = vpop.permute.xlu0 %758 }
 0x1e6   :  { %835 = vst [vmem:[#allocation3 + $0x168] sm:$0xff] %v785_v50  ;;  %v787_v53 = vsel %vm764_vm3, %v757_v24, %v759_v52 }
 0x1e7   :  { %836 = vst [vmem:[#allocation3 + $0x170] sm:$0xff] %v786_v51 }
 0x1e8   :  { %837 = vst [vmem:[#allocation3 + $0x178] sm:$0xff] %v787_v53 }
 0x1ec   :  { %v761_v54 = vpop.permute.xlu1 %760  ;;  %v933_v15 = vpop.permute.xlu2 %932 }
 0x1ed   :  { %v788_v56 = vsel %vm764_vm3, %v759_v52, %v761_v54  ;;  %v789_v60 = vsel %vm764_vm3, %v761_v54, %v763_v36  ;;  %v917_v63 = vpop.permute.xlu0 %916 }
 0x1ee   :  { %838 = vst [vmem:[#allocation3 + $0x180] sm:$0xff] %v788_v56  ;;  %v1017_v0 = vmul.f32 0.0, %v917_v63 }
 0x1ef   :  { %839 = vst [vmem:[#allocation3 + $0x188] sm:$0xff] %v789_v60 }
 0x1f0   :  { %1069 = vrot.lane.b32.xlu1 %v1017_v0, %s7744_s26 }
 0x1f4   :  { %v919_v2 = vpop.permute.xlu1 %918  ;;  %v939_v23 = vpop.permute.xlu2 %938 }
 0x1f5   :  { %v967_v4 = vsel %vm966_vm4, %v917_v63, %v919_v2  ;;  %v923_v8 = vpop.permute.xlu0 %922  ;;  %v968_v9 = vsel %vm966_vm4, %v919_v2, %v921_v49 }
 0x1f6   :  { %v969_v10 = vsel %vm966_vm4, %v921_v49, %v923_v8  ;;  %v1018_v11 = vmul.f32 %v967_v4, %v7816_v32  ;;  %v1019_v12 = vmul.f32 %v968_v9, %v7811_v31 }
 0x1f7   :  { %v1020_v13 = vmul.f32 %v969_v10, %v7806_v30 }
 0x1f8   :  { %1071 = vrot.lane.b32.xlu2 %v1018_v11, %s7744_s26  ;;  %1073 = vrot.lane.b32.xlu0 %v1019_v12, %s7744_s26 }
 0x1f9   :  { %1075 = vrot.lane.b32.xlu1 %v1020_v13, %s7744_s26 }
 0x1fc   :  { %v925_v16 = vpop.permute.xlu1 %924  ;;  %v945_v36 = vpop.permute.xlu2 %944 }
 0x1fd   :  { %v970_v19 = vsel %vm966_vm4, %v923_v8, %v925_v16  ;;  %v929_v20 = vpop.permute.xlu0 %928  ;;  %v971_v21 = vsel %vm966_vm4, %v925_v16, %v927_v1 }
 0x1fe   :  { %v972_v22 = vsel %vm966_vm4, %v927_v1, %v929_v20  ;;  %v1021_v32 = vmul.f32 %v970_v19, %v7842_v47  ;;  %v1022_v31 = vmul.f32 %v971_v21, %v7836_v44  ;;  %v1224_v21 = vld [vmem:[#allocation4 + $0x260] sm:$0xff] }
 0x1ff   :  { %v1023_v30 = vmul.f32 %v972_v22, %v7831_v43  ;;  %v1229_v22 = vld [vmem:[#allocation4 + $0x288] sm:$0xff] }
 0x200   :  { %1077 = vrot.lane.b32.xlu2 %v1021_v32, %s7744_s26  ;;  %1079 = vrot.lane.b32.xlu0 %v1022_v31, %s7744_s26  ;;  %v1230_v32 = vld [vmem:[#allocation4 + $0x290] sm:$0xff]  ;;  %v1232_v31 = vld [vmem:[#allocation4 + $0x2a0] sm:$0xff] }
 0x201   :  { %1081 = vrot.lane.b32.xlu1 %v1023_v30, %s7744_s26  ;;  %v1231_v30 = vld [vmem:[#allocation4 + $0x298] sm:$0xff] }
 0x204   :  { %v931_v24 = vpop.permute.xlu1 %930  ;;  %v951_v52 = vpop.permute.xlu2 %950 }
 0x205   :  { %v973_v25 = vsel %vm966_vm4, %v929_v20, %v931_v24  ;;  %v935_v27 = vpop.permute.xlu0 %934  ;;  %v974_v33 = vsel %vm966_vm4, %v931_v24, %v933_v15  ;;  %v1223_v20 = vld [vmem:[#allocation4 + $0x258] sm:$0xff] }
 0x206   :  { %v975_v34 = vsel %vm966_vm4, %v933_v15, %v935_v27  ;;  %v1024_v47 = vmul.f32 %v973_v25, %v7861_v57  ;;  %v1025_v44 = vmul.f32 %v974_v33, %v7855_v55  ;;  %v1235_v25 = vld [vmem:[#allocation4 + $0x2b8] sm:$0xff]  ;;  %v1236_v33 = vld [vmem:[#allocation4 + $0x2c0] sm:$0xff] }
 0x207   :  { %v1026_v43 = vmul.f32 %v975_v34, %v7866_v58 }
 0x208   :  { %1083 = vrot.lane.b32.xlu2 %v1024_v47, %s7744_s26  ;;  %1085 = vrot.lane.b32.xlu0 %v1025_v44, %s7744_s26  ;;  %v1238_v47 = vld [vmem:[#allocation4 + $0x2d0] sm:$0xff]  ;;  %v1237_v44 = vld [vmem:[#allocation4 + $0x2c8] sm:$0xff] }
 0x209   :  { %1087 = vrot.lane.b32.xlu1 %v1026_v43, %s7744_s26  ;;  %v1239_v43 = vld [vmem:[#allocation4 + $0x2d8] sm:$0xff] }
 0x20c   :  { %v937_v35 = vpop.permute.xlu1 %936  ;;  %v957_v0 = vpop.permute.xlu2 %956 }
 0x20d   :  { %v976_v37 = vsel %vm966_vm4, %v935_v27, %v937_v35  ;;  %v941_v38 = vpop.permute.xlu0 %940  ;;  %v977_v39 = vsel %vm966_vm4, %v937_v35, %v939_v23  ;;  %v1234_v27 = vld [vmem:[#allocation4 + $0x2b0] sm:$0xff] }
 0x20e   :  { %v978_v40 = vsel %vm966_vm4, %v939_v23, %v941_v38  ;;  %v1027_v57 = vmul.f32 %v976_v37, %v7885_v5  ;;  %v1028_v55 = vmul.f32 %v977_v39, %v7879_v3  ;;  %v1233_v23 = vld [vmem:[#allocation4 + $0x2a8] sm:$0xff]  ;;  %v1240_v39 = vld [vmem:[#allocation4 + $0x2e0] sm:$0xff] }
 0x20f   :  { %v1029_v58 = vmul.f32 %v978_v40, %v7890_v6  ;;  %v1242_v40 = vld [vmem:[#allocation4 + $0x2f0] sm:$0xff] }
 0x210   :  { %1089 = vrot.lane.b32.xlu2 %v1027_v57, %s7744_s26  ;;  %1091 = vrot.lane.b32.xlu0 %v1028_v55, %s7744_s26 }
 0x211   :  { %1093 = vrot.lane.b32.xlu1 %v1029_v58, %s7744_s26 }
 0x214   :  { %v943_v42 = vpop.permute.xlu1 %942  ;;  %v963_v10 = vpop.permute.xlu2 %962 }
 0x215   :  { %v979_v48 = vsel %vm966_vm4, %v941_v38, %v943_v42  ;;  %v947_v49 = vpop.permute.xlu0 %946  ;;  %v980_v50 = vsel %vm966_vm4, %v943_v42, %v945_v36  ;;  %v1241_v38 = vld [vmem:[#allocation4 + $0x2e8] sm:$0xff] }
 0x216   :  { %v981_v51 = vsel %vm966_vm4, %v945_v36, %v947_v49  ;;  %v1030_v5 = vmul.f32 %v979_v48, %v7909_v17  ;;  %v1031_v3 = vmul.f32 %v980_v50, %v7903_v14  ;;  %v1244_v50 = vld [vmem:[#allocation4 + $0x300] sm:$0xff] }
 0x217   :  { %v1032_v6 = vmul.f32 %v981_v51, %v7914_v18  ;;  %v1243_v51 = vld [vmem:[#allocation4 + $0x2f8] sm:$0xff] }
 0x218   :  { %1095 = vrot.lane.b32.xlu2 %v1030_v5, %s7744_s26  ;;  %1097 = vrot.lane.b32.xlu0 %v1031_v3, %s7744_s26  ;;  %v1245_v5 = vld [vmem:[#allocation4 + $0x308] sm:$0xff] }
 0x219   :  { %1099 = vrot.lane.b32.xlu1 %v1032_v6, %s7744_s26 }
 0x21c   :  { %v949_v53 = vpop.permute.xlu1 %948 }
 0x21d   :  { %v982_v54 = vsel %vm966_vm4, %v947_v49, %v949_v53  ;;  %v953_v56 = vpop.permute.xlu0 %952  ;;  %v983_v60 = vsel %vm966_vm4, %v949_v53, %v951_v52 }
 0x21e   :  { %v984_v63 = vsel %vm966_vm4, %v951_v52, %v953_v56  ;;  %v1033_v17 = vmul.f32 %v982_v54, %v7933_v28  ;;  %v1034_v14 = vmul.f32 %v983_v60, %v7927_v26  ;;  %v1247_v60 = vld [vmem:[#allocation4 + $0x318] sm:$0xff] }
 0x21f   :  { %v1035_v18 = vmul.f32 %v984_v63, %v7938_v29  ;;  %v1246_v63 = vld [vmem:[#allocation4 + $0x310] sm:$0xff] }
 0x220   :  { %1101 = vrot.lane.b32.xlu2 %v1033_v17, %s7744_s26  ;;  %1103 = vrot.lane.b32.xlu0 %v1034_v14, %s7744_s26 }
 0x221   :  { %1105 = vrot.lane.b32.xlu1 %v1035_v18, %s7744_s26 }
 0x224   :  { %v955_v1 = vpop.permute.xlu1 %954 }
 0x225   :  { %v985_v2 = vsel %vm966_vm4, %v953_v56, %v955_v1  ;;  %v959_v4 = vpop.permute.xlu0 %958  ;;  %v986_v8 = vsel %vm966_vm4, %v955_v1, %v957_v0 }
 0x226   :  { %v987_v9 = vsel %vm966_vm4, %v957_v0, %v959_v4  ;;  %v1037_v28 = vmul.f32 %v986_v8, %v7951_v41  ;;  %v1036_v26 = vmul.f32 %v985_v2, %v7957_v45 }
 0x227   :  { %v1038_v29 = vmul.f32 %v987_v9, %v7962_v46 }
 0x228   :  { %1107 = vrot.lane.b32.xlu2 %v1036_v26, %s7744_s26  ;;  %1109 = vrot.lane.b32.xlu0 %v1037_v28, %s7744_s26 }
 0x229   :  { %1111 = vrot.lane.b32.xlu1 %v1038_v29, %s7744_s26 }
 0x22c   :  { %v961_v11 = vpop.permute.xlu1 %960 }
 0x22d   :  { %v988_v12 = vsel %vm966_vm4, %v959_v4, %v961_v11  ;;  %v965_v13 = vpop.permute.xlu0 %964  ;;  %v989_v15 = vsel %vm966_vm4, %v961_v11, %v963_v10 }
 0x22e   :  { %v1039_v16 = vmul.f32 %v988_v12, %v7981_v61  ;;  %v990_v41 = vsel %vm966_vm4, %v963_v10, %v965_v13  ;;  %v1040_v45 = vmul.f32 %v989_v15, %v7975_v59  ;;  %v1042_v19 = vmul.f32 %v965_v13, %v7998_v7  ;;  %v1226_v59 = vld [vmem:[#allocation4 + $0x270] sm:$0xff]  ;;  %v1225_v61 = vld [vmem:[#allocation4 + $0x268] sm:$0xff]  ;;  %v1228_v7 = vld [vmem:[#allocation4 + $0x280] sm:$0xff] }
 0x22f   :  { %v1041_v46 = vmul.f32 %v990_v41, %v7986_v62  ;;  %v1227_v62 = vld [vmem:[#allocation4 + $0x278] sm:$0xff] }
 0x230   :  { %1113 = vrot.lane.b32.xlu2 %v1039_v16, %s7744_s26  ;;  %1115 = vrot.lane.b32.xlu0 %v1040_v45, %s7744_s26 }
 0x231   :  { %1117 = vrot.lane.b32.xlu1 %v1041_v46, %s7744_s26 }
 0x238   :  { %1273 = vrot.lane.b32.xlu0 %v1223_v20, %s7745_s27  ;;  %1119 = vrot.lane.b32.xlu2 %v1042_v19, %s7744_s26 }
 0x239   :  { %1275 = vrot.lane.b32.xlu1 %v1224_v21, %s7745_s27 }
 0x240   :  { %1279 = vrot.lane.b32.xlu0 %v1226_v59, %s7745_s27  ;;  %1277 = vrot.lane.b32.xlu2 %v1225_v61, %s7745_s27 }
 0x241   :  { %1281 = vrot.lane.b32.xlu1 %v1227_v62, %s7745_s27 }
 0x248   :  { %1285 = vrot.lane.b32.xlu0 %v1229_v22, %s7745_s27  ;;  %1283 = vrot.lane.b32.xlu2 %v1228_v7, %s7745_s27 }
 0x249   :  { %1287 = vrot.lane.b32.xlu1 %v1230_v32, %s7745_s27 }
 0x250   :  { %1291 = vrot.lane.b32.xlu0 %v1232_v31, %s7745_s27  ;;  %1289 = vrot.lane.b32.xlu2 %v1231_v30, %s7745_s27 }
 0x251   :  { %1293 = vrot.lane.b32.xlu1 %v1233_v23, %s7745_s27 }
 0x252   :  { %v1072_v24 = vpop.permute.xlu2 %1071 }
 0x258   :  { %1297 = vrot.lane.b32.xlu0 %v1235_v25, %s7745_s27  ;;  %1295 = vrot.lane.b32.xlu2 %v1234_v27, %s7745_s27 }
 0x259   :  { %1299 = vrot.lane.b32.xlu1 %v1236_v33, %s7745_s27 }
 0x25a   :  { %v1078_v34 = vpop.permute.xlu2 %1077 }
 0x260   :  { %1303 = vrot.lane.b32.xlu0 %v1238_v47, %s7745_s27  ;;  %1301 = vrot.lane.b32.xlu2 %v1237_v44, %s7745_s27 }
 0x261   :  { %1305 = vrot.lane.b32.xlu1 %v1239_v43, %s7745_s27 }
 0x262   :  { %v1070_v35 = vpop.permute.xlu1 %1069  ;;  %v1084_v36 = vpop.permute.xlu2 %1083 }
 0x263   :  { %v1122_v37 = vsel %vm1121_vm5, %v1070_v35, %v1072_v24  ;;  %v8307_v35 = vld [vmem:[%s10796_s1] sm:$0xff] }
 0x264   :  { %1172 = vst [vmem:[#allocation3 + $0x190] sm:$0xff] %v1122_v37  ;;  %v8313_v37 = vld [vmem:[%s10796_s1 + $0x8] sm:$0xff] }
 0x268   :  { %1309 = vrot.lane.b32.xlu0 %v1241_v38, %s7745_s27  ;;  %1307 = vrot.lane.b32.xlu2 %v1240_v39, %s7745_s27 }
 0x269   :  { %1311 = vrot.lane.b32.xlu1 %v1242_v40, %s7745_s27 }
 0x26a   :  { %v1074_v57 = vpop.permute.xlu0 %1073  ;;  %v1090_v55 = vpop.permute.xlu2 %1089 }
 0x26b   :  { %v1076_v58 = vpop.permute.xlu1 %1075  ;;  %v1123_v42 = vsel %vm1121_vm5, %v1072_v24, %v1074_v57 }
 0x26c   :  { %v1125_v48 = vsel %vm1121_vm5, %v1076_v58, %v1078_v34  ;;  %v1124_v49 = vsel %vm1121_vm5, %v1074_v57, %v1076_v58  ;;  %1173 = vst [vmem:[#allocation3 + $0x198] sm:$0xff] %v1123_v42  ;;  %v8324_v42 = vld [vmem:[%s10796_s1 + $0x10] sm:$0xff] }
 0x26d   :  { %1175 = vst [vmem:[#allocation3 + $0x1a8] sm:$0xff] %v1125_v48 }
 0x26e   :  { %1174 = vst [vmem:[#allocation3 + $0x1a0] sm:$0xff] %v1124_v49 }
 0x270   :  { %1315 = vrot.lane.b32.xlu0 %v1244_v50, %s7745_s27  ;;  %1313 = vrot.lane.b32.xlu2 %v1243_v51, %s7745_s27  ;;  %v8331_v50 = vld [vmem:[%s10796_s1 + $0x18] sm:$0xff] }
 0x271   :  { %1317 = vrot.lane.b32.xlu1 %v1245_v5, %s7745_s27  ;;  %v8337_v5 = vld [vmem:[%s10796_s1 + $0x20] sm:$0xff] }
 0x272   :  { %v1080_v3 = vpop.permute.xlu0 %1079  ;;  %v1096_v52 = vpop.permute.xlu2 %1095 }
 0x273   :  { %v1082_v6 = vpop.permute.xlu1 %1081  ;;  %v1126_v53 = vsel %vm1121_vm5, %v1078_v34, %v1080_v3 }
 0x274   :  { %v1128_v54 = vsel %vm1121_vm5, %v1082_v6, %v1084_v36  ;;  %v1127_v56 = vsel %vm1121_vm5, %v1080_v3, %v1082_v6  ;;  %1176 = vst [vmem:[#allocation3 + $0x1b0] sm:$0xff] %v1126_v53 }
 0x275   :  { %1178 = vst [vmem:[#allocation3 + $0x1c0] sm:$0xff] %v1128_v54 }
 0x276   :  { %1177 = vst [vmem:[#allocation3 + $0x1b8] sm:$0xff] %v1127_v56 }
 0x278   :  { %1321 = vrot.lane.b32.xlu0 %v1247_v60, %s7745_s27  ;;  %1319 = vrot.lane.b32.xlu2 %v1246_v63, %s7745_s27  ;;  %v8348_v60 = vld [vmem:[%s10796_s1 + $0x28] sm:$0xff] }
 0x27a   :  { %v1086_v17 = vpop.permute.xlu0 %1085  ;;  %v1102_v14 = vpop.permute.xlu2 %1101 }
 0x27b   :  { %v1088_v18 = vpop.permute.xlu1 %1087  ;;  %v1129_v0 = vsel %vm1121_vm5, %v1084_v36, %v1086_v17 }
 0x27c   :  { %v1131_v1 = vsel %vm1121_vm5, %v1088_v18, %v1090_v55  ;;  %v1130_v2 = vsel %vm1121_vm5, %v1086_v17, %v1088_v18  ;;  %1179 = vst [vmem:[#allocation3 + $0x1c8] sm:$0xff] %v1129_v0  ;;  %v8361_v0 = vld [vmem:[%s10796_s1 + $0x38] sm:$0xff] }
 0x27d   :  { %1181 = vst [vmem:[#allocation3 + $0x1d8] sm:$0xff] %v1131_v1 }
 0x27e   :  { %1180 = vst [vmem:[#allocation3 + $0x1d0] sm:$0xff] %v1130_v2 }
 0x282   :  { %v1092_v4 = vpop.permute.xlu0 %1091  ;;  %v1108_v8 = vpop.permute.xlu2 %1107 }
 0x283   :  { %v1094_v9 = vpop.permute.xlu1 %1093  ;;  %v1132_v28 = vsel %vm1121_vm5, %v1090_v55, %v1092_v4 }
 0x284   :  { %v1134_v26 = vsel %vm1121_vm5, %v1094_v9, %v1096_v52  ;;  %v1133_v29 = vsel %vm1121_vm5, %v1092_v4, %v1094_v9  ;;  %1182 = vst [vmem:[#allocation3 + $0x1e0] sm:$0xff] %v1132_v28 }
 0x285   :  { %1184 = vst [vmem:[#allocation3 + $0x1f0] sm:$0xff] %v1134_v26  ;;  %v8372_v26 = vld [vmem:[%s10796_s1 + $0x40] sm:$0xff] }
 0x286   :  { %1183 = vst [vmem:[#allocation3 + $0x1e8] sm:$0xff] %v1133_v29 }
 0x28a   :  { %v1098_v10 = vpop.permute.xlu0 %1097  ;;  %v1114_v13 = vpop.permute.xlu2 %1113 }
 0x28b   :  { %v1100_v11 = vpop.permute.xlu1 %1099  ;;  %v1135_v12 = vsel %vm1121_vm5, %v1096_v52, %v1098_v10 }
 0x28c   :  { %v1137_v15 = vsel %vm1121_vm5, %v1100_v11, %v1102_v14  ;;  %v1136_v16 = vsel %vm1121_vm5, %v1098_v10, %v1100_v11  ;;  %1185 = vst [vmem:[#allocation3 + $0x1f8] sm:$0xff] %v1135_v12  ;;  %v8379_v11 = vld [vmem:[%s10796_s1 + $0x48] sm:$0xff] }
 0x28d   :  { %1187 = vst [vmem:[#allocation3 + $0x208] sm:$0xff] %v1137_v15 }
 0x28e   :  { %1186 = vst [vmem:[#allocation3 + $0x200] sm:$0xff] %v1136_v16 }
 0x292   :  { %v1104_v41 = vpop.permute.xlu0 %1103  ;;  %v1120_v19 = vpop.permute.xlu2 %1119 }
 0x293   :  { %v1106_v45 = vpop.permute.xlu1 %1105  ;;  %v1138_v46 = vsel %vm1121_vm5, %v1102_v14, %v1104_v41  ;;  %v8355_v14 = vld [vmem:[%s10796_s1 + $0x30] sm:$0xff] }
 0x294   :  { %v1140_v20 = vsel %vm1121_vm5, %v1106_v45, %v1108_v8  ;;  %v1139_v21 = vsel %vm1121_vm5, %v1104_v41, %v1106_v45  ;;  %1188 = vst [vmem:[#allocation3 + $0x210] sm:$0xff] %v1138_v46 }
 0x295   :  { %1190 = vst [vmem:[#allocation3 + $0x220] sm:$0xff] %v1140_v20 }
 0x296   :  { %1189 = vst [vmem:[#allocation3 + $0x218] sm:$0xff] %v1139_v21 }
 0x29a   :  { %v1110_v59 = vpop.permute.xlu0 %1109  ;;  %v1278_v22 = vpop.permute.xlu2 %1277 }
 0x29b   :  { %v1112_v61 = vpop.permute.xlu1 %1111  ;;  %v1141_v62 = vsel %vm1121_vm5, %v1108_v8, %v1110_v59 }
 0x29c   :  { %v1143_v7 = vsel %vm1121_vm5, %v1112_v61, %v1114_v13  ;;  %v1142_v32 = vsel %vm1121_vm5, %v1110_v59, %v1112_v61  ;;  %1191 = vst [vmem:[#allocation3 + $0x228] sm:$0xff] %v1141_v62  ;;  %v8403_v59 = vld [vmem:[%s10796_s1 + $0x60] sm:$0xff]  ;;  %v8409_v62 = vld [vmem:[%s10796_s1 + $0x68] sm:$0xff] }
 0x29d   :  { %1193 = vst [vmem:[#allocation3 + $0x238] sm:$0xff] %v1143_v7 }
 0x29e   :  { %1192 = vst [vmem:[#allocation3 + $0x230] sm:$0xff] %v1142_v32 }
 0x2a2   :  { %v1116_v31 = vpop.permute.xlu0 %1115  ;;  %v1284_v27 = vpop.permute.xlu2 %1283 }
 0x2a3   :  { %v1118_v30 = vpop.permute.xlu1 %1117  ;;  %v1144_v23 = vsel %vm1121_vm5, %v1114_v13, %v1116_v31  ;;  %v8385_v13 = vld [vmem:[%s10796_s1 + $0x50] sm:$0xff] }
 0x2a4   :  { %v1146_v24 = vsel %vm1121_vm5, %v1118_v30, %v1120_v19  ;;  %v1145_v25 = vsel %vm1121_vm5, %v1116_v31, %v1118_v30  ;;  %1194 = vst [vmem:[#allocation3 + $0x240] sm:$0xff] %v1144_v23  ;;  %v8396_v19 = vld [vmem:[%s10796_s1 + $0x58] sm:$0xff] }
 0x2a5   :  { %1196 = vst [vmem:[#allocation3 + $0x250] sm:$0xff] %v1146_v24  ;;  %v8420_v24 = vld [vmem:[%s10796_s1 + $0x70] sm:$0xff] }
 0x2a6   :  { %1195 = vst [vmem:[#allocation3 + $0x248] sm:$0xff] %v1145_v25 }
 0x2aa   :  { %v1274_v33 = vpop.permute.xlu0 %1273  ;;  %v1290_v39 = vpop.permute.xlu2 %1289 }
 0x2ab   :  { %v1276_v34 = vpop.permute.xlu1 %1275  ;;  %v1374_v47 = vmul.f32 0.0, %v1274_v33 }
 0x2ac   :  { %v1324_v44 = vsel %vm1323_vm6, %v1274_v33, %v1276_v34  ;;  %v1325_v43 = vsel %vm1323_vm6, %v1276_v34, %v1278_v22  ;;  %v8427_v33 = vld [vmem:[%s10796_s1 + $0x78] sm:$0xff] }
 0x2ad   :  { %v1375_v36 = vmul.f32 %v8307_v35, %v1324_v44  ;;  %v1376_v38 = vmul.f32 %v8313_v37, %v1325_v43  ;;  %1426 = vrot.lane.b32.xlu1 %v1374_v47, %s7746_s6  ;;  %v8433_v47 = vld [vmem:[%s10796_s1 + $0x80] sm:$0xff] }
 0x2af   :  { %1428 = vrot.lane.b32.xlu2 %v1375_v36, %s7746_s6  ;;  %1430 = vrot.lane.b32.xlu0 %v1376_v38, %s7746_s6 }
 0x2b2   :  { %v1280_v40 = vpop.permute.xlu0 %1279  ;;  %v1296_v52 = vpop.permute.xlu2 %1295 }
 0x2b3   :  { %v1282_v57 = vpop.permute.xlu1 %1281  ;;  %v1326_v55 = vsel %vm1323_vm6, %v1278_v22, %v1280_v40 }
 0x2b4   :  { %v1327_v58 = vsel %vm1323_vm6, %v1280_v40, %v1282_v57  ;;  %v1377_v48 = vmul.f32 %v8324_v42, %v1326_v55  ;;  %v1328_v49 = vsel %vm1323_vm6, %v1282_v57, %v1284_v27  ;;  %v8444_v57 = vld [vmem:[%s10796_s1 + $0x88] sm:$0xff] }
 0x2b5   :  { %v1378_v51 = vmul.f32 %v8331_v50, %v1327_v58  ;;  %v1379_v3 = vmul.f32 %v8337_v5, %v1328_v49 }
 0x2b6   :  { %1432 = vrot.lane.b32.xlu1 %v1377_v48, %s7746_s6  ;;  %v8451_v48 = vld [vmem:[%s10796_s1 + $0x90] sm:$0xff] }
 0x2b7   :  { %1434 = vrot.lane.b32.xlu2 %v1378_v51, %s7746_s6  ;;  %1436 = vrot.lane.b32.xlu0 %v1379_v3, %s7746_s6  ;;  %v8457_v51 = vld [vmem:[%s10796_s1 + $0x98] sm:$0xff] }
 0x2ba   :  { %v1286_v6 = vpop.permute.xlu0 %1285  ;;  %v1302_v9 = vpop.permute.xlu2 %1301 }
 0x2bb   :  { %v1288_v53 = vpop.permute.xlu1 %1287  ;;  %v1329_v54 = vsel %vm1323_vm6, %v1284_v27, %v1286_v6 }
 0x2bc   :  { %v1330_v56 = vsel %vm1323_vm6, %v1286_v6, %v1288_v53  ;;  %v1380_v63 = vmul.f32 %v8348_v60, %v1329_v54  ;;  %v1331_v17 = vsel %vm1323_vm6, %v1288_v53, %v1290_v39 }
 0x2bd   :  { %v1381_v18 = vmul.f32 %v8355_v14, %v1330_v56  ;;  %v1382_v1 = vmul.f32 %v8361_v0, %v1331_v17 }
 0x2be   :  { %1438 = vrot.lane.b32.xlu1 %v1380_v63, %s7746_s6  ;;  %v8468_v63 = vld [vmem:[%s10796_s1 + $0xa0] sm:$0xff] }
 0x2bf   :  { %1440 = vrot.lane.b32.xlu2 %v1381_v18, %s7746_s6  ;;  %1442 = vrot.lane.b32.xlu0 %v1382_v1, %s7746_s6  ;;  %v8475_v1 = vld [vmem:[%s10796_s1 + $0xa8] sm:$0xff] }
 0x2c2   :  { %v1292_v2 = vpop.permute.xlu0 %1291  ;;  %v1308_v7 = vpop.permute.xlu2 %1307 }
 0x2c3   :  { %v1294_v4 = vpop.permute.xlu1 %1293  ;;  %v1332_v8 = vsel %vm1323_vm6, %v1290_v39, %v1292_v2 }
 0x2c4   :  { %v1333_v28 = vsel %vm1323_vm6, %v1292_v2, %v1294_v4  ;;  %v1383_v29 = vmul.f32 %v8372_v26, %v1332_v8  ;;  %v1334_v10 = vsel %vm1323_vm6, %v1294_v4, %v1296_v52  ;;  %v8481_v4 = vld [vmem:[%s10796_s1 + $0xb0] sm:$0xff] }
 0x2c5   :  { %v1384_v12 = vmul.f32 %v8379_v11, %v1333_v28  ;;  %v1385_v15 = vmul.f32 %v8385_v13, %v1334_v10 }
 0x2c6   :  { %1444 = vrot.lane.b32.xlu1 %v1383_v29, %s7746_s6  ;;  %v8491_v29 = vld [vmem:[%s10796_s1 + $0xc0] sm:$0xff] }
 0x2c7   :  { %1446 = vrot.lane.b32.xlu2 %v1384_v12, %s7746_s6  ;;  %1448 = vrot.lane.b32.xlu0 %v1385_v15, %s7746_s6  ;;  %v8497_v12 = vld [vmem:[%s10796_s1 + $0xb8] sm:$0xff] }
 0x2ca   :  { %v1298_v16 = vpop.permute.xlu0 %1297  ;;  %v1314_v43 = vpop.permute.xlu2 %1313 }
 0x2cb   :  { %v1300_v41 = vpop.permute.xlu1 %1299  ;;  %v1335_v45 = vsel %vm1323_vm6, %v1296_v52, %v1298_v16 }
 0x2cc   :  { %v1336_v46 = vsel %vm1323_vm6, %v1298_v16, %v1300_v41  ;;  %v1386_v20 = vmul.f32 %v8396_v19, %v1335_v45  ;;  %v1337_v21 = vsel %vm1323_vm6, %v1300_v41, %v1302_v9  ;;  %v1680_v16 = vld [vmem:[#allocation4 + $0x3e8] sm:$0xff]  ;;  %v1681_v41 = vld [vmem:[#allocation4 + $0x3f0] sm:$0xff]  ;;  %v1683_v45 = vld [vmem:[#allocation4 + $0x400] sm:$0xff] }
 0x2cd   :  { %v1387_v61 = vmul.f32 %v8403_v59, %v1336_v46  ;;  %v1388_v22 = vmul.f32 %v8409_v62, %v1337_v21  ;;  %v1682_v46 = vld [vmem:[#allocation4 + $0x3f8] sm:$0xff] }
 0x2ce   :  { %1450 = vrot.lane.b32.xlu1 %v1386_v20, %s7746_s6  ;;  %v1684_v20 = vld [vmem:[#allocation4 + $0x408] sm:$0xff]  ;;  %v1686_v21 = vld [vmem:[#allocation4 + $0x418] sm:$0xff] }
 0x2cf   :  { %1452 = vrot.lane.b32.xlu2 %v1387_v61, %s7746_s6  ;;  %1454 = vrot.lane.b32.xlu0 %v1388_v22, %s7746_s6  ;;  %v1685_v61 = vld [vmem:[#allocation4 + $0x410] sm:$0xff]  ;;  %v1687_v22 = vld [vmem:[#allocation4 + $0x420] sm:$0xff] }
 0x2d2   :  { %v1304_v32 = vpop.permute.xlu0 %1303  ;;  %v1320_v52 = vpop.permute.xlu2 %1319 }
 0x2d3   :  { %v1306_v31 = vpop.permute.xlu1 %1305  ;;  %v1338_v30 = vsel %vm1323_vm6, %v1302_v9, %v1304_v32 }
 0x2d4   :  { %v1339_v23 = vsel %vm1323_vm6, %v1304_v32, %v1306_v31  ;;  %v1389_v25 = vmul.f32 %v8420_v24, %v1338_v30  ;;  %v1340_v27 = vsel %vm1323_vm6, %v1306_v31, %v1308_v7  ;;  %v1688_v32 = vld [vmem:[#allocation4 + $0x428] sm:$0xff]  ;;  %v1690_v30 = vld [vmem:[#allocation4 + $0x438] sm:$0xff] }
 0x2d5   :  { %v1390_v34 = vmul.f32 %v8427_v33, %v1339_v23  ;;  %v1391_v44 = vmul.f32 %v8433_v47, %v1340_v27  ;;  %v1692_v23 = vld [vmem:[#allocation4 + $0x448] sm:$0xff] }
 0x2d6   :  { %1456 = vrot.lane.b32.xlu1 %v1389_v25, %s7746_s6  ;;  %v1691_v25 = vld [vmem:[#allocation4 + $0x440] sm:$0xff] }
 0x2d7   :  { %1458 = vrot.lane.b32.xlu2 %v1390_v34, %s7746_s6  ;;  %1460 = vrot.lane.b32.xlu0 %v1391_v44, %s7746_s6  ;;  %v1693_v34 = vld [vmem:[#allocation4 + $0x450] sm:$0xff]  ;;  %v1695_v44 = vld [vmem:[#allocation4 + $0x460] sm:$0xff] }
 0x2da   :  { %v1310_v36 = vpop.permute.xlu0 %1309 }
 0x2db   :  { %v1312_v38 = vpop.permute.xlu1 %1311  ;;  %v1341_v39 = vsel %vm1323_vm6, %v1308_v7, %v1310_v36  ;;  %v1689_v7 = vld [vmem:[#allocation4 + $0x430] sm:$0xff] }
 0x2dc   :  { %v1342_v40 = vsel %vm1323_vm6, %v1310_v36, %v1312_v38  ;;  %v1392_v55 = vmul.f32 %v8444_v57, %v1341_v39  ;;  %v1343_v58 = vsel %vm1323_vm6, %v1312_v38, %v1314_v43  ;;  %v1696_v38 = vld [vmem:[#allocation4 + $0x468] sm:$0xff]  ;;  %v1698_v39 = vld [vmem:[#allocation4 + $0x478] sm:$0xff] }
 0x2dd   :  { %v1393_v49 = vmul.f32 %v8451_v48, %v1342_v40  ;;  %v1394_v3 = vmul.f32 %v8457_v51, %v1343_v58  ;;  %v1697_v40 = vld [vmem:[#allocation4 + $0x470] sm:$0xff] }
 0x2de   :  { %1462 = vrot.lane.b32.xlu1 %v1392_v55, %s7746_s6 }
 0x2df   :  { %1464 = vrot.lane.b32.xlu2 %v1393_v49, %s7746_s6  ;;  %1466 = vrot.lane.b32.xlu0 %v1394_v3, %s7746_s6 }
 0x2e2   :  { %v1316_v6 = vpop.permute.xlu0 %1315 }
 0x2e3   :  { %v1318_v53 = vpop.permute.xlu1 %1317  ;;  %v1344_v54 = vsel %vm1323_vm6, %v1314_v43, %v1316_v6  ;;  %v1694_v43 = vld [vmem:[#allocation4 + $0x458] sm:$0xff] }
 0x2e4   :  { %v1345_v56 = vsel %vm1323_vm6, %v1316_v6, %v1318_v53  ;;  %v1395_v17 = vmul.f32 %v8468_v63, %v1344_v54  ;;  %v1346_v18 = vsel %vm1323_vm6, %v1318_v53, %v1320_v52  ;;  %v1699_v6 = vld [vmem:[#allocation4 + $0x480] sm:$0xff]  ;;  %v1701_v53 = vld [vmem:[#allocation4 + $0x490] sm:$0xff]  ;;  %v1700_v54 = vld [vmem:[#allocation4 + $0x488] sm:$0xff] }
 0x2e5   :  { %v1396_v2 = vmul.f32 %v8475_v1, %v1345_v56  ;;  %v1397_v8 = vmul.f32 %v8481_v4, %v1346_v18 }
 0x2e6   :  { %1468 = vrot.lane.b32.xlu1 %v1395_v17, %s7746_s6 }
 0x2e7   :  { %1470 = vrot.lane.b32.xlu2 %v1396_v2, %s7746_s6  ;;  %1472 = vrot.lane.b32.xlu0 %v1397_v8, %s7746_s6 }
 0x2ea   :  { %v1322_v9 = vpop.permute.xlu0 %1321 }
 0x2eb   :  { %v1347_v28 = vsel %vm1323_vm6, %v1320_v52, %v1322_v9  ;;  %v1399_v10 = vmul.f32 %v8491_v29, %v1322_v9 }
 0x2ec   :  { %v1398_v15 = vmul.f32 %v8497_v12, %v1347_v28  ;;  %v1702_v28 = vld [vmem:[#allocation4 + $0x498] sm:$0xff] }
 0x2ee   :  { %1474 = vrot.lane.b32.xlu1 %v1398_v15, %s7746_s6  ;;  %v1703_v15 = vld [vmem:[#allocation4 + $0x4a0] sm:$0xff] }
 0x2ef   :  { %1476 = vrot.lane.b32.xlu2 %v1399_v10, %s7746_s6  ;;  %1730 = vrot.lane.b32.xlu0 %v1680_v16, %s7746_s6  ;;  %v1704_v10 = vld [vmem:[#allocation4 + $0x4a8] sm:$0xff] }
 0x2f6   :  { %1732 = vrot.lane.b32.xlu1 %v1681_v41, %s7746_s6 }
 0x2f7   :  { %1736 = vrot.lane.b32.xlu0 %v1683_v45, %s7746_s6  ;;  %1734 = vrot.lane.b32.xlu2 %v1682_v46, %s7746_s6 }
 0x2fe   :  { %1738 = vrot.lane.b32.xlu1 %v1684_v20, %s7746_s6 }
 0x2ff   :  { %1742 = vrot.lane.b32.xlu0 %v1686_v21, %s7746_s6  ;;  %1740 = vrot.lane.b32.xlu2 %v1685_v61, %s7746_s6 }
 0x306   :  { %1744 = vrot.lane.b32.xlu1 %v1687_v22, %s7746_s6 }
 0x307   :  { %1748 = vrot.lane.b32.xlu0 %v1689_v7, %s7746_s6  ;;  %1746 = vrot.lane.b32.xlu2 %v1688_v32, %s7746_s6 }
 0x309   :  { %v1429_v31 = vpop.permute.xlu2 %1428 }
 0x30e   :  { %1750 = vrot.lane.b32.xlu1 %v1690_v30, %s7746_s6 }
 0x30f   :  { %1754 = vrot.lane.b32.xlu0 %v1692_v23, %s7746_s6  ;;  %1752 = vrot.lane.b32.xlu2 %v1691_v25, %s7746_s6 }
 0x311   :  { %v1435_v27 = vpop.permute.xlu2 %1434 }
 0x316   :  { %1756 = vrot.lane.b32.xlu1 %v1693_v34, %s7746_s6 }
 0x317   :  { %1760 = vrot.lane.b32.xlu0 %v1695_v44, %s7746_s6  ;;  %1758 = vrot.lane.b32.xlu2 %v1694_v43, %s7746_s6 }
 0x319   :  { %v1441_v36 = vpop.permute.xlu2 %1440 }
 0x31e   :  { %1762 = vrot.lane.b32.xlu1 %v1696_v38, %s7746_s6 }
 0x31f   :  { %1766 = vrot.lane.b32.xlu0 %v1698_v39, %s7746_s6  ;;  %v1427_v55 = vpop.permute.xlu1 %1426  ;;  %1764 = vrot.lane.b32.xlu2 %v1697_v40, %s7746_s6 }
 0x320   :  { %v1479_v58 = vsel %vm1478_vm7, %v1427_v55, %v1429_v31 }
 0x321   :  { %1529 = vst [vmem:[#allocation3 + $0x258] sm:$0xff] %v1479_v58  ;;  %v1431_v49 = vpop.permute.xlu0 %1430  ;;  %v1447_v3 = vpop.permute.xlu2 %1446 }
 0x322   :  { %v1480_v52 = vsel %vm1478_vm7, %v1429_v31, %v1431_v49 }
 0x323   :  { %1530 = vst [vmem:[#allocation3 + $0x260] sm:$0xff] %v1480_v52 }
 0x326   :  { %1768 = vrot.lane.b32.xlu1 %v1699_v6, %s7746_s6 }
 0x327   :  { %1772 = vrot.lane.b32.xlu0 %v1701_v53, %s7746_s6  ;;  %1770 = vrot.lane.b32.xlu2 %v1700_v54, %s7746_s6 }
 0x328   :  { %v1433_v56 = vpop.permute.xlu1 %1432 }
 0x329   :  { %v1481_v17 = vsel %vm1478_vm7, %v1431_v49, %v1433_v56  ;;  %v1482_v18 = vsel %vm1478_vm7, %v1433_v56, %v1435_v27  ;;  %v1437_v2 = vpop.permute.xlu0 %1436  ;;  %v1453_v8 = vpop.permute.xlu2 %1452 }
 0x32a   :  { %1531 = vst [vmem:[#allocation3 + $0x268] sm:$0xff] %v1481_v17  ;;  %v1483_v9 = vsel %vm1478_vm7, %v1435_v27, %v1437_v2 }
 0x32b   :  { %1532 = vst [vmem:[#allocation3 + $0x270] sm:$0xff] %v1482_v18 }
 0x32c   :  { %1533 = vst [vmem:[#allocation3 + $0x278] sm:$0xff] %v1483_v9 }
 0x32e   :  { %1774 = vrot.lane.b32.xlu1 %v1702_v28, %s7746_s6 }
 0x32f   :  { %1778 = vrot.lane.b32.xlu0 %v1704_v10, %s7746_s6  ;;  %1776 = vrot.lane.b32.xlu2 %v1703_v15, %s7746_s6 }
 0x330   :  { %v1439_v16 = vpop.permute.xlu1 %1438 }
 0x331   :  { %v1484_v41 = vsel %vm1478_vm7, %v1437_v2, %v1439_v16  ;;  %v1485_v45 = vsel %vm1478_vm7, %v1439_v16, %v1441_v36  ;;  %v1443_v46 = vpop.permute.xlu0 %1442  ;;  %v1459_v21 = vpop.permute.xlu2 %1458 }
 0x332   :  { %1534 = vst [vmem:[#allocation3 + $0x280] sm:$0xff] %v1484_v41  ;;  %v1486_v20 = vsel %vm1478_vm7, %v1441_v36, %v1443_v46 }
 0x333   :  { %1535 = vst [vmem:[#allocation3 + $0x288] sm:$0xff] %v1485_v45 }
 0x334   :  { %1536 = vst [vmem:[#allocation3 + $0x290] sm:$0xff] %v1486_v20 }
 0x338   :  { %v1445_v61 = vpop.permute.xlu1 %1444 }
 0x339   :  { %v1487_v22 = vsel %vm1478_vm7, %v1443_v46, %v1445_v61  ;;  %v1488_v7 = vsel %vm1478_vm7, %v1445_v61, %v1447_v3  ;;  %v1449_v32 = vpop.permute.xlu0 %1448  ;;  %v1465_v30 = vpop.permute.xlu2 %1464 }
 0x33a   :  { %1537 = vst [vmem:[#allocation3 + $0x298] sm:$0xff] %v1487_v22  ;;  %v1489_v31 = vsel %vm1478_vm7, %v1447_v3, %v1449_v32 }
 0x33b   :  { %1538 = vst [vmem:[#allocation3 + $0x2a0] sm:$0xff] %v1488_v7 }
 0x33c   :  { %1539 = vst [vmem:[#allocation3 + $0x2a8] sm:$0xff] %v1489_v31 }
 0x340   :  { %v1451_v23 = vpop.permute.xlu1 %1450 }
 0x341   :  { %v1490_v25 = vsel %vm1478_vm7, %v1449_v32, %v1451_v23  ;;  %v1491_v27 = vsel %vm1478_vm7, %v1451_v23, %v1453_v8  ;;  %v1455_v34 = vpop.permute.xlu0 %1454  ;;  %v1471_v43 = vpop.permute.xlu2 %1470 }
 0x342   :  { %1540 = vst [vmem:[#allocation3 + $0x2b0] sm:$0xff] %v1490_v25  ;;  %v1492_v44 = vsel %vm1478_vm7, %v1453_v8, %v1455_v34 }
 0x343   :  { %1541 = vst [vmem:[#allocation3 + $0x2b8] sm:$0xff] %v1491_v27 }
 0x344   :  { %1542 = vst [vmem:[#allocation3 + $0x2c0] sm:$0xff] %v1492_v44 }
 0x348   :  { %v1457_v36 = vpop.permute.xlu1 %1456 }
 0x349   :  { %v1493_v38 = vsel %vm1478_vm7, %v1455_v34, %v1457_v36  ;;  %v1494_v39 = vsel %vm1478_vm7, %v1457_v36, %v1459_v21  ;;  %v1461_v40 = vpop.permute.xlu0 %1460  ;;  %v1477_v58 = vpop.permute.xlu2 %1476 }
 0x34a   :  { %1543 = vst [vmem:[#allocation3 + $0x2c8] sm:$0xff] %v1493_v38  ;;  %v1495_v55 = vsel %vm1478_vm7, %v1459_v21, %v1461_v40 }
 0x34b   :  { %1544 = vst [vmem:[#allocation3 + $0x2d0] sm:$0xff] %v1494_v39 }
 0x34c   :  { %1545 = vst [vmem:[#allocation3 + $0x2d8] sm:$0xff] %v1495_v55 }
 0x350   :  { %v1463_v49 = vpop.permute.xlu1 %1462 }
 0x351   :  { %v1496_v3 = vsel %vm1478_vm7, %v1461_v40, %v1463_v49  ;;  %v1497_v52 = vsel %vm1478_vm7, %v1463_v49, %v1465_v30  ;;  %v1467_v6 = vpop.permute.xlu0 %1466  ;;  %v1735_v56 = vpop.permute.xlu2 %1734 }
 0x352   :  { %1546 = vst [vmem:[#allocation3 + $0x2e0] sm:$0xff] %v1496_v3  ;;  %v1498_v53 = vsel %vm1478_vm7, %v1465_v30, %v1467_v6 }
 0x353   :  { %1547 = vst [vmem:[#allocation3 + $0x2e8] sm:$0xff] %v1497_v52 }
 0x354   :  { %1548 = vst [vmem:[#allocation3 + $0x2f0] sm:$0xff] %v1498_v53 }
 0x358   :  { %v1469_v54 = vpop.permute.xlu1 %1468 }
 0x359   :  { %v1499_v17 = vsel %vm1478_vm7, %v1467_v6, %v1469_v54  ;;  %v1500_v18 = vsel %vm1478_vm7, %v1469_v54, %v1471_v43  ;;  %v1473_v2 = vpop.permute.xlu0 %1472  ;;  %v1741_v41 = vpop.permute.xlu2 %1740 }
 0x35a   :  { %1549 = vst [vmem:[#allocation3 + $0x2f8] sm:$0xff] %v1499_v17  ;;  %v1501_v8 = vsel %vm1478_vm7, %v1471_v43, %v1473_v2 }
 0x35b   :  { %1550 = vst [vmem:[#allocation3 + $0x300] sm:$0xff] %v1500_v18 }
 0x35c   :  { %1551 = vst [vmem:[#allocation3 + $0x308] sm:$0xff] %v1501_v8 }
 0x360   :  { %v1475_v9 = vpop.permute.xlu1 %1474 }
 0x361   :  { %v1502_v28 = vsel %vm1478_vm7, %v1473_v2, %v1475_v9  ;;  %v1503_v10 = vsel %vm1478_vm7, %v1475_v9, %v1477_v58  ;;  %v1731_v15 = vpop.permute.xlu0 %1730  ;;  %v1747_v31 = vpop.permute.xlu2 %1746 }
 0x362   :  { %1552 = vst [vmem:[#allocation3 + $0x310] sm:$0xff] %v1502_v28  ;;  %v1830_v16 = vmul.f32 %v8307_v35, %v1731_v15 }
 0x363   :  { %1553 = vst [vmem:[#allocation3 + $0x318] sm:$0xff] %v1503_v10 }
 0x364   :  { %1882 = vrot.lane.b32.xlu1 %v1830_v16, %s7745_s27 }
 0x368   :  { %v1733_v45 = vpop.permute.xlu1 %1732 }
 0x369   :  { %v1780_v46 = vsel %vm1478_vm7, %v1731_v15, %v1733_v45  ;;  %v1737_v20 = vpop.permute.xlu0 %1736  ;;  %v1781_v21 = vsel %vm1478_vm7, %v1733_v45, %v1735_v56  ;;  %v1753_v38 = vpop.permute.xlu2 %1752 }
 0x36a   :  { %v1831_v61 = vmul.f32 %v8313_v37, %v1780_v46  ;;  %v1782_v22 = vsel %vm1478_vm7, %v1735_v56, %v1737_v20  ;;  %v1832_v7 = vmul.f32 %v8324_v42, %v1781_v21 }
 0x36b   :  { %v1833_v32 = vmul.f32 %v8331_v50, %v1782_v22 }
 0x36c   :  { %1884 = vrot.lane.b32.xlu2 %v1831_v61, %s7745_s27  ;;  %1886 = vrot.lane.b32.xlu0 %v1832_v7, %s7745_s27 }
 0x36d   :  { %1888 = vrot.lane.b32.xlu1 %v1833_v32, %s7745_s27 }
 0x370   :  { %v1739_v30 = vpop.permute.xlu1 %1738 }
 0x371   :  { %v1783_v23 = vsel %vm1478_vm7, %v1737_v20, %v1739_v30  ;;  %v1743_v25 = vpop.permute.xlu0 %1742  ;;  %v1784_v27 = vsel %vm1478_vm7, %v1739_v30, %v1741_v41  ;;  %v1759_v54 = vpop.permute.xlu2 %1758 }
 0x372   :  { %v1834_v34 = vmul.f32 %v8337_v5, %v1783_v23  ;;  %v1785_v44 = vsel %vm1478_vm7, %v1741_v41, %v1743_v25  ;;  %v1835_v43 = vmul.f32 %v8348_v60, %v1784_v27 }
 0x373   :  { %v1836_v36 = vmul.f32 %v8355_v14, %v1785_v44 }
 0x374   :  { %1890 = vrot.lane.b32.xlu2 %v1834_v34, %s7745_s27  ;;  %1892 = vrot.lane.b32.xlu0 %v1835_v43, %s7745_s27 }
 0x375   :  { %1894 = vrot.lane.b32.xlu1 %v1836_v36, %s7745_s27 }
 0x378   :  { %v1745_v39 = vpop.permute.xlu1 %1744 }
 0x379   :  { %v1786_v40 = vsel %vm1478_vm7, %v1743_v25, %v1745_v39  ;;  %v1749_v55 = vpop.permute.xlu0 %1748  ;;  %v1787_v58 = vsel %vm1478_vm7, %v1745_v39, %v1747_v31  ;;  %v1765_v21 = vpop.permute.xlu2 %1764 }
 0x37a   :  { %v1837_v49 = vmul.f32 %v8361_v0, %v1786_v40  ;;  %v1788_v3 = vsel %vm1478_vm7, %v1747_v31, %v1749_v55  ;;  %v1838_v52 = vmul.f32 %v8372_v26, %v1787_v58 }
 0x37b   :  { %v1839_v6 = vmul.f32 %v8379_v11, %v1788_v3 }
 0x37c   :  { %1896 = vrot.lane.b32.xlu2 %v1837_v49, %s7745_s27  ;;  %1898 = vrot.lane.b32.xlu0 %v1838_v52, %s7745_s27 }
 0x37d   :  { %1900 = vrot.lane.b32.xlu1 %v1839_v6, %s7745_s27 }
 0x380   :  { %v1751_v53 = vpop.permute.xlu1 %1750 }
 0x381   :  { %v1789_v56 = vsel %vm1478_vm7, %v1749_v55, %v1751_v53  ;;  %v1755_v17 = vpop.permute.xlu0 %1754  ;;  %v1790_v18 = vsel %vm1478_vm7, %v1751_v53, %v1753_v38  ;;  %v1771_v34 = vpop.permute.xlu2 %1770 }
 0x382   :  { %v1840_v2 = vmul.f32 %v8385_v13, %v1789_v56  ;;  %v1791_v8 = vsel %vm1478_vm7, %v1753_v38, %v1755_v17  ;;  %v1841_v9 = vmul.f32 %v8396_v19, %v1790_v18 }
 0x383   :  { %v1842_v28 = vmul.f32 %v8403_v59, %v1791_v8  ;;  %v2035_v8 = vld [vmem:[#allocation4 + $0x4b0] sm:$0xff] }
 0x384   :  { %1902 = vrot.lane.b32.xlu2 %v1840_v2, %s7745_s27  ;;  %1904 = vrot.lane.b32.xlu0 %v1841_v9, %s7745_s27  ;;  %v2036_v9 = vld [vmem:[#allocation4 + $0x4b8] sm:$0xff] }
 0x385   :  { %1906 = vrot.lane.b32.xlu1 %v1842_v28, %s7745_s27  ;;  %v2038_v28 = vld [vmem:[#allocation4 + $0x4c8] sm:$0xff] }
 0x388   :  { %v1757_v10 = vpop.permute.xlu1 %1756 }
 0x389   :  { %v1792_v15 = vsel %vm1478_vm7, %v1755_v17, %v1757_v10  ;;  %v1761_v16 = vpop.permute.xlu0 %1760  ;;  %v1793_v41 = vsel %vm1478_vm7, %v1757_v10, %v1759_v54  ;;  %v1777_v49 = vpop.permute.xlu2 %1776  ;;  %v2037_v10 = vld [vmem:[#allocation4 + $0x4c0] sm:$0xff] }
 0x38a   :  { %v1843_v45 = vmul.f32 %v8409_v62, %v1792_v15  ;;  %v1794_v46 = vsel %vm1478_vm7, %v1759_v54, %v1761_v16  ;;  %v1844_v20 = vmul.f32 %v8420_v24, %v1793_v41  ;;  %v2039_v15 = vld [vmem:[#allocation4 + $0x4d0] sm:$0xff]  ;;  %v2040_v41 = vld [vmem:[#allocation4 + $0x4d8] sm:$0xff] }
 0x38b   :  { %v1845_v61 = vmul.f32 %v8427_v33, %v1794_v46  ;;  %v2044_v46 = vld [vmem:[#allocation4 + $0x4f8] sm:$0xff] }
 0x38c   :  { %1908 = vrot.lane.b32.xlu2 %v1843_v45, %s7745_s27  ;;  %1910 = vrot.lane.b32.xlu0 %v1844_v20, %s7745_s27  ;;  %v2042_v45 = vld [vmem:[#allocation4 + $0x4e8] sm:$0xff]  ;;  %v2043_v20 = vld [vmem:[#allocation4 + $0x4f0] sm:$0xff] }
 0x38d   :  { %1912 = vrot.lane.b32.xlu1 %v1845_v61, %s7745_s27 }
 0x390   :  { %v1763_v22 = vpop.permute.xlu1 %1762 }
 0x391   :  { %v1795_v7 = vsel %vm1478_vm7, %v1761_v16, %v1763_v22  ;;  %v1767_v32 = vpop.permute.xlu0 %1766  ;;  %v1796_v31 = vsel %vm1478_vm7, %v1763_v22, %v1765_v21  ;;  %v2041_v16 = vld [vmem:[#allocation4 + $0x4e0] sm:$0xff]  ;;  %v2047_v22 = vld [vmem:[#allocation4 + $0x510] sm:$0xff] }
 0x392   :  { %v1846_v30 = vmul.f32 %v8433_v47, %v1795_v7  ;;  %v1797_v23 = vsel %vm1478_vm7, %v1765_v21, %v1767_v32  ;;  %v1847_v25 = vmul.f32 %v8444_v57, %v1796_v31  ;;  %v2045_v21 = vld [vmem:[#allocation4 + $0x500] sm:$0xff]  ;;  %v2046_v7 = vld [vmem:[#allocation4 + $0x508] sm:$0xff] }
 0x393   :  { %v1848_v27 = vmul.f32 %v8451_v48, %v1797_v23  ;;  %v2049_v23 = vld [vmem:[#allocation4 + $0x520] sm:$0xff] }
 0x394   :  { %1914 = vrot.lane.b32.xlu2 %v1846_v30, %s7745_s27  ;;  %1916 = vrot.lane.b32.xlu0 %v1847_v25, %s7745_s27  ;;  %v2050_v30 = vld [vmem:[#allocation4 + $0x528] sm:$0xff]  ;;  %v2051_v25 = vld [vmem:[#allocation4 + $0x530] sm:$0xff] }
 0x395   :  { %1918 = vrot.lane.b32.xlu1 %v1848_v27, %s7745_s27 }
 0x398   :  { %v1769_v44 = vpop.permute.xlu1 %1768 }
 0x399   :  { %v1798_v43 = vsel %vm1478_vm7, %v1767_v32, %v1769_v44  ;;  %v1773_v36 = vpop.permute.xlu0 %1772  ;;  %v1799_v38 = vsel %vm1478_vm7, %v1769_v44, %v1771_v34  ;;  %v2048_v32 = vld [vmem:[#allocation4 + $0x518] sm:$0xff] }
 0x39a   :  { %v1849_v39 = vmul.f32 %v8457_v51, %v1798_v43  ;;  %v1800_v40 = vsel %vm1478_vm7, %v1771_v34, %v1773_v36  ;;  %v1850_v55 = vmul.f32 %v8468_v63, %v1799_v38  ;;  %v2053_v43 = vld [vmem:[#allocation4 + $0x540] sm:$0xff]  ;;  %v2054_v38 = vld [vmem:[#allocation4 + $0x548] sm:$0xff] }
 0x39b   :  { %v1851_v58 = vmul.f32 %v8475_v1, %v1800_v40 }
 0x39c   :  { %1920 = vrot.lane.b32.xlu2 %v1849_v39, %s7745_s27  ;;  %1922 = vrot.lane.b32.xlu0 %v1850_v55, %s7745_s27 }
 0x39d   :  { %1924 = vrot.lane.b32.xlu1 %v1851_v58, %s7745_s27 }
 0x3a0   :  { %v1775_v3 = vpop.permute.xlu1 %1774 }
 0x3a1   :  { %v1801_v52 = vsel %vm1478_vm7, %v1773_v36, %v1775_v3  ;;  %v1779_v6 = vpop.permute.xlu0 %1778  ;;  %v1802_v53 = vsel %vm1478_vm7, %v1775_v3, %v1777_v49  ;;  %v2052_v36 = vld [vmem:[#allocation4 + $0x538] sm:$0xff] }
 0x3a2   :  { %v1852_v54 = vmul.f32 %v8481_v4, %v1801_v52  ;;  %v1803_v56 = vsel %vm1478_vm7, %v1777_v49, %v1779_v6  ;;  %v1853_v17 = vmul.f32 %v8497_v12, %v1802_v53  ;;  %v1855_v2 = vmul.f32 0.0, %v1779_v6  ;;  %v2056_v52 = vld [vmem:[#allocation4 + $0x558] sm:$0xff]  ;;  %v2055_v6 = vld [vmem:[#allocation4 + $0x550] sm:$0xff]  ;;  %v2057_v53 = vld [vmem:[#allocation4 + $0x560] sm:$0xff] }
 0x3a3   :  { %v1854_v18 = vmul.f32 %v8491_v29, %v1803_v56 }
 0x3a4   :  { %1926 = vrot.lane.b32.xlu2 %v1852_v54, %s7745_s27  ;;  %1928 = vrot.lane.b32.xlu0 %v1853_v17, %s7745_s27 }
 0x3a5   :  { %1930 = vrot.lane.b32.xlu1 %v1854_v18, %s7745_s27 }
 0x3ac   :  { %2085 = vrot.lane.b32.xlu0 %v2035_v8, %s7744_s26  ;;  %1932 = vrot.lane.b32.xlu2 %v1855_v2, %s7745_s27 }
 0x3ad   :  { %2087 = vrot.lane.b32.xlu1 %v2036_v9, %s7744_s26  ;;  %v2059_v9 = vld [vmem:[#allocation4 + $0x570] sm:$0xff] }
 0x3b4   :  { %2091 = vrot.lane.b32.xlu0 %v2038_v28, %s7744_s26  ;;  %2089 = vrot.lane.b32.xlu2 %v2037_v10, %s7744_s26  ;;  %v2058_v28 = vld [vmem:[#allocation4 + $0x568] sm:$0xff] }
 0x3b5   :  { %2093 = vrot.lane.b32.xlu1 %v2039_v15, %s7744_s26 }
 0x3bc   :  { %2097 = vrot.lane.b32.xlu0 %v2041_v16, %s7744_s26  ;;  %2095 = vrot.lane.b32.xlu2 %v2040_v41, %s7744_s26 }
 0x3bd   :  { %2099 = vrot.lane.b32.xlu1 %v2042_v45, %s7744_s26 }
 0x3c4   :  { %2103 = vrot.lane.b32.xlu0 %v2044_v46, %s7744_s26  ;;  %2101 = vrot.lane.b32.xlu2 %v2043_v20, %s7744_s26 }
 0x3c5   :  { %2105 = vrot.lane.b32.xlu1 %v2045_v21, %s7744_s26 }
 0x3c6   :  { %v1885_v61 = vpop.permute.xlu2 %1884 }
 0x3cc   :  { %2109 = vrot.lane.b32.xlu0 %v2047_v22, %s7744_s26  ;;  %2107 = vrot.lane.b32.xlu2 %v2046_v7, %s7744_s26 }
 0x3cd   :  { %2111 = vrot.lane.b32.xlu1 %v2048_v32, %s7744_s26 }
 0x3ce   :  { %v1891_v31 = vpop.permute.xlu2 %1890 }
 0x3d4   :  { %2115 = vrot.lane.b32.xlu0 %v2050_v30, %s7744_s26  ;;  %2113 = vrot.lane.b32.xlu2 %v2049_v23, %s7744_s26 }
 0x3d5   :  { %2117 = vrot.lane.b32.xlu1 %v2051_v25, %s7744_s26 }
 0x3d6   :  { %v1883_v27 = vpop.permute.xlu1 %1882  ;;  %v1897_v34 = vpop.permute.xlu2 %1896 }
 0x3d7   :  { %v1934_v44 = vsel %vm1323_vm6, %v1883_v27, %v1885_v61 }
 0x3d8   :  { %1984 = vst [vmem:[#allocation3 + $0x3e8] sm:$0xff] %v1934_v44 }
 0x3dc   :  { %2121 = vrot.lane.b32.xlu0 %v2053_v43, %s7744_s26  ;;  %2119 = vrot.lane.b32.xlu2 %v2052_v36, %s7744_s26 }
 0x3dd   :  { %2123 = vrot.lane.b32.xlu1 %v2054_v38, %s7744_s26 }
 0x3de   :  { %v1887_v39 = vpop.permute.xlu0 %1886  ;;  %v1903_v40 = vpop.permute.xlu2 %1902 }
 0x3df   :  { %v1889_v55 = vpop.permute.xlu1 %1888  ;;  %v1935_v58 = vsel %vm1323_vm6, %v1885_v61, %v1887_v39 }
 0x3e0   :  { %v1937_v49 = vsel %vm1323_vm6, %v1889_v55, %v1891_v31  ;;  %v1936_v3 = vsel %vm1323_vm6, %v1887_v39, %v1889_v55  ;;  %1985 = vst [vmem:[#allocation3 + $0x3f0] sm:$0xff] %v1935_v58 }
 0x3e1   :  { %1987 = vst [vmem:[#allocation3 + $0x400] sm:$0xff] %v1937_v49 }
 0x3e2   :  { %1986 = vst [vmem:[#allocation3 + $0x3f8] sm:$0xff] %v1936_v3 }
 0x3e4   :  { %2127 = vrot.lane.b32.xlu0 %v2056_v52, %s7744_s26  ;;  %2125 = vrot.lane.b32.xlu2 %v2055_v6, %s7744_s26 }
 0x3e5   :  { %2129 = vrot.lane.b32.xlu1 %v2057_v53, %s7744_s26 }
 0x3e6   :  { %v1893_v54 = vpop.permute.xlu0 %1892  ;;  %v1909_v56 = vpop.permute.xlu2 %1908 }
 0x3e7   :  { %v1895_v17 = vpop.permute.xlu1 %1894  ;;  %v1938_v18 = vsel %vm1323_vm6, %v1891_v31, %v1893_v54 }
 0x3e8   :  { %v1940_v2 = vsel %vm1323_vm6, %v1895_v17, %v1897_v34  ;;  %v1939_v8 = vsel %vm1323_vm6, %v1893_v54, %v1895_v17  ;;  %1988 = vst [vmem:[#allocation3 + $0x408] sm:$0xff] %v1938_v18 }
 0x3e9   :  { %1990 = vst [vmem:[#allocation3 + $0x418] sm:$0xff] %v1940_v2 }
 0x3ea   :  { %1989 = vst [vmem:[#allocation3 + $0x410] sm:$0xff] %v1939_v8 }
 0x3ec   :  { %2133 = vrot.lane.b32.xlu0 %v2059_v9, %s7744_s26  ;;  %2131 = vrot.lane.b32.xlu2 %v2058_v28, %s7744_s26 }
 0x3ee   :  { %v1899_v10 = vpop.permute.xlu0 %1898  ;;  %v1915_v15 = vpop.permute.xlu2 %1914 }
 0x3ef   :  { %v1901_v16 = vpop.permute.xlu1 %1900  ;;  %v1941_v41 = vsel %vm1323_vm6, %v1897_v34, %v1899_v10 }
 0x3f0   :  { %v1943_v45 = vsel %vm1323_vm6, %v1901_v16, %v1903_v40  ;;  %v1942_v46 = vsel %vm1323_vm6, %v1899_v10, %v1901_v16  ;;  %1991 = vst [vmem:[#allocation3 + $0x420] sm:$0xff] %v1941_v41 }
 0x3f1   :  { %1993 = vst [vmem:[#allocation3 + $0x430] sm:$0xff] %v1943_v45 }
 0x3f2   :  { %1992 = vst [vmem:[#allocation3 + $0x428] sm:$0xff] %v1942_v46 }
 0x3f6   :  { %v1905_v20 = vpop.permute.xlu0 %1904  ;;  %v1921_v21 = vpop.permute.xlu2 %1920 }
 0x3f7   :  { %v1907_v61 = vpop.permute.xlu1 %1906  ;;  %v1944_v22 = vsel %vm1323_vm6, %v1903_v40, %v1905_v20 }
 0x3f8   :  { %v1946_v7 = vsel %vm1323_vm6, %v1907_v61, %v1909_v56  ;;  %v1945_v32 = vsel %vm1323_vm6, %v1905_v20, %v1907_v61  ;;  %1994 = vst [vmem:[#allocation3 + $0x438] sm:$0xff] %v1944_v22 }
 0x3f9   :  { %1996 = vst [vmem:[#allocation3 + $0x448] sm:$0xff] %v1946_v7 }
 0x3fa   :  { %1995 = vst [vmem:[#allocation3 + $0x440] sm:$0xff] %v1945_v32 }
 0x3fe   :  { %v1911_v31 = vpop.permute.xlu0 %1910  ;;  %v1927_v25 = vpop.permute.xlu2 %1926 }
 0x3ff   :  { %v1913_v30 = vpop.permute.xlu1 %1912  ;;  %v1947_v23 = vsel %vm1323_vm6, %v1909_v56, %v1911_v31 }
 0x400   :  { %v1949_v27 = vsel %vm1323_vm6, %v1913_v30, %v1915_v15  ;;  %v1948_v34 = vsel %vm1323_vm6, %v1911_v31, %v1913_v30  ;;  %1997 = vst [vmem:[#allocation3 + $0x450] sm:$0xff] %v1947_v23 }
 0x401   :  { %1999 = vst [vmem:[#allocation3 + $0x460] sm:$0xff] %v1949_v27 }
 0x402   :  { %1998 = vst [vmem:[#allocation3 + $0x458] sm:$0xff] %v1948_v34 }
 0x406   :  { %v1917_v44 = vpop.permute.xlu0 %1916  ;;  %v1933_v38 = vpop.permute.xlu2 %1932 }
 0x407   :  { %v1919_v43 = vpop.permute.xlu1 %1918  ;;  %v1950_v36 = vsel %vm1323_vm6, %v1915_v15, %v1917_v44 }
 0x408   :  { %v1952_v39 = vsel %vm1323_vm6, %v1919_v43, %v1921_v21  ;;  %v1951_v40 = vsel %vm1323_vm6, %v1917_v44, %v1919_v43  ;;  %2000 = vst [vmem:[#allocation3 + $0x468] sm:$0xff] %v1950_v36 }
 0x409   :  { %2002 = vst [vmem:[#allocation3 + $0x478] sm:$0xff] %v1952_v39 }
 0x40a   :  { %2001 = vst [vmem:[#allocation3 + $0x470] sm:$0xff] %v1951_v40 }
 0x40e   :  { %v1923_v55 = vpop.permute.xlu0 %1922  ;;  %v2090_v3 = vpop.permute.xlu2 %2089 }
 0x40f   :  { %v1925_v58 = vpop.permute.xlu1 %1924  ;;  %v1953_v49 = vsel %vm1323_vm6, %v1921_v21, %v1923_v55 }
 0x410   :  { %v1955_v52 = vsel %vm1323_vm6, %v1925_v58, %v1927_v25  ;;  %v1954_v6 = vsel %vm1323_vm6, %v1923_v55, %v1925_v58  ;;  %2003 = vst [vmem:[#allocation3 + $0x480] sm:$0xff] %v1953_v49 }
 0x411   :  { %2005 = vst [vmem:[#allocation3 + $0x490] sm:$0xff] %v1955_v52 }
 0x412   :  { %2004 = vst [vmem:[#allocation3 + $0x488] sm:$0xff] %v1954_v6 }
 0x416   :  { %v1929_v53 = vpop.permute.xlu0 %1928  ;;  %v2096_v2 = vpop.permute.xlu2 %2095 }
 0x417   :  { %v1931_v54 = vpop.permute.xlu1 %1930  ;;  %v1956_v56 = vsel %vm1323_vm6, %v1927_v25, %v1929_v53 }
 0x418   :  { %v1958_v17 = vsel %vm1323_vm6, %v1931_v54, %v1933_v38  ;;  %v1957_v18 = vsel %vm1323_vm6, %v1929_v53, %v1931_v54  ;;  %2006 = vst [vmem:[#allocation3 + $0x498] sm:$0xff] %v1956_v56 }
 0x419   :  { %2008 = vst [vmem:[#allocation3 + $0x4a8] sm:$0xff] %v1958_v17 }
 0x41a   :  { %2007 = vst [vmem:[#allocation3 + $0x4a0] sm:$0xff] %v1957_v18 }
 0x41e   :  { %v2086_v8 = vpop.permute.xlu0 %2085  ;;  %v2102_v45 = vpop.permute.xlu2 %2101 }
 0x41f   :  { %v2088_v9 = vpop.permute.xlu1 %2087  ;;  %v2185_v28 = vmul.f32 %v8307_v35, %v2086_v8 }
 0x420   :  { %v2135_v10 = vsel %vm1121_vm5, %v2086_v8, %v2088_v9  ;;  %v2136_v15 = vsel %vm1121_vm5, %v2088_v9, %v2090_v3 }
 0x421   :  { %v2186_v16 = vmul.f32 %v8313_v37, %v2135_v10  ;;  %v2187_v41 = vmul.f32 %v8324_v42, %v2136_v15  ;;  %2237 = vrot.lane.b32.xlu1 %v2185_v28, %s7743_s25 }
 0x423   :  { %2239 = vrot.lane.b32.xlu2 %v2186_v16, %s7743_s25  ;;  %2241 = vrot.lane.b32.xlu0 %v2187_v41, %s7743_s25 }
 0x426   :  { %v2092_v46 = vpop.permute.xlu0 %2091  ;;  %v2108_v7 = vpop.permute.xlu2 %2107 }
 0x427   :  { %v2094_v20 = vpop.permute.xlu1 %2093  ;;  %v2137_v21 = vsel %vm1121_vm5, %v2090_v3, %v2092_v46 }
 0x428   :  { %v2138_v35 = vsel %vm1121_vm5, %v2092_v46, %v2094_v20  ;;  %v2188_v61 = vmul.f32 %v8331_v50, %v2137_v21  ;;  %v2139_v22 = vsel %vm1121_vm5, %v2094_v20, %v2096_v2 }
 0x429   :  { %v2189_v37 = vmul.f32 %v8337_v5, %v2138_v35  ;;  %v2190_v42 = vmul.f32 %v8348_v60, %v2139_v22  ;;  %v2390_v22 = vld [vmem:[#allocation4 + $0x578] sm:$0xff] }
 0x42a   :  { %2243 = vrot.lane.b32.xlu1 %v2188_v61, %s7743_s25 }
 0x42b   :  { %2245 = vrot.lane.b32.xlu2 %v2189_v37, %s7743_s25  ;;  %2247 = vrot.lane.b32.xlu0 %v2190_v42, %s7743_s25  ;;  %v2394_v37 = vld [vmem:[#allocation4 + $0x598] sm:$0xff]  ;;  %v2396_v42 = vld [vmem:[#allocation4 + $0x5a8] sm:$0xff] }
 0x42e   :  { %v2098_v32 = vpop.permute.xlu0 %2097  ;;  %v2114_v43 = vpop.permute.xlu2 %2113 }
 0x42f   :  { %v2100_v31 = vpop.permute.xlu1 %2099  ;;  %v2140_v30 = vsel %vm1121_vm5, %v2096_v2, %v2098_v32 }
 0x430   :  { %v2141_v23 = vsel %vm1121_vm5, %v2098_v32, %v2100_v31  ;;  %v2191_v50 = vmul.f32 %v8355_v14, %v2140_v30  ;;  %v2142_v25 = vsel %vm1121_vm5, %v2100_v31, %v2102_v45  ;;  %v2399_v32 = vld [vmem:[#allocation4 + $0x5c0] sm:$0xff]  ;;  %v2398_v31 = vld [vmem:[#allocation4 + $0x5b8] sm:$0xff] }
 0x431   :  { %v2192_v5 = vmul.f32 %v8361_v0, %v2141_v23  ;;  %v2193_v60 = vmul.f32 %v8372_v26, %v2142_v25  ;;  %v2400_v23 = vld [vmem:[#allocation4 + $0x5c8] sm:$0xff]  ;;  %v2401_v25 = vld [vmem:[#allocation4 + $0x5d0] sm:$0xff] }
 0x432   :  { %2249 = vrot.lane.b32.xlu1 %v2191_v50, %s7743_s25  ;;  %v2402_v50 = vld [vmem:[#allocation4 + $0x5d8] sm:$0xff] }
 0x433   :  { %2251 = vrot.lane.b32.xlu2 %v2192_v5, %s7743_s25  ;;  %2253 = vrot.lane.b32.xlu0 %v2193_v60, %s7743_s25  ;;  %v2403_v60 = vld [vmem:[#allocation4 + $0x5e0] sm:$0xff] }
 0x436   :  { %v2104_v27 = vpop.permute.xlu0 %2103  ;;  %v2120_v3 = vpop.permute.xlu2 %2119 }
 0x437   :  { %v2106_v34 = vpop.permute.xlu1 %2105  ;;  %v2143_v44 = vsel %vm1121_vm5, %v2102_v45, %v2104_v27 }
 0x438   :  { %v2144_v36 = vsel %vm1121_vm5, %v2104_v27, %v2106_v34  ;;  %v2194_v14 = vmul.f32 %v8379_v11, %v2143_v44  ;;  %v2145_v38 = vsel %vm1121_vm5, %v2106_v34, %v2108_v7  ;;  %v2405_v27 = vld [vmem:[#allocation4 + $0x5f0] sm:$0xff]  ;;  %v2404_v34 = vld [vmem:[#allocation4 + $0x5e8] sm:$0xff] }
 0x439   :  { %v2195_v0 = vmul.f32 %v8385_v13, %v2144_v36  ;;  %v2196_v26 = vmul.f32 %v8396_v19, %v2145_v38  ;;  %v2408_v36 = vld [vmem:[#allocation4 + $0x608] sm:$0xff] }
 0x43a   :  { %2255 = vrot.lane.b32.xlu1 %v2194_v14, %s7743_s25  ;;  %v2407_v14 = vld [vmem:[#allocation4 + $0x600] sm:$0xff] }
 0x43b   :  { %2257 = vrot.lane.b32.xlu2 %v2195_v0, %s7743_s25  ;;  %2259 = vrot.lane.b32.xlu0 %v2196_v26, %s7743_s25 }
 0x43e   :  { %v2110_v39 = vpop.permute.xlu0 %2109  ;;  %v2126_v17 = vpop.permute.xlu2 %2125 }
 0x43f   :  { %v2112_v40 = vpop.permute.xlu1 %2111  ;;  %v2146_v55 = vsel %vm1121_vm5, %v2108_v7, %v2110_v39  ;;  %v2395_v7 = vld [vmem:[#allocation4 + $0x5a0] sm:$0xff] }
 0x440   :  { %v2147_v58 = vsel %vm1121_vm5, %v2110_v39, %v2112_v40  ;;  %v2197_v11 = vmul.f32 %v8403_v59, %v2146_v55  ;;  %v2148_v49 = vsel %vm1121_vm5, %v2112_v40, %v2114_v43  ;;  %v2409_v39 = vld [vmem:[#allocation4 + $0x610] sm:$0xff]  ;;  %v2411_v40 = vld [vmem:[#allocation4 + $0x620] sm:$0xff]  ;;  %v2410_v55 = vld [vmem:[#allocation4 + $0x618] sm:$0xff] }
 0x441   :  { %v2198_v13 = vmul.f32 %v8409_v62, %v2147_v58  ;;  %v2199_v19 = vmul.f32 %v8420_v24, %v2148_v49 }
 0x442   :  { %2261 = vrot.lane.b32.xlu1 %v2197_v11, %s7743_s25 }
 0x443   :  { %2263 = vrot.lane.b32.xlu2 %v2198_v13, %s7743_s25  ;;  %2265 = vrot.lane.b32.xlu0 %v2199_v19, %s7743_s25 }
 0x446   :  { %v2116_v52 = vpop.permute.xlu0 %2115  ;;  %v2132_v10 = vpop.permute.xlu2 %2131 }
 0x447   :  { %v2118_v6 = vpop.permute.xlu1 %2117  ;;  %v2149_v53 = vsel %vm1121_vm5, %v2114_v43, %v2116_v52  ;;  %v2406_v43 = vld [vmem:[#allocation4 + $0x5f8] sm:$0xff] }
 0x448   :  { %v2150_v54 = vsel %vm1121_vm5, %v2116_v52, %v2118_v6  ;;  %v2200_v59 = vmul.f32 %v8427_v33, %v2149_v53  ;;  %v2151_v56 = vsel %vm1121_vm5, %v2118_v6, %v2120_v3  ;;  %v2412_v52 = vld [vmem:[#allocation4 + $0x628] sm:$0xff]  ;;  %v2414_v6 = vld [vmem:[#allocation4 + $0x638] sm:$0xff]  ;;  %v2413_v53 = vld [vmem:[#allocation4 + $0x630] sm:$0xff] }
 0x449   :  { %v2201_v62 = vmul.f32 %v8433_v47, %v2150_v54  ;;  %v2202_v24 = vmul.f32 %v8444_v57, %v2151_v56 }
 0x44a   :  { %2267 = vrot.lane.b32.xlu1 %v2200_v59, %s7743_s25 }
 0x44b   :  { %2269 = vrot.lane.b32.xlu2 %v2201_v62, %s7743_s25  ;;  %2271 = vrot.lane.b32.xlu0 %v2202_v24, %s7743_s25 }
 0x44e   :  { %v2122_v18 = vpop.permute.xlu0 %2121 }
 0x44f   :  { %v2124_v2 = vpop.permute.xlu1 %2123  ;;  %v2152_v8 = vsel %vm1121_vm5, %v2120_v3, %v2122_v18 }
 0x450   :  { %v2153_v9 = vsel %vm1121_vm5, %v2122_v18, %v2124_v2  ;;  %v2203_v33 = vmul.f32 %v8451_v48, %v2152_v8  ;;  %v2154_v28 = vsel %vm1121_vm5, %v2124_v2, %v2126_v17 }
 0x451   :  { %v2204_v47 = vmul.f32 %v8457_v51, %v2153_v9  ;;  %v2205_v57 = vmul.f32 %v8468_v63, %v2154_v28 }
 0x452   :  { %2273 = vrot.lane.b32.xlu1 %v2203_v33, %s7743_s25 }
 0x453   :  { %2275 = vrot.lane.b32.xlu2 %v2204_v47, %s7743_s25  ;;  %2277 = vrot.lane.b32.xlu0 %v2205_v57, %s7743_s25 }
 0x456   :  { %v2128_v15 = vpop.permute.xlu0 %2127 }
 0x457   :  { %v2130_v16 = vpop.permute.xlu1 %2129  ;;  %v2155_v41 = vsel %vm1121_vm5, %v2126_v17, %v2128_v15 }
 0x458   :  { %v2156_v45 = vsel %vm1121_vm5, %v2128_v15, %v2130_v16  ;;  %v2206_v48 = vmul.f32 %v8475_v1, %v2155_v41  ;;  %v2157_v46 = vsel %vm1121_vm5, %v2130_v16, %v2132_v10  ;;  %v2391_v1 = vld [vmem:[#allocation4 + $0x580] sm:$0xff] }
 0x459   :  { %v2207_v51 = vmul.f32 %v8481_v4, %v2156_v45  ;;  %v2208_v63 = vmul.f32 %v8497_v12, %v2157_v46  ;;  %v2393_v4 = vld [vmem:[#allocation4 + $0x590] sm:$0xff]  ;;  %v2392_v12 = vld [vmem:[#allocation4 + $0x588] sm:$0xff] }
 0x45a   :  { %2279 = vrot.lane.b32.xlu1 %v2206_v48, %s7743_s25 }
 0x45b   :  { %2281 = vrot.lane.b32.xlu2 %v2207_v51, %s7743_s25  ;;  %2283 = vrot.lane.b32.xlu0 %v2208_v63, %s7743_s25 }
 0x45e   :  { %v2134_v20 = vpop.permute.xlu0 %2133 }
 0x45f   :  { %v2158_v21 = vsel %vm1121_vm5, %v2132_v10, %v2134_v20  ;;  %v2210_v35 = vmul.f32 0.0, %v2134_v20 }
 0x460   :  { %v2209_v61 = vmul.f32 %v8491_v29, %v2158_v21  ;;  %v2397_v29 = vld [vmem:[#allocation4 + $0x5b0] sm:$0xff] }
 0x462   :  { %2285 = vrot.lane.b32.xlu1 %v2209_v61, %s7743_s25 }
 0x463   :  { %2287 = vrot.lane.b32.xlu2 %v2210_v35, %s7743_s25  ;;  %2440 = vrot.lane.b32.xlu0 %v2390_v22, %s7742_s24 }
 0x46a   :  { %2442 = vrot.lane.b32.xlu1 %v2391_v1, %s7742_s24 }
 0x46b   :  { %2446 = vrot.lane.b32.xlu0 %v2393_v4, %s7742_s24  ;;  %2444 = vrot.lane.b32.xlu2 %v2392_v12, %s7742_s24 }
 0x472   :  { %2448 = vrot.lane.b32.xlu1 %v2394_v37, %s7742_s24 }
 0x473   :  { %2452 = vrot.lane.b32.xlu0 %v2396_v42, %s7742_s24  ;;  %2450 = vrot.lane.b32.xlu2 %v2395_v7, %s7742_s24 }
 0x47a   :  { %2454 = vrot.lane.b32.xlu1 %v2397_v29, %s7742_s24 }
 0x47b   :  { %2458 = vrot.lane.b32.xlu0 %v2399_v32, %s7742_s24  ;;  %2456 = vrot.lane.b32.xlu2 %v2398_v31, %s7742_s24 }
 0x47d   :  { %v8762_v30 = vpop.permute.xlu2 %2239 }
 0x482   :  { %2460 = vrot.lane.b32.xlu1 %v2400_v23, %s7742_s24 }
 0x483   :  { %2464 = vrot.lane.b32.xlu0 %v2402_v50, %s7742_s24  ;;  %2462 = vrot.lane.b32.xlu2 %v2401_v25, %s7742_s24  ;;  %v8810_v25 = vld [vmem:[%s10796_s1] sm:$0xff] }
 0x485   :  { %v2246_v5 = vpop.permute.xlu2 %2245 }
 0x48a   :  { %2466 = vrot.lane.b32.xlu1 %v2403_v60, %s7742_s24 }
 0x48b   :  { %2470 = vrot.lane.b32.xlu0 %v2405_v27, %s7742_s24  ;;  %2468 = vrot.lane.b32.xlu2 %v2404_v34, %s7742_s24 }
 0x48d   :  { %v2252_v44 = vpop.permute.xlu2 %2251 }
 0x492   :  { %2472 = vrot.lane.b32.xlu1 %v2406_v43, %s7742_s24 }
 0x493   :  { %2476 = vrot.lane.b32.xlu0 %v2408_v36, %s7742_s24  ;;  %v8772_v38 = vpop.permute.xlu1 %2237  ;;  %2474 = vrot.lane.b32.xlu2 %v2407_v14, %s7742_s24  ;;  %v8819_v36 = vld [vmem:[%s10796_s1 + $0x8] sm:$0xff] }
 0x495   :  { %v8775_v0 = vpop.permute.xlu0 %2241  ;;  %v2258_v26 = vpop.permute.xlu2 %2257 }
 0x49a   :  { %2478 = vrot.lane.b32.xlu1 %v2409_v39, %s7742_s24  ;;  %v8826_v39 = vld [vmem:[%s10796_s1 + $0x10] sm:$0xff] }
 0x49b   :  { %2482 = vrot.lane.b32.xlu0 %v2411_v40, %s7742_s24  ;;  %2480 = vrot.lane.b32.xlu2 %v2410_v55, %s7742_s24  ;;  %v8832_v55 = vld [vmem:[%s10796_s1 + $0x18] sm:$0xff] }
 0x49c   :  { %v2244_v58 = vpop.permute.xlu1 %2243 }
 0x49d   :  { %v2291_v11 = vsel %vm966_vm4, %v8775_v0, %v2244_v58  ;;  %v2292_v49 = vsel %vm966_vm4, %v2244_v58, %v2246_v5  ;;  %v2248_v13 = vpop.permute.xlu0 %2247  ;;  %v2264_v19 = vpop.permute.xlu2 %2263 }
 0x49e   :  { %2341 = vst [vmem:[#allocation3 + $0x4c0] sm:$0xff] %v2291_v11  ;;  %v2293_v3 = vsel %vm966_vm4, %v2246_v5, %v2248_v13 }
 0x49f   :  { %2342 = vst [vmem:[#allocation3 + $0x4c8] sm:$0xff] %v2292_v49 }
 0x4a0   :  { %2343 = vst [vmem:[#allocation3 + $0x4d0] sm:$0xff] %v2293_v3 }
 0x4a2   :  { %2484 = vrot.lane.b32.xlu1 %v2412_v52, %s7742_s24  ;;  %v8843_v52 = vld [vmem:[%s10796_s1 + $0x20] sm:$0xff] }
 0x4a3   :  { %2488 = vrot.lane.b32.xlu0 %v2414_v6, %s7742_s24  ;;  %2486 = vrot.lane.b32.xlu2 %v2413_v53, %s7742_s24 }
 0x4a4   :  { %v2250_v54 = vpop.permute.xlu1 %2249 }
 0x4a5   :  { %v2294_v59 = vsel %vm966_vm4, %v2248_v13, %v2250_v54  ;;  %v2295_v56 = vsel %vm966_vm4, %v2250_v54, %v2252_v44  ;;  %v2254_v62 = vpop.permute.xlu0 %2253  ;;  %v2270_v17 = vpop.permute.xlu2 %2269  ;;  %v8850_v54 = vld [vmem:[%s10796_s1 + $0x28] sm:$0xff] }
 0x4a6   :  { %2344 = vst [vmem:[#allocation3 + $0x4d8] sm:$0xff] %v2294_v59  ;;  %v2296_v24 = vsel %vm966_vm4, %v2252_v44, %v2254_v62 }
 0x4a7   :  { %2345 = vst [vmem:[#allocation3 + $0x4e0] sm:$0xff] %v2295_v56  ;;  %v8856_v56 = vld [vmem:[%s10796_s1 + $0x30] sm:$0xff] }
 0x4a8   :  { %2346 = vst [vmem:[#allocation3 + $0x4e8] sm:$0xff] %v2296_v24 }
 0x4ac   :  { %v2256_v18 = vpop.permute.xlu1 %2255 }
 0x4ad   :  { %v2297_v2 = vsel %vm966_vm4, %v2254_v62, %v2256_v18  ;;  %v2298_v8 = vsel %vm966_vm4, %v2256_v18, %v2258_v26  ;;  %v2260_v9 = vpop.permute.xlu0 %2259  ;;  %v2276_v28 = vpop.permute.xlu2 %2275 }
 0x4ae   :  { %2347 = vst [vmem:[#allocation3 + $0x4f0] sm:$0xff] %v2297_v2  ;;  %v2299_v33 = vsel %vm966_vm4, %v2258_v26, %v2260_v9 }
 0x4af   :  { %2348 = vst [vmem:[#allocation3 + $0x4f8] sm:$0xff] %v2298_v8 }
 0x4b0   :  { %2349 = vst [vmem:[#allocation3 + $0x500] sm:$0xff] %v2299_v33 }
 0x4b4   :  { %v2262_v47 = vpop.permute.xlu1 %2261 }
 0x4b5   :  { %v2300_v57 = vsel %vm966_vm4, %v2260_v9, %v2262_v47  ;;  %v2301_v10 = vsel %vm966_vm4, %v2262_v47, %v2264_v19  ;;  %v2266_v15 = vpop.permute.xlu0 %2265  ;;  %v2282_v41 = vpop.permute.xlu2 %2281  ;;  %v8867_v9 = vld [vmem:[%s10796_s1 + $0x38] sm:$0xff]  ;;  %v8874_v47 = vld [vmem:[%s10796_s1 + $0x40] sm:$0xff] }
 0x4b6   :  { %2350 = vst [vmem:[#allocation3 + $0x508] sm:$0xff] %v2300_v57  ;;  %v2302_v16 = vsel %vm966_vm4, %v2264_v19, %v2266_v15 }
 0x4b7   :  { %2351 = vst [vmem:[#allocation3 + $0x510] sm:$0xff] %v2301_v10  ;;  %v8880_v10 = vld [vmem:[%s10796_s1 + $0x48] sm:$0xff] }
 0x4b8   :  { %2352 = vst [vmem:[#allocation3 + $0x518] sm:$0xff] %v2302_v16 }
 0x4bc   :  { %v2268_v45 = vpop.permute.xlu1 %2267 }
 0x4bd   :  { %v2303_v48 = vsel %vm966_vm4, %v2266_v15, %v2268_v45  ;;  %v2304_v46 = vsel %vm966_vm4, %v2268_v45, %v2270_v17  ;;  %v2272_v51 = vpop.permute.xlu0 %2271  ;;  %v2288_v20 = vpop.permute.xlu2 %2287 }
 0x4be   :  { %2353 = vst [vmem:[#allocation3 + $0x520] sm:$0xff] %v2303_v48  ;;  %v2305_v63 = vsel %vm966_vm4, %v2270_v17, %v2272_v51 }
 0x4bf   :  { %2354 = vst [vmem:[#allocation3 + $0x528] sm:$0xff] %v2304_v46 }
 0x4c0   :  { %2355 = vst [vmem:[#allocation3 + $0x530] sm:$0xff] %v2305_v63 }
 0x4c4   :  { %v2274_v21 = vpop.permute.xlu1 %2273 }
 0x4c5   :  { %v2306_v35 = vsel %vm966_vm4, %v2272_v51, %v2274_v21  ;;  %v2307_v61 = vsel %vm966_vm4, %v2274_v21, %v2276_v28  ;;  %v2278_v22 = vpop.permute.xlu0 %2277  ;;  %v2445_v12 = vpop.permute.xlu2 %2444  ;;  %v8891_v51 = vld [vmem:[%s10796_s1 + $0x50] sm:$0xff]  ;;  %v8898_v21 = vld [vmem:[%s10796_s1 + $0x58] sm:$0xff] }
 0x4c6   :  { %2356 = vst [vmem:[#allocation3 + $0x538] sm:$0xff] %v2306_v35  ;;  %v2308_v1 = vsel %vm966_vm4, %v2276_v28, %v2278_v22 }
 0x4c7   :  { %2357 = vst [vmem:[#allocation3 + $0x540] sm:$0xff] %v2307_v61  ;;  %v8904_v61 = vld [vmem:[%s10796_s1 + $0x60] sm:$0xff] }
 0x4c8   :  { %2358 = vst [vmem:[#allocation3 + $0x548] sm:$0xff] %v2308_v1 }
 0x4cc   :  { %v2280_v4 = vpop.permute.xlu1 %2279 }
 0x4cd   :  { %v2309_v37 = vsel %vm966_vm4, %v2278_v22, %v2280_v4  ;;  %v2310_v42 = vsel %vm966_vm4, %v2280_v4, %v2282_v41  ;;  %v2284_v7 = vpop.permute.xlu0 %2283  ;;  %v2451_v60 = vpop.permute.xlu2 %2450 }
 0x4ce   :  { %2359 = vst [vmem:[#allocation3 + $0x550] sm:$0xff] %v2309_v37  ;;  %v2311_v29 = vsel %vm966_vm4, %v2282_v41, %v2284_v7 }
 0x4cf   :  { %2360 = vst [vmem:[#allocation3 + $0x558] sm:$0xff] %v2310_v42  ;;  %v8915_v42 = vld [vmem:[%s10796_s1 + $0x68] sm:$0xff] }
 0x4d0   :  { %2361 = vst [vmem:[#allocation3 + $0x560] sm:$0xff] %v2311_v29 }
 0x4d4   :  { %v2286_v32 = vpop.permute.xlu1 %2285 }
 0x4d5   :  { %v2312_v31 = vsel %vm966_vm4, %v2284_v7, %v2286_v32  ;;  %v2313_v23 = vsel %vm966_vm4, %v2286_v32, %v2288_v20  ;;  %v2441_v50 = vpop.permute.xlu0 %2440  ;;  %v2457_v11 = vpop.permute.xlu2 %2456  ;;  %v8922_v32 = vld [vmem:[%s10796_s1 + $0x70] sm:$0xff] }
 0x4d6   :  { %2362 = vst [vmem:[#allocation3 + $0x568] sm:$0xff] %v2312_v31  ;;  %v2540_v5 = vmul.f32 %v8810_v25, %v2441_v50 }
 0x4d7   :  { %2363 = vst [vmem:[#allocation3 + $0x570] sm:$0xff] %v2313_v23 }
 0x4d8   :  { %2592 = vrot.lane.b32.xlu1 %v2540_v5, %s7741_s23 }
 0x4dc   :  { %v2443_v27 = vpop.permute.xlu1 %2442 }
 0x4dd   :  { %v2490_v34 = vsel %vm764_vm3, %v2441_v50, %v2443_v27  ;;  %v2447_v44 = vpop.permute.xlu0 %2446  ;;  %v2491_v43 = vsel %vm764_vm3, %v2443_v27, %v2445_v12  ;;  %v2463_v24 = vpop.permute.xlu2 %2462  ;;  %v8928_v50 = vld [vmem:[%s10796_s1 + $0x78] sm:$0xff] }
 0x4de   :  { %v2541_v14 = vmul.f32 %v8819_v36, %v2490_v34  ;;  %v2492_v26 = vsel %vm764_vm3, %v2445_v12, %v2447_v44  ;;  %v2542_v40 = vmul.f32 %v8826_v39, %v2491_v43  ;;  %v8939_v43 = vld [vmem:[%s10796_s1 + $0x80] sm:$0xff] }
 0x4df   :  { %v2543_v58 = vmul.f32 %v8832_v55, %v2492_v26 }
 0x4e0   :  { %2594 = vrot.lane.b32.xlu2 %v2541_v14, %s7741_s23  ;;  %2596 = vrot.lane.b32.xlu0 %v2542_v40, %s7741_s23  ;;  %v8946_v40 = vld [vmem:[%s10796_s1 + $0x88] sm:$0xff] }
 0x4e1   :  { %2598 = vrot.lane.b32.xlu1 %v2543_v58, %s7741_s23 }
 0x4e4   :  { %v2449_v49 = vpop.permute.xlu1 %2448 }
 0x4e5   :  { %v2493_v13 = vsel %vm764_vm3, %v2447_v44, %v2449_v49  ;;  %v2453_v19 = vpop.permute.xlu0 %2452  ;;  %v2494_v3 = vsel %vm764_vm3, %v2449_v49, %v2451_v60  ;;  %v2469_v41 = vpop.permute.xlu2 %2468 }
 0x4e6   :  { %v2544_v6 = vmul.f32 %v8843_v52, %v2493_v13  ;;  %v2495_v53 = vsel %vm764_vm3, %v2451_v60, %v2453_v19  ;;  %v2545_v59 = vmul.f32 %v8850_v54, %v2494_v3 }
 0x4e7   :  { %v2546_v62 = vmul.f32 %v8856_v56, %v2495_v53 }
 0x4e8   :  { %2600 = vrot.lane.b32.xlu2 %v2544_v6, %s7741_s23  ;;  %2602 = vrot.lane.b32.xlu0 %v2545_v59, %s7741_s23  ;;  %v8963_v59 = vld [vmem:[%s10796_s1 + $0x98] sm:$0xff] }
 0x4e9   :  { %2604 = vrot.lane.b32.xlu1 %v2546_v62, %s7741_s23 }
 0x4ec   :  { %v2455_v17 = vpop.permute.xlu1 %2454 }
 0x4ed   :  { %v2496_v18 = vsel %vm764_vm3, %v2453_v19, %v2455_v17  ;;  %v2459_v2 = vpop.permute.xlu0 %2458  ;;  %v2497_v8 = vsel %vm764_vm3, %v2455_v17, %v2457_v11  ;;  %v2475_v23 = vpop.permute.xlu2 %2474  ;;  %v8970_v17 = vld [vmem:[%s10796_s1 + $0xa0] sm:$0xff] }
 0x4ee   :  { %v2547_v33 = vmul.f32 %v8867_v9, %v2496_v18  ;;  %v2498_v28 = vsel %vm764_vm3, %v2457_v11, %v2459_v2  ;;  %v2548_v57 = vmul.f32 %v8874_v47, %v2497_v8  ;;  %v8952_v11 = vld [vmem:[%s10796_s1 + $0x90] sm:$0xff] }
 0x4ef   :  { %v2549_v15 = vmul.f32 %v8880_v10, %v2498_v28 }
 0x4f0   :  { %2606 = vrot.lane.b32.xlu2 %v2547_v33, %s7741_s23  ;;  %2608 = vrot.lane.b32.xlu0 %v2548_v57, %s7741_s23 }
 0x4f1   :  { %2610 = vrot.lane.b32.xlu1 %v2549_v15, %s7741_s23 }
 0x4f4   :  { %v2461_v16 = vpop.permute.xlu1 %2460 }
 0x4f5   :  { %v2499_v45 = vsel %vm764_vm3, %v2459_v2, %v2461_v16  ;;  %v2465_v48 = vpop.permute.xlu0 %2464  ;;  %v2500_v46 = vsel %vm764_vm3, %v2461_v16, %v2463_v24  ;;  %v2481_v13 = vpop.permute.xlu2 %2480  ;;  %v8976_v2 = vld [vmem:[%s10796_s1 + $0xa8] sm:$0xff] }
 0x4f6   :  { %v2550_v63 = vmul.f32 %v8891_v51, %v2499_v45  ;;  %v2501_v20 = vsel %vm764_vm3, %v2463_v24, %v2465_v48  ;;  %v2551_v35 = vmul.f32 %v8898_v21, %v2500_v46  ;;  %v8994_v46 = vld [vmem:[%s10796_s1 + $0xb8] sm:$0xff] }
 0x4f7   :  { %v2552_v22 = vmul.f32 %v8904_v61, %v2501_v20  ;;  %v9000_v20 = vld [vmem:[%s10796_s1 + $0xc0] sm:$0xff] }
 0x4f8   :  { %2612 = vrot.lane.b32.xlu2 %v2550_v63, %s7741_s23  ;;  %2614 = vrot.lane.b32.xlu0 %v2551_v35, %s7741_s23 }
 0x4f9   :  { %2616 = vrot.lane.b32.xlu1 %v2552_v22, %s7741_s23 }
 0x4fc   :  { %v2467_v1 = vpop.permute.xlu1 %2466 }
 0x4fd   :  { %v2502_v4 = vsel %vm764_vm3, %v2465_v48, %v2467_v1  ;;  %v2471_v12 = vpop.permute.xlu0 %2470  ;;  %v2503_v37 = vsel %vm764_vm3, %v2467_v1, %v2469_v41  ;;  %v2487_v33 = vpop.permute.xlu2 %2486  ;;  %v2745_v1 = vld [vmem:[#allocation4 + $0x640] sm:$0xff] }
 0x4fe   :  { %v2553_v7 = vmul.f32 %v8915_v42, %v2502_v4  ;;  %v2504_v29 = vsel %vm764_vm3, %v2469_v41, %v2471_v12  ;;  %v2554_v31 = vmul.f32 %v8922_v32, %v2503_v37  ;;  %v8987_v41 = vld [vmem:[%s10796_s1 + $0xb0] sm:$0xff]  ;;  %v2746_v4 = vld [vmem:[#allocation4 + $0x648] sm:$0xff]  ;;  %v2747_v37 = vld [vmem:[#allocation4 + $0x650] sm:$0xff] }
 0x4ff   :  { %v2555_v5 = vmul.f32 %v8928_v50, %v2504_v29  ;;  %v2751_v29 = vld [vmem:[#allocation4 + $0x670] sm:$0xff] }
 0x500   :  { %2618 = vrot.lane.b32.xlu2 %v2553_v7, %s7741_s23  ;;  %2620 = vrot.lane.b32.xlu0 %v2554_v31, %s7741_s23  ;;  %v2749_v7 = vld [vmem:[#allocation4 + $0x660] sm:$0xff]  ;;  %v2750_v31 = vld [vmem:[#allocation4 + $0x668] sm:$0xff] }
 0x501   :  { %2622 = vrot.lane.b32.xlu1 %v2555_v5, %s7741_s23  ;;  %v2754_v5 = vld [vmem:[#allocation4 + $0x688] sm:$0xff] }
 0x504   :  { %v2473_v60 = vpop.permute.xlu1 %2472 }
 0x505   :  { %v2505_v27 = vsel %vm764_vm3, %v2471_v12, %v2473_v60  ;;  %v2477_v34 = vpop.permute.xlu0 %2476  ;;  %v2506_v44 = vsel %vm764_vm3, %v2473_v60, %v2475_v23  ;;  %v2748_v12 = vld [vmem:[#allocation4 + $0x658] sm:$0xff]  ;;  %v2753_v60 = vld [vmem:[#allocation4 + $0x680] sm:$0xff] }
 0x506   :  { %v2556_v14 = vmul.f32 %v8939_v43, %v2505_v27  ;;  %v2507_v26 = vsel %vm764_vm3, %v2475_v23, %v2477_v34  ;;  %v2557_v58 = vmul.f32 %v8946_v40, %v2506_v44  ;;  %v2752_v23 = vld [vmem:[#allocation4 + $0x678] sm:$0xff]  ;;  %v2755_v27 = vld [vmem:[#allocation4 + $0x690] sm:$0xff]  ;;  %v2757_v44 = vld [vmem:[#allocation4 + $0x6a0] sm:$0xff] }
 0x507   :  { %v2558_v49 = vmul.f32 %v8952_v11, %v2507_v26  ;;  %v2758_v26 = vld [vmem:[#allocation4 + $0x6a8] sm:$0xff] }
 0x508   :  { %2624 = vrot.lane.b32.xlu2 %v2556_v14, %s7741_s23  ;;  %2626 = vrot.lane.b32.xlu0 %v2557_v58, %s7741_s23  ;;  %v2756_v14 = vld [vmem:[#allocation4 + $0x698] sm:$0xff] }
 0x509   :  { %2628 = vrot.lane.b32.xlu1 %v2558_v49, %s7741_s23  ;;  %v2760_v49 = vld [vmem:[#allocation4 + $0x6b8] sm:$0xff] }
 0x50c   :  { %v2479_v19 = vpop.permute.xlu1 %2478 }
 0x50d   :  { %v2508_v3 = vsel %vm764_vm3, %v2477_v34, %v2479_v19  ;;  %v2483_v6 = vpop.permute.xlu0 %2482  ;;  %v2509_v53 = vsel %vm764_vm3, %v2479_v19, %v2481_v13  ;;  %v2761_v19 = vld [vmem:[#allocation4 + $0x6c0] sm:$0xff] }
 0x50e   :  { %v2559_v62 = vmul.f32 %v8963_v59, %v2508_v3  ;;  %v2510_v24 = vsel %vm764_vm3, %v2481_v13, %v2483_v6  ;;  %v2560_v18 = vmul.f32 %v8970_v17, %v2509_v53  ;;  %v2759_v13 = vld [vmem:[#allocation4 + $0x6b0] sm:$0xff] }
 0x50f   :  { %v2561_v8 = vmul.f32 %v8976_v2, %v2510_v24  ;;  %v2763_v53 = vld [vmem:[#allocation4 + $0x6d0] sm:$0xff]  ;;  %v2764_v24 = vld [vmem:[#allocation4 + $0x6d8] sm:$0xff] }
 0x510   :  { %2630 = vrot.lane.b32.xlu2 %v2559_v62, %s7741_s23  ;;  %2632 = vrot.lane.b32.xlu0 %v2560_v18, %s7741_s23  ;;  %v2762_v62 = vld [vmem:[#allocation4 + $0x6c8] sm:$0xff] }
 0x511   :  { %2634 = vrot.lane.b32.xlu1 %v2561_v8, %s7741_s23 }
 0x514   :  { %v2485_v28 = vpop.permute.xlu1 %2484 }
 0x515   :  { %v2511_v57 = vsel %vm764_vm3, %v2483_v6, %v2485_v28  ;;  %v2489_v15 = vpop.permute.xlu0 %2488  ;;  %v2512_v16 = vsel %vm764_vm3, %v2485_v28, %v2487_v33  ;;  %v2766_v28 = vld [vmem:[#allocation4 + $0x6e8] sm:$0xff] }
 0x516   :  { %v2562_v45 = vmul.f32 %v8987_v41, %v2511_v57  ;;  %v2513_v48 = vsel %vm764_vm3, %v2487_v33, %v2489_v15  ;;  %v2563_v63 = vmul.f32 %v8994_v46, %v2512_v16  ;;  %v2565_v22 = vmul.f32 0.0, %v2489_v15  ;;  %v2765_v57 = vld [vmem:[#allocation4 + $0x6e0] sm:$0xff]  ;;  %v2767_v15 = vld [vmem:[#allocation4 + $0x6f0] sm:$0xff] }
 0x517   :  { %v2564_v35 = vmul.f32 %v9000_v20, %v2513_v48 }
 0x518   :  { %2636 = vrot.lane.b32.xlu2 %v2562_v45, %s7741_s23  ;;  %2638 = vrot.lane.b32.xlu0 %v2563_v63, %s7741_s23  ;;  %v2769_v63 = vld [vmem:[#allocation4 + $0x700] sm:$0xff] }
 0x519   :  { %2640 = vrot.lane.b32.xlu1 %v2564_v35, %s7741_s23  ;;  %v2768_v35 = vld [vmem:[#allocation4 + $0x6f8] sm:$0xff] }
 0x520   :  { %2795 = vrot.lane.b32.xlu0 %v2745_v1, %s7740_s0  ;;  %2642 = vrot.lane.b32.xlu2 %v2565_v22, %s7741_s23 }
 0x521   :  { %2797 = vrot.lane.b32.xlu1 %v2746_v4, %s7740_s0 }
 0x528   :  { %2801 = vrot.lane.b32.xlu0 %v2748_v12, %s7740_s0  ;;  %2799 = vrot.lane.b32.xlu2 %v2747_v37, %s7740_s0 }
 0x529   :  { %2803 = vrot.lane.b32.xlu1 %v2749_v7, %s7740_s0 }
 0x530   :  { %2807 = vrot.lane.b32.xlu0 %v2751_v29, %s7740_s0  ;;  %2805 = vrot.lane.b32.xlu2 %v2750_v31, %s7740_s0 }
 0x531   :  { %2809 = vrot.lane.b32.xlu1 %v2752_v23, %s7740_s0 }
 0x538   :  { %2813 = vrot.lane.b32.xlu0 %v2754_v5, %s7740_s0  ;;  %2811 = vrot.lane.b32.xlu2 %v2753_v60, %s7740_s0 }
 0x539   :  { %2815 = vrot.lane.b32.xlu1 %v2755_v27, %s7740_s0 }
 0x53a   :  { %v9018_v34 = vpop.permute.xlu2 %2594 }
 0x540   :  { %2819 = vrot.lane.b32.xlu0 %v2757_v44, %s7740_s0  ;;  %2817 = vrot.lane.b32.xlu2 %v2756_v14, %s7740_s0 }
 0x541   :  { %2821 = vrot.lane.b32.xlu1 %v2758_v26, %s7740_s0 }
 0x542   :  { %v9023_v58 = vpop.permute.xlu2 %2600 }
 0x548   :  { %2825 = vrot.lane.b32.xlu0 %v2760_v49, %s7740_s0  ;;  %2823 = vrot.lane.b32.xlu2 %v2759_v13, %s7740_s0 }
 0x549   :  { %2827 = vrot.lane.b32.xlu1 %v2761_v19, %s7740_s0 }
 0x54a   :  { %v9028_v3 = vpop.permute.xlu1 %2592  ;;  %v9030_v6 = vpop.permute.xlu2 %2606 }
 0x550   :  { %2831 = vrot.lane.b32.xlu0 %v2763_v53, %s7740_s0  ;;  %2829 = vrot.lane.b32.xlu2 %v2762_v62, %s7740_s0 }
 0x551   :  { %2833 = vrot.lane.b32.xlu1 %v2764_v24, %s7740_s0 }
 0x552   :  { %v9035_v18 = vpop.permute.xlu0 %2596  ;;  %v9037_v8 = vpop.permute.xlu2 %2612 }
 0x553   :  { %v9039_v33 = vpop.permute.xlu1 %2598 }
 0x558   :  { %2837 = vrot.lane.b32.xlu0 %v2766_v28, %s7740_s0  ;;  %2835 = vrot.lane.b32.xlu2 %v2765_v57, %s7740_s0 }
 0x559   :  { %2839 = vrot.lane.b32.xlu1 %v2767_v15, %s7740_s0 }
 0x55a   :  { %v9044_v16 = vpop.permute.xlu0 %2602  ;;  %v2619_v45 = vpop.permute.xlu2 %2618 }
 0x55b   :  { %v9046_v48 = vpop.permute.xlu1 %2604 }
 0x560   :  { %2843 = vrot.lane.b32.xlu0 %v2769_v63, %s7740_s0  ;;  %2841 = vrot.lane.b32.xlu2 %v2768_v35, %s7740_s0 }
 0x562   :  { %v9050_v22 = vpop.permute.xlu0 %2608  ;;  %v2625_v4 = vpop.permute.xlu2 %2624 }
 0x563   :  { %v9052_v1 = vpop.permute.xlu1 %2610 }
 0x56a   :  { %v9054_v12 = vpop.permute.xlu0 %2614  ;;  %v2631_v29 = vpop.permute.xlu2 %2630 }
 0x56b   :  { %v9056_v37 = vpop.permute.xlu1 %2616 }
 0x56c   :  { %v2656_v7 = vsel %vm609_vm2, %v9056_v37, %v2619_v45 }
 0x56d   :  { %2706 = vst [vmem:[#allocation3 + $0x5d8] sm:$0xff] %v2656_v7 }
 0x572   :  { %v2621_v31 = vpop.permute.xlu0 %2620  ;;  %v2637_v44 = vpop.permute.xlu2 %2636 }
 0x573   :  { %v2623_v23 = vpop.permute.xlu1 %2622  ;;  %v2657_v5 = vsel %vm609_vm2, %v2619_v45, %v2621_v31 }
 0x574   :  { %v2659_v60 = vsel %vm609_vm2, %v2623_v23, %v2625_v4  ;;  %v2658_v27 = vsel %vm609_vm2, %v2621_v31, %v2623_v23  ;;  %2707 = vst [vmem:[#allocation3 + $0x5e0] sm:$0xff] %v2657_v5 }
 0x575   :  { %2709 = vst [vmem:[#allocation3 + $0x5f0] sm:$0xff] %v2659_v60 }
 0x576   :  { %2708 = vst [vmem:[#allocation3 + $0x5e8] sm:$0xff] %v2658_v27 }
 0x57a   :  { %v2627_v14 = vpop.permute.xlu0 %2626  ;;  %v2643_v53 = vpop.permute.xlu2 %2642 }
 0x57b   :  { %v2629_v26 = vpop.permute.xlu1 %2628  ;;  %v2660_v49 = vsel %vm609_vm2, %v2625_v4, %v2627_v14 }
 0x57c   :  { %v2662_v13 = vsel %vm609_vm2, %v2629_v26, %v2631_v29  ;;  %v2661_v19 = vsel %vm609_vm2, %v2627_v14, %v2629_v26  ;;  %2710 = vst [vmem:[#allocation3 + $0x5f8] sm:$0xff] %v2660_v49 }
 0x57d   :  { %2712 = vst [vmem:[#allocation3 + $0x608] sm:$0xff] %v2662_v13 }
 0x57e   :  { %2711 = vst [vmem:[#allocation3 + $0x600] sm:$0xff] %v2661_v19 }
 0x582   :  { %v2633_v62 = vpop.permute.xlu0 %2632  ;;  %v2800_v45 = vpop.permute.xlu2 %2799 }
 0x583   :  { %v2635_v24 = vpop.permute.xlu1 %2634  ;;  %v2663_v28 = vsel %vm609_vm2, %v2631_v29, %v2633_v62 }
 0x584   :  { %v2665_v57 = vsel %vm609_vm2, %v2635_v24, %v2637_v44  ;;  %v2664_v15 = vsel %vm609_vm2, %v2633_v62, %v2635_v24  ;;  %2713 = vst [vmem:[#allocation3 + $0x610] sm:$0xff] %v2663_v28 }
 0x585   :  { %2715 = vst [vmem:[#allocation3 + $0x620] sm:$0xff] %v2665_v57 }
 0x586   :  { %2714 = vst [vmem:[#allocation3 + $0x618] sm:$0xff] %v2664_v15 }
 0x58a   :  { %v2639_v63 = vpop.permute.xlu0 %2638  ;;  %v2806_v29 = vpop.permute.xlu2 %2805 }
 0x58b   :  { %v2641_v35 = vpop.permute.xlu1 %2640  ;;  %v2666_v4 = vsel %vm609_vm2, %v2637_v44, %v2639_v63 }
 0x58c   :  { %v2668_v7 = vsel %vm609_vm2, %v2641_v35, %v2643_v53  ;;  %v2667_v31 = vsel %vm609_vm2, %v2639_v63, %v2641_v35  ;;  %2716 = vst [vmem:[#allocation3 + $0x628] sm:$0xff] %v2666_v4 }
 0x58d   :  { %2718 = vst [vmem:[#allocation3 + $0x638] sm:$0xff] %v2668_v7 }
 0x58e   :  { %2717 = vst [vmem:[#allocation3 + $0x630] sm:$0xff] %v2667_v31 }
 0x592   :  { %v2796_v23 = vpop.permute.xlu0 %2795  ;;  %v2812_v53 = vpop.permute.xlu2 %2811 }
 0x593   :  { %v2798_v5 = vpop.permute.xlu1 %2797  ;;  %v2895_v60 = vmul.f32 %v8810_v25, %v2796_v23 }
 0x594   :  { %v2845_v27 = vsel %vm407_vm1, %v2796_v23, %v2798_v5  ;;  %v2846_v14 = vsel %vm407_vm1, %v2798_v5, %v2800_v45 }
 0x595   :  { %v2896_v26 = vmul.f32 %v8819_v36, %v2845_v27  ;;  %v2897_v44 = vmul.f32 %v8826_v39, %v2846_v14  ;;  %2947 = vrot.lane.b32.xlu1 %v2895_v60, %s7739_s22 }
 0x597   :  { %2949 = vrot.lane.b32.xlu2 %v2896_v26, %s7739_s22  ;;  %2951 = vrot.lane.b32.xlu0 %v2897_v44, %s7739_s22 }
 0x59a   :  { %v2802_v49 = vpop.permute.xlu0 %2801  ;;  %v2818_v60 = vpop.permute.xlu2 %2817 }
 0x59b   :  { %v2804_v13 = vpop.permute.xlu1 %2803  ;;  %v2847_v19 = vsel %vm407_vm1, %v2800_v45, %v2802_v49 }
 0x59c   :  { %v2848_v62 = vsel %vm407_vm1, %v2802_v49, %v2804_v13  ;;  %v2898_v24 = vmul.f32 %v8832_v55, %v2847_v19  ;;  %v2849_v28 = vsel %vm407_vm1, %v2804_v13, %v2806_v29 }
 0x59d   :  { %v2899_v57 = vmul.f32 %v8843_v52, %v2848_v62  ;;  %v2900_v15 = vmul.f32 %v8850_v54, %v2849_v28 }
 0x59e   :  { %2953 = vrot.lane.b32.xlu1 %v2898_v24, %s7739_s22 }
 0x59f   :  { %2955 = vrot.lane.b32.xlu2 %v2899_v57, %s7739_s22  ;;  %2957 = vrot.lane.b32.xlu0 %v2900_v15, %s7739_s22 }
 0x5a2   :  { %v2808_v63 = vpop.permute.xlu0 %2807  ;;  %v2824_v19 = vpop.permute.xlu2 %2823 }
 0x5a3   :  { %v2810_v35 = vpop.permute.xlu1 %2809  ;;  %v2850_v45 = vsel %vm407_vm1, %v2806_v29, %v2808_v63 }
 0x5a4   :  { %v2851_v4 = vsel %vm407_vm1, %v2808_v63, %v2810_v35  ;;  %v2901_v7 = vmul.f32 %v8856_v56, %v2850_v45  ;;  %v2852_v31 = vsel %vm407_vm1, %v2810_v35, %v2812_v53 }
 0x5a5   :  { %v2902_v23 = vmul.f32 %v8867_v9, %v2851_v4  ;;  %v2903_v5 = vmul.f32 %v8874_v47, %v2852_v31 }
 0x5a6   :  { %2959 = vrot.lane.b32.xlu1 %v2901_v7, %s7739_s22 }
 0x5a7   :  { %2963 = vrot.lane.b32.xlu0 %v2903_v5, %s7739_s22  ;;  %2961 = vrot.lane.b32.xlu2 %v2902_v23, %s7739_s22 }
 0x5aa   :  { %v2814_v27 = vpop.permute.xlu0 %2813  ;;  %v2830_v15 = vpop.permute.xlu2 %2829 }
 0x5ab   :  { %v2816_v14 = vpop.permute.xlu1 %2815  ;;  %v2853_v29 = vsel %vm407_vm1, %v2812_v53, %v2814_v27 }
 0x5ac   :  { %v2854_v26 = vsel %vm407_vm1, %v2814_v27, %v2816_v14  ;;  %v2904_v44 = vmul.f32 %v8880_v10, %v2853_v29  ;;  %v2855_v49 = vsel %vm407_vm1, %v2816_v14, %v2818_v60 }
 0x5ad   :  { %v2905_v13 = vmul.f32 %v8891_v51, %v2854_v26  ;;  %v2906_v47 = vmul.f32 %v8898_v21, %v2855_v49 }
 0x5ae   :  { %2965 = vrot.lane.b32.xlu1 %v2904_v44, %s7739_s22 }
 0x5af   :  { %2969 = vrot.lane.b32.xlu0 %v2906_v47, %s7739_s22  ;;  %2967 = vrot.lane.b32.xlu2 %v2905_v13, %s7739_s22 }
 0x5b2   :  { %v2820_v62 = vpop.permute.xlu0 %2819  ;;  %v2836_v31 = vpop.permute.xlu2 %2835 }
 0x5b3   :  { %v2822_v24 = vpop.permute.xlu1 %2821  ;;  %v2856_v53 = vsel %vm407_vm1, %v2818_v60, %v2820_v62 }
 0x5b4   :  { %v2857_v28 = vsel %vm407_vm1, %v2820_v62, %v2822_v24  ;;  %v2907_v10 = vmul.f32 %v8904_v61, %v2856_v53  ;;  %v2858_v57 = vsel %vm407_vm1, %v2822_v24, %v2824_v19  ;;  %v7747_v53 = vmov 1.0  }
 0x5b5   :  { %v2908_v51 = vmul.f32 %v8915_v42, %v2857_v28  ;;  %v2909_v21 = vmul.f32 %v8922_v32, %v2858_v57  ;;  %34 = vst [vmem:[#allocation3 + $0x708] ss:$8 sm:$0xf] %v7747_v53 }
 0x5b6   :  { %2971 = vrot.lane.b32.xlu1 %v2907_v10, %s7739_s22  ;;  %35 = vst [vmem:[#allocation3 + $0x708] ss:$8 sm:$0xf0] %v7747_v53 }
 0x5b7   :  { %2975 = vrot.lane.b32.xlu0 %v2909_v21, %s7739_s22  ;;  %2973 = vrot.lane.b32.xlu2 %v2908_v51, %s7739_s22  ;;  %37 = vst [vmem:[#allocation3 + $0x748] ss:$8 sm:$0xf] %v7747_v53 }
 0x5b8   :  { %38 = vst [vmem:[#allocation3 + $0x748] ss:$8 sm:$0xf0] %v7747_v53 }
 0x5b9   :  { %40 = vst [vmem:[#allocation3 + $0x788] ss:$8 sm:$0xf] %v7747_v53 }
 0x5ba   :  { %v2826_v63 = vpop.permute.xlu0 %2825  ;;  %v2842_v29 = vpop.permute.xlu2 %2841  ;;  %41 = vst [vmem:[#allocation3 + $0x788] ss:$8 sm:$0xf0] %v7747_v53 }
 0x5bb   :  { %v2828_v35 = vpop.permute.xlu1 %2827  ;;  %v2859_v45 = vsel %vm407_vm1, %v2824_v19, %v2826_v63 }
 0x5bc   :  { %v2860_v4 = vsel %vm407_vm1, %v2826_v63, %v2828_v35  ;;  %v2910_v61 = vmul.f32 %v8928_v50, %v2859_v45  ;;  %v2861_v7 = vsel %vm407_vm1, %v2828_v35, %v2830_v15  ;;  %v3880_v35 = vld [vmem:[#allocation4] sm:$0xff]  ;;  %v2644_v45 = vsel %vm609_vm2, %v9028_v3, %v9018_v34 }
 0x5bd   :  { %v2911_v42 = vmul.f32 %v8939_v43, %v2860_v4  ;;  %v2912_v32 = vmul.f32 %v8946_v40, %v2861_v7  ;;  %v2289_v7 = vsel %vm966_vm4, %v8772_v38, %v8762_v30 }
 0x5be   :  { %2977 = vrot.lane.b32.xlu1 %v2910_v61, %s7739_s22  ;;  %v1579_v61 = vld [vmem:[#allocation4 + $0x320] sm:$0xff] }
 0x5bf   :  { %2981 = vrot.lane.b32.xlu0 %v2912_v32, %s7739_s22  ;;  %2979 = vrot.lane.b32.xlu2 %v2911_v42, %s7739_s22  ;;  %v2645_v42 = vsel %vm609_vm2, %v9018_v34, %v9035_v18  ;;  %v1580_v32 = vld [vmem:[#allocation4 + $0x328] sm:$0xff]  ;;  %v1604_v3 = vmul.f32 %v8810_v25, %v1579_v61  ;;  %v3077_v61 = vld [vmem:[#allocation3 + $0x10] sm:$0xff] }
 0x5c0   :  { %v3150_v25 = vld [vmem:[#allocation3 + $0x258] sm:$0xff] }
 0x5c2   :  { %v2832_v23 = vpop.permute.xlu0 %2831 }
 0x5c3   :  { %v2834_v5 = vpop.permute.xlu1 %2833  ;;  %v2862_v60 = vsel %vm407_vm1, %v2830_v15, %v2832_v23  ;;  %v3881_v15 = vld [vmem:[#allocation4 + $0x8] sm:$0xff] }
 0x5c4   :  { %v2863_v27 = vsel %vm407_vm1, %v2832_v23, %v2834_v5  ;;  %v2913_v50 = vmul.f32 %v8952_v11, %v2862_v60  ;;  %v2864_v14 = vsel %vm407_vm1, %v2834_v5, %v2836_v31  ;;  %v3200_v23 = vld [vmem:[#allocation3 + $0x3e8] sm:$0xff]  ;;  %v1605_v5 = vmul.f32 %v8819_v36, %v1580_v32  ;;  %v1581_v36 = vld [vmem:[#allocation4 + $0x330] sm:$0xff] }
 0x5c5   :  { %v2914_v43 = vmul.f32 %v8963_v59, %v2863_v27  ;;  %v2915_v40 = vmul.f32 %v8970_v17, %v2864_v14  ;;  %v3201_v27 = vld [vmem:[#allocation3 + $0x3f0] sm:$0xff]  ;;  %v1582_v14 = vld [vmem:[#allocation4 + $0x338] sm:$0xff] }
 0x5c6   :  { %2983 = vrot.lane.b32.xlu1 %v2913_v50, %s7739_s22 }
 0x5c7   :  { %2987 = vrot.lane.b32.xlu0 %v2915_v40, %s7739_s22  ;;  %2985 = vrot.lane.b32.xlu2 %v2914_v43, %s7739_s22  ;;  %v3151_v43 = vld [vmem:[#allocation3 + $0x260] sm:$0xff]  ;;  %v3125_v40 = vld [vmem:[#allocation3 + $0x190] sm:$0xff] }
 0x5ca   :  { %v2838_v26 = vpop.permute.xlu0 %2837 }
 0x5cb   :  { %v2865_v44 = vsel %vm407_vm1, %v2836_v31, %v2838_v26  ;;  %v2840_v49 = vpop.permute.xlu1 %2839  ;;  %v2290_v31 = vsel %vm966_vm4, %v8762_v30, %v8775_v0  ;;  %v2647_v30 = vsel %vm609_vm2, %v9039_v33, %v9023_v58  ;;  %v2646_v0 = vsel %vm609_vm2, %v9035_v18, %v9039_v33  ;;  %v3202_v33 = vld [vmem:[#allocation3 + $0x3f8] sm:$0xff] }
 0x5cc   :  { %v2916_v13 = vmul.f32 %v8976_v2, %v2865_v44  ;;  %v2866_v11 = vsel %vm407_vm1, %v2838_v26, %v2840_v49  ;;  %v2867_v47 = vsel %vm407_vm1, %v2840_v49, %v2842_v29  ;;  %v3228_v26 = vld [vmem:[#allocation3 + $0x4c8] sm:$0xff]  ;;  %v3126_v44 = vld [vmem:[#allocation3 + $0x198] sm:$0xff]  ;;  %v1607_v18 = vmul.f32 %v8832_v55, %v1582_v14 }
 0x5cd   :  { %v2917_v59 = vmul.f32 %v8987_v41, %v2866_v11  ;;  %v2918_v17 = vmul.f32 %v8994_v46, %v2867_v47  ;;  %v7748_v41 = vmov 0.0   ;;  %v3100_v49 = vld [vmem:[#allocation3 + $0xc8] sm:$0xff]  ;;  %v3203_v11 = vld [vmem:[#allocation3 + $0x400] sm:$0xff]  ;;  %v3101_v47 = vld [vmem:[#allocation3 + $0xd0] sm:$0xff] }
 0x5ce   :  { %2989 = vrot.lane.b32.xlu1 %v2916_v13, %s7739_s22  ;;  %49 = vst [vmem:[#allocation3 + $0x708] sm:$0xfe] %v7748_v41  ;;  %v1606_v13 = vmul.f32 %v8826_v39, %v1581_v36  ;;  %v9184_v39 = vld [vmem:[%s10797_s2] sm:$0xff]  ;;  %v3232_v14 = vld [vmem:[#allocation3 + $0x4e8] sm:$0xff] }
 0x5cf   :  { %2993 = vrot.lane.b32.xlu0 %v2918_v17, %s7739_s22  ;;  %2991 = vrot.lane.b32.xlu2 %v2917_v59, %s7739_s22  ;;  %50 = vst [vmem:[#allocation3 + $0x710] sm:$0xfe] %v7748_v41  ;;  %v3075_v59 = vld [vmem:[#allocation3] sm:$0xff] }
 0x5d0   :  { %51 = vst [vmem:[#allocation3 + $0x718] sm:$0xfe] %v7748_v41  ;;  %v3231_v36 = vld [vmem:[#allocation3 + $0x4e0] sm:$0xff] }
 0x5d1   :  { %52 = vst [vmem:[#allocation3 + $0x720] sm:$0xfe] %v7748_v41 }
 0x5d2   :  { %v2844_v19 = vpop.permute.xlu0 %2843  ;;  %53 = vst [vmem:[#allocation3 + $0x728] sm:$0xfe] %v7748_v41 }
 0x5d3   :  { %v2868_v62 = vsel %vm407_vm1, %v2842_v29, %v2844_v19  ;;  %v2920_v24 = vmul.f32 0.0, %v2844_v19  ;;  %54 = vst [vmem:[#allocation3 + $0x730] sm:$0xfe] %v7748_v41  ;;  %v3227_v29 = vld [vmem:[#allocation3 + $0x4c0] sm:$0xff] }
 0x5d4   :  { %v2919_v2 = vmul.f32 %v9000_v20, %v2868_v62  ;;  %55 = vst [vmem:[#allocation3 + $0x738] sm:$0xfe] %v7748_v41 }
 0x5d5   :  { %v3300_v46 = vld [vmem:[#allocation3 + $0x708] sm:$0xff]  ;;  %56 = vst [vmem:[#allocation3 + $0x740] sm:$0xfe] %v7748_v41 }
 0x5d6   :  { %2995 = vrot.lane.b32.xlu1 %v2919_v2, %s7739_s22  ;;  %3335 = vmatpush.msra.mxu0 %v3300_v46  ;;  %57 = vst [vmem:[#allocation3 + $0x748] sm:$0xfe] %v7748_v41  ;;  %v3301_v20 = vld [vmem:[#allocation3 + $0x710] sm:$0xff]  ;;  %v3076_v2 = vld [vmem:[#allocation3 + $0x8] sm:$0xff] }
 0x5d7   :  { %2997 = vrot.lane.b32.xlu2 %v2920_v24, %s7739_s22  ;;  %58 = vst [vmem:[#allocation3 + $0x750] sm:$0xfe] %v7748_v41  ;;  %3355 = vmatpush.msra.mxu1 %v3301_v20  ;;  %v3302_v28 = vld [vmem:[#allocation3 + $0x718] sm:$0xff]  ;;  %v3153_v46 = vld [vmem:[#allocation3 + $0x270] sm:$0xff] }
 0x5d8   :  { %59 = vst [vmem:[#allocation3 + $0x758] sm:$0xfe] %v7748_v41  ;;  %v3303_v10 = vld [vmem:[#allocation3 + $0x720] sm:$0xff]  ;;  %3375 = vmatpush.msra.mxu2 %v3302_v28  ;;  %3930 = vrot.lane.b32.xlu0 %v3880_v35, %s7739_s22  ;;  %v1584_v35 = vld [vmem:[#allocation4 + $0x348] sm:$0xff] }
 0x5d9   :  { %60 = vst [vmem:[#allocation3 + $0x760] sm:$0xfe] %v7748_v41  ;;  %3395 = vmatpush.msra.mxu3 %v3303_v10  ;;  %v3304_v17 = vld [vmem:[#allocation3 + $0x728] sm:$0xff]  ;;  %v3127_v28 = vld [vmem:[#allocation3 + $0x1a0] sm:$0xff] }
 0x5da   :  { %61 = vst [vmem:[#allocation3 + $0x768] sm:$0xfe] %v7748_v41  ;;  %v3305_v19 = vld [vmem:[#allocation3 + $0x730] sm:$0xff]  ;;  %v3128_v10 = vld [vmem:[#allocation3 + $0x1a8] sm:$0xff] }
 0x5db   :  { %62 = vst [vmem:[#allocation3 + $0x770] sm:$0xfe] %v7748_v41 }
 0x5dc   :  { %63 = vst [vmem:[#allocation3 + $0x778] sm:$0xfe] %v7748_v41  ;;  %v3307_v32 = vld [vmem:[#allocation3 + $0x740] sm:$0xff] }
 0x5dd   :  { %64 = vst [vmem:[#allocation3 + $0x780] sm:$0xfe] %v7748_v41 }
 0x5de   :  { %65 = vst [vmem:[#allocation3 + $0x788] sm:$0xfe] %v7748_v41  ;;  %3932 = vrot.lane.b32.xlu1 %v3881_v15, %s7739_s22  ;;  %v3102_v15 = vld [vmem:[#allocation3 + $0xd8] sm:$0xff] }
 0x5df   :  { %66 = vst [vmem:[#allocation3 + $0x790] sm:$0xfe] %v7748_v41 }
 0x5e0   :  { %67 = vst [vmem:[#allocation3 + $0x798] sm:$0xfe] %v7748_v41 }
 0x5e1   :  { %68 = vst [vmem:[#allocation3 + $0x7a0] sm:$0xfe] %v7748_v41 }
 0x5e2   :  { %69 = vst [vmem:[#allocation3 + $0x7a8] sm:$0xfe] %v7748_v41 }
 0x5e3   :  { %70 = vst [vmem:[#allocation3 + $0x7b0] sm:$0xfe] %v7748_v41 }
 0x5e4   :  { %71 = vst [vmem:[#allocation3 + $0x7b8] sm:$0xfe] %v7748_v41 }
 0x5e5   :  { %72 = vst [vmem:[#allocation3 + $0x7c0] sm:$0xfe] %v7748_v41 }
 0x5e6   :  { %73 = vst [vmem:[#allocation3 + $0x7c8] sm:$0xfe] %v7748_v41  ;;  %v3152_v41 = vld [vmem:[#allocation3 + $0x268] sm:$0xff] }
 0x5f1   :  { %v2950_v57 = vpop.permute.xlu2 %2949 }
 0x5f9   :  { %v2956_v60 = vpop.permute.xlu2 %2955 }
 0x607   :  { %v2948_v51 = vpop.permute.xlu1 %2947 }
 0x608   :  { %v2999_v21 = vsel %vm252_vm0, %v2948_v51, %v2950_v57  ;;  %v2649_v51 = vsel %vm609_vm2, %v9044_v16, %v9046_v48 }
 0x609   :  { %v2952_v63 = vpop.permute.xlu0 %2951  ;;  %3336 = vmatpush.msra.mxu0 %v2999_v21  ;;  %v1583_v21 = vld [vmem:[#allocation4 + $0x340] sm:$0xff] }
 0x60a   :  { %v3000_v4 = vsel %vm252_vm0, %v2950_v57, %v2952_v63  ;;  %v2648_v57 = vsel %vm609_vm2, %v9023_v58, %v9044_v16  ;;  %v3078_v58 = vld [vmem:[#allocation3 + $0x18] sm:$0xff]  ;;  %v3204_v16 = vld [vmem:[#allocation3 + $0x408] sm:$0xff] }
 0x60b   :  { %3356 = vmatpush.msra.mxu1 %v3000_v4  ;;  %3337 = vmatpush.msra.mxu0 %v2644_v45  ;;  %v3229_v45 = vld [vmem:[#allocation3 + $0x4d0] sm:$0xff]  ;;  %v3230_v4 = vld [vmem:[#allocation3 + $0x4d8] sm:$0xff] }
 0x60d   :  { %3357 = vmatpush.msra.mxu1 %v2645_v42  ;;  %3338 = vmatpush.msra.mxu0 %v2289_v7  ;;  %v3306_v7 = vld [vmem:[#allocation3 + $0x738] sm:$0xff]  ;;  %v1608_v42 = vmul.f32 %v8843_v52, %v1583_v21  ;;  %v3311_v21 = vld [vmem:[#allocation3 + $0x760] sm:$0xff] }
 0x60f   :  { %3358 = vmatpush.msra.mxu1 %v2290_v31  ;;  %3339 = vmatpush.msra.mxu0 %v3200_v23  ;;  %v3205_v23 = vld [vmem:[#allocation3 + $0x410] sm:$0xff] }
 0x610   :  { %v2954_v38 = vpop.permute.xlu1 %2953 }
 0x611   :  { %v3001_v50 = vsel %vm252_vm0, %v2952_v63, %v2954_v38  ;;  %v3002_v34 = vsel %vm252_vm0, %v2954_v38, %v2956_v60  ;;  %3359 = vmatpush.msra.mxu1 %v3201_v27  ;;  %3340 = vmatpush.msra.mxu0 %v1604_v3  ;;  %v2958_v62 = vpop.permute.xlu0 %2957  ;;  %v3103_v63 = vld [vmem:[#allocation3 + $0xe0] sm:$0xff]  ;;  %v1609_v3 = vmul.f32 %v8850_v54, %v1584_v35  ;;  %v3154_v54 = vld [vmem:[#allocation3 + $0x278] sm:$0xff] }
 0x612   :  { %3376 = vmatpush.msra.mxu2 %v3001_v50  ;;  %3396 = vmatpush.msra.mxu3 %v3002_v34  ;;  %v3003_v20 = vsel %vm252_vm0, %v2956_v60, %v2958_v62  ;;  %v3155_v38 = vld [vmem:[#allocation3 + $0x280] sm:$0xff]  ;;  %v2650_v27 = vsel %vm609_vm2, %v9046_v48, %v9030_v6  ;;  %v2651_v50 = vsel %vm609_vm2, %v9030_v6, %v9050_v22  ;;  %v3105_v48 = vld [vmem:[#allocation3 + $0xf0] sm:$0xff]  ;;  %v3206_v6 = vld [vmem:[#allocation3 + $0x418] sm:$0xff] }
 0x613   :  { %3360 = vmatpush.msra.mxu1 %v1605_v5  ;;  %3341 = vmatpush.msra.mxu0 %v3150_v25  ;;  %v2962_v5 = vpop.permute.xlu2 %2961  ;;  %v1585_v34 = vld [vmem:[#allocation4 + $0x350] sm:$0xff]  ;;  %v3129_v25 = vld [vmem:[#allocation3 + $0x1b0] sm:$0xff] }
 0x614   :  { %3377 = vmatpush.msra.mxu2 %v2646_v0  ;;  %3397 = vmatpush.msra.mxu3 %v2647_v30  ;;  %v3130_v30 = vld [vmem:[#allocation3 + $0x1b8] sm:$0xff]  ;;  %v1586_v0 = vld [vmem:[#allocation4 + $0x358] sm:$0xff] }
 0x615   :  { %3361 = vmatpush.msra.mxu1 %v3151_v43  ;;  %3342 = vmatpush.msra.mxu0 %v3125_v40  ;;  %v3104_v43 = vld [vmem:[#allocation3 + $0xe8] sm:$0xff]  ;;  %v1610_v40 = vmul.f32 %v8856_v56, %v1585_v34  ;;  %v3109_v34 = vld [vmem:[#allocation3 + $0x110] sm:$0xff] }
 0x616   :  { %3378 = vmatpush.msra.mxu2 %v3227_v29  ;;  %3398 = vmatpush.msra.mxu3 %v3228_v26  ;;  %v3207_v29 = vld [vmem:[#allocation3 + $0x420] sm:$0xff]  ;;  %v1611_v26 = vmul.f32 %v8867_v9, %v1586_v0  ;;  %v3156_v56 = vld [vmem:[#allocation3 + $0x288] sm:$0xff]  ;;  %v3157_v9 = vld [vmem:[#allocation3 + $0x290] sm:$0xff] }
 0x617   :  { %3362 = vmatpush.msra.mxu1 %v3126_v44  ;;  %3343 = vmatpush.msra.mxu0 %v3100_v49  ;;  %v3079_v44 = vld [vmem:[#allocation3 + $0x20] sm:$0xff]  ;;  %v3080_v49 = vld [vmem:[#allocation3 + $0x28] sm:$0xff]  ;;  %v7694_v0 = vld [vmem:[%s10796_s1 + $0x58] sm:$0xff] }
 0x618   :  { %3379 = vmatpush.msra.mxu2 %v3202_v33  ;;  %3399 = vmatpush.msra.mxu3 %v3203_v11  ;;  %v2960_v24 = vpop.permute.xlu1 %2959 }
 0x619   :  { %3363 = vmatpush.msra.mxu1 %v3101_v47  ;;  %3344 = vmatpush.msra.mxu0 %v3075_v59  ;;  %v3004_v55 = vsel %vm252_vm0, %v2958_v62, %v2960_v24  ;;  %v2964_v31 = vpop.permute.xlu0 %2963  ;;  %v3005_v60 = vsel %vm252_vm0, %v2960_v24, %v2962_v5  ;;  %v3132_v62 = vld [vmem:[#allocation3 + $0x1c8] sm:$0xff] }
 0x61a   :  { %3380 = vmatpush.msra.mxu2 %v1606_v13  ;;  %3400 = vmatpush.msra.mxu3 %v1607_v18  ;;  %v3006_v52 = vsel %vm252_vm0, %v2962_v5, %v2964_v31  ;;  %v3308_v13 = vld [vmem:[#allocation3 + $0x748] sm:$0xff]  ;;  %v3309_v18 = vld [vmem:[#allocation3 + $0x750] sm:$0xff] }
 0x61b   :  { %3364 = vmatpush.msra.mxu1 %v3076_v2  ;;  %3415 = vmatpush.msrb.mxu0 %v3304_v17  ;;  %v2968_v11 = vpop.permute.xlu2 %2967  ;;  %v3131_v17 = vld [vmem:[#allocation3 + $0x1c0] sm:$0xff]  ;;  %v3883_v24 = vld [vmem:[#allocation4 + $0x18] sm:$0xff]  ;;  %v2653_v2 = vsel %vm609_vm2, %v9052_v1, %v9037_v8  ;;  %v3133_v5 = vld [vmem:[#allocation3 + $0x1d0] sm:$0xff] }
 0x61c   :  { %3381 = vmatpush.msra.mxu2 %v3152_v41  ;;  %7579 = vmatmul.msk.f32.vlgmr.msra.gmra.mxu1 %vm3325_vm8, %v9184_v39  ;;  %v1587_v41 = vld [vmem:[#allocation4 + $0x360] sm:$0xff] }
 0x61d   :  { %3435 = vmatpush.msrb.mxu1 %v3305_v19  ;;  %3401 = vmatpush.msra.mxu3 %v3153_v46  ;;  %v2652_v19 = vsel %vm609_vm2, %v9050_v22, %v9052_v1  ;;  %v1588_v46 = vld [vmem:[#allocation4 + $0x368] sm:$0xff]  ;;  %v3107_v22 = vld [vmem:[#allocation3 + $0x100] sm:$0xff] }
 0x61e   :  { %3416 = vmatpush.msrb.mxu0 %v3003_v20  ;;  %3382 = vmatpush.msra.mxu2 %v3127_v28  ;;  %v3233_v20 = vld [vmem:[#allocation3 + $0x4f0] sm:$0xff]  ;;  %v3310_v1 = vld [vmem:[#allocation3 + $0x758] sm:$0xff] }
 0x61f   :  { %3436 = vmatpush.msrb.mxu1 %v3004_v55  ;;  %3402 = vmatpush.msra.mxu3 %v3128_v10  ;;  %v3106_v55 = vld [vmem:[#allocation3 + $0xf8] sm:$0xff]  ;;  %v3081_v28 = vld [vmem:[#allocation3 + $0x30] sm:$0xff] }
 0x620   :  { %3417 = vmatpush.msrb.mxu0 %v2648_v57  ;;  %3383 = vmatpush.msra.mxu2 %v3102_v15  ;;  %v2966_v33 = vpop.permute.xlu1 %2965  ;;  %v3234_v10 = vld [vmem:[#allocation3 + $0x4f8] sm:$0xff]  ;;  %v3884_v15 = vld [vmem:[#allocation4 + $0x20] sm:$0xff] }
 0x621   :  { %3437 = vmatpush.msrb.mxu1 %v2649_v51  ;;  %3403 = vmatpush.msra.mxu3 %v3103_v63  ;;  %v3007_v47 = vsel %vm252_vm0, %v2964_v31, %v2966_v33  ;;  %v3008_v59 = vsel %vm252_vm0, %v2966_v33, %v2968_v11  ;;  %v3082_v57 = vld [vmem:[#allocation3 + $0x38] sm:$0xff]  ;;  %v3208_v51 = vld [vmem:[#allocation3 + $0x428] sm:$0xff]  ;;  %v7691_v63 = vld [vmem:[%s10796_s1 + $0x40] sm:$0xff] }
 0x622   :  { %3418 = vmatpush.msrb.mxu0 %v3229_v45  ;;  %3384 = vmatpush.msra.mxu2 %v3077_v61  ;;  %v1612_v35 = vmul.f32 %v7691_v63, %v1587_v41  ;;  %v7692_v45 = vld [vmem:[%s10796_s1 + $0x48] sm:$0xff]  ;;  %v2970_v61 = vpop.permute.xlu0 %2969  ;;  %v3159_v31 = vld [vmem:[#allocation3 + $0x2a0] sm:$0xff]  ;;  %v3314_v41 = vld [vmem:[#allocation3 + $0x778] sm:$0xff] }
 0x623   :  { %3438 = vmatpush.msrb.mxu1 %v3230_v4  ;;  %3404 = vmatpush.msra.mxu3 %v3078_v58  ;;  %v1613_v4 = vmul.f32 %v7692_v45, %v1588_v46  ;;  %v3136_v33 = vld [vmem:[#allocation3 + $0x1e8] sm:$0xff]  ;;  %v3315_v46 = vld [vmem:[#allocation3 + $0x780] sm:$0xff]  ;;  %v3162_v45 = vld [vmem:[#allocation3 + $0x2b8] sm:$0xff] }
 0x624   :  { %3419 = vmatpush.msrb.mxu0 %v3204_v16  ;;  %7580 = vmatmul.msk.f32.vlgmr.msra.gmra.mxu2 %vm3325_vm8, %v9184_v39  ;;  %v3009_v16 = vsel %vm252_vm0, %v2968_v11, %v2970_v61  ;;  %v3263_v11 = vld [vmem:[#allocation3 + $0x5e0] sm:$0xff] }
 0x625   :  { %3439 = vmatpush.msrb.mxu1 %v3205_v23  ;;  %3455 = vmatpush.msrb.mxu2 %v3306_v7  ;;  %v3209_v7 = vld [vmem:[#allocation3 + $0x430] sm:$0xff]  ;;  %v2655_v23 = vsel %vm609_vm2, %v9054_v12, %v9056_v37 }
 0x626   :  { %3475 = vmatpush.msrb.mxu3 %v3307_v32  ;;  %3420 = vmatpush.msrb.mxu0 %v1608_v42  ;;  %v3158_v32 = vld [vmem:[#allocation3 + $0x298] sm:$0xff] }
 0x627   :  { %7578 = vmatmul.msk.f32.vlgmr.msra.gmra.mxu0 %vm3325_vm8, %v9184_v39  ;;  %3440 = vmatpush.msrb.mxu1 %v1609_v3  ;;  %v2654_v3 = vsel %vm609_vm2, %v9037_v8, %v9054_v12  ;;  %v9247_v8 = vld [vmem:[#allocation4 + $0x378] sm:$0xff]  ;;  %v7693_v12 = vld [vmem:[%s10796_s1 + $0x50] sm:$0xff] }
 0x628   :  { %3456 = vmatpush.msrb.mxu2 %v3005_v60  ;;  %3476 = vmatpush.msrb.mxu3 %v3006_v52  ;;  %v9231_v58 = vpop.permute.xlu1 %2971  ;;  %v3134_v60 = vld [vmem:[#allocation3 + $0x1d8] sm:$0xff]  ;;  %v9245_v52 = vld [vmem:[#allocation4 + $0x370] sm:$0xff] }
 0x629   :  { %3421 = vmatpush.msrb.mxu0 %v3154_v54  ;;  %3441 = vmatpush.msrb.mxu1 %v3155_v38  ;;  %v3010_v42 = vsel %vm252_vm0, %v2970_v61, %v9231_v58  ;;  %v3235_v54 = vld [vmem:[#allocation3 + $0x500] sm:$0xff]  ;;  %v1614_v37 = vmul.f32 %v7693_v12, %v9245_v52  ;;  %v3264_v61 = vld [vmem:[#allocation3 + $0x5e8] sm:$0xff] }
 0x62a   :  { %3457 = vmatpush.msrb.mxu2 %v2650_v27  ;;  %3477 = vmatpush.msrb.mxu3 %v2651_v50  ;;  %v3882_v38 = vld [vmem:[#allocation4 + $0x10] sm:$0xff]  ;;  %v3236_v27 = vld [vmem:[#allocation3 + $0x508] sm:$0xff] }
 0x62b   :  { %3422 = vmatpush.msrb.mxu0 %v3129_v25  ;;  %3442 = vmatpush.msrb.mxu1 %v3130_v30  ;;  %v3108_v50 = vld [vmem:[#allocation3 + $0x108] sm:$0xff]  ;;  %v3210_v25 = vld [vmem:[#allocation3 + $0x438] sm:$0xff]  ;;  %v3211_v30 = vld [vmem:[#allocation3 + $0x440] sm:$0xff] }
 0x62c   :  { %3458 = vmatpush.msrb.mxu2 %v3231_v36  ;;  %3478 = vmatpush.msrb.mxu3 %v3232_v14  ;;  %v1615_v36 = vmul.f32 %v7694_v0, %v9247_v8  ;;  %v3083_v14 = vld [vmem:[#allocation3 + $0x40] sm:$0xff]  ;;  %v3316_v0 = vld [vmem:[#allocation3 + $0x788] sm:$0xff] }
 0x62d   :  { %3423 = vmatpush.msrb.mxu0 %v3104_v43  ;;  %3443 = vmatpush.msrb.mxu1 %v3105_v48  ;;  %v3312_v43 = vld [vmem:[#allocation3 + $0x768] sm:$0xff] }
 0x62e   :  { %3459 = vmatpush.msrb.mxu2 %v3206_v6  ;;  %3479 = vmatpush.msrb.mxu3 %v3207_v29  ;;  %v3084_v48 = vld [vmem:[#allocation3 + $0x48] sm:$0xff]  ;;  %v2976_v6 = vpop.permute.xlu0 %2975  ;;  %v2974_v29 = vpop.permute.xlu2 %2973 }
 0x62f   :  { %3424 = vmatpush.msrb.mxu0 %v3079_v44  ;;  %3444 = vmatpush.msrb.mxu1 %v3080_v49  ;;  %v3161_v44 = vld [vmem:[#allocation3 + $0x2b0] sm:$0xff]  ;;  %v3011_v49 = vsel %vm252_vm0, %v9231_v58, %v2974_v29  ;;  %v3885_v58 = vld [vmem:[#allocation4 + $0x28] sm:$0xff] }
 0x630   :  { %7582 = vmatmul.msk.f32.vlgmr.msrb.gmra.mxu0 %vm3325_vm8, %v9184_v39  ;;  %3460 = vmatpush.msrb.mxu2 %v1610_v40  ;;  %v3313_v40 = vld [vmem:[#allocation3 + $0x770] sm:$0xff] }
 0x631   :  { %3480 = vmatpush.msrb.mxu3 %v1611_v26  ;;  %3495 = vmatpush.msra.mxu0 %v3308_v13  ;;  %v3160_v26 = vld [vmem:[#allocation3 + $0x2a8] sm:$0xff]  ;;  %v3012_v13 = vsel %vm252_vm0, %v2974_v29, %v2976_v6 }
 0x632   :  { %3515 = vmatpush.msra.mxu1 %v3309_v18  ;;  %3461 = vmatpush.msrb.mxu2 %v3156_v56  ;;  %v3135_v18 = vld [vmem:[#allocation3 + $0x1e0] sm:$0xff]  ;;  %v3262_v56 = vld [vmem:[#allocation3 + $0x5d8] sm:$0xff] }
 0x633   :  { %3481 = vmatpush.msrb.mxu3 %v3157_v9  ;;  %3496 = vmatpush.msra.mxu0 %v3007_v47  ;;  %v3110_v47 = vld [vmem:[#allocation3 + $0x118] sm:$0xff]  ;;  %v3111_v9 = vld [vmem:[#allocation3 + $0x120] sm:$0xff] }
 0x634   :  { %3516 = vmatpush.msra.mxu1 %v3008_v59  ;;  %3462 = vmatpush.msrb.mxu2 %v3131_v17  ;;  %v3237_v59 = vld [vmem:[#allocation3 + $0x510] sm:$0xff]  ;;  %v3238_v17 = vld [vmem:[#allocation3 + $0x518] sm:$0xff] }
 0x635   :  { %3482 = vmatpush.msrb.mxu3 %v3132_v62  ;;  %3497 = vmatpush.msra.mxu0 %v2652_v19  ;;  %v9265_v19 = vld [vmem:[#allocation4 + $0x380] sm:$0xff] }
 0x636   :  { %7581 = vmatmul.msk.f32.vlgmr.msra.gmra.mxu3 %vm3325_vm8, %v9184_v39  ;;  %3517 = vmatpush.msra.mxu1 %v2653_v2  ;;  %v3085_v62 = vld [vmem:[#allocation3 + $0x50] sm:$0xff]  ;;  %v9267_v2 = vld [vmem:[#allocation4 + $0x388] sm:$0xff]  ;;  %v2980_v63 = vpop.permute.xlu2 %2979 }
 0x637   :  { %3936 = vrot.lane.b32.xlu0 %v3883_v24, %s7739_s22  ;;  %3463 = vmatpush.msrb.mxu2 %v3106_v55  ;;  %v3086_v24 = vld [vmem:[#allocation3 + $0x58] sm:$0xff]  ;;  %v3212_v55 = vld [vmem:[#allocation3 + $0x448] sm:$0xff] }
 0x638   :  { %3483 = vmatpush.msrb.mxu3 %v3107_v22  ;;  %3498 = vmatpush.msra.mxu0 %v3233_v20  ;;  %v3213_v22 = vld [vmem:[#allocation3 + $0x450] sm:$0xff]  ;;  %v3887_v20 = vld [vmem:[#allocation4 + $0x38] sm:$0xff] }
 0x639   :  { %3518 = vmatpush.msra.mxu1 %v3234_v10  ;;  %3464 = vmatpush.msrb.mxu2 %v3081_v28  ;;  %v3886_v28 = vld [vmem:[#allocation4 + $0x30] sm:$0xff] }
 0x63a   :  { %3484 = vmatpush.msrb.mxu3 %v3082_v57  ;;  %3499 = vmatpush.msra.mxu0 %v3208_v51  ;;  %v7695_v10 = vld [vmem:[%s10796_s1 + $0x60] sm:$0xff]  ;;  %v7696_v51 = vld [vmem:[%s10796_s1 + $0x68] sm:$0xff] }
 0x63b   :  { %3519 = vmatpush.msra.mxu1 %v3209_v7  ;;  %3535 = vmatpush.msra.mxu2 %v3310_v1  ;;  %v1616_v57 = vmul.f32 %v7695_v10, %v9265_v19  ;;  %v2978_v1 = vpop.permute.xlu1 %2977  ;;  %v3265_v7 = vld [vmem:[#allocation3 + $0x5f0] sm:$0xff]  ;;  %v7700_v10 = vld [vmem:[%s10796_s1 + $0x88] sm:$0xff] }
 0x63c   :  { %3555 = vmatpush.msra.mxu3 %v3311_v21  ;;  %3938 = vrot.lane.b32.xlu1 %v3884_v15, %s7739_s22  ;;  %v1617_v21 = vmul.f32 %v7696_v51, %v9267_v2  ;;  %v3013_v15 = vsel %vm252_vm0, %v2976_v6, %v2978_v1  ;;  %v3165_v6 = vld [vmem:[#allocation3 + $0x2d0] sm:$0xff] }
 0x63d   :  { %3500 = vmatpush.msra.mxu0 %v1612_v35  ;;  %3520 = vmatpush.msra.mxu1 %v1613_v4  ;;  %v3014_v35 = vsel %vm252_vm0, %v2978_v1, %v2980_v63  ;;  %v3163_v4 = vld [vmem:[#allocation3 + $0x2c0] sm:$0xff]  ;;  %v3217_v51 = vld [vmem:[#allocation3 + $0x470] sm:$0xff] }
 0x63e   :  { %3536 = vmatpush.msra.mxu2 %v3009_v16  ;;  %3556 = vmatpush.msra.mxu3 %v3010_v42  ;;  %v3137_v42 = vld [vmem:[#allocation3 + $0x1f0] sm:$0xff]  ;;  %v9287_v16 = vld [vmem:[#allocation4 + $0x390] sm:$0xff]  ;;  %v2986_v1 = vpop.permute.xlu2 %2985 }
 0x63f   :  { %3501 = vmatpush.msra.mxu0 %v3158_v32  ;;  %7585 = vmatmul.msk.f32.vlgmr.msrb.gmra.mxu3 %vm3325_vm8, %v9184_v39  ;;  %v9289_v32 = vld [vmem:[#allocation4 + $0x398] sm:$0xff] }
 0x640   :  { %3521 = vmatpush.msra.mxu1 %v3159_v31  ;;  %3537 = vmatpush.msra.mxu2 %v2654_v3  ;;  %v3138_v3 = vld [vmem:[#allocation3 + $0x1f8] sm:$0xff]  ;;  %v3239_v31 = vld [vmem:[#allocation3 + $0x520] sm:$0xff] }
 0x641   :  { %3557 = vmatpush.msra.mxu3 %v2655_v23  ;;  %3502 = vmatpush.msra.mxu0 %v3133_v5  ;;  %v3240_v23 = vld [vmem:[#allocation3 + $0x528] sm:$0xff] }
 0x642   :  { %3522 = vmatpush.msra.mxu1 %v3134_v60  ;;  %3538 = vmatpush.msra.mxu2 %v3235_v54  ;;  %v3112_v5 = vld [vmem:[#allocation3 + $0x128] sm:$0xff]  ;;  %v3889_v60 = vld [vmem:[#allocation4 + $0x48] sm:$0xff]  ;;  %v3113_v54 = vld [vmem:[#allocation3 + $0x130] sm:$0xff] }
 0x643   :  { %3558 = vmatpush.msra.mxu3 %v3236_v27  ;;  %3503 = vmatpush.msra.mxu0 %v3108_v50  ;;  %v7697_v27 = vld [vmem:[%s10796_s1 + $0x70] sm:$0xff] }
 0x644   :  { %3934 = vrot.lane.b32.xlu2 %v3882_v38, %s7739_s22  ;;  %3523 = vmatpush.msra.mxu1 %v3109_v34  ;;  %v3214_v38 = vld [vmem:[#allocation3 + $0x458] sm:$0xff]  ;;  %v1618_v50 = vmul.f32 %v7697_v27, %v9287_v16  ;;  %v7701_v27 = vld [vmem:[%s10796_s1 + $0x90] sm:$0xff] }
 0x645   :  { %3539 = vmatpush.msra.mxu2 %v3210_v25  ;;  %3559 = vmatpush.msra.mxu3 %v3211_v30  ;;  %v7698_v34 = vld [vmem:[%s10796_s1 + $0x78] sm:$0xff]  ;;  %v3087_v25 = vld [vmem:[#allocation3 + $0x60] sm:$0xff]  ;;  %v3088_v30 = vld [vmem:[#allocation3 + $0x68] sm:$0xff] }
 0x646   :  { %3504 = vmatpush.msra.mxu0 %v3083_v14  ;;  %7583 = vmatmul.msk.f32.vlgmr.msrb.gmra.mxu1 %vm3325_vm8, %v9184_v39  ;;  %v1619_v12 = vmul.f32 %v7698_v34, %v9289_v32  ;;  %v2982_v14 = vpop.permute.xlu0 %2981  ;;  %v7702_v34 = vld [vmem:[%s10796_s1 + $0x98] sm:$0xff] }
 0x647   :  { %3524 = vmatpush.msra.mxu1 %v3084_v48  ;;  %3540 = vmatpush.msra.mxu2 %v1614_v37  ;;  %v3215_v37 = vld [vmem:[#allocation3 + $0x460] sm:$0xff]  ;;  %v3015_v29 = vsel %vm252_vm0, %v2980_v63, %v2982_v14 }
 0x648   :  { %3560 = vmatpush.msra.mxu3 %v1615_v36  ;;  %3575 = vmatpush.msrb.mxu0 %v3312_v43  ;;  %v3317_v36 = vld [vmem:[#allocation3 + $0x790] sm:$0xff]  ;;  %v2984_v43 = vpop.permute.xlu1 %2983 }
 0x649   :  { %7584 = vmatmul.msk.f32.vlgmr.msrb.gmra.mxu2 %vm3325_vm8, %v9184_v39  ;;  %3595 = vmatpush.msrb.mxu1 %v3313_v40  ;;  %v3016_v48 = vsel %vm252_vm0, %v2982_v14, %v2984_v43  ;;  %v3164_v40 = vld [vmem:[#allocation3 + $0x2c8] sm:$0xff] }
 0x64a   :  { %3541 = vmatpush.msra.mxu2 %v3160_v26  ;;  %3561 = vmatpush.msra.mxu3 %v3161_v44  ;;  %v3139_v26 = vld [vmem:[#allocation3 + $0x200] sm:$0xff] }
 0x64b   :  { %3576 = vmatpush.msrb.mxu0 %v3011_v49  ;;  %3596 = vmatpush.msrb.mxu1 %v3012_v13  ;;  %v3890_v44 = vld [vmem:[#allocation4 + $0x50] sm:$0xff]  ;;  %v3140_v49 = vld [vmem:[#allocation3 + $0x208] sm:$0xff]  ;;  %v3266_v13 = vld [vmem:[#allocation3 + $0x5f8] sm:$0xff] }
 0x64c   :  { %3542 = vmatpush.msra.mxu2 %v3135_v18  ;;  %3562 = vmatpush.msra.mxu3 %v3136_v33  ;;  %v3267_v18 = vld [vmem:[#allocation3 + $0x600] sm:$0xff]  ;;  %v3114_v33 = vld [vmem:[#allocation3 + $0x138] sm:$0xff] }
 0x64d   :  { %3577 = vmatpush.msrb.mxu0 %v3262_v56  ;;  %3597 = vmatpush.msrb.mxu1 %v3263_v11  ;;  %v3892_v56 = vld [vmem:[#allocation4 + $0x60] sm:$0xff]  ;;  %v3115_v11 = vld [vmem:[#allocation3 + $0x140] sm:$0xff] }
 0x64e   :  { %3543 = vmatpush.msra.mxu2 %v3110_v47  ;;  %3563 = vmatpush.msra.mxu3 %v3111_v9  ;;  %v9308_v47 = vld [vmem:[#allocation4 + $0x3a0] sm:$0xff]  ;;  %v9310_v9 = vld [vmem:[#allocation4 + $0x3a8] sm:$0xff] }
 0x64f   :  { %3578 = vmatpush.msrb.mxu0 %v3237_v59  ;;  %3598 = vmatpush.msrb.mxu1 %v3238_v17  ;;  %v42_v59 = vlaneseq  ;;  %v3241_v17 = vld [vmem:[#allocation3 + $0x530] sm:$0xff] }
 0x650   :  { %7586 = vmatmul.msk.f32.vlgmr.msra.gmra.mxu0 %vm3325_vm8, %v9184_v39  ;;  %3544 = vmatpush.msra.mxu2 %v3085_v62  ;;  %v3242_v62 = vld [vmem:[#allocation3 + $0x538] sm:$0xff]  ;;  %v2990_v14 = vpop.permute.xlu1 %2989 }
 0x651   :  { %3564 = vmatpush.msra.mxu3 %v3086_v24  ;;  %3579 = vmatpush.msrb.mxu0 %v3212_v55  ;;  %v3089_v24 = vld [vmem:[#allocation3 + $0x70] sm:$0xff]  ;;  %v3090_v55 = vld [vmem:[#allocation3 + $0x78] sm:$0xff]  ;;  %vm44_vm9 = vcmp.lt.s32.totalorder %v42_v59, 128 }
 0x652   :  { %7588 = vmatmul.msk.f32.vlgmr.msra.gmra.mxu2 %vm3325_vm8, %v9184_v39  ;;  %3599 = vmatpush.msrb.mxu1 %v3213_v22  ;;  %v3319_v22 = vld [vmem:[#allocation3 + $0x7a0] sm:$0xff]  ;;  %47 = vst.msk [vmem:[#allocation3 + $0x7c8] ss:$8 sm:$0x1] %vm44_vm9, %v7747_v53  ;;  %v3166_v53 = vld [vmem:[#allocation3 + $0x2d8] sm:$0xff]  ;;  %v3245_v59 = vld [vmem:[#allocation3 + $0x550] sm:$0xff] }
 0x653   :  { %3615 = vmatpush.msrb.mxu2 %v3314_v41  ;;  %3635 = vmatpush.msrb.mxu3 %v3315_v46  ;;  %v3216_v41 = vld [vmem:[#allocation3 + $0x468] sm:$0xff]  ;;  %v3318_v46 = vld [vmem:[#allocation3 + $0x798] sm:$0xff] }
 0x654   :  { %3944 = vrot.lane.b32.xlu1 %v3887_v20, %s7739_s22  ;;  %3942 = vrot.lane.b32.xlu0 %v3886_v28, %s7739_s22  ;;  %v7699_v20 = vld [vmem:[%s10796_s1 + $0x80] sm:$0xff] }
 0x655   :  { %7589 = vmatmul.msk.f32.vlgmr.msra.gmra.mxu3 %vm3325_vm8, %v9184_v39  ;;  %3580 = vmatpush.msrb.mxu0 %v1616_v57  ;;  %v1620_v28 = vmul.f32 %v7699_v20, %v9308_v47  ;;  %v1621_v57 = vmul.f32 %v7700_v10, %v9310_v9  ;;  %v7703_v20 = vld [vmem:[%s10796_s1 + $0xa0] sm:$0xff]  ;;  %v3221_v10 = vld [vmem:[#allocation3 + $0x490] sm:$0xff] }
 0x656   :  { %3600 = vmatpush.msrb.mxu1 %v1617_v21  ;;  %3616 = vmatpush.msrb.mxu2 %v3013_v15  ;;  %v2988_v21 = vpop.permute.xlu0 %2987  ;;  %v3017_v15 = vsel %vm252_vm0, %v2984_v43, %v2986_v1  ;;  %v2992_v43 = vpop.permute.xlu2 %2991 }
 0x657   :  { %3636 = vmatpush.msrb.mxu3 %v3014_v35  ;;  %3581 = vmatpush.msrb.mxu0 %v3162_v45  ;;  %v3018_v63 = vsel %vm252_vm0, %v2986_v1, %v2988_v21  ;;  %v3893_v35 = vld [vmem:[#allocation4 + $0x68] sm:$0xff]  ;;  %v3167_v45 = vld [vmem:[#allocation3 + $0x2e0] sm:$0xff]  ;;  %v7704_v1 = vld [vmem:[%s10796_s1 + $0xa8] sm:$0xff] }
 0x658   :  { %3601 = vmatpush.msrb.mxu1 %v3163_v4  ;;  %3617 = vmatpush.msrb.mxu2 %v3264_v61  ;;  %v3268_v4 = vld [vmem:[#allocation3 + $0x608] sm:$0xff]  ;;  %v3888_v61 = vld [vmem:[#allocation4 + $0x40] sm:$0xff] }
 0x659   :  { %3637 = vmatpush.msrb.mxu3 %v3265_v7  ;;  %3582 = vmatpush.msrb.mxu0 %v3137_v42  ;;  %v3141_v7 = vld [vmem:[#allocation3 + $0x210] sm:$0xff]  ;;  %v9329_v42 = vld [vmem:[#allocation4 + $0x3b0] sm:$0xff] }
 0x65a   :  { %3940 = vrot.lane.b32.xlu2 %v3885_v58, %s7739_s22  ;;  %7587 = vmatmul.msk.f32.vlgmr.msra.gmra.mxu1 %vm3325_vm8, %v9184_v39  ;;  %v3269_v58 = vld [vmem:[#allocation3 + $0x610] sm:$0xff] }
 0x65b   :  { %3602 = vmatpush.msrb.mxu1 %v3138_v3  ;;  %3618 = vmatpush.msrb.mxu2 %v3239_v31  ;;  %v9331_v3 = vld [vmem:[#allocation4 + $0x3b8] sm:$0xff]  ;;  %v3142_v31 = vld [vmem:[#allocation3 + $0x218] sm:$0xff] }
 0x65c   :  { %3638 = vmatpush.msrb.mxu3 %v3240_v23  ;;  %3583 = vmatpush.msrb.mxu0 %v3112_v5  ;;  %v3243_v23 = vld [vmem:[#allocation3 + $0x540] sm:$0xff]  ;;  %v3244_v5 = vld [vmem:[#allocation3 + $0x548] sm:$0xff] }
 0x65d   :  { %3603 = vmatpush.msrb.mxu1 %v3113_v54  ;;  %3619 = vmatpush.msrb.mxu2 %v3214_v38  ;;  %v3117_v54 = vld [vmem:[#allocation3 + $0x150] sm:$0xff]  ;;  %v3218_v38 = vld [vmem:[#allocation3 + $0x478] sm:$0xff] }
 0x65e   :  { %3639 = vmatpush.msrb.mxu3 %v3215_v37  ;;  %3948 = vrot.lane.b32.xlu0 %v3889_v60, %s7739_s22  ;;  %v3116_v60 = vld [vmem:[#allocation3 + $0x148] sm:$0xff]  ;;  %v3219_v37 = vld [vmem:[#allocation3 + $0x480] sm:$0xff] }
 0x65f   :  { %3584 = vmatpush.msrb.mxu0 %v3087_v25  ;;  %3604 = vmatpush.msrb.mxu1 %v3088_v30  ;;  %v3091_v25 = vld [vmem:[#allocation3 + $0x80] sm:$0xff]  ;;  %v3092_v30 = vld [vmem:[#allocation3 + $0x88] sm:$0xff] }
 0x660   :  { %3620 = vmatpush.msrb.mxu2 %v1618_v50  ;;  %3640 = vmatpush.msrb.mxu3 %v1619_v12  ;;  %v1622_v50 = vmul.f32 %v7701_v27, %v9329_v42  ;;  %v1623_v12 = vmul.f32 %v7702_v34, %v9331_v3  ;;  %v3120_v27 = vld [vmem:[#allocation3 + $0x168] sm:$0xff]  ;;  %v3894_v34 = vld [vmem:[#allocation4 + $0x70] sm:$0xff] }
 0x661   :  { %3655 = vmatpush.msra.mxu0 %v3316_v0  ;;  %3675 = vmatpush.msra.mxu1 %v3317_v36  ;;  %v3320_v0 = vld [vmem:[#allocation3 + $0x7a8] sm:$0xff]  ;;  %v3321_v36 = vld [vmem:[#allocation3 + $0x7b0] sm:$0xff] }
 0x662   :  { %3621 = vmatpush.msrb.mxu2 %v3164_v40  ;;  %3641 = vmatpush.msrb.mxu3 %v3165_v6  ;;  %v3019_v40 = vsel %vm252_vm0, %v2988_v21, %v2990_v14  ;;  %v3169_v6 = vld [vmem:[#allocation3 + $0x2f0] sm:$0xff]  ;;  %v2994_v21 = vpop.permute.xlu0 %2993 }
 0x663   :  { %3656 = vmatpush.msra.mxu0 %v3015_v29  ;;  %3676 = vmatpush.msra.mxu1 %v3016_v48  ;;  %v3168_v48 = vld [vmem:[#allocation3 + $0x2e8] sm:$0xff]  ;;  %v3020_v29 = vsel %vm252_vm0, %v2990_v14, %v2992_v43  ;;  %v3095_v14 = vld [vmem:[#allocation3 + $0xa0] sm:$0xff] }
 0x664   :  { %7591 = vmatmul.msk.f32.vlgmr.msrb.gmra.mxu1 %vm3325_vm8, %v9184_v39  ;;  %3622 = vmatpush.msrb.mxu2 %v3139_v26  ;;  %v3143_v26 = vld [vmem:[#allocation3 + $0x220] sm:$0xff] }
 0x665   :  { %3642 = vmatpush.msrb.mxu3 %v3140_v49  ;;  %3657 = vmatpush.msra.mxu0 %v3266_v13  ;;  %v3895_v49 = vld [vmem:[#allocation4 + $0x78] sm:$0xff]  ;;  %v3270_v13 = vld [vmem:[#allocation3 + $0x618] sm:$0xff] }
 0x666   :  { %3677 = vmatpush.msra.mxu1 %v3267_v18  ;;  %3950 = vrot.lane.b32.xlu1 %v3890_v44, %s7739_s22  ;;  %v3144_v44 = vld [vmem:[#allocation3 + $0x228] sm:$0xff]  ;;  %v3271_v18 = vld [vmem:[#allocation3 + $0x620] sm:$0xff] }
 0x667   :  { %3623 = vmatpush.msrb.mxu2 %v3114_v33  ;;  %3643 = vmatpush.msrb.mxu3 %v3115_v11  ;;  %v3118_v33 = vld [vmem:[#allocation3 + $0x158] sm:$0xff]  ;;  %v3119_v11 = vld [vmem:[#allocation3 + $0x160] sm:$0xff] }
 0x668   :  { %3658 = vmatpush.msra.mxu0 %v3241_v17  ;;  %3954 = vrot.lane.b32.xlu0 %v3892_v56, %s7739_s22  ;;  %v9350_v56 = vld [vmem:[#allocation4 + $0x3c0] sm:$0xff]  ;;  %v9353_v17 = vld [vmem:[#allocation4 + $0x3c8] sm:$0xff] }
 0x669   :  { %3678 = vmatpush.msra.mxu1 %v3242_v62  ;;  %3624 = vmatpush.msrb.mxu2 %v3089_v24  ;;  %v3246_v62 = vld [vmem:[#allocation3 + $0x558] sm:$0xff]  ;;  %v3093_v24 = vld [vmem:[#allocation3 + $0x90] sm:$0xff] }
 0x66a   :  { %3644 = vmatpush.msrb.mxu3 %v3090_v55  ;;  %3659 = vmatpush.msra.mxu0 %v3216_v41  ;;  %v3094_v55 = vld [vmem:[#allocation3 + $0x98] sm:$0xff]  ;;  %v3220_v41 = vld [vmem:[#allocation3 + $0x488] sm:$0xff] }
 0x66b   :  { %7592 = vmatmul.msk.f32.vlgmr.msrb.gmra.mxu2 %vm3325_vm8, %v9184_v39  ;;  %3679 = vmatpush.msra.mxu1 %v3217_v51  ;;  %v1625_v51 = vmul.f32 %v7704_v1, %v9353_v17 }
 0x66c   :  { %3695 = vmatpush.msra.mxu2 %v3318_v46  ;;  %3715 = vmatpush.msra.mxu3 %v3319_v22  ;;  %v3322_v46 = vld [vmem:[#allocation3 + $0x7b8] sm:$0xff]  ;;  %v3323_v22 = vld [vmem:[#allocation3 + $0x7c0] sm:$0xff] }
 0x66d   :  { %3660 = vmatpush.msra.mxu0 %v1620_v28  ;;  %3680 = vmatpush.msra.mxu1 %v1621_v57  ;;  %v1624_v28 = vmul.f32 %v7703_v20, %v9350_v56  ;;  %v3896_v57 = vld [vmem:[#allocation4 + $0x80] sm:$0xff]  ;;  %v3902_v20 = vld [vmem:[#allocation4 + $0xb0] sm:$0xff] }
 0x66e   :  { %7590 = vmatmul.msk.f32.vlgmr.msrb.gmra.mxu0 %vm3325_vm8, %v9184_v39  ;;  %3696 = vmatpush.msra.mxu2 %v3017_v15  ;;  %v9363_v15 = vpop.permute.xlu1 %2995 }
 0x66f   :  { %3716 = vmatpush.msra.mxu3 %v3018_v63  ;;  %3661 = vmatpush.msra.mxu0 %v3166_v53  ;;  %v3891_v63 = vld [vmem:[#allocation4 + $0x58] sm:$0xff]  ;;  %v3022_v53 = vsel %vm252_vm0, %v2994_v21, %v9363_v15 }
 0x670   :  { %3681 = vmatpush.msra.mxu1 %v3167_v45  ;;  %3697 = vmatpush.msra.mxu2 %v3268_v4  ;;  %v3170_v45 = vld [vmem:[#allocation3 + $0x2f8] sm:$0xff]  ;;  %v3898_v4 = vld [vmem:[#allocation4 + $0x90] sm:$0xff] }
 0x671   :  { %3717 = vmatpush.msra.mxu3 %v3269_v58  ;;  %3956 = vrot.lane.b32.xlu1 %v3893_v35, %s7739_s22  ;;  %v3021_v35 = vsel %vm252_vm0, %v2992_v43, %v2994_v21  ;;  %v3272_v58 = vld [vmem:[#allocation3 + $0x628] sm:$0xff] }
 0x672   :  { %3662 = vmatpush.msra.mxu0 %v3141_v7  ;;  %3946 = vrot.lane.b32.xlu2 %v3888_v61, %s7739_s22  ;;  %v3171_v61 = vld [vmem:[#allocation3 + $0x300] sm:$0xff]  ;;  %v3273_v7 = vld [vmem:[#allocation3 + $0x630] sm:$0xff]  ;;  %v3096_v43 = vld [vmem:[#allocation3 + $0xa8] sm:$0xff] }
 0x673   :  { %3682 = vmatpush.msra.mxu1 %v3142_v31  ;;  %3698 = vmatpush.msra.mxu2 %v3243_v23  ;;  %v3146_v31 = vld [vmem:[#allocation3 + $0x238] sm:$0xff]  ;;  %v3145_v23 = vld [vmem:[#allocation3 + $0x230] sm:$0xff] }
 0x674   :  { %3718 = vmatpush.msra.mxu3 %v3244_v5  ;;  %3663 = vmatpush.msra.mxu0 %v3116_v60  ;;  %v9375_v5 = vld [vmem:[#allocation4 + $0x3d0] sm:$0xff]  ;;  %v9377_v60 = vld [vmem:[#allocation4 + $0x3d8] sm:$0xff] }
 0x675   :  { %3683 = vmatpush.msra.mxu1 %v3117_v54  ;;  %3699 = vmatpush.msra.mxu2 %v3218_v38  ;;  %v3247_v54 = vld [vmem:[#allocation3 + $0x560] sm:$0xff]  ;;  %v3248_v38 = vld [vmem:[#allocation3 + $0x568] sm:$0xff] }
 0x676   :  { %3719 = vmatpush.msra.mxu3 %v3219_v37  ;;  %3664 = vmatpush.msra.mxu0 %v3091_v25  ;;  %v3223_v37 = vld [vmem:[#allocation3 + $0x4a0] sm:$0xff]  ;;  %v7705_v25 = vld [vmem:[%s10796_s1 + $0xb0] sm:$0xff] }
 0x677   :  { %7594 = vmatmul.msk.f32.vlgmr.msra.gmra.mxu0 %vm3325_vm8, %v9184_v39  ;;  %3684 = vmatpush.msra.mxu1 %v3092_v30  ;;  %v1626_v30 = vmul.f32 %v7705_v25, %v9375_v5 }
 0x678   :  { %3700 = vmatpush.msra.mxu2 %v1622_v50  ;;  %3720 = vmatpush.msra.mxu3 %v1623_v12  ;;  %v3121_v50 = vld [vmem:[#allocation3 + $0x170] sm:$0xff]  ;;  %v3222_v12 = vld [vmem:[#allocation3 + $0x498] sm:$0xff] }
 0x679   :  { %3735 = vmatpush.msrb.mxu0 %v3320_v0  ;;  %7593 = vmatmul.msk.f32.vlgmr.msrb.gmra.mxu3 %vm3325_vm8, %v9184_v39  ;;  %v7706_v0 = vld [vmem:[%s10796_s1 + $0xb8] sm:$0xff] }
 0x67a   :  { %3755 = vmatpush.msrb.mxu1 %v3321_v36  ;;  %3701 = vmatpush.msra.mxu2 %v3168_v48  ;;  %v1627_v36 = vmul.f32 %v7706_v0, %v9377_v60  ;;  %v3324_v48 = vld [vmem:[#allocation3 + $0x7c8] sm:$0xff] }
 0x67b   :  { %3721 = vmatpush.msra.mxu3 %v3169_v6  ;;  %3736 = vmatpush.msrb.mxu0 %v3019_v40  ;;  %v3899_v40 = vld [vmem:[#allocation4 + $0x98] sm:$0xff]  ;;  %v2998_v6 = vpop.permute.xlu2 %2997 }
 0x67c   :  { %3756 = vmatpush.msrb.mxu1 %v3020_v29  ;;  %3702 = vmatpush.msra.mxu2 %v3143_v26  ;;  %v3172_v29 = vld [vmem:[#allocation3 + $0x308] sm:$0xff]  ;;  %v3173_v26 = vld [vmem:[#allocation3 + $0x310] sm:$0xff] }
 0x67d   :  { %7595 = vmatmul.msk.f32.vlgmr.msra.gmra.mxu1 %vm3325_vm8, %v9184_v39  ;;  %3722 = vmatpush.msra.mxu3 %v3144_v44  ;;  %v3023_v44 = vsel %vm252_vm0, %v9363_v15, %v2998_v6  ;;  %v3933_v15 = vpop.permute.xlu1 %3932 }
 0x67e   :  { %3737 = vmatpush.msrb.mxu0 %v3270_v13  ;;  %3757 = vmatpush.msrb.mxu1 %v3271_v18  ;;  %v3147_v13 = vld [vmem:[#allocation3 + $0x240] sm:$0xff]  ;;  %v3148_v18 = vld [vmem:[#allocation3 + $0x248] sm:$0xff] }
 0x67f   :  { %3960 = vrot.lane.b32.xlu0 %v3895_v49, %s7739_s22  ;;  %3703 = vmatpush.msra.mxu2 %v3118_v33  ;;  %v3901_v49 = vld [vmem:[#allocation4 + $0xa8] sm:$0xff] }
 0x680   :  { %3723 = vmatpush.msra.mxu3 %v3119_v11  ;;  %3738 = vmatpush.msrb.mxu0 %v3245_v59  ;;  %v3274_v33 = vld [vmem:[#allocation3 + $0x638] sm:$0xff]  ;;  %v9395_v11 = vld [vmem:[#allocation4 + $0x3e0] sm:$0xff] }
 0x681   :  { %3758 = vmatpush.msrb.mxu1 %v3246_v62  ;;  %3704 = vmatpush.msra.mxu2 %v3093_v24  ;;  %v3897_v59 = vld [vmem:[#allocation4 + $0x88] sm:$0xff]  ;;  %v3123_v24 = vld [vmem:[#allocation3 + $0x180] sm:$0xff] }
 0x682   :  { %3724 = vmatpush.msra.mxu3 %v3094_v55  ;;  %3739 = vmatpush.msrb.mxu0 %v3220_v41  ;;  %v3122_v62 = vld [vmem:[#allocation3 + $0x178] sm:$0xff]  ;;  %v3249_v55 = vld [vmem:[#allocation3 + $0x570] sm:$0xff] }
 0x683   :  { %7597 = vmatmul.msk.f32.vlgmr.msra.gmra.mxu3 %vm3325_vm8, %v9184_v39  ;;  %3759 = vmatpush.msrb.mxu1 %v3221_v10  ;;  %v3097_v41 = vld [vmem:[#allocation3 + $0xb0] sm:$0xff]  ;;  %v3224_v10 = vld [vmem:[#allocation3 + $0x4a8] sm:$0xff] }
 0x684   :  { %3775 = vmatpush.msrb.mxu2 %v3322_v46  ;;  %3795 = vmatpush.msrb.mxu3 %v3323_v22  ;;  %v3098_v46 = vld [vmem:[#allocation3 + $0xb8] sm:$0xff] }
 0x685   :  { %3962 = vrot.lane.b32.xlu1 %v3896_v57, %s7739_s22  ;;  %3740 = vmatpush.msrb.mxu0 %v1624_v28  ;;  %v5300_v28 = vld [vmem:[#allocation4 + $0x328] sm:$0xff]  ;;  %v7708_v57 = vld [vmem:[%s10797_s2] sm:$0xff] }
 0x686   :  { %3952 = vrot.lane.b32.xlu2 %v3891_v63, %s7739_s22  ;;  %3760 = vmatpush.msrb.mxu1 %v1625_v51  ;;  %v3904_v51 = vld [vmem:[#allocation4 + $0xc0] sm:$0xff]  ;;  %v3931_v63 = vpop.permute.xlu0 %3930 }
 0x687   :  { %3776 = vmatpush.msrb.mxu2 %v3021_v35  ;;  %3796 = vmatpush.msrb.mxu3 %v3022_v53  ;;  %v3174_v53 = vld [vmem:[#allocation3 + $0x318] sm:$0xff]  ;;  %v3900_v35 = vld [vmem:[#allocation4 + $0xa0] sm:$0xff]  ;;  %v3980_v25 = vsel %vm252_vm0, %v3931_v63, %v3933_v15 }
 0x688   :  { %7596 = vmatmul.msk.f32.vlgmr.msra.gmra.mxu2 %vm3325_vm8, %v9184_v39  ;;  %3741 = vmatpush.msrb.mxu0 %v3170_v45 }
 0x689   :  { %3761 = vmatpush.msrb.mxu1 %v3171_v61  ;;  %3777 = vmatpush.msrb.mxu2 %v3272_v58  ;;  %v4030_v58 = vmul.f32 0.0, %v3931_v63 }
 0x68a   :  { %3797 = vmatpush.msrb.mxu3 %v3273_v7  ;;  %3966 = vrot.lane.b32.xlu0 %v3898_v4, %s7739_s22  ;;  %v3149_v4 = vld [vmem:[#allocation3 + $0x250] sm:$0xff]  ;;  %v3124_v7 = vld [vmem:[#allocation3 + $0x188] sm:$0xff] }
 0x68b   :  { %3742 = vmatpush.msrb.mxu0 %v3145_v23  ;;  %3762 = vmatpush.msrb.mxu1 %v3146_v31  ;;  %v5299_v23 = vld [vmem:[#allocation4 + $0x320] sm:$0xff] }
 0x68c   :  { %3778 = vmatpush.msrb.mxu2 %v3247_v54  ;;  %3798 = vmatpush.msrb.mxu3 %v3248_v38  ;;  %v3099_v54 = vld [vmem:[#allocation3 + $0xc0] sm:$0xff] }
 0x68d   :  { %3743 = vmatpush.msrb.mxu0 %v3120_v27  ;;  %3763 = vmatpush.msrb.mxu1 %v3121_v50  ;;  %v5301_v50 = vld [vmem:[#allocation4 + $0x330] sm:$0xff] }
 0x68e   :  { %3779 = vmatpush.msrb.mxu2 %v3222_v12  ;;  %3799 = vmatpush.msrb.mxu3 %v3223_v37 }
 0x68f   :  { %3744 = vmatpush.msrb.mxu0 %v3095_v14  ;;  %3958 = vrot.lane.b32.xlu2 %v3894_v34, %s7739_s22  ;;  %v3903_v34 = vld [vmem:[#allocation4 + $0xb8] sm:$0xff]  ;;  %v5303_v14 = vld [vmem:[#allocation4 + $0x340] sm:$0xff] }
 0x690   :  { %7598 = vmatmul.msk.f32.vlgmr.msrb.gmra.mxu0 %vm3325_vm8, %v9184_v39  ;;  %3764 = vmatpush.msrb.mxu1 %v3096_v43 }
 0x691   :  { %3780 = vmatpush.msrb.mxu2 %v1626_v30  ;;  %3800 = vmatpush.msrb.mxu3 %v1627_v36 }
 0x692   :  { %3815 = vmatpush.msra.mxu0 %v3324_v48  ;;  %3968 = vrot.lane.b32.xlu1 %v3899_v40, %s7739_s22 }
 0x693   :  { %3781 = vmatpush.msrb.mxu2 %v3172_v29  ;;  %3801 = vmatpush.msrb.mxu3 %v3173_v26 }
 0x694   :  { %3816 = vmatpush.msra.mxu0 %v3023_v44  ;;  %7599 = vmatmul.msk.f32.vlgmr.msrb.gmra.mxu1 %vm3325_vm8, %v9184_v39  ;;  %v7707_v39 = vld [vmem:[%s10796_s1 + $0xc0] sm:$0xff] }
 0x695   :  { %3782 = vmatpush.msrb.mxu2 %v3147_v13  ;;  %3802 = vmatpush.msrb.mxu3 %v3148_v18  ;;  %v1628_v22 = vmul.f32 %v7707_v39, %v9395_v11  ;;  %v5302_v13 = vld [vmem:[#allocation4 + $0x338] sm:$0xff] }
 0x696   :  { %3817 = vmatpush.msra.mxu0 %v3274_v33  ;;  %3972 = vrot.lane.b32.xlu0 %v3901_v49, %s7739_s22 }
 0x697   :  { %3783 = vmatpush.msrb.mxu2 %v3122_v62  ;;  %3803 = vmatpush.msrb.mxu3 %v3123_v24  ;;  %v5306_v62 = vld [vmem:[#allocation4 + $0x358] sm:$0xff]  ;;  %v5304_v24 = vld [vmem:[#allocation4 + $0x348] sm:$0xff] }
 0x698   :  { %3818 = vmatpush.msra.mxu0 %v3249_v55  ;;  %3964 = vrot.lane.b32.xlu2 %v3897_v59, %s7739_s22 }
 0x699   :  { %3784 = vmatpush.msrb.mxu2 %v3097_v41  ;;  %3804 = vmatpush.msrb.mxu3 %v3098_v46  ;;  %v9407_v1 = vpop.f32.mrf.mxu1 }
 0x69a   :  { %3819 = vmatpush.msra.mxu0 %v3224_v10  ;;  %7600 = vmatmul.msk.f32.vlgmr.msrb.gmra.mxu2 %vm3325_vm8, %v7708_v57  ;;  %v5325_v21 = vmul.f32 %v5300_v28, %v9407_v1 }
 0x69b   :  { %7601 = vmatmul.msk.f32.vlgmr.msrb.gmra.mxu3 %vm3325_vm8, %v7708_v57  ;;  %3974 = vrot.lane.b32.xlu1 %v3902_v20, %s7739_s22 }
 0x69c   :  { %3820 = vmatpush.msra.mxu0 %v1628_v22  ;;  %5350 = vst [vmem:[#allocation3 + $0x328] sm:$0xff] %v5325_v21  ;;  %v5307_v21 = vld [vmem:[#allocation4 + $0x360] sm:$0xff] }
 0x69e   :  { %3821 = vmatpush.msra.mxu0 %v3174_v53  ;;  %3978 = vrot.lane.b32.xlu0 %v3904_v51, %s7739_s22  ;;  %v3935_v45 = vpop.permute.xlu2 %3934  ;;  %v5305_v51 = vld [vmem:[#allocation4 + $0x350] sm:$0xff] }
 0x69f   :  { %v3981_v61 = vsel %vm252_vm0, %v3933_v15, %v3935_v45 }
 0x6a0   :  { %3822 = vmatpush.msra.mxu0 %v3149_v4  ;;  %3970 = vrot.lane.b32.xlu2 %v3900_v35, %s7739_s22  ;;  %v4032_v31 = vmul.f32 %v3981_v61, %v9407_v1 }
 0x6a2   :  { %3823 = vmatpush.msra.mxu0 %v3124_v7 }
 0x6a3   :  { %4082 = vrot.lane.b32.xlu1 %v4030_v58, %s7740_s0 }
 0x6a4   :  { %3824 = vmatpush.msra.mxu0 %v3099_v54  ;;  %v9417_v38 = vpop.f32.mrf.mxu0  ;;  %v5308_v54 = vld [vmem:[#allocation4 + $0x368] sm:$0xff] }
 0x6a5   :  { %7602 = vmatmul.msk.f32.vlgmr.msra.gmra.mxu0 %vm3325_vm8, %v7708_v57  ;;  %v5324_v27 = vmul.f32 %v5299_v23, %v9417_v38  ;;  %v4031_v43 = vmul.f32 %v3980_v25, %v9417_v38 }
 0x6a6   :  { %4086 = vrot.lane.b32.xlu0 %v4032_v31, %s7740_s0 }
 0x6a7   :  { %5349 = vst [vmem:[#allocation3 + $0x320] sm:$0xff] %v5324_v27  ;;  %v9422_v12 = vpop.f32.mrf.mxu2 }
 0x6a8   :  { %v5326_v37 = vmul.f32 %v5301_v50, %v9422_v12  ;;  %3976 = vrot.lane.b32.xlu2 %v3903_v34, %s7739_s22 }
 0x6a9   :  { %v3937_v30 = vpop.permute.xlu0 %3936 }
 0x6aa   :  { %v3982_v0 = vsel %vm252_vm0, %v3935_v45, %v3937_v30  ;;  %5351 = vst [vmem:[#allocation3 + $0x330] sm:$0xff] %v5326_v37 }
 0x6ab   :  { %v4033_v36 = vmul.f32 %v3982_v0, %v9422_v12 }
 0x6ad   :  { %4088 = vrot.lane.b32.xlu1 %v4033_v36, %s7740_s0  ;;  %v9431_v48 = vpop.f32.mrf.mxu0 }
 0x6ae   :  { %v5328_v40 = vmul.f32 %v5303_v14, %v9431_v48  ;;  %v3939_v6 = vpop.permute.xlu1 %3938 }
 0x6af   :  { %v3983_v49 = vsel %vm252_vm0, %v3937_v30, %v3939_v6 }
 0x6b0   :  { %5353 = vst [vmem:[#allocation3 + $0x340] sm:$0xff] %v5328_v40  ;;  %4084 = vrot.lane.b32.xlu2 %v4031_v43, %s7740_s0 }
 0x6b4   :  { %v3941_v29 = vpop.permute.xlu2 %3940 }
 0x6b5   :  { %v3984_v26 = vsel %vm252_vm0, %v3939_v6, %v3941_v29 }
 0x6b6   :  { %v4035_v44 = vmul.f32 %v3984_v26, %v9431_v48 }
 0x6b8   :  { %4092 = vrot.lane.b32.xlu0 %v4035_v44, %s7740_s0 }
 0x6b9   :  { %v9439_v18 = vpop.f32.mrf.mxu3 }
 0x6ba   :  { %v5327_v33 = vmul.f32 %v5302_v13, %v9439_v18  ;;  %v4034_v59 = vmul.f32 %v3983_v49, %v9439_v18 }
 0x6bc   :  { %5352 = vst [vmem:[#allocation3 + $0x338] sm:$0xff] %v5327_v33  ;;  %4090 = vrot.lane.b32.xlu2 %v4034_v59, %s7740_s0 }
 0x6c2   :  { %v9444_v55 = vpop.f32.mrf.mxu3 }
 0x6c3   :  { %v9446_v41 = vpop.f32.mrf.mxu1  ;;  %v5331_v46 = vmul.f32 %v5306_v62, %v9444_v55 }
 0x6c4   :  { %v5329_v39 = vmul.f32 %v5304_v24, %v9446_v41 }
 0x6c5   :  { %5356 = vst [vmem:[#allocation3 + $0x358] sm:$0xff] %v5331_v46 }
 0x6c6   :  { %v3943_v22 = vpop.permute.xlu0 %3942  ;;  %5354 = vst [vmem:[#allocation3 + $0x348] sm:$0xff] %v5329_v39  ;;  %v3945_v10 = vpop.permute.xlu1 %3944 }
 0x6c7   :  { %v3985_v20 = vsel %vm252_vm0, %v3941_v29, %v3943_v22  ;;  %v3986_v57 = vsel %vm252_vm0, %v3943_v22, %v3945_v10 }
 0x6c8   :  { %v4036_v28 = vmul.f32 %v3985_v20, %v9446_v41 }
 0x6ca   :  { %4094 = vrot.lane.b32.xlu1 %v4036_v28, %s7740_s0 }
 0x6cc   :  { %v3947_v15 = vpop.permute.xlu2 %3946  ;;  %v9454_v63 = vpop.f32.mrf.mxu2 }
 0x6cd   :  { %v3987_v53 = vsel %vm252_vm0, %v3945_v10, %v3947_v15  ;;  %v5330_v35 = vmul.f32 %v5305_v51, %v9454_v63  ;;  %v9458_v45 = vpop.f32.mrf.mxu0  ;;  %v4037_v4 = vmul.f32 %v3986_v57, %v9454_v63 }
 0x6ce   :  { %v4038_v61 = vmul.f32 %v3987_v53, %v9444_v55  ;;  %v5332_v58 = vmul.f32 %v5307_v21, %v9458_v45 }
 0x6cf   :  { %5355 = vst [vmem:[#allocation3 + $0x350] sm:$0xff] %v5330_v35  ;;  %4096 = vrot.lane.b32.xlu2 %v4037_v4, %s7740_s0 }
 0x6d0   :  { %4098 = vrot.lane.b32.xlu0 %v4038_v61, %s7740_s0  ;;  %v3949_v7 = vpop.permute.xlu0 %3948  ;;  %5357 = vst [vmem:[#allocation3 + $0x360] sm:$0xff] %v5332_v58 }
 0x6d1   :  { %v3988_v31 = vsel %vm252_vm0, %v3947_v15, %v3949_v7 }
 0x6d2   :  { %v4039_v23 = vmul.f32 %v3988_v31, %v9458_v45 }
 0x6d4   :  { %4100 = vrot.lane.b32.xlu1 %v4039_v23, %s7740_s0 }
 0x6d5   :  { %v9468_v27 = vpop.f32.mrf.mxu2 }
 0x6d6   :  { %v5334_v50 = vmul.f32 %v9468_v27, %v9245_v52 }
 0x6d7   :  { %v9472_v34 = vpop.f32.mrf.mxu1 }
 0x6d8   :  { %v3951_v37 = vpop.permute.xlu1 %3950  ;;  %v5333_v25 = vmul.f32 %v5308_v54, %v9472_v34  ;;  %5359 = vst [vmem:[#allocation3 + $0x370] sm:$0xff] %v5334_v50  ;;  %v9475_v30 = vpop.f32.mrf.mxu3 }
 0x6d9   :  { %v3989_v0 = vsel %vm252_vm0, %v3949_v7, %v3951_v37  ;;  %v5335_v36 = vmul.f32 %v9475_v30, %v9247_v8 }
 0x6da   :  { %5358 = vst [vmem:[#allocation3 + $0x368] sm:$0xff] %v5333_v25  ;;  %v4040_v14 = vmul.f32 %v3989_v0, %v9472_v34  ;;  %v3955_v52 = vpop.permute.xlu0 %3954 }
 0x6db   :  { %5360 = vst [vmem:[#allocation3 + $0x378] sm:$0xff] %v5335_v36 }
 0x6dc   :  { %4102 = vrot.lane.b32.xlu2 %v4040_v14, %s7740_s0 }
 0x6e0   :  { %v3953_v43 = vpop.permute.xlu2 %3952 }
 0x6e1   :  { %v3990_v40 = vsel %vm252_vm0, %v3951_v37, %v3953_v43  ;;  %v3991_v6 = vsel %vm252_vm0, %v3953_v43, %v3955_v52  ;;  %v9484_v29 = vpop.f32.mrf.mxu1 }
 0x6e2   :  { %v4041_v26 = vmul.f32 %v3990_v40, %v9468_v27  ;;  %v4042_v44 = vmul.f32 %v3991_v6, %v9475_v30  ;;  %v5337_v8 = vmul.f32 %v9484_v29, %v9267_v2 }
 0x6e3   :  { %v3957_v49 = vpop.permute.xlu1 %3956 }
 0x6e4   :  { %4104 = vrot.lane.b32.xlu0 %v4041_v26, %s7740_s0  ;;  %4106 = vrot.lane.b32.xlu1 %v4042_v44, %s7740_s0  ;;  %5362 = vst [vmem:[#allocation3 + $0x388] sm:$0xff] %v5337_v8  ;;  %v3992_v13 = vsel %vm252_vm0, %v3955_v52, %v3957_v49 }
 0x6e9   :  { %v3959_v33 = vpop.permute.xlu2 %3958 }
 0x6ea   :  { %v3993_v59 = vsel %vm252_vm0, %v3957_v49, %v3959_v33 }
 0x6eb   :  { %v4044_v62 = vmul.f32 %v3993_v59, %v9484_v29  ;;  %v9495_v24 = vpop.f32.mrf.mxu0 }
 0x6ec   :  { %v5336_v46 = vmul.f32 %v9495_v24, %v9265_v19  ;;  %v4043_v2 = vmul.f32 %v3992_v13, %v9495_v24 }
 0x6ed   :  { %4110 = vrot.lane.b32.xlu0 %v4044_v62, %s7740_s0 }
 0x6ee   :  { %5361 = vst [vmem:[#allocation3 + $0x380] sm:$0xff] %v5336_v46  ;;  %v9501_v39 = vpop.f32.mrf.mxu2  ;;  %4108 = vrot.lane.b32.xlu2 %v4043_v2, %s7740_s0 }
 0x6ef   :  { %v5338_v22 = vmul.f32 %v9501_v39, %v9287_v16 }
 0x6f1   :  { %v3961_v20 = vpop.permute.xlu0 %3960  ;;  %5363 = vst [vmem:[#allocation3 + $0x390] sm:$0xff] %v5338_v22 }
 0x6f2   :  { %v3994_v28 = vsel %vm252_vm0, %v3959_v33, %v3961_v20  ;;  %v3965_v19 = vpop.permute.xlu2 %3964 }
 0x6f3   :  { %v4045_v10 = vmul.f32 %v3994_v28, %v9501_v39 }
 0x6f4   :  { %v9508_v57 = vpop.f32.mrf.mxu0 }
 0x6f5   :  { %4112 = vrot.lane.b32.xlu1 %v4045_v10, %s7740_s0  ;;  %v5340_v51 = vmul.f32 %v9508_v57, %v9308_v47 }
 0x6f7   :  { %v3963_v21 = vpop.permute.xlu1 %3962  ;;  %5365 = vst [vmem:[#allocation3 + $0x3a0] sm:$0xff] %v5340_v51 }
 0x6f8   :  { %v3996_v15 = vsel %vm252_vm0, %v3963_v21, %v3965_v19  ;;  %v3995_v53 = vsel %vm252_vm0, %v3961_v20, %v3963_v21 }
 0x6f9   :  { %v4047_v16 = vmul.f32 %v3996_v15, %v9508_v57 }
 0x6fa   :  { %v9516_v35 = vpop.f32.mrf.mxu1  ;;  %v3971_v54 = vpop.permute.xlu2 %3970 }
 0x6fb   :  { %4116 = vrot.lane.b32.xlu0 %v4047_v16, %s7740_s0  ;;  %v5341_v4 = vmul.f32 %v9516_v35, %v9310_v9 }
 0x6fc   :  { %v3967_v61 = vpop.permute.xlu0 %3966  ;;  %v9521_v58 = vpop.f32.mrf.mxu3 }
 0x6fd   :  { %v3997_v47 = vsel %vm252_vm0, %v3965_v19, %v3967_v61  ;;  %5366 = vst [vmem:[#allocation3 + $0x3a8] sm:$0xff] %v5341_v4  ;;  %v5339_v7 = vmul.f32 %v9521_v58, %v9289_v32  ;;  %v4046_v31 = vmul.f32 %v3995_v53, %v9521_v58 }
 0x6fe   :  { %v4048_v23 = vmul.f32 %v3997_v47, %v9516_v35 }
 0x6ff   :  { %5364 = vst [vmem:[#allocation3 + $0x398] sm:$0xff] %v5339_v7  ;;  %4114 = vrot.lane.b32.xlu2 %v4046_v31, %s7740_s0  ;;  %v4235_v7 = vld [vmem:[#allocation4 + $0xc8] sm:$0xff]  ;;  %v4236_v31 = vld [vmem:[#allocation4 + $0xd0] sm:$0xff] }
 0x700   :  { %4118 = vrot.lane.b32.xlu1 %v4048_v23, %s7740_s0 }
 0x702   :  { %v3977_v43 = vpop.permute.xlu2 %3976 }
 0x704   :  { %v3969_v9 = vpop.permute.xlu1 %3968 }
 0x705   :  { %v3999_v50 = vsel %vm252_vm0, %v3969_v9, %v3971_v54  ;;  %v3998_v36 = vsel %vm252_vm0, %v3967_v61, %v3969_v9 }
 0x706   :  { %v9531_v37 = vpop.f32.mrf.mxu3 }
 0x707   :  { %v5343_v25 = vmul.f32 %v9531_v37, %v9331_v3  ;;  %v4050_v32 = vmul.f32 %v3999_v50, %v9531_v37  ;;  %v4238_v50 = vld [vmem:[#allocation4 + $0xe0] sm:$0xff] }
 0x708   :  { %v3973_v0 = vpop.permute.xlu0 %3972 }
 0x709   :  { %5368 = vst [vmem:[#allocation3 + $0x3b8] sm:$0xff] %v5343_v25  ;;  %4122 = vrot.lane.b32.xlu0 %v4050_v32, %s7740_s0  ;;  %v4000_v14 = vsel %vm252_vm0, %v3971_v54, %v3973_v0  ;;  %v4237_v54 = vld [vmem:[#allocation4 + $0xd8] sm:$0xff]  ;;  %v4240_v25 = vld [vmem:[#allocation4 + $0xf0] sm:$0xff] }
 0x70a   :  { %v4085_v62 = vpop.permute.xlu2 %4084  ;;  %v4241_v32 = vld [vmem:[#allocation4 + $0xf8] sm:$0xff] }
 0x70b   :  { %v9539_v52 = vpop.f32.mrf.mxu2 }
 0x70c   :  { %v5342_v40 = vmul.f32 %v9539_v52, %v9329_v42  ;;  %v4049_v6 = vmul.f32 %v3998_v36, %v9539_v52 }
 0x70d   :  { %v9544_v26 = vpop.f32.mrf.mxu0  ;;  %v3975_v3 = vpop.permute.xlu1 %3974 }
 0x70e   :  { %5367 = vst [vmem:[#allocation3 + $0x3b0] sm:$0xff] %v5342_v40  ;;  %v5344_v44 = vmul.f32 %v9544_v26, %v9350_v56  ;;  %4120 = vrot.lane.b32.xlu2 %v4049_v6, %s7740_s0  ;;  %v4051_v8 = vmul.f32 %v4000_v14, %v9544_v26  ;;  %v4001_v49 = vsel %vm252_vm0, %v3973_v0, %v3975_v3  ;;  %v4242_v0 = vld [vmem:[#allocation4 + $0x100] sm:$0xff]  ;;  %v4243_v14 = vld [vmem:[#allocation4 + $0x108] sm:$0xff]  ;;  %v4244_v40 = vld [vmem:[#allocation4 + $0x110] sm:$0xff] }
 0x70f   :  { %v4002_v20 = vsel %vm252_vm0, %v3975_v3, %v3977_v43 }
 0x710   :  { %5369 = vst [vmem:[#allocation3 + $0x3c0] sm:$0xff] %v5344_v44  ;;  %4124 = vrot.lane.b32.xlu1 %v4051_v8, %s7740_s0  ;;  %v3979_v13 = vpop.permute.xlu0 %3978  ;;  %v4245_v44 = vld [vmem:[#allocation4 + $0x118] sm:$0xff] }
 0x711   :  { %v9552_v42 = vpop.f32.mrf.mxu1  ;;  %v4003_v28 = vsel %vm252_vm0, %v3977_v43, %v3979_v13 }
 0x712   :  { %v5345_v33 = vmul.f32 %v9552_v42, %v9353_v17  ;;  %v4052_v59 = vmul.f32 %v4001_v49, %v9552_v42  ;;  %v4246_v49 = vld [vmem:[#allocation4 + $0x120] sm:$0xff] }
 0x714   :  { %5370 = vst [vmem:[#allocation3 + $0x3c8] sm:$0xff] %v5345_v33 }
 0x715   :  { %v4083_v56 = vpop.permute.xlu1 %4082 }
 0x716   :  { %4126 = vrot.lane.b32.xlu2 %v4052_v59, %s7740_s0  ;;  %v4134_v46 = vsel %vm407_vm1, %v4083_v56, %v4085_v62  ;;  %v4091_v16 = vpop.permute.xlu2 %4090  ;;  %v4247_v59 = vld [vmem:[#allocation4 + $0x128] sm:$0xff] }
 0x717   :  { %4184 = vst [vmem:[#allocation3] sm:$0xff] %v4134_v46 }
 0x718   :  { %v4087_v2 = vpop.permute.xlu0 %4086 }
 0x719   :  { %v4135_v22 = vsel %vm407_vm1, %v4085_v62, %v4087_v2  ;;  %v4248_v62 = vld [vmem:[#allocation4 + $0x130] sm:$0xff] }
 0x71a   :  { %4185 = vst [vmem:[#allocation3 + $0x8] sm:$0xff] %v4135_v22  ;;  %v4249_v22 = vld [vmem:[#allocation4 + $0x138] sm:$0xff] }
 0x71d   :  { %v9562_v10 = vpop.f32.mrf.mxu2 }
 0x71e   :  { %v5346_v17 = vmul.f32 %v9562_v10, %v9375_v5  ;;  %v9566_v19 = vpop.f32.mrf.mxu3  ;;  %v4053_v51 = vmul.f32 %v4002_v20, %v9562_v10  ;;  %v4250_v20 = vld [vmem:[#allocation4 + $0x140] sm:$0xff] }
 0x71f   :  { %v5347_v21 = vmul.f32 %v9566_v19, %v9377_v60  ;;  %v4054_v15 = vmul.f32 %v4003_v28, %v9566_v19  ;;  %v4089_v53 = vpop.permute.xlu1 %4088  ;;  %v4251_v28 = vld [vmem:[#allocation4 + $0x148] sm:$0xff] }
 0x720   :  { %5371 = vst [vmem:[#allocation3 + $0x3d0] sm:$0xff] %v5346_v17  ;;  %4128 = vrot.lane.b32.xlu0 %v4053_v51, %s7740_s0  ;;  %v4136_v4 = vsel %vm407_vm1, %v4087_v2, %v4089_v53  ;;  %v4137_v61 = vsel %vm407_vm1, %v4089_v53, %v4091_v16  ;;  %v4252_v17 = vld [vmem:[#allocation4 + $0x150] sm:$0xff] }
 0x721   :  { %5372 = vst [vmem:[#allocation3 + $0x3d8] sm:$0xff] %v5347_v21  ;;  %4130 = vrot.lane.b32.xlu1 %v4054_v15, %s7740_s0  ;;  %v4253_v21 = vld [vmem:[#allocation4 + $0x158] sm:$0xff]  ;;  %v4254_v15 = vld [vmem:[#allocation4 + $0x160] sm:$0xff] }
 0x722   :  { %v9576_v5 = vpop.f32.mrf.mxu0  ;;  %4186 = vst [vmem:[#allocation3 + $0x10] sm:$0xff] %v4136_v4 }
 0x723   :  { %v5348_v60 = vmul.f32 %v9576_v5, %v9395_v11  ;;  %v4055_v47 = vmul.f32 %v3979_v13, %v9576_v5  ;;  %4187 = vst [vmem:[#allocation3 + $0x18] sm:$0xff] %v4137_v61  ;;  %v4239_v11 = vld [vmem:[#allocation4 + $0xe8] sm:$0xff] }
 0x725   :  { %5373 = vst [vmem:[#allocation3 + $0x3e0] sm:$0xff] %v5348_v60  ;;  %4132 = vrot.lane.b32.xlu2 %v4055_v47, %s7740_s0  ;;  %v4255_v47 = vld [vmem:[#allocation4 + $0x168] sm:$0xff] }
 0x728   :  { %4285 = vrot.lane.b32.xlu0 %v4235_v7, %s7741_s23  ;;  %v4256_v7 = vld [vmem:[#allocation4 + $0x170] sm:$0xff] }
 0x729   :  { %4287 = vrot.lane.b32.xlu1 %v4236_v31, %s7741_s23  ;;  %v4097_v36 = vpop.permute.xlu2 %4096  ;;  %v4257_v31 = vld [vmem:[#allocation4 + $0x178] sm:$0xff] }
 0x72a   :  { %v4093_v23 = vpop.permute.xlu0 %4092 }
 0x72b   :  { %v4138_v9 = vsel %vm407_vm1, %v4091_v16, %v4093_v23 }
 0x72c   :  { %4188 = vst [vmem:[#allocation3 + $0x20] sm:$0xff] %v4138_v9  ;;  %v4258_v9 = vld [vmem:[#allocation4 + $0x180] sm:$0xff] }
 0x72d   :  { %4289 = vrot.lane.b32.xlu2 %v4237_v54, %s7741_s23 }
 0x730   :  { %4291 = vrot.lane.b32.xlu0 %v4238_v50, %s7741_s23  ;;  %v4259_v50 = vld [vmem:[#allocation4 + $0x188] sm:$0xff] }
 0x731   :  { %4293 = vrot.lane.b32.xlu1 %v4239_v11, %s7741_s23 }
 0x735   :  { %4295 = vrot.lane.b32.xlu2 %v4240_v25, %s7741_s23 }
 0x736   :  { %v4103_v33 = vpop.permute.xlu2 %4102 }
 0x738   :  { %4297 = vrot.lane.b32.xlu0 %v4241_v32, %s7741_s23 }
 0x739   :  { %4299 = vrot.lane.b32.xlu1 %v4242_v0, %s7741_s23 }
 0x73c   :  { %v4095_v43 = vpop.permute.xlu1 %4094 }
 0x73d   :  { %v4139_v6 = vsel %vm407_vm1, %v4093_v23, %v4095_v43  ;;  %v4140_v3 = vsel %vm407_vm1, %v4095_v43, %v4097_v36  ;;  %4301 = vrot.lane.b32.xlu2 %v4243_v14, %s7741_s23 }
 0x73e   :  { %4189 = vst [vmem:[#allocation3 + $0x28] sm:$0xff] %v4139_v6 }
 0x73f   :  { %4190 = vst [vmem:[#allocation3 + $0x30] sm:$0xff] %v4140_v3 }
 0x740   :  { %4303 = vrot.lane.b32.xlu0 %v4244_v40, %s7741_s23 }
 0x741   :  { %4305 = vrot.lane.b32.xlu1 %v4245_v44, %s7741_s23 }
 0x742   :  { %v4099_v8 = vpop.permute.xlu0 %4098 }
 0x743   :  { %v4141_v13 = vsel %vm407_vm1, %v4097_v36, %v4099_v8 }
 0x744   :  { %4191 = vst [vmem:[#allocation3 + $0x38] sm:$0xff] %v4141_v13 }
 0x745   :  { %4307 = vrot.lane.b32.xlu2 %v4246_v49, %s7741_s23 }
 0x746   :  { %v4101_v56 = vpop.permute.xlu1 %4100 }
 0x747   :  { %v4142_v46 = vsel %vm407_vm1, %v4099_v8, %v4101_v56  ;;  %v4143_v2 = vsel %vm407_vm1, %v4101_v56, %v4103_v33 }
 0x748   :  { %4309 = vrot.lane.b32.xlu0 %v4247_v59, %s7741_s23  ;;  %4192 = vst [vmem:[#allocation3 + $0x40] sm:$0xff] %v4142_v46  ;;  %v4109_v51 = vpop.permute.xlu2 %4108 }
 0x749   :  { %4311 = vrot.lane.b32.xlu1 %v4248_v62, %s7741_s23  ;;  %4193 = vst [vmem:[#allocation3 + $0x48] sm:$0xff] %v4143_v2 }
 0x74d   :  { %4313 = vrot.lane.b32.xlu2 %v4249_v22, %s7741_s23 }
 0x750   :  { %4315 = vrot.lane.b32.xlu0 %v4250_v20, %s7741_s23 }
 0x751   :  { %4317 = vrot.lane.b32.xlu1 %v4251_v28, %s7741_s23 }
 0x755   :  { %4319 = vrot.lane.b32.xlu2 %v4252_v17, %s7741_s23 }
 0x756   :  { %v4105_v16 = vpop.permute.xlu0 %4104  ;;  %v4107_v53 = vpop.permute.xlu1 %4106 }
 0x757   :  { %v4144_v4 = vsel %vm407_vm1, %v4103_v33, %v4105_v16  ;;  %v4145_v61 = vsel %vm407_vm1, %v4105_v16, %v4107_v53  ;;  %v4146_v60 = vsel %vm407_vm1, %v4107_v53, %v4109_v51 }
 0x758   :  { %4321 = vrot.lane.b32.xlu0 %v4253_v21, %s7741_s23  ;;  %4194 = vst [vmem:[#allocation3 + $0x50] sm:$0xff] %v4144_v4 }
 0x759   :  { %4323 = vrot.lane.b32.xlu1 %v4254_v15, %s7741_s23  ;;  %4195 = vst [vmem:[#allocation3 + $0x58] sm:$0xff] %v4145_v61  ;;  %v4115_v11 = vpop.permute.xlu2 %4114 }
 0x75a   :  { %4196 = vst [vmem:[#allocation3 + $0x60] sm:$0xff] %v4146_v60 }
 0x75d   :  { %4325 = vrot.lane.b32.xlu2 %v4255_v47, %s7741_s23 }
 0x75f   :  { %v4111_v23 = vpop.permute.xlu0 %4110 }
 0x760   :  { %4327 = vrot.lane.b32.xlu0 %v4256_v7, %s7741_s23  ;;  %v4147_v54 = vsel %vm407_vm1, %v4109_v51, %v4111_v23 }
 0x761   :  { %4329 = vrot.lane.b32.xlu1 %v4257_v31, %s7741_s23  ;;  %4197 = vst [vmem:[#allocation3 + $0x68] sm:$0xff] %v4147_v54 }
 0x765   :  { %4331 = vrot.lane.b32.xlu2 %v4258_v9, %s7741_s23 }
 0x767   :  { %v4113_v25 = vpop.permute.xlu1 %4112 }
 0x768   :  { %4333 = vrot.lane.b32.xlu0 %v4259_v50, %s7741_s23  ;;  %v4148_v32 = vsel %vm407_vm1, %v4111_v23, %v4113_v25  ;;  %v4149_v0 = vsel %vm407_vm1, %v4113_v25, %v4115_v11  ;;  %v4121_v43 = vpop.permute.xlu2 %4120 }
 0x769   :  { %4198 = vst [vmem:[#allocation3 + $0x70] sm:$0xff] %v4148_v32 }
 0x76a   :  { %4199 = vst [vmem:[#allocation3 + $0x78] sm:$0xff] %v4149_v0 }
 0x76d   :  { %v4117_v36 = vpop.permute.xlu0 %4116 }
 0x76e   :  { %v4150_v14 = vsel %vm407_vm1, %v4115_v11, %v4117_v36 }
 0x76f   :  { %4200 = vst [vmem:[#allocation3 + $0x80] sm:$0xff] %v4150_v14 }
 0x770   :  { %v4127_v44 = vpop.permute.xlu2 %4126 }
 0x772   :  { %v4119_v40 = vpop.permute.xlu1 %4118 }
 0x773   :  { %v4151_v6 = vsel %vm407_vm1, %v4117_v36, %v4119_v40  ;;  %v4152_v3 = vsel %vm407_vm1, %v4119_v40, %v4121_v43 }
 0x774   :  { %4201 = vst [vmem:[#allocation3 + $0x88] sm:$0xff] %v4151_v6 }
 0x775   :  { %4202 = vst [vmem:[#allocation3 + $0x90] sm:$0xff] %v4152_v3 }
 0x77b   :  { %v4123_v8 = vpop.permute.xlu0 %4122 }
 0x77c   :  { %v4153_v49 = vsel %vm407_vm1, %v4121_v43, %v4123_v8 }
 0x77d   :  { %4203 = vst [vmem:[#allocation3 + $0x98] sm:$0xff] %v4153_v49 }
 0x77f   :  { %v4133_v33 = vpop.permute.xlu2 %4132 }
 0x782   :  { %v4125_v13 = vpop.permute.xlu1 %4124 }
 0x783   :  { %v4154_v59 = vsel %vm407_vm1, %v4123_v8, %v4125_v13  ;;  %v4155_v62 = vsel %vm407_vm1, %v4125_v13, %v4127_v44 }
 0x784   :  { %4204 = vst [vmem:[#allocation3 + $0xa0] sm:$0xff] %v4154_v59 }
 0x785   :  { %4205 = vst [vmem:[#allocation3 + $0xa8] sm:$0xff] %v4155_v62 }
 0x787   :  { %v4290_v56 = vpop.permute.xlu2 %4289 }
 0x78f   :  { %v4296_v17 = vpop.permute.xlu2 %4295 }
 0x792   :  { %v4129_v46 = vpop.permute.xlu0 %4128 }
 0x793   :  { %v4156_v2 = vsel %vm407_vm1, %v4127_v44, %v4129_v46  ;;  %v4131_v22 = vpop.permute.xlu1 %4130 }
 0x794   :  { %4206 = vst [vmem:[#allocation3 + $0xb0] sm:$0xff] %v4156_v2  ;;  %v4157_v20 = vsel %vm407_vm1, %v4129_v46, %v4131_v22  ;;  %v4158_v28 = vsel %vm407_vm1, %v4131_v22, %v4133_v33 }
 0x795   :  { %4207 = vst [vmem:[#allocation3 + $0xb8] sm:$0xff] %v4157_v20 }
 0x796   :  { %4208 = vst [vmem:[#allocation3 + $0xc0] sm:$0xff] %v4158_v28 }
 0x797   :  { %v4302_v60 = vpop.permute.xlu2 %4301 }
 0x79a   :  { %v4286_v51 = vpop.permute.xlu0 %4285 }
 0x79b   :  { %v4385_v21 = vmul.f32 0.0, %v4286_v51  ;;  %v4288_v15 = vpop.permute.xlu1 %4287 }
 0x79c   :  { %v4335_v16 = vsel %vm609_vm2, %v4286_v51, %v4288_v15  ;;  %v4336_v53 = vsel %vm609_vm2, %v4288_v15, %v4290_v56 }
 0x79d   :  { %v4386_v4 = vmul.f32 %v4335_v16, %v9417_v38  ;;  %v4387_v61 = vmul.f32 %v4336_v53, %v9407_v1  ;;  %4437 = vrot.lane.b32.xlu1 %v4385_v21, %s7742_s24 }
 0x79f   :  { %4439 = vrot.lane.b32.xlu2 %v4386_v4, %s7742_s24  ;;  %4441 = vrot.lane.b32.xlu0 %v4387_v61, %s7742_s24  ;;  %v4308_v25 = vpop.permute.xlu2 %4307 }
 0x7a2   :  { %v4292_v47 = vpop.permute.xlu0 %4291 }
 0x7a3   :  { %v4337_v7 = vsel %vm609_vm2, %v4290_v56, %v4292_v47  ;;  %v4294_v31 = vpop.permute.xlu1 %4293 }
 0x7a4   :  { %v4388_v23 = vmul.f32 %v4337_v7, %v9422_v12  ;;  %v4338_v54 = vsel %vm609_vm2, %v4292_v47, %v4294_v31  ;;  %v4339_v9 = vsel %vm609_vm2, %v4294_v31, %v4296_v17 }
 0x7a5   :  { %v4389_v50 = vmul.f32 %v4338_v54, %v9439_v18  ;;  %v4390_v11 = vmul.f32 %v4339_v9, %v9431_v48 }
 0x7a6   :  { %4443 = vrot.lane.b32.xlu1 %v4388_v23, %s7742_s24 }
 0x7a7   :  { %4445 = vrot.lane.b32.xlu2 %v4389_v50, %s7742_s24  ;;  %4447 = vrot.lane.b32.xlu0 %v4390_v11, %s7742_s24  ;;  %v4314_v13 = vpop.permute.xlu2 %4313 }
 0x7aa   :  { %v4298_v32 = vpop.permute.xlu0 %4297 }
 0x7ab   :  { %v4340_v0 = vsel %vm609_vm2, %v4296_v17, %v4298_v32  ;;  %v4300_v36 = vpop.permute.xlu1 %4299 }
 0x7ac   :  { %v4391_v14 = vmul.f32 %v4340_v0, %v9446_v41  ;;  %v4341_v43 = vsel %vm609_vm2, %v4298_v32, %v4300_v36  ;;  %v4342_v40 = vsel %vm609_vm2, %v4300_v36, %v4302_v60 }
 0x7ad   :  { %v4392_v6 = vmul.f32 %v4341_v43, %v9454_v63  ;;  %v4393_v3 = vmul.f32 %v4342_v40, %v9444_v55 }
 0x7ae   :  { %4449 = vrot.lane.b32.xlu1 %v4391_v14, %s7742_s24 }
 0x7af   :  { %4451 = vrot.lane.b32.xlu2 %v4392_v6, %s7742_s24  ;;  %4453 = vrot.lane.b32.xlu0 %v4393_v3, %s7742_s24  ;;  %v4320_v16 = vpop.permute.xlu2 %4319 }
 0x7b2   :  { %v4304_v44 = vpop.permute.xlu0 %4303 }
 0x7b3   :  { %v4343_v8 = vsel %vm609_vm2, %v4302_v60, %v4304_v44  ;;  %v4306_v49 = vpop.permute.xlu1 %4305 }
 0x7b4   :  { %v4394_v33 = vmul.f32 %v4343_v8, %v9458_v45  ;;  %v4344_v59 = vsel %vm609_vm2, %v4304_v44, %v4306_v49  ;;  %v4345_v62 = vsel %vm609_vm2, %v4306_v49, %v4308_v25 }
 0x7b5   :  { %v4395_v56 = vmul.f32 %v4344_v59, %v9472_v34  ;;  %v4396_v46 = vmul.f32 %v4345_v62, %v9468_v27 }
 0x7b6   :  { %4455 = vrot.lane.b32.xlu1 %v4394_v33, %s7742_s24 }
 0x7b7   :  { %4457 = vrot.lane.b32.xlu2 %v4395_v56, %s7742_s24  ;;  %4459 = vrot.lane.b32.xlu0 %v4396_v46, %s7742_s24  ;;  %v4326_v54 = vpop.permute.xlu2 %4325 }
 0x7ba   :  { %v4310_v2 = vpop.permute.xlu0 %4309 }
 0x7bb   :  { %v4346_v22 = vsel %vm609_vm2, %v4308_v25, %v4310_v2  ;;  %v4312_v20 = vpop.permute.xlu1 %4311 }
 0x7bc   :  { %v4397_v28 = vmul.f32 %v4346_v22, %v9475_v30  ;;  %v4347_v17 = vsel %vm609_vm2, %v4310_v2, %v4312_v20  ;;  %v4348_v51 = vsel %vm609_vm2, %v4312_v20, %v4314_v13  ;;  %v4590_v2 = vld [vmem:[#allocation4 + $0x190] sm:$0xff]  ;;  %v4591_v22 = vld [vmem:[#allocation4 + $0x198] sm:$0xff]  ;;  %v4593_v20 = vld [vmem:[#allocation4 + $0x1a8] sm:$0xff] }
 0x7bd   :  { %v4398_v21 = vmul.f32 %v4347_v17, %v9495_v24  ;;  %v4399_v15 = vmul.f32 %v4348_v51, %v9484_v29  ;;  %v4594_v17 = vld [vmem:[#allocation4 + $0x1b0] sm:$0xff]  ;;  %v4596_v51 = vld [vmem:[#allocation4 + $0x1c0] sm:$0xff] }
 0x7be   :  { %4461 = vrot.lane.b32.xlu1 %v4397_v28, %s7742_s24  ;;  %v4592_v28 = vld [vmem:[#allocation4 + $0x1a0] sm:$0xff] }
 0x7bf   :  { %4463 = vrot.lane.b32.xlu2 %v4398_v21, %s7742_s24  ;;  %4465 = vrot.lane.b32.xlu0 %v4399_v15, %s7742_s24  ;;  %v4332_v43 = vpop.permute.xlu2 %4331  ;;  %v4595_v21 = vld [vmem:[#allocation4 + $0x1b8] sm:$0xff]  ;;  %v4597_v15 = vld [vmem:[#allocation4 + $0x1c8] sm:$0xff] }
 0x7c2   :  { %v4316_v53 = vpop.permute.xlu0 %4315 }
 0x7c3   :  { %v4349_v4 = vsel %vm609_vm2, %v4314_v13, %v4316_v53  ;;  %v4318_v61 = vpop.permute.xlu1 %4317 }
 0x7c4   :  { %v4400_v60 = vmul.f32 %v4349_v4, %v9501_v39  ;;  %v4350_v47 = vsel %vm609_vm2, %v4316_v53, %v4318_v61  ;;  %v4351_v7 = vsel %vm609_vm2, %v4318_v61, %v4320_v16  ;;  %v4598_v53 = vld [vmem:[#allocation4 + $0x1d0] sm:$0xff]  ;;  %v4600_v61 = vld [vmem:[#allocation4 + $0x1e0] sm:$0xff] }
 0x7c5   :  { %v4401_v31 = vmul.f32 %v4350_v47, %v9521_v58  ;;  %v4402_v23 = vmul.f32 %v4351_v7, %v9508_v57  ;;  %v4601_v47 = vld [vmem:[#allocation4 + $0x1e8] sm:$0xff] }
 0x7c6   :  { %4467 = vrot.lane.b32.xlu1 %v4400_v60, %s7742_s24  ;;  %v4602_v60 = vld [vmem:[#allocation4 + $0x1f0] sm:$0xff] }
 0x7c7   :  { %4469 = vrot.lane.b32.xlu2 %v4401_v31, %s7742_s24  ;;  %4471 = vrot.lane.b32.xlu0 %v4402_v23, %s7742_s24  ;;  %v4603_v31 = vld [vmem:[#allocation4 + $0x1f8] sm:$0xff]  ;;  %v4605_v23 = vld [vmem:[#allocation4 + $0x208] sm:$0xff] }
 0x7ca   :  { %v4322_v9 = vpop.permute.xlu0 %4321 }
 0x7cb   :  { %v4352_v50 = vsel %vm609_vm2, %v4320_v16, %v4322_v9  ;;  %v4324_v11 = vpop.permute.xlu1 %4323  ;;  %v4599_v16 = vld [vmem:[#allocation4 + $0x1d8] sm:$0xff] }
 0x7cc   :  { %v4403_v25 = vmul.f32 %v4352_v50, %v9516_v35  ;;  %v4353_v32 = vsel %vm609_vm2, %v4322_v9, %v4324_v11  ;;  %v4354_v0 = vsel %vm609_vm2, %v4324_v11, %v4326_v54  ;;  %v4606_v50 = vld [vmem:[#allocation4 + $0x210] sm:$0xff]  ;;  %v4608_v11 = vld [vmem:[#allocation4 + $0x220] sm:$0xff] }
 0x7cd   :  { %v4404_v36 = vmul.f32 %v4353_v32, %v9539_v52  ;;  %v4405_v14 = vmul.f32 %v4354_v0, %v9531_v37 }
 0x7ce   :  { %4473 = vrot.lane.b32.xlu1 %v4403_v25, %s7742_s24  ;;  %v4607_v25 = vld [vmem:[#allocation4 + $0x218] sm:$0xff] }
 0x7cf   :  { %4475 = vrot.lane.b32.xlu2 %v4404_v36, %s7742_s24  ;;  %4477 = vrot.lane.b32.xlu0 %v4405_v14, %s7742_s24 }
 0x7d2   :  { %v4328_v40 = vpop.permute.xlu0 %4327 }
 0x7d3   :  { %v4355_v6 = vsel %vm609_vm2, %v4326_v54, %v4328_v40  ;;  %v4330_v3 = vpop.permute.xlu1 %4329  ;;  %v4604_v54 = vld [vmem:[#allocation4 + $0x200] sm:$0xff] }
 0x7d4   :  { %v4406_v44 = vmul.f32 %v4355_v6, %v9544_v26  ;;  %v4356_v8 = vsel %vm609_vm2, %v4328_v40, %v4330_v3  ;;  %v4357_v49 = vsel %vm609_vm2, %v4330_v3, %v4332_v43  ;;  %v4609_v40 = vld [vmem:[#allocation4 + $0x228] sm:$0xff]  ;;  %v4611_v6 = vld [vmem:[#allocation4 + $0x238] sm:$0xff]  ;;  %v4610_v3 = vld [vmem:[#allocation4 + $0x230] sm:$0xff] }
 0x7d5   :  { %v4407_v13 = vmul.f32 %v4356_v8, %v9552_v42  ;;  %v4408_v33 = vmul.f32 %v4357_v49, %v9562_v10 }
 0x7d6   :  { %4479 = vrot.lane.b32.xlu1 %v4406_v44, %s7742_s24 }
 0x7d7   :  { %4481 = vrot.lane.b32.xlu2 %v4407_v13, %s7742_s24  ;;  %4483 = vrot.lane.b32.xlu0 %v4408_v33, %s7742_s24 }
 0x7da   :  { %v4334_v59 = vpop.permute.xlu0 %4333 }
 0x7db   :  { %v4358_v62 = vsel %vm609_vm2, %v4332_v43, %v4334_v59  ;;  %v4410_v56 = vmul.f32 %v4334_v59, %v9576_v5 }
 0x7dc   :  { %v4409_v46 = vmul.f32 %v4358_v62, %v9566_v19  ;;  %v4612_v62 = vld [vmem:[#allocation4 + $0x240] sm:$0xff] }
 0x7de   :  { %4485 = vrot.lane.b32.xlu1 %v4409_v46, %s7742_s24  ;;  %v4613_v46 = vld [vmem:[#allocation4 + $0x248] sm:$0xff] }
 0x7df   :  { %4487 = vrot.lane.b32.xlu2 %v4410_v56, %s7742_s24  ;;  %4640 = vrot.lane.b32.xlu0 %v4590_v2, %s7743_s25  ;;  %v4614_v56 = vld [vmem:[#allocation4 + $0x250] sm:$0xff] }
 0x7e6   :  { %4642 = vrot.lane.b32.xlu1 %v4591_v22, %s7743_s25 }
 0x7e7   :  { %4646 = vrot.lane.b32.xlu0 %v4593_v20, %s7743_s25  ;;  %4644 = vrot.lane.b32.xlu2 %v4592_v28, %s7743_s25 }
 0x7ee   :  { %4648 = vrot.lane.b32.xlu1 %v4594_v17, %s7743_s25 }
 0x7ef   :  { %4652 = vrot.lane.b32.xlu0 %v4596_v51, %s7743_s25  ;;  %4650 = vrot.lane.b32.xlu2 %v4595_v21, %s7743_s25 }
 0x7f6   :  { %4654 = vrot.lane.b32.xlu1 %v4597_v15, %s7743_s25 }
 0x7f7   :  { %4658 = vrot.lane.b32.xlu0 %v4599_v16, %s7743_s25  ;;  %4656 = vrot.lane.b32.xlu2 %v4598_v53, %s7743_s25 }
 0x7f9   :  { %v4440_v4 = vpop.permute.xlu2 %4439 }
 0x7fe   :  { %4660 = vrot.lane.b32.xlu1 %v4600_v61, %s7743_s25 }
 0x7ff   :  { %4664 = vrot.lane.b32.xlu0 %v4602_v60, %s7743_s25  ;;  %4662 = vrot.lane.b32.xlu2 %v4601_v47, %s7743_s25 }
 0x801   :  { %v4446_v7 = vpop.permute.xlu2 %4445 }
 0x806   :  { %4666 = vrot.lane.b32.xlu1 %v4603_v31, %s7743_s25 }
 0x807   :  { %4670 = vrot.lane.b32.xlu0 %v4605_v23, %s7743_s25  ;;  %4668 = vrot.lane.b32.xlu2 %v4604_v54, %s7743_s25 }
 0x809   :  { %v4452_v9 = vpop.permute.xlu2 %4451 }
 0x80e   :  { %4672 = vrot.lane.b32.xlu1 %v4606_v50, %s7743_s25 }
 0x80f   :  { %4676 = vrot.lane.b32.xlu0 %v4608_v11, %s7743_s25  ;;  %v4438_v32 = vpop.permute.xlu1 %4437  ;;  %4674 = vrot.lane.b32.xlu2 %v4607_v25, %s7743_s25 }
 0x810   :  { %v4489_v0 = vsel %vm764_vm3, %v4438_v32, %v4440_v4 }
 0x811   :  { %4539 = vst [vmem:[#allocation3 + $0xc8] sm:$0xff] %v4489_v0  ;;  %v4442_v36 = vpop.permute.xlu0 %4441  ;;  %v4458_v14 = vpop.permute.xlu2 %4457 }
 0x812   :  { %v4490_v43 = vsel %vm764_vm3, %v4440_v4, %v4442_v36 }
 0x813   :  { %4540 = vst [vmem:[#allocation3 + $0xd0] sm:$0xff] %v4490_v43 }
 0x816   :  { %4678 = vrot.lane.b32.xlu1 %v4609_v40, %s7743_s25 }
 0x817   :  { %4682 = vrot.lane.b32.xlu0 %v4611_v6, %s7743_s25  ;;  %4680 = vrot.lane.b32.xlu2 %v4610_v3, %s7743_s25 }
 0x818   :  { %v4444_v44 = vpop.permute.xlu1 %4443 }
 0x819   :  { %v4491_v8 = vsel %vm764_vm3, %v4442_v36, %v4444_v44  ;;  %v4492_v49 = vsel %vm764_vm3, %v4444_v44, %v4446_v7  ;;  %v4448_v13 = vpop.permute.xlu0 %4447  ;;  %v4464_v33 = vpop.permute.xlu2 %4463 }
 0x81a   :  { %4541 = vst [vmem:[#allocation3 + $0xd8] sm:$0xff] %v4491_v8  ;;  %v4493_v59 = vsel %vm764_vm3, %v4446_v7, %v4448_v13 }
 0x81b   :  { %4542 = vst [vmem:[#allocation3 + $0xe0] sm:$0xff] %v4492_v49 }
 0x81c   :  { %4543 = vst [vmem:[#allocation3 + $0xe8] sm:$0xff] %v4493_v59 }
 0x81e   :  { %4684 = vrot.lane.b32.xlu1 %v4612_v62, %s7743_s25 }
 0x81f   :  { %4688 = vrot.lane.b32.xlu0 %v4614_v56, %s7743_s25  ;;  %4686 = vrot.lane.b32.xlu2 %v4613_v46, %s7743_s25 }
 0x820   :  { %v4450_v2 = vpop.permute.xlu1 %4449 }
 0x821   :  { %v4494_v22 = vsel %vm764_vm3, %v4448_v13, %v4450_v2  ;;  %v4495_v20 = vsel %vm764_vm3, %v4450_v2, %v4452_v9  ;;  %v4454_v28 = vpop.permute.xlu0 %4453  ;;  %v4470_v51 = vpop.permute.xlu2 %4469 }
 0x822   :  { %4544 = vst [vmem:[#allocation3 + $0xf0] sm:$0xff] %v4494_v22  ;;  %v4496_v17 = vsel %vm764_vm3, %v4452_v9, %v4454_v28 }
 0x823   :  { %4545 = vst [vmem:[#allocation3 + $0xf8] sm:$0xff] %v4495_v20 }
 0x824   :  { %4546 = vst [vmem:[#allocation3 + $0x100] sm:$0xff] %v4496_v17 }
 0x828   :  { %v4456_v21 = vpop.permute.xlu1 %4455 }
 0x829   :  { %v4497_v15 = vsel %vm764_vm3, %v4454_v28, %v4456_v21  ;;  %v4498_v16 = vsel %vm764_vm3, %v4456_v21, %v4458_v14  ;;  %v4460_v53 = vpop.permute.xlu0 %4459  ;;  %v4476_v61 = vpop.permute.xlu2 %4475 }
 0x82a   :  { %4547 = vst [vmem:[#allocation3 + $0x108] sm:$0xff] %v4497_v15  ;;  %v4499_v4 = vsel %vm764_vm3, %v4458_v14, %v4460_v53 }
 0x82b   :  { %4548 = vst [vmem:[#allocation3 + $0x110] sm:$0xff] %v4498_v16 }
 0x82c   :  { %4549 = vst [vmem:[#allocation3 + $0x118] sm:$0xff] %v4499_v4 }
 0x830   :  { %v4462_v60 = vpop.permute.xlu1 %4461 }
 0x831   :  { %v4500_v47 = vsel %vm764_vm3, %v4460_v53, %v4462_v60  ;;  %v4501_v7 = vsel %vm764_vm3, %v4462_v60, %v4464_v33  ;;  %v4466_v31 = vpop.permute.xlu0 %4465  ;;  %v4482_v54 = vpop.permute.xlu2 %4481 }
 0x832   :  { %4550 = vst [vmem:[#allocation3 + $0x120] sm:$0xff] %v4500_v47  ;;  %v4502_v23 = vsel %vm764_vm3, %v4464_v33, %v4466_v31 }
 0x833   :  { %4551 = vst [vmem:[#allocation3 + $0x128] sm:$0xff] %v4501_v7 }
 0x834   :  { %4552 = vst [vmem:[#allocation3 + $0x130] sm:$0xff] %v4502_v23 }
 0x838   :  { %v4468_v9 = vpop.permute.xlu1 %4467 }
 0x839   :  { %v4503_v50 = vsel %vm764_vm3, %v4466_v31, %v4468_v9  ;;  %v4504_v11 = vsel %vm764_vm3, %v4468_v9, %v4470_v51  ;;  %v4472_v25 = vpop.permute.xlu0 %4471  ;;  %v4488_v0 = vpop.permute.xlu2 %4487 }
 0x83a   :  { %4553 = vst [vmem:[#allocation3 + $0x138] sm:$0xff] %v4503_v50  ;;  %v4505_v32 = vsel %vm764_vm3, %v4470_v51, %v4472_v25 }
 0x83b   :  { %4554 = vst [vmem:[#allocation3 + $0x140] sm:$0xff] %v4504_v11 }
 0x83c   :  { %4555 = vst [vmem:[#allocation3 + $0x148] sm:$0xff] %v4505_v32 }
 0x840   :  { %v4474_v36 = vpop.permute.xlu1 %4473 }
 0x841   :  { %v4506_v14 = vsel %vm764_vm3, %v4472_v25, %v4474_v36  ;;  %v4507_v43 = vsel %vm764_vm3, %v4474_v36, %v4476_v61  ;;  %v4478_v40 = vpop.permute.xlu0 %4477  ;;  %v4645_v44 = vpop.permute.xlu2 %4644 }
 0x842   :  { %4556 = vst [vmem:[#allocation3 + $0x150] sm:$0xff] %v4506_v14  ;;  %v4508_v6 = vsel %vm764_vm3, %v4476_v61, %v4478_v40 }
 0x843   :  { %4557 = vst [vmem:[#allocation3 + $0x158] sm:$0xff] %v4507_v43 }
 0x844   :  { %4558 = vst [vmem:[#allocation3 + $0x160] sm:$0xff] %v4508_v6 }
 0x848   :  { %v4480_v3 = vpop.permute.xlu1 %4479 }
 0x849   :  { %v4509_v8 = vsel %vm764_vm3, %v4478_v40, %v4480_v3  ;;  %v4510_v49 = vsel %vm764_vm3, %v4480_v3, %v4482_v54  ;;  %v4484_v13 = vpop.permute.xlu0 %4483  ;;  %v4651_v22 = vpop.permute.xlu2 %4650 }
 0x84a   :  { %4559 = vst [vmem:[#allocation3 + $0x168] sm:$0xff] %v4509_v8  ;;  %v4511_v33 = vsel %vm764_vm3, %v4482_v54, %v4484_v13 }
 0x84b   :  { %4560 = vst [vmem:[#allocation3 + $0x170] sm:$0xff] %v4510_v49 }
 0x84c   :  { %4561 = vst [vmem:[#allocation3 + $0x178] sm:$0xff] %v4511_v33 }
 0x850   :  { %v4486_v59 = vpop.permute.xlu1 %4485 }
 0x851   :  { %v4512_v62 = vsel %vm764_vm3, %v4484_v13, %v4486_v59  ;;  %v4513_v56 = vsel %vm764_vm3, %v4486_v59, %v4488_v0  ;;  %v4641_v46 = vpop.permute.xlu0 %4640  ;;  %v4657_v4 = vpop.permute.xlu2 %4656 }
 0x852   :  { %4562 = vst [vmem:[#allocation3 + $0x180] sm:$0xff] %v4512_v62  ;;  %v4740_v2 = vmul.f32 0.0, %v4641_v46 }
 0x853   :  { %4563 = vst [vmem:[#allocation3 + $0x188] sm:$0xff] %v4513_v56 }
 0x854   :  { %4792 = vrot.lane.b32.xlu1 %v4740_v2, %s7744_s26 }
 0x858   :  { %v4643_v20 = vpop.permute.xlu1 %4642 }
 0x859   :  { %v4690_v28 = vsel %vm966_vm4, %v4641_v46, %v4643_v20  ;;  %v4647_v17 = vpop.permute.xlu0 %4646  ;;  %v4691_v51 = vsel %vm966_vm4, %v4643_v20, %v4645_v44  ;;  %v4663_v50 = vpop.permute.xlu2 %4662 }
 0x85a   :  { %v4741_v21 = vmul.f32 %v4690_v28, %v9417_v38  ;;  %v4692_v15 = vsel %vm966_vm4, %v4645_v44, %v4647_v17  ;;  %v4742_v16 = vmul.f32 %v4691_v51, %v9407_v1 }
 0x85b   :  { %v4743_v53 = vmul.f32 %v4692_v15, %v9422_v12 }
 0x85c   :  { %4794 = vrot.lane.b32.xlu2 %v4741_v21, %s7744_s26  ;;  %4796 = vrot.lane.b32.xlu0 %v4742_v16, %s7744_s26 }
 0x85d   :  { %4798 = vrot.lane.b32.xlu1 %v4743_v53, %s7744_s26 }
 0x860   :  { %v4649_v61 = vpop.permute.xlu1 %4648 }
 0x861   :  { %v4693_v60 = vsel %vm966_vm4, %v4647_v17, %v4649_v61  ;;  %v4653_v47 = vpop.permute.xlu0 %4652  ;;  %v4694_v7 = vsel %vm966_vm4, %v4649_v61, %v4651_v22  ;;  %v4669_v3 = vpop.permute.xlu2 %4668 }
 0x862   :  { %v4744_v31 = vmul.f32 %v4693_v60, %v9439_v18  ;;  %v4695_v23 = vsel %vm966_vm4, %v4651_v22, %v4653_v47  ;;  %v4745_v54 = vmul.f32 %v4694_v7, %v9431_v48 }
 0x863   :  { %v4746_v9 = vmul.f32 %v4695_v23, %v9446_v41 }
 0x864   :  { %4800 = vrot.lane.b32.xlu2 %v4744_v31, %s7744_s26  ;;  %4802 = vrot.lane.b32.xlu0 %v4745_v54, %s7744_s26 }
 0x865   :  { %4804 = vrot.lane.b32.xlu1 %v4746_v9, %s7744_s26 }
 0x868   :  { %v4655_v11 = vpop.permute.xlu1 %4654 }
 0x869   :  { %v4696_v25 = vsel %vm966_vm4, %v4653_v47, %v4655_v11  ;;  %v4659_v32 = vpop.permute.xlu0 %4658  ;;  %v4697_v0 = vsel %vm966_vm4, %v4655_v11, %v4657_v4  ;;  %v4675_v51 = vpop.permute.xlu2 %4674 }
 0x86a   :  { %v4747_v36 = vmul.f32 %v4696_v25, %v9454_v63  ;;  %v4698_v14 = vsel %vm966_vm4, %v4657_v4, %v4659_v32  ;;  %v4748_v43 = vmul.f32 %v4697_v0, %v9444_v55 }
 0x86b   :  { %v4749_v40 = vmul.f32 %v4698_v14, %v9458_v45 }
 0x86c   :  { %4806 = vrot.lane.b32.xlu2 %v4747_v36, %s7744_s26  ;;  %4808 = vrot.lane.b32.xlu0 %v4748_v43, %s7744_s26 }
 0x86d   :  { %4810 = vrot.lane.b32.xlu1 %v4749_v40, %s7744_s26 }
 0x870   :  { %v4661_v6 = vpop.permute.xlu1 %4660 }
 0x871   :  { %v4699_v44 = vsel %vm966_vm4, %v4659_v32, %v4661_v6  ;;  %v4665_v8 = vpop.permute.xlu0 %4664  ;;  %v4700_v49 = vsel %vm966_vm4, %v4661_v6, %v4663_v50  ;;  %v4681_v31 = vpop.permute.xlu2 %4680 }
 0x872   :  { %v4750_v13 = vmul.f32 %v4699_v44, %v9472_v34  ;;  %v4701_v33 = vsel %vm966_vm4, %v4663_v50, %v4665_v8  ;;  %v4751_v59 = vmul.f32 %v4700_v49, %v9468_v27 }
 0x873   :  { %v4752_v62 = vmul.f32 %v4701_v33, %v9475_v30 }
 0x874   :  { %4812 = vrot.lane.b32.xlu2 %v4750_v13, %s7744_s26  ;;  %4814 = vrot.lane.b32.xlu0 %v4751_v59, %s7744_s26  ;;  %v4945_v13 = vld [vmem:[#allocation4 + $0x258] sm:$0xff]  ;;  %v4946_v59 = vld [vmem:[#allocation4 + $0x260] sm:$0xff] }
 0x875   :  { %4816 = vrot.lane.b32.xlu1 %v4752_v62, %s7744_s26  ;;  %v4948_v62 = vld [vmem:[#allocation4 + $0x270] sm:$0xff] }
 0x878   :  { %v4667_v56 = vpop.permute.xlu1 %4666 }
 0x879   :  { %v4702_v46 = vsel %vm966_vm4, %v4665_v8, %v4667_v56  ;;  %v4671_v2 = vpop.permute.xlu0 %4670  ;;  %v4703_v22 = vsel %vm966_vm4, %v4667_v56, %v4669_v3  ;;  %v4687_v36 = vpop.permute.xlu2 %4686  ;;  %v4947_v56 = vld [vmem:[#allocation4 + $0x268] sm:$0xff] }
 0x87a   :  { %v4753_v20 = vmul.f32 %v4702_v46, %v9495_v24  ;;  %v4704_v28 = vsel %vm966_vm4, %v4669_v3, %v4671_v2  ;;  %v4754_v17 = vmul.f32 %v4703_v22, %v9484_v29  ;;  %v4949_v46 = vld [vmem:[#allocation4 + $0x278] sm:$0xff]  ;;  %v4950_v22 = vld [vmem:[#allocation4 + $0x280] sm:$0xff] }
 0x87b   :  { %v4755_v21 = vmul.f32 %v4704_v28, %v9501_v39  ;;  %v4954_v28 = vld [vmem:[#allocation4 + $0x2a0] sm:$0xff] }
 0x87c   :  { %4818 = vrot.lane.b32.xlu2 %v4753_v20, %s7744_s26  ;;  %4820 = vrot.lane.b32.xlu0 %v4754_v17, %s7744_s26  ;;  %v4952_v20 = vld [vmem:[#allocation4 + $0x290] sm:$0xff]  ;;  %v4953_v17 = vld [vmem:[#allocation4 + $0x298] sm:$0xff] }
 0x87d   :  { %4822 = vrot.lane.b32.xlu1 %v4755_v21, %s7744_s26 }
 0x880   :  { %v4673_v15 = vpop.permute.xlu1 %4672 }
 0x881   :  { %v4705_v16 = vsel %vm966_vm4, %v4671_v2, %v4673_v15  ;;  %v4677_v53 = vpop.permute.xlu0 %4676  ;;  %v4706_v4 = vsel %vm966_vm4, %v4673_v15, %v4675_v51  ;;  %v4951_v2 = vld [vmem:[#allocation4 + $0x288] sm:$0xff]  ;;  %v4957_v15 = vld [vmem:[#allocation4 + $0x2b8] sm:$0xff] }
 0x882   :  { %v4756_v61 = vmul.f32 %v4705_v16, %v9521_v58  ;;  %v4707_v60 = vsel %vm966_vm4, %v4675_v51, %v4677_v53  ;;  %v4757_v47 = vmul.f32 %v4706_v4, %v9508_v57  ;;  %v4955_v51 = vld [vmem:[#allocation4 + $0x2a8] sm:$0xff]  ;;  %v4956_v16 = vld [vmem:[#allocation4 + $0x2b0] sm:$0xff] }
 0x883   :  { %v4758_v7 = vmul.f32 %v4707_v60, %v9516_v35  ;;  %v4959_v60 = vld [vmem:[#allocation4 + $0x2c8] sm:$0xff] }
 0x884   :  { %4824 = vrot.lane.b32.xlu2 %v4756_v61, %s7744_s26  ;;  %4826 = vrot.lane.b32.xlu0 %v4757_v47, %s7744_s26  ;;  %v4960_v61 = vld [vmem:[#allocation4 + $0x2d0] sm:$0xff]  ;;  %v4961_v47 = vld [vmem:[#allocation4 + $0x2d8] sm:$0xff] }
 0x885   :  { %4828 = vrot.lane.b32.xlu1 %v4758_v7, %s7744_s26 }
 0x888   :  { %v4679_v23 = vpop.permute.xlu1 %4678 }
 0x889   :  { %v4708_v54 = vsel %vm966_vm4, %v4677_v53, %v4679_v23  ;;  %v4683_v9 = vpop.permute.xlu0 %4682  ;;  %v4709_v50 = vsel %vm966_vm4, %v4679_v23, %v4681_v31  ;;  %v4958_v53 = vld [vmem:[#allocation4 + $0x2c0] sm:$0xff] }
 0x88a   :  { %v4759_v11 = vmul.f32 %v4708_v54, %v9539_v52  ;;  %v4710_v25 = vsel %vm966_vm4, %v4681_v31, %v4683_v9  ;;  %v4760_v32 = vmul.f32 %v4709_v50, %v9531_v37  ;;  %v4963_v54 = vld [vmem:[#allocation4 + $0x2e8] sm:$0xff]  ;;  %v4964_v50 = vld [vmem:[#allocation4 + $0x2f0] sm:$0xff] }
 0x88b   :  { %v4761_v0 = vmul.f32 %v4710_v25, %v9544_v26 }
 0x88c   :  { %4830 = vrot.lane.b32.xlu2 %v4759_v11, %s7744_s26  ;;  %4832 = vrot.lane.b32.xlu0 %v4760_v32, %s7744_s26 }
 0x88d   :  { %4834 = vrot.lane.b32.xlu1 %v4761_v0, %s7744_s26 }
 0x890   :  { %v4685_v14 = vpop.permute.xlu1 %4684 }
 0x891   :  { %v4711_v43 = vsel %vm966_vm4, %v4683_v9, %v4685_v14  ;;  %v4689_v40 = vpop.permute.xlu0 %4688  ;;  %v4712_v6 = vsel %vm966_vm4, %v4685_v14, %v4687_v36  ;;  %v4962_v9 = vld [vmem:[#allocation4 + $0x2e0] sm:$0xff] }
 0x892   :  { %v4762_v3 = vmul.f32 %v4711_v43, %v9552_v42  ;;  %v4713_v44 = vsel %vm966_vm4, %v4687_v36, %v4689_v40  ;;  %v4763_v8 = vmul.f32 %v4712_v6, %v9562_v10  ;;  %v4765_v33 = vmul.f32 %v4689_v40, %v9576_v5  ;;  %v4966_v43 = vld [vmem:[#allocation4 + $0x300] sm:$0xff]  ;;  %v4965_v40 = vld [vmem:[#allocation4 + $0x2f8] sm:$0xff]  ;;  %v4967_v6 = vld [vmem:[#allocation4 + $0x308] sm:$0xff] }
 0x893   :  { %v4764_v49 = vmul.f32 %v4713_v44, %v9566_v19 }
 0x894   :  { %4836 = vrot.lane.b32.xlu2 %v4762_v3, %s7744_s26  ;;  %4838 = vrot.lane.b32.xlu0 %v4763_v8, %s7744_s26 }
 0x895   :  { %4840 = vrot.lane.b32.xlu1 %v4764_v49, %s7744_s26 }
 0x89c   :  { %4842 = vrot.lane.b32.xlu2 %v4765_v33, %s7744_s26  ;;  %4995 = vrot.lane.b32.xlu0 %v4945_v13, %s7745_s27 }
 0x89d   :  { %4997 = vrot.lane.b32.xlu1 %v4946_v59, %s7745_s27  ;;  %v4969_v59 = vld [vmem:[#allocation4 + $0x318] sm:$0xff] }
 0x8a4   :  { %5001 = vrot.lane.b32.xlu0 %v4948_v62, %s7745_s27  ;;  %4999 = vrot.lane.b32.xlu2 %v4947_v56, %s7745_s27  ;;  %v4968_v62 = vld [vmem:[#allocation4 + $0x310] sm:$0xff] }
 0x8a5   :  { %5003 = vrot.lane.b32.xlu1 %v4949_v46, %s7745_s27 }
 0x8ac   :  { %5007 = vrot.lane.b32.xlu0 %v4951_v2, %s7745_s27  ;;  %5005 = vrot.lane.b32.xlu2 %v4950_v22, %s7745_s27 }
 0x8ad   :  { %5009 = vrot.lane.b32.xlu1 %v4952_v20, %s7745_s27 }
 0x8b4   :  { %5013 = vrot.lane.b32.xlu0 %v4954_v28, %s7745_s27  ;;  %5011 = vrot.lane.b32.xlu2 %v4953_v17, %s7745_s27 }
 0x8b5   :  { %5015 = vrot.lane.b32.xlu1 %v4955_v51, %s7745_s27 }
 0x8b6   :  { %v4795_v21 = vpop.permute.xlu2 %4794 }
 0x8bc   :  { %5019 = vrot.lane.b32.xlu0 %v4957_v15, %s7745_s27  ;;  %5017 = vrot.lane.b32.xlu2 %v4956_v16, %s7745_s27 }
 0x8bd   :  { %5021 = vrot.lane.b32.xlu1 %v4958_v53, %s7745_s27 }
 0x8be   :  { %v4801_v4 = vpop.permute.xlu2 %4800 }
 0x8c4   :  { %5025 = vrot.lane.b32.xlu0 %v4960_v61, %s7745_s27  ;;  %5023 = vrot.lane.b32.xlu2 %v4959_v60, %s7745_s27 }
 0x8c5   :  { %5027 = vrot.lane.b32.xlu1 %v4961_v47, %s7745_s27 }
 0x8c6   :  { %v4793_v7 = vpop.permute.xlu1 %4792  ;;  %v4807_v31 = vpop.permute.xlu2 %4806 }
 0x8c7   :  { %v4844_v23 = vsel %vm1121_vm5, %v4793_v7, %v4795_v21 }
 0x8c8   :  { %4894 = vst [vmem:[#allocation3 + $0x190] sm:$0xff] %v4844_v23 }
 0x8cc   :  { %5031 = vrot.lane.b32.xlu0 %v4963_v54, %s7745_s27  ;;  %5029 = vrot.lane.b32.xlu2 %v4962_v9, %s7745_s27 }
 0x8cd   :  { %5033 = vrot.lane.b32.xlu1 %v4964_v50, %s7745_s27 }
 0x8ce   :  { %v4797_v11 = vpop.permute.xlu0 %4796  ;;  %v4813_v25 = vpop.permute.xlu2 %4812 }
 0x8cf   :  { %v4799_v32 = vpop.permute.xlu1 %4798  ;;  %v4845_v0 = vsel %vm1121_vm5, %v4795_v21, %v4797_v11 }
 0x8d0   :  { %v4847_v36 = vsel %vm1121_vm5, %v4799_v32, %v4801_v4  ;;  %v4846_v14 = vsel %vm1121_vm5, %v4797_v11, %v4799_v32  ;;  %4895 = vst [vmem:[#allocation3 + $0x198] sm:$0xff] %v4845_v0 }
 0x8d1   :  { %4897 = vst [vmem:[#allocation3 + $0x1a8] sm:$0xff] %v4847_v36 }
 0x8d2   :  { %4896 = vst [vmem:[#allocation3 + $0x1a0] sm:$0xff] %v4846_v14 }
 0x8d4   :  { %5037 = vrot.lane.b32.xlu0 %v4966_v43, %s7745_s27  ;;  %5035 = vrot.lane.b32.xlu2 %v4965_v40, %s7745_s27 }
 0x8d5   :  { %5039 = vrot.lane.b32.xlu1 %v4967_v6, %s7745_s27 }
 0x8d6   :  { %v4803_v3 = vpop.permute.xlu0 %4802  ;;  %v4819_v44 = vpop.permute.xlu2 %4818 }
 0x8d7   :  { %v4805_v8 = vpop.permute.xlu1 %4804  ;;  %v4848_v49 = vsel %vm1121_vm5, %v4801_v4, %v4803_v3 }
 0x8d8   :  { %v4850_v13 = vsel %vm1121_vm5, %v4805_v8, %v4807_v31  ;;  %v4849_v33 = vsel %vm1121_vm5, %v4803_v3, %v4805_v8  ;;  %4898 = vst [vmem:[#allocation3 + $0x1b0] sm:$0xff] %v4848_v49 }
 0x8d9   :  { %4900 = vst [vmem:[#allocation3 + $0x1c0] sm:$0xff] %v4850_v13 }
 0x8da   :  { %4899 = vst [vmem:[#allocation3 + $0x1b8] sm:$0xff] %v4849_v33 }
 0x8dc   :  { %5043 = vrot.lane.b32.xlu0 %v4969_v59, %s7745_s27  ;;  %5041 = vrot.lane.b32.xlu2 %v4968_v62, %s7745_s27 }
 0x8de   :  { %v4809_v56 = vpop.permute.xlu0 %4808  ;;  %v4825_v46 = vpop.permute.xlu2 %4824 }
 0x8df   :  { %v4811_v2 = vpop.permute.xlu1 %4810  ;;  %v4851_v22 = vsel %vm1121_vm5, %v4807_v31, %v4809_v56 }
 0x8e0   :  { %v4853_v20 = vsel %vm1121_vm5, %v4811_v2, %v4813_v25  ;;  %v4852_v28 = vsel %vm1121_vm5, %v4809_v56, %v4811_v2  ;;  %4901 = vst [vmem:[#allocation3 + $0x1c8] sm:$0xff] %v4851_v22 }
 0x8e1   :  { %4903 = vst [vmem:[#allocation3 + $0x1d8] sm:$0xff] %v4853_v20 }
 0x8e2   :  { %4902 = vst [vmem:[#allocation3 + $0x1d0] sm:$0xff] %v4852_v28 }
 0x8e6   :  { %v4815_v17 = vpop.permute.xlu0 %4814  ;;  %v4831_v51 = vpop.permute.xlu2 %4830 }
 0x8e7   :  { %v4817_v21 = vpop.permute.xlu1 %4816  ;;  %v4854_v15 = vsel %vm1121_vm5, %v4813_v25, %v4815_v17 }
 0x8e8   :  { %v4856_v16 = vsel %vm1121_vm5, %v4817_v21, %v4819_v44  ;;  %v4855_v53 = vsel %vm1121_vm5, %v4815_v17, %v4817_v21  ;;  %4904 = vst [vmem:[#allocation3 + $0x1e0] sm:$0xff] %v4854_v15 }
 0x8e9   :  { %4906 = vst [vmem:[#allocation3 + $0x1f0] sm:$0xff] %v4856_v16 }
 0x8ea   :  { %4905 = vst [vmem:[#allocation3 + $0x1e8] sm:$0xff] %v4855_v53 }
 0x8ee   :  { %v4821_v4 = vpop.permute.xlu0 %4820  ;;  %v4837_v61 = vpop.permute.xlu2 %4836 }
 0x8ef   :  { %v4823_v60 = vpop.permute.xlu1 %4822  ;;  %v4857_v47 = vsel %vm1121_vm5, %v4819_v44, %v4821_v4 }
 0x8f0   :  { %v4859_v7 = vsel %vm1121_vm5, %v4823_v60, %v4825_v46  ;;  %v4858_v31 = vsel %vm1121_vm5, %v4821_v4, %v4823_v60  ;;  %4907 = vst [vmem:[#allocation3 + $0x1f8] sm:$0xff] %v4857_v47 }
 0x8f1   :  { %4909 = vst [vmem:[#allocation3 + $0x208] sm:$0xff] %v4859_v7 }
 0x8f2   :  { %4908 = vst [vmem:[#allocation3 + $0x200] sm:$0xff] %v4858_v31 }
 0x8f6   :  { %v4827_v23 = vpop.permute.xlu0 %4826  ;;  %v4843_v50 = vpop.permute.xlu2 %4842 }
 0x8f7   :  { %v4829_v54 = vpop.permute.xlu1 %4828  ;;  %v4860_v9 = vsel %vm1121_vm5, %v4825_v46, %v4827_v23 }
 0x8f8   :  { %v4862_v11 = vsel %vm1121_vm5, %v4829_v54, %v4831_v51  ;;  %v4861_v25 = vsel %vm1121_vm5, %v4827_v23, %v4829_v54  ;;  %4910 = vst [vmem:[#allocation3 + $0x210] sm:$0xff] %v4860_v9 }
 0x8f9   :  { %4912 = vst [vmem:[#allocation3 + $0x220] sm:$0xff] %v4862_v11 }
 0x8fa   :  { %4911 = vst [vmem:[#allocation3 + $0x218] sm:$0xff] %v4861_v25 }
 0x8fe   :  { %v4833_v32 = vpop.permute.xlu0 %4832  ;;  %v5000_v14 = vpop.permute.xlu2 %4999 }
 0x8ff   :  { %v4835_v0 = vpop.permute.xlu1 %4834  ;;  %v4863_v36 = vsel %vm1121_vm5, %v4831_v51, %v4833_v32 }
 0x900   :  { %v4865_v43 = vsel %vm1121_vm5, %v4835_v0, %v4837_v61  ;;  %v4864_v40 = vsel %vm1121_vm5, %v4833_v32, %v4835_v0  ;;  %4913 = vst [vmem:[#allocation3 + $0x228] sm:$0xff] %v4863_v36 }
 0x901   :  { %4915 = vst [vmem:[#allocation3 + $0x238] sm:$0xff] %v4865_v43 }
 0x902   :  { %4914 = vst [vmem:[#allocation3 + $0x230] sm:$0xff] %v4864_v40 }
 0x906   :  { %v4839_v6 = vpop.permute.xlu0 %4838  ;;  %v5006_v13 = vpop.permute.xlu2 %5005 }
 0x907   :  { %v4841_v3 = vpop.permute.xlu1 %4840  ;;  %v4866_v44 = vsel %vm1121_vm5, %v4837_v61, %v4839_v6 }
 0x908   :  { %v4868_v8 = vsel %vm1121_vm5, %v4841_v3, %v4843_v50  ;;  %v4867_v49 = vsel %vm1121_vm5, %v4839_v6, %v4841_v3  ;;  %4916 = vst [vmem:[#allocation3 + $0x240] sm:$0xff] %v4866_v44 }
 0x909   :  { %4918 = vst [vmem:[#allocation3 + $0x250] sm:$0xff] %v4868_v8 }
 0x90a   :  { %4917 = vst [vmem:[#allocation3 + $0x248] sm:$0xff] %v4867_v49 }
 0x90e   :  { %v4996_v33 = vpop.permute.xlu0 %4995  ;;  %v5012_v20 = vpop.permute.xlu2 %5011 }
 0x90f   :  { %v4998_v59 = vpop.permute.xlu1 %4997  ;;  %v5095_v62 = vmul.f32 0.0, %v4996_v33 }
 0x910   :  { %v5045_v56 = vsel %vm1323_vm6, %v4996_v33, %v4998_v59  ;;  %v5046_v46 = vsel %vm1323_vm6, %v4998_v59, %v5000_v14 }
 0x911   :  { %v5096_v2 = vmul.f32 %v5045_v56, %v9417_v38  ;;  %v5097_v22 = vmul.f32 %v5046_v46, %v9407_v1  ;;  %5147 = vrot.lane.b32.xlu1 %v5095_v62, %s7746_s6 }
 0x913   :  { %5149 = vrot.lane.b32.xlu2 %v5096_v2, %s7746_s6  ;;  %5151 = vrot.lane.b32.xlu0 %v5097_v22, %s7746_s6 }
 0x916   :  { %v5002_v28 = vpop.permute.xlu0 %5001  ;;  %v5018_v61 = vpop.permute.xlu2 %5017 }
 0x917   :  { %v5004_v17 = vpop.permute.xlu1 %5003  ;;  %v5047_v51 = vsel %vm1323_vm6, %v5000_v14, %v5002_v28 }
 0x918   :  { %v5048_v21 = vsel %vm1323_vm6, %v5002_v28, %v5004_v17  ;;  %v5098_v15 = vmul.f32 %v5047_v51, %v9422_v12  ;;  %v5049_v16 = vsel %vm1323_vm6, %v5004_v17, %v5006_v13 }
 0x919   :  { %v5099_v53 = vmul.f32 %v5048_v21, %v9439_v18  ;;  %v5100_v4 = vmul.f32 %v5049_v16, %v9431_v48 }
 0x91a   :  { %5153 = vrot.lane.b32.xlu1 %v5098_v15, %s7746_s6 }
 0x91b   :  { %5155 = vrot.lane.b32.xlu2 %v5099_v53, %s7746_s6  ;;  %5157 = vrot.lane.b32.xlu0 %v5100_v4, %s7746_s6 }
 0x91e   :  { %v5008_v60 = vpop.permute.xlu0 %5007  ;;  %v5024_v0 = vpop.permute.xlu2 %5023 }
 0x91f   :  { %v5010_v47 = vpop.permute.xlu1 %5009  ;;  %v5050_v7 = vsel %vm1323_vm6, %v5006_v13, %v5008_v60 }
 0x920   :  { %v5051_v31 = vsel %vm1323_vm6, %v5008_v60, %v5010_v47  ;;  %v5101_v23 = vmul.f32 %v5050_v7, %v9446_v41  ;;  %v5052_v54 = vsel %vm1323_vm6, %v5010_v47, %v5012_v20 }
 0x921   :  { %v5102_v9 = vmul.f32 %v5051_v31, %v9454_v63  ;;  %v5103_v50 = vmul.f32 %v5052_v54, %v9444_v55 }
 0x922   :  { %5159 = vrot.lane.b32.xlu1 %v5101_v23, %s7746_s6 }
 0x923   :  { %5161 = vrot.lane.b32.xlu2 %v5102_v9, %s7746_s6  ;;  %5163 = vrot.lane.b32.xlu0 %v5103_v50, %s7746_s6 }
 0x926   :  { %v5014_v11 = vpop.permute.xlu0 %5013  ;;  %v5030_v56 = vpop.permute.xlu2 %5029 }
 0x927   :  { %v5016_v25 = vpop.permute.xlu1 %5015  ;;  %v5053_v32 = vsel %vm1323_vm6, %v5012_v20, %v5014_v11 }
 0x928   :  { %v5054_v36 = vsel %vm1323_vm6, %v5014_v11, %v5016_v25  ;;  %v5104_v14 = vmul.f32 %v5053_v32, %v9458_v45  ;;  %v5055_v43 = vsel %vm1323_vm6, %v5016_v25, %v5018_v61 }
 0x929   :  { %v5105_v40 = vmul.f32 %v5054_v36, %v9472_v34  ;;  %v5106_v6 = vmul.f32 %v5055_v43, %v9468_v27 }
 0x92a   :  { %5165 = vrot.lane.b32.xlu1 %v5104_v14, %s7746_s6 }
 0x92b   :  { %5167 = vrot.lane.b32.xlu2 %v5105_v40, %s7746_s6  ;;  %5169 = vrot.lane.b32.xlu0 %v5106_v6, %s7746_s6 }
 0x92e   :  { %v5020_v3 = vpop.permute.xlu0 %5019  ;;  %v5036_v15 = vpop.permute.xlu2 %5035 }
 0x92f   :  { %v5022_v44 = vpop.permute.xlu1 %5021  ;;  %v5056_v8 = vsel %vm1323_vm6, %v5018_v61, %v5020_v3 }
 0x930   :  { %v5057_v49 = vsel %vm1323_vm6, %v5020_v3, %v5022_v44  ;;  %v5107_v13 = vmul.f32 %v5056_v8, %v9475_v30  ;;  %v5058_v33 = vsel %vm1323_vm6, %v5022_v44, %v5024_v0  ;;  %v5400_v3 = vld [vmem:[#allocation4 + $0x3e8] sm:$0xff]  ;;  %v5401_v44 = vld [vmem:[#allocation4 + $0x3f0] sm:$0xff]  ;;  %v5403_v8 = vld [vmem:[#allocation4 + $0x400] sm:$0xff] }
 0x931   :  { %v5108_v59 = vmul.f32 %v5057_v49, %v9495_v24  ;;  %v5109_v62 = vmul.f32 %v5058_v33, %v9484_v29  ;;  %v5402_v49 = vld [vmem:[#allocation4 + $0x3f8] sm:$0xff] }
 0x932   :  { %5171 = vrot.lane.b32.xlu1 %v5107_v13, %s7746_s6  ;;  %v5404_v13 = vld [vmem:[#allocation4 + $0x408] sm:$0xff]  ;;  %v5406_v33 = vld [vmem:[#allocation4 + $0x418] sm:$0xff] }
 0x933   :  { %5173 = vrot.lane.b32.xlu2 %v5108_v59, %s7746_s6  ;;  %5175 = vrot.lane.b32.xlu0 %v5109_v62, %s7746_s6  ;;  %v5405_v59 = vld [vmem:[#allocation4 + $0x410] sm:$0xff]  ;;  %v5407_v62 = vld [vmem:[#allocation4 + $0x420] sm:$0xff] }
 0x936   :  { %v5026_v46 = vpop.permute.xlu0 %5025  ;;  %v5042_v23 = vpop.permute.xlu2 %5041 }
 0x937   :  { %v5028_v2 = vpop.permute.xlu1 %5027  ;;  %v5059_v22 = vsel %vm1323_vm6, %v5024_v0, %v5026_v46 }
 0x938   :  { %v5060_v20 = vsel %vm1323_vm6, %v5026_v46, %v5028_v2  ;;  %v5110_v28 = vmul.f32 %v5059_v22, %v9501_v39  ;;  %v5061_v17 = vsel %vm1323_vm6, %v5028_v2, %v5030_v56  ;;  %v5408_v46 = vld [vmem:[#allocation4 + $0x428] sm:$0xff]  ;;  %v5410_v22 = vld [vmem:[#allocation4 + $0x438] sm:$0xff] }
 0x939   :  { %v5111_v51 = vmul.f32 %v5060_v20, %v9521_v58  ;;  %v5112_v21 = vmul.f32 %v5061_v17, %v9508_v57  ;;  %v5412_v20 = vld [vmem:[#allocation4 + $0x448] sm:$0xff] }
 0x93a   :  { %5177 = vrot.lane.b32.xlu1 %v5110_v28, %s7746_s6  ;;  %v5411_v28 = vld [vmem:[#allocation4 + $0x440] sm:$0xff] }
 0x93b   :  { %5179 = vrot.lane.b32.xlu2 %v5111_v51, %s7746_s6  ;;  %5181 = vrot.lane.b32.xlu0 %v5112_v21, %s7746_s6  ;;  %v5413_v51 = vld [vmem:[#allocation4 + $0x450] sm:$0xff]  ;;  %v5415_v21 = vld [vmem:[#allocation4 + $0x460] sm:$0xff] }
 0x93e   :  { %v5032_v16 = vpop.permute.xlu0 %5031 }
 0x93f   :  { %v5034_v53 = vpop.permute.xlu1 %5033  ;;  %v5062_v4 = vsel %vm1323_vm6, %v5030_v56, %v5032_v16  ;;  %v5409_v56 = vld [vmem:[#allocation4 + $0x430] sm:$0xff] }
 0x940   :  { %v5063_v61 = vsel %vm1323_vm6, %v5032_v16, %v5034_v53  ;;  %v5113_v60 = vmul.f32 %v5062_v4, %v9516_v35  ;;  %v5064_v47 = vsel %vm1323_vm6, %v5034_v53, %v5036_v15  ;;  %v5416_v53 = vld [vmem:[#allocation4 + $0x468] sm:$0xff]  ;;  %v5418_v4 = vld [vmem:[#allocation4 + $0x478] sm:$0xff] }
 0x941   :  { %v5114_v7 = vmul.f32 %v5063_v61, %v9539_v52  ;;  %v5115_v31 = vmul.f32 %v5064_v47, %v9531_v37  ;;  %v5417_v61 = vld [vmem:[#allocation4 + $0x470] sm:$0xff] }
 0x942   :  { %5183 = vrot.lane.b32.xlu1 %v5113_v60, %s7746_s6 }
 0x943   :  { %5185 = vrot.lane.b32.xlu2 %v5114_v7, %s7746_s6  ;;  %5187 = vrot.lane.b32.xlu0 %v5115_v31, %s7746_s6 }
 0x946   :  { %v5038_v54 = vpop.permute.xlu0 %5037 }
 0x947   :  { %v5040_v9 = vpop.permute.xlu1 %5039  ;;  %v5065_v50 = vsel %vm1323_vm6, %v5036_v15, %v5038_v54  ;;  %v5414_v15 = vld [vmem:[#allocation4 + $0x458] sm:$0xff] }
 0x948   :  { %v5066_v11 = vsel %vm1323_vm6, %v5038_v54, %v5040_v9  ;;  %v5116_v25 = vmul.f32 %v5065_v50, %v9544_v26  ;;  %v5067_v32 = vsel %vm1323_vm6, %v5040_v9, %v5042_v23  ;;  %v5419_v54 = vld [vmem:[#allocation4 + $0x480] sm:$0xff]  ;;  %v5421_v9 = vld [vmem:[#allocation4 + $0x490] sm:$0xff]  ;;  %v5420_v50 = vld [vmem:[#allocation4 + $0x488] sm:$0xff] }
 0x949   :  { %v5117_v0 = vmul.f32 %v5066_v11, %v9552_v42  ;;  %v5118_v36 = vmul.f32 %v5067_v32, %v9562_v10 }
 0x94a   :  { %5189 = vrot.lane.b32.xlu1 %v5116_v25, %s7746_s6 }
 0x94b   :  { %5191 = vrot.lane.b32.xlu2 %v5117_v0, %s7746_s6  ;;  %5193 = vrot.lane.b32.xlu0 %v5118_v36, %s7746_s6 }
 0x94e   :  { %v5044_v14 = vpop.permute.xlu0 %5043 }
 0x94f   :  { %v5068_v43 = vsel %vm1323_vm6, %v5042_v23, %v5044_v14  ;;  %v5120_v40 = vmul.f32 %v5044_v14, %v9576_v5 }
 0x950   :  { %v5119_v6 = vmul.f32 %v5068_v43, %v9566_v19  ;;  %v5422_v43 = vld [vmem:[#allocation4 + $0x498] sm:$0xff] }
 0x952   :  { %5195 = vrot.lane.b32.xlu1 %v5119_v6, %s7746_s6  ;;  %v5423_v6 = vld [vmem:[#allocation4 + $0x4a0] sm:$0xff] }
 0x953   :  { %5197 = vrot.lane.b32.xlu2 %v5120_v40, %s7746_s6  ;;  %5450 = vrot.lane.b32.xlu0 %v5400_v3, %s7746_s6  ;;  %v5424_v40 = vld [vmem:[#allocation4 + $0x4a8] sm:$0xff] }
 0x95a   :  { %5452 = vrot.lane.b32.xlu1 %v5401_v44, %s7746_s6 }
 0x95b   :  { %5456 = vrot.lane.b32.xlu0 %v5403_v8, %s7746_s6  ;;  %5454 = vrot.lane.b32.xlu2 %v5402_v49, %s7746_s6 }
 0x962   :  { %5458 = vrot.lane.b32.xlu1 %v5404_v13, %s7746_s6 }
 0x963   :  { %5462 = vrot.lane.b32.xlu0 %v5406_v33, %s7746_s6  ;;  %5460 = vrot.lane.b32.xlu2 %v5405_v59, %s7746_s6 }
 0x96a   :  { %5464 = vrot.lane.b32.xlu1 %v5407_v62, %s7746_s6 }
 0x96b   :  { %5468 = vrot.lane.b32.xlu0 %v5409_v56, %s7746_s6  ;;  %5466 = vrot.lane.b32.xlu2 %v5408_v46, %s7746_s6 }
 0x96d   :  { %v5150_v2 = vpop.permute.xlu2 %5149 }
 0x972   :  { %5470 = vrot.lane.b32.xlu1 %v5410_v22, %s7746_s6 }
 0x973   :  { %5474 = vrot.lane.b32.xlu0 %v5412_v20, %s7746_s6  ;;  %5472 = vrot.lane.b32.xlu2 %v5411_v28, %s7746_s6 }
 0x975   :  { %v5156_v17 = vpop.permute.xlu2 %5155 }
 0x97a   :  { %5476 = vrot.lane.b32.xlu1 %v5413_v51, %s7746_s6 }
 0x97b   :  { %5480 = vrot.lane.b32.xlu0 %v5415_v21, %s7746_s6  ;;  %5478 = vrot.lane.b32.xlu2 %v5414_v15, %s7746_s6 }
 0x97d   :  { %v5162_v16 = vpop.permute.xlu2 %5161 }
 0x982   :  { %5482 = vrot.lane.b32.xlu1 %v5416_v53, %s7746_s6 }
 0x983   :  { %5486 = vrot.lane.b32.xlu0 %v5418_v4, %s7746_s6  ;;  %v5148_v60 = vpop.permute.xlu1 %5147  ;;  %5484 = vrot.lane.b32.xlu2 %v5417_v61, %s7746_s6 }
 0x984   :  { %v5199_v47 = vsel %vm1478_vm7, %v5148_v60, %v5150_v2 }
 0x985   :  { %5249 = vst [vmem:[#allocation3 + $0x258] sm:$0xff] %v5199_v47  ;;  %v5152_v7 = vpop.permute.xlu0 %5151  ;;  %v5168_v31 = vpop.permute.xlu2 %5167 }
 0x986   :  { %v5200_v23 = vsel %vm1478_vm7, %v5150_v2, %v5152_v7 }
 0x987   :  { %5250 = vst [vmem:[#allocation3 + $0x260] sm:$0xff] %v5200_v23 }
 0x98a   :  { %5488 = vrot.lane.b32.xlu1 %v5419_v54, %s7746_s6 }
 0x98b   :  { %5492 = vrot.lane.b32.xlu0 %v5421_v9, %s7746_s6  ;;  %5490 = vrot.lane.b32.xlu2 %v5420_v50, %s7746_s6 }
 0x98c   :  { %v5154_v11 = vpop.permute.xlu1 %5153 }
 0x98d   :  { %v5201_v25 = vsel %vm1478_vm7, %v5152_v7, %v5154_v11  ;;  %v5202_v32 = vsel %vm1478_vm7, %v5154_v11, %v5156_v17  ;;  %v5158_v0 = vpop.permute.xlu0 %5157  ;;  %v5174_v36 = vpop.permute.xlu2 %5173 }
 0x98e   :  { %5251 = vst [vmem:[#allocation3 + $0x268] sm:$0xff] %v5201_v25  ;;  %v5203_v14 = vsel %vm1478_vm7, %v5156_v17, %v5158_v0 }
 0x98f   :  { %5252 = vst [vmem:[#allocation3 + $0x270] sm:$0xff] %v5202_v32 }
 0x990   :  { %5253 = vst [vmem:[#allocation3 + $0x278] sm:$0xff] %v5203_v14 }
 0x992   :  { %5494 = vrot.lane.b32.xlu1 %v5422_v43, %s7746_s6 }
 0x993   :  { %5498 = vrot.lane.b32.xlu0 %v5424_v40, %s7746_s6  ;;  %5496 = vrot.lane.b32.xlu2 %v5423_v6, %s7746_s6 }
 0x994   :  { %v5160_v3 = vpop.permute.xlu1 %5159 }
 0x995   :  { %v5204_v44 = vsel %vm1478_vm7, %v5158_v0, %v5160_v3  ;;  %v5205_v8 = vsel %vm1478_vm7, %v5160_v3, %v5162_v16  ;;  %v5164_v49 = vpop.permute.xlu0 %5163  ;;  %v5180_v33 = vpop.permute.xlu2 %5179 }
 0x996   :  { %5254 = vst [vmem:[#allocation3 + $0x280] sm:$0xff] %v5204_v44  ;;  %v5206_v13 = vsel %vm1478_vm7, %v5162_v16, %v5164_v49 }
 0x997   :  { %5255 = vst [vmem:[#allocation3 + $0x288] sm:$0xff] %v5205_v8 }
 0x998   :  { %5256 = vst [vmem:[#allocation3 + $0x290] sm:$0xff] %v5206_v13 }
 0x99c   :  { %v5166_v59 = vpop.permute.xlu1 %5165 }
 0x99d   :  { %v5207_v62 = vsel %vm1478_vm7, %v5164_v49, %v5166_v59  ;;  %v5208_v56 = vsel %vm1478_vm7, %v5166_v59, %v5168_v31  ;;  %v5170_v46 = vpop.permute.xlu0 %5169  ;;  %v5186_v22 = vpop.permute.xlu2 %5185 }
 0x99e   :  { %5257 = vst [vmem:[#allocation3 + $0x298] sm:$0xff] %v5207_v62  ;;  %v5209_v2 = vsel %vm1478_vm7, %v5168_v31, %v5170_v46 }
 0x99f   :  { %5258 = vst [vmem:[#allocation3 + $0x2a0] sm:$0xff] %v5208_v56 }
 0x9a0   :  { %5259 = vst [vmem:[#allocation3 + $0x2a8] sm:$0xff] %v5209_v2 }
 0x9a4   :  { %v5172_v20 = vpop.permute.xlu1 %5171 }
 0x9a5   :  { %v5210_v28 = vsel %vm1478_vm7, %v5170_v46, %v5172_v20  ;;  %v5211_v17 = vsel %vm1478_vm7, %v5172_v20, %v5174_v36  ;;  %v5176_v51 = vpop.permute.xlu0 %5175  ;;  %v5192_v15 = vpop.permute.xlu2 %5191 }
 0x9a6   :  { %5260 = vst [vmem:[#allocation3 + $0x2b0] sm:$0xff] %v5210_v28  ;;  %v5212_v21 = vsel %vm1478_vm7, %v5174_v36, %v5176_v51 }
 0x9a7   :  { %5261 = vst [vmem:[#allocation3 + $0x2b8] sm:$0xff] %v5211_v17 }
 0x9a8   :  { %5262 = vst [vmem:[#allocation3 + $0x2c0] sm:$0xff] %v5212_v21 }
 0x9ac   :  { %v5178_v16 = vpop.permute.xlu1 %5177 }
 0x9ad   :  { %v5213_v53 = vsel %vm1478_vm7, %v5176_v51, %v5178_v16  ;;  %v5214_v4 = vsel %vm1478_vm7, %v5178_v16, %v5180_v33  ;;  %v5182_v61 = vpop.permute.xlu0 %5181  ;;  %v5198_v47 = vpop.permute.xlu2 %5197 }
 0x9ae   :  { %5263 = vst [vmem:[#allocation3 + $0x2c8] sm:$0xff] %v5213_v53  ;;  %v5215_v60 = vsel %vm1478_vm7, %v5180_v33, %v5182_v61 }
 0x9af   :  { %5264 = vst [vmem:[#allocation3 + $0x2d0] sm:$0xff] %v5214_v4 }
 0x9b0   :  { %5265 = vst [vmem:[#allocation3 + $0x2d8] sm:$0xff] %v5215_v60 }
 0x9b4   :  { %v5184_v7 = vpop.permute.xlu1 %5183 }
 0x9b5   :  { %v5216_v31 = vsel %vm1478_vm7, %v5182_v61, %v5184_v7  ;;  %v5217_v23 = vsel %vm1478_vm7, %v5184_v7, %v5186_v22  ;;  %v5188_v54 = vpop.permute.xlu0 %5187  ;;  %v5455_v11 = vpop.permute.xlu2 %5454 }
 0x9b6   :  { %5266 = vst [vmem:[#allocation3 + $0x2e0] sm:$0xff] %v5216_v31  ;;  %v5218_v9 = vsel %vm1478_vm7, %v5186_v22, %v5188_v54 }
 0x9b7   :  { %5267 = vst [vmem:[#allocation3 + $0x2e8] sm:$0xff] %v5217_v23 }
 0x9b8   :  { %5268 = vst [vmem:[#allocation3 + $0x2f0] sm:$0xff] %v5218_v9 }
 0x9bc   :  { %v5190_v50 = vpop.permute.xlu1 %5189 }
 0x9bd   :  { %v5219_v25 = vsel %vm1478_vm7, %v5188_v54, %v5190_v50  ;;  %v5220_v32 = vsel %vm1478_vm7, %v5190_v50, %v5192_v15  ;;  %v5194_v0 = vpop.permute.xlu0 %5193  ;;  %v5461_v44 = vpop.permute.xlu2 %5460 }
 0x9be   :  { %5269 = vst [vmem:[#allocation3 + $0x2f8] sm:$0xff] %v5219_v25  ;;  %v5221_v36 = vsel %vm1478_vm7, %v5192_v15, %v5194_v0 }
 0x9bf   :  { %5270 = vst [vmem:[#allocation3 + $0x300] sm:$0xff] %v5220_v32 }
 0x9c0   :  { %5271 = vst [vmem:[#allocation3 + $0x308] sm:$0xff] %v5221_v36 }
 0x9c4   :  { %v5196_v14 = vpop.permute.xlu1 %5195 }
 0x9c5   :  { %v5222_v43 = vsel %vm1478_vm7, %v5194_v0, %v5196_v14  ;;  %v5223_v40 = vsel %vm1478_vm7, %v5196_v14, %v5198_v47  ;;  %v5451_v6 = vpop.permute.xlu0 %5450  ;;  %v5467_v2 = vpop.permute.xlu2 %5466 }
 0x9c6   :  { %5272 = vst [vmem:[#allocation3 + $0x310] sm:$0xff] %v5222_v43  ;;  %v5550_v3 = vmul.f32 %v5451_v6, %v9417_v38 }
 0x9c7   :  { %5273 = vst [vmem:[#allocation3 + $0x318] sm:$0xff] %v5223_v40 }
 0x9c8   :  { %5602 = vrot.lane.b32.xlu1 %v5550_v3, %s7745_s27 }
 0x9cc   :  { %v5453_v8 = vpop.permute.xlu1 %5452 }
 0x9cd   :  { %v5500_v49 = vsel %vm1478_vm7, %v5451_v6, %v5453_v8  ;;  %v5457_v13 = vpop.permute.xlu0 %5456  ;;  %v5501_v33 = vsel %vm1478_vm7, %v5453_v8, %v5455_v11  ;;  %v5473_v53 = vpop.permute.xlu2 %5472 }
 0x9ce   :  { %v5551_v59 = vmul.f32 %v5500_v49, %v9407_v1  ;;  %v5502_v62 = vsel %vm1478_vm7, %v5455_v11, %v5457_v13  ;;  %v5552_v56 = vmul.f32 %v5501_v33, %v9422_v12 }
 0x9cf   :  { %v5553_v46 = vmul.f32 %v5502_v62, %v9439_v18 }
 0x9d0   :  { %5604 = vrot.lane.b32.xlu2 %v5551_v59, %s7745_s27  ;;  %5606 = vrot.lane.b32.xlu0 %v5552_v56, %s7745_s27 }
 0x9d1   :  { %5608 = vrot.lane.b32.xlu1 %v5553_v46, %s7745_s27 }
 0x9d4   :  { %v5459_v22 = vpop.permute.xlu1 %5458 }
 0x9d5   :  { %v5503_v20 = vsel %vm1478_vm7, %v5457_v13, %v5459_v22  ;;  %v5463_v28 = vpop.permute.xlu0 %5462  ;;  %v5504_v17 = vsel %vm1478_vm7, %v5459_v22, %v5461_v44  ;;  %v5479_v50 = vpop.permute.xlu2 %5478 }
 0x9d6   :  { %v5554_v51 = vmul.f32 %v5503_v20, %v9431_v48  ;;  %v5505_v21 = vsel %vm1478_vm7, %v5461_v44, %v5463_v28  ;;  %v5555_v15 = vmul.f32 %v5504_v17, %v9446_v41 }
 0x9d7   :  { %v5556_v16 = vmul.f32 %v5505_v21, %v9454_v63 }
 0x9d8   :  { %5610 = vrot.lane.b32.xlu2 %v5554_v51, %s7745_s27  ;;  %5612 = vrot.lane.b32.xlu0 %v5555_v15, %s7745_s27 }
 0x9d9   :  { %5614 = vrot.lane.b32.xlu1 %v5556_v16, %s7745_s27 }
 0x9dc   :  { %v5465_v4 = vpop.permute.xlu1 %5464 }
 0x9dd   :  { %v5506_v61 = vsel %vm1478_vm7, %v5463_v28, %v5465_v4  ;;  %v5469_v60 = vpop.permute.xlu0 %5468  ;;  %v5507_v47 = vsel %vm1478_vm7, %v5465_v4, %v5467_v2  ;;  %v5485_v33 = vpop.permute.xlu2 %5484 }
 0x9de   :  { %v5557_v7 = vmul.f32 %v5506_v61, %v9444_v55  ;;  %v5508_v31 = vsel %vm1478_vm7, %v5467_v2, %v5469_v60  ;;  %v5558_v23 = vmul.f32 %v5507_v47, %v9458_v45 }
 0x9df   :  { %v5559_v54 = vmul.f32 %v5508_v31, %v9472_v34 }
 0x9e0   :  { %5616 = vrot.lane.b32.xlu2 %v5557_v7, %s7745_s27  ;;  %5618 = vrot.lane.b32.xlu0 %v5558_v23, %s7745_s27 }
 0x9e1   :  { %5620 = vrot.lane.b32.xlu1 %v5559_v54, %s7745_s27 }
 0x9e4   :  { %v5471_v9 = vpop.permute.xlu1 %5470 }
 0x9e5   :  { %v5509_v11 = vsel %vm1478_vm7, %v5469_v60, %v5471_v9  ;;  %v5475_v25 = vpop.permute.xlu0 %5474  ;;  %v5510_v32 = vsel %vm1478_vm7, %v5471_v9, %v5473_v53  ;;  %v5491_v51 = vpop.permute.xlu2 %5490 }
 0x9e6   :  { %v5560_v0 = vmul.f32 %v5509_v11, %v9468_v27  ;;  %v5511_v36 = vsel %vm1478_vm7, %v5473_v53, %v5475_v25  ;;  %v5561_v14 = vmul.f32 %v5510_v32, %v9475_v30 }
 0x9e7   :  { %v5562_v43 = vmul.f32 %v5511_v36, %v9495_v24 }
 0x9e8   :  { %5622 = vrot.lane.b32.xlu2 %v5560_v0, %s7745_s27  ;;  %5624 = vrot.lane.b32.xlu0 %v5561_v14, %s7745_s27  ;;  %v5755_v0 = vld [vmem:[#allocation4 + $0x4b0] sm:$0xff]  ;;  %v5756_v14 = vld [vmem:[#allocation4 + $0x4b8] sm:$0xff] }
 0x9e9   :  { %5626 = vrot.lane.b32.xlu1 %v5562_v43, %s7745_s27  ;;  %v5758_v43 = vld [vmem:[#allocation4 + $0x4c8] sm:$0xff] }
 0x9ec   :  { %v5477_v40 = vpop.permute.xlu1 %5476 }
 0x9ed   :  { %v5512_v6 = vsel %vm1478_vm7, %v5475_v25, %v5477_v40  ;;  %v5481_v3 = vpop.permute.xlu0 %5480  ;;  %v5513_v44 = vsel %vm1478_vm7, %v5477_v40, %v5479_v50  ;;  %v5497_v7 = vpop.permute.xlu2 %5496  ;;  %v5757_v40 = vld [vmem:[#allocation4 + $0x4c0] sm:$0xff] }
 0x9ee   :  { %v5563_v8 = vmul.f32 %v5512_v6, %v9484_v29  ;;  %v5514_v49 = vsel %vm1478_vm7, %v5479_v50, %v5481_v3  ;;  %v5564_v13 = vmul.f32 %v5513_v44, %v9501_v39  ;;  %v5759_v6 = vld [vmem:[#allocation4 + $0x4d0] sm:$0xff]  ;;  %v5760_v44 = vld [vmem:[#allocation4 + $0x4d8] sm:$0xff] }
 0x9ef   :  { %v5565_v59 = vmul.f32 %v5514_v49, %v9521_v58  ;;  %v5764_v49 = vld [vmem:[#allocation4 + $0x4f8] sm:$0xff] }
 0x9f0   :  { %5628 = vrot.lane.b32.xlu2 %v5563_v8, %s7745_s27  ;;  %5630 = vrot.lane.b32.xlu0 %v5564_v13, %s7745_s27  ;;  %v5762_v8 = vld [vmem:[#allocation4 + $0x4e8] sm:$0xff]  ;;  %v5763_v13 = vld [vmem:[#allocation4 + $0x4f0] sm:$0xff] }
 0x9f1   :  { %5632 = vrot.lane.b32.xlu1 %v5565_v59, %s7745_s27 }
 0x9f4   :  { %v5483_v62 = vpop.permute.xlu1 %5482 }
 0x9f5   :  { %v5515_v56 = vsel %vm1478_vm7, %v5481_v3, %v5483_v62  ;;  %v5487_v46 = vpop.permute.xlu0 %5486  ;;  %v5516_v2 = vsel %vm1478_vm7, %v5483_v62, %v5485_v33  ;;  %v5761_v3 = vld [vmem:[#allocation4 + $0x4e0] sm:$0xff]  ;;  %v5767_v62 = vld [vmem:[#allocation4 + $0x510] sm:$0xff] }
 0x9f6   :  { %v5566_v22 = vmul.f32 %v5515_v56, %v9508_v57  ;;  %v5517_v20 = vsel %vm1478_vm7, %v5485_v33, %v5487_v46  ;;  %v5567_v28 = vmul.f32 %v5516_v2, %v9516_v35  ;;  %v5765_v33 = vld [vmem:[#allocation4 + $0x500] sm:$0xff]  ;;  %v5766_v56 = vld [vmem:[#allocation4 + $0x508] sm:$0xff] }
 0x9f7   :  { %v5568_v17 = vmul.f32 %v5517_v20, %v9539_v52  ;;  %v5769_v20 = vld [vmem:[#allocation4 + $0x520] sm:$0xff] }
 0x9f8   :  { %5634 = vrot.lane.b32.xlu2 %v5566_v22, %s7745_s27  ;;  %5636 = vrot.lane.b32.xlu0 %v5567_v28, %s7745_s27  ;;  %v5770_v22 = vld [vmem:[#allocation4 + $0x528] sm:$0xff]  ;;  %v5771_v28 = vld [vmem:[#allocation4 + $0x530] sm:$0xff] }
 0x9f9   :  { %5638 = vrot.lane.b32.xlu1 %v5568_v17, %s7745_s27 }
 0x9fc   :  { %v5489_v21 = vpop.permute.xlu1 %5488 }
 0x9fd   :  { %v5518_v15 = vsel %vm1478_vm7, %v5487_v46, %v5489_v21  ;;  %v5493_v16 = vpop.permute.xlu0 %5492  ;;  %v5519_v53 = vsel %vm1478_vm7, %v5489_v21, %v5491_v51  ;;  %v5768_v46 = vld [vmem:[#allocation4 + $0x518] sm:$0xff] }
 0x9fe   :  { %v5569_v4 = vmul.f32 %v5518_v15, %v9531_v37  ;;  %v5520_v61 = vsel %vm1478_vm7, %v5491_v51, %v5493_v16  ;;  %v5570_v60 = vmul.f32 %v5519_v53, %v9544_v26  ;;  %v5773_v15 = vld [vmem:[#allocation4 + $0x540] sm:$0xff]  ;;  %v5774_v53 = vld [vmem:[#allocation4 + $0x548] sm:$0xff] }
 0x9ff   :  { %v5571_v47 = vmul.f32 %v5520_v61, %v9552_v42 }
 0xa00   :  { %5640 = vrot.lane.b32.xlu2 %v5569_v4, %s7745_s27  ;;  %5642 = vrot.lane.b32.xlu0 %v5570_v60, %s7745_s27 }
 0xa01   :  { %5644 = vrot.lane.b32.xlu1 %v5571_v47, %s7745_s27 }
 0xa04   :  { %v5495_v31 = vpop.permute.xlu1 %5494 }
 0xa05   :  { %v5521_v23 = vsel %vm1478_vm7, %v5493_v16, %v5495_v31  ;;  %v5499_v54 = vpop.permute.xlu0 %5498  ;;  %v5522_v9 = vsel %vm1478_vm7, %v5495_v31, %v5497_v7  ;;  %v5772_v16 = vld [vmem:[#allocation4 + $0x538] sm:$0xff] }
 0xa06   :  { %v5572_v50 = vmul.f32 %v5521_v23, %v9562_v10  ;;  %v5523_v11 = vsel %vm1478_vm7, %v5497_v7, %v5499_v54  ;;  %v5573_v25 = vmul.f32 %v5522_v9, %v9566_v19  ;;  %v5575_v36 = vmul.f32 0.0, %v5499_v54  ;;  %v5776_v23 = vld [vmem:[#allocation4 + $0x558] sm:$0xff]  ;;  %v5775_v54 = vld [vmem:[#allocation4 + $0x550] sm:$0xff]  ;;  %v5777_v9 = vld [vmem:[#allocation4 + $0x560] sm:$0xff] }
 0xa07   :  { %v5574_v32 = vmul.f32 %v5523_v11, %v9576_v5 }
 0xa08   :  { %5646 = vrot.lane.b32.xlu2 %v5572_v50, %s7745_s27  ;;  %5648 = vrot.lane.b32.xlu0 %v5573_v25, %s7745_s27 }
 0xa09   :  { %5650 = vrot.lane.b32.xlu1 %v5574_v32, %s7745_s27 }
 0xa10   :  { %5652 = vrot.lane.b32.xlu2 %v5575_v36, %s7745_s27  ;;  %5805 = vrot.lane.b32.xlu0 %v5755_v0, %s7744_s26 }
 0xa11   :  { %5807 = vrot.lane.b32.xlu1 %v5756_v14, %s7744_s26  ;;  %v5779_v14 = vld [vmem:[#allocation4 + $0x570] sm:$0xff] }
 0xa18   :  { %5811 = vrot.lane.b32.xlu0 %v5758_v43, %s7744_s26  ;;  %5809 = vrot.lane.b32.xlu2 %v5757_v40, %s7744_s26  ;;  %v5778_v43 = vld [vmem:[#allocation4 + $0x568] sm:$0xff] }
 0xa19   :  { %5813 = vrot.lane.b32.xlu1 %v5759_v6, %s7744_s26 }
 0xa20   :  { %5817 = vrot.lane.b32.xlu0 %v5761_v3, %s7744_s26  ;;  %5815 = vrot.lane.b32.xlu2 %v5760_v44, %s7744_s26 }
 0xa21   :  { %5819 = vrot.lane.b32.xlu1 %v5762_v8, %s7744_s26 }
 0xa28   :  { %5823 = vrot.lane.b32.xlu0 %v5764_v49, %s7744_s26  ;;  %5821 = vrot.lane.b32.xlu2 %v5763_v13, %s7744_s26 }
 0xa29   :  { %5825 = vrot.lane.b32.xlu1 %v5765_v33, %s7744_s26 }
 0xa2a   :  { %v5605_v59 = vpop.permute.xlu2 %5604 }
 0xa30   :  { %5829 = vrot.lane.b32.xlu0 %v5767_v62, %s7744_s26  ;;  %5827 = vrot.lane.b32.xlu2 %v5766_v56, %s7744_s26 }
 0xa31   :  { %5831 = vrot.lane.b32.xlu1 %v5768_v46, %s7744_s26 }
 0xa32   :  { %v5611_v2 = vpop.permute.xlu2 %5610 }
 0xa38   :  { %5835 = vrot.lane.b32.xlu0 %v5770_v22, %s7744_s26  ;;  %5833 = vrot.lane.b32.xlu2 %v5769_v20, %s7744_s26 }
 0xa39   :  { %5837 = vrot.lane.b32.xlu1 %v5771_v28, %s7744_s26 }
 0xa3a   :  { %v5603_v17 = vpop.permute.xlu1 %5602  ;;  %v5617_v51 = vpop.permute.xlu2 %5616 }
 0xa3b   :  { %v5654_v21 = vsel %vm1323_vm6, %v5603_v17, %v5605_v59 }
 0xa3c   :  { %5704 = vst [vmem:[#allocation3 + $0x3e8] sm:$0xff] %v5654_v21 }
 0xa40   :  { %5841 = vrot.lane.b32.xlu0 %v5773_v15, %s7744_s26  ;;  %5839 = vrot.lane.b32.xlu2 %v5772_v16, %s7744_s26 }
 0xa41   :  { %5843 = vrot.lane.b32.xlu1 %v5774_v53, %s7744_s26 }
 0xa42   :  { %v5607_v4 = vpop.permute.xlu0 %5606  ;;  %v5623_v61 = vpop.permute.xlu2 %5622 }
 0xa43   :  { %v5609_v60 = vpop.permute.xlu1 %5608  ;;  %v5655_v47 = vsel %vm1323_vm6, %v5605_v59, %v5607_v4 }
 0xa44   :  { %v5657_v7 = vsel %vm1323_vm6, %v5609_v60, %v5611_v2  ;;  %v5656_v31 = vsel %vm1323_vm6, %v5607_v4, %v5609_v60  ;;  %5705 = vst [vmem:[#allocation3 + $0x3f0] sm:$0xff] %v5655_v47 }
 0xa45   :  { %5707 = vst [vmem:[#allocation3 + $0x400] sm:$0xff] %v5657_v7 }
 0xa46   :  { %5706 = vst [vmem:[#allocation3 + $0x3f8] sm:$0xff] %v5656_v31 }
 0xa48   :  { %5847 = vrot.lane.b32.xlu0 %v5776_v23, %s7744_s26  ;;  %5845 = vrot.lane.b32.xlu2 %v5775_v54, %s7744_s26 }
 0xa49   :  { %5849 = vrot.lane.b32.xlu1 %v5777_v9, %s7744_s26 }
 0xa4a   :  { %v5613_v50 = vpop.permute.xlu0 %5612  ;;  %v5629_v11 = vpop.permute.xlu2 %5628 }
 0xa4b   :  { %v5615_v25 = vpop.permute.xlu1 %5614  ;;  %v5658_v32 = vsel %vm1323_vm6, %v5611_v2, %v5613_v50 }
 0xa4c   :  { %v5660_v0 = vsel %vm1323_vm6, %v5615_v25, %v5617_v51  ;;  %v5659_v36 = vsel %vm1323_vm6, %v5613_v50, %v5615_v25  ;;  %5708 = vst [vmem:[#allocation3 + $0x408] sm:$0xff] %v5658_v32 }
 0xa4d   :  { %5710 = vst [vmem:[#allocation3 + $0x418] sm:$0xff] %v5660_v0 }
 0xa4e   :  { %5709 = vst [vmem:[#allocation3 + $0x410] sm:$0xff] %v5659_v36 }
 0xa50   :  { %5853 = vrot.lane.b32.xlu0 %v5779_v14, %s7744_s26  ;;  %5851 = vrot.lane.b32.xlu2 %v5778_v43, %s7744_s26 }
 0xa52   :  { %v5619_v40 = vpop.permute.xlu0 %5618  ;;  %v5635_v6 = vpop.permute.xlu2 %5634 }
 0xa53   :  { %v5621_v3 = vpop.permute.xlu1 %5620  ;;  %v5661_v44 = vsel %vm1323_vm6, %v5617_v51, %v5619_v40 }
 0xa54   :  { %v5663_v8 = vsel %vm1323_vm6, %v5621_v3, %v5623_v61  ;;  %v5662_v49 = vsel %vm1323_vm6, %v5619_v40, %v5621_v3  ;;  %5711 = vst [vmem:[#allocation3 + $0x420] sm:$0xff] %v5661_v44 }
 0xa55   :  { %5713 = vst [vmem:[#allocation3 + $0x430] sm:$0xff] %v5663_v8 }
 0xa56   :  { %5712 = vst [vmem:[#allocation3 + $0x428] sm:$0xff] %v5662_v49 }
 0xa5a   :  { %v5625_v13 = vpop.permute.xlu0 %5624  ;;  %v5641_v33 = vpop.permute.xlu2 %5640 }
 0xa5b   :  { %v5627_v59 = vpop.permute.xlu1 %5626  ;;  %v5664_v62 = vsel %vm1323_vm6, %v5623_v61, %v5625_v13 }
 0xa5c   :  { %v5666_v56 = vsel %vm1323_vm6, %v5627_v59, %v5629_v11  ;;  %v5665_v46 = vsel %vm1323_vm6, %v5625_v13, %v5627_v59  ;;  %5714 = vst [vmem:[#allocation3 + $0x438] sm:$0xff] %v5664_v62 }
 0xa5d   :  { %5716 = vst [vmem:[#allocation3 + $0x448] sm:$0xff] %v5666_v56 }
 0xa5e   :  { %5715 = vst [vmem:[#allocation3 + $0x440] sm:$0xff] %v5665_v46 }
 0xa62   :  { %v5631_v2 = vpop.permute.xlu0 %5630  ;;  %v5647_v22 = vpop.permute.xlu2 %5646 }
 0xa63   :  { %v5633_v20 = vpop.permute.xlu1 %5632  ;;  %v5667_v28 = vsel %vm1323_vm6, %v5629_v11, %v5631_v2 }
 0xa64   :  { %v5669_v17 = vsel %vm1323_vm6, %v5633_v20, %v5635_v6  ;;  %v5668_v51 = vsel %vm1323_vm6, %v5631_v2, %v5633_v20  ;;  %5717 = vst [vmem:[#allocation3 + $0x450] sm:$0xff] %v5667_v28 }
 0xa65   :  { %5719 = vst [vmem:[#allocation3 + $0x460] sm:$0xff] %v5669_v17 }
 0xa66   :  { %5718 = vst [vmem:[#allocation3 + $0x458] sm:$0xff] %v5668_v51 }
 0xa6a   :  { %v5637_v21 = vpop.permute.xlu0 %5636  ;;  %v5653_v53 = vpop.permute.xlu2 %5652 }
 0xa6b   :  { %v5639_v15 = vpop.permute.xlu1 %5638  ;;  %v5670_v16 = vsel %vm1323_vm6, %v5635_v6, %v5637_v21 }
 0xa6c   :  { %v5672_v4 = vsel %vm1323_vm6, %v5639_v15, %v5641_v33  ;;  %v5671_v61 = vsel %vm1323_vm6, %v5637_v21, %v5639_v15  ;;  %5720 = vst [vmem:[#allocation3 + $0x468] sm:$0xff] %v5670_v16 }
 0xa6d   :  { %5722 = vst [vmem:[#allocation3 + $0x478] sm:$0xff] %v5672_v4 }
 0xa6e   :  { %5721 = vst [vmem:[#allocation3 + $0x470] sm:$0xff] %v5671_v61 }
 0xa72   :  { %v5643_v60 = vpop.permute.xlu0 %5642  ;;  %v5810_v31 = vpop.permute.xlu2 %5809 }
 0xa73   :  { %v5645_v47 = vpop.permute.xlu1 %5644  ;;  %v5673_v7 = vsel %vm1323_vm6, %v5641_v33, %v5643_v60 }
 0xa74   :  { %v5675_v23 = vsel %vm1323_vm6, %v5645_v47, %v5647_v22  ;;  %v5674_v54 = vsel %vm1323_vm6, %v5643_v60, %v5645_v47  ;;  %5723 = vst [vmem:[#allocation3 + $0x480] sm:$0xff] %v5673_v7 }
 0xa75   :  { %5725 = vst [vmem:[#allocation3 + $0x490] sm:$0xff] %v5675_v23 }
 0xa76   :  { %5724 = vst [vmem:[#allocation3 + $0x488] sm:$0xff] %v5674_v54 }
 0xa7a   :  { %v5649_v9 = vpop.permute.xlu0 %5648  ;;  %v5816_v0 = vpop.permute.xlu2 %5815 }
 0xa7b   :  { %v5651_v50 = vpop.permute.xlu1 %5650  ;;  %v5676_v11 = vsel %vm1323_vm6, %v5647_v22, %v5649_v9 }
 0xa7c   :  { %v5678_v25 = vsel %vm1323_vm6, %v5651_v50, %v5653_v53  ;;  %v5677_v32 = vsel %vm1323_vm6, %v5649_v9, %v5651_v50  ;;  %5726 = vst [vmem:[#allocation3 + $0x498] sm:$0xff] %v5676_v11 }
 0xa7d   :  { %5728 = vst [vmem:[#allocation3 + $0x4a8] sm:$0xff] %v5678_v25 }
 0xa7e   :  { %5727 = vst [vmem:[#allocation3 + $0x4a0] sm:$0xff] %v5677_v32 }
 0xa82   :  { %v5806_v36 = vpop.permute.xlu0 %5805  ;;  %v5822_v8 = vpop.permute.xlu2 %5821 }
 0xa83   :  { %v5808_v14 = vpop.permute.xlu1 %5807  ;;  %v5905_v43 = vmul.f32 %v5806_v36, %v9417_v38 }
 0xa84   :  { %v5855_v40 = vsel %vm1121_vm5, %v5806_v36, %v5808_v14  ;;  %v5856_v6 = vsel %vm1121_vm5, %v5808_v14, %v5810_v31 }
 0xa85   :  { %v5906_v3 = vmul.f32 %v5855_v40, %v9407_v1  ;;  %v5907_v44 = vmul.f32 %v5856_v6, %v9422_v12  ;;  %5957 = vrot.lane.b32.xlu1 %v5905_v43, %s7743_s25 }
 0xa87   :  { %5959 = vrot.lane.b32.xlu2 %v5906_v3, %s7743_s25  ;;  %5961 = vrot.lane.b32.xlu0 %v5907_v44, %s7743_s25 }
 0xa8a   :  { %v5812_v49 = vpop.permute.xlu0 %5811  ;;  %v5828_v22 = vpop.permute.xlu2 %5827 }
 0xa8b   :  { %v5814_v13 = vpop.permute.xlu1 %5813  ;;  %v5857_v33 = vsel %vm1121_vm5, %v5810_v31, %v5812_v49 }
 0xa8c   :  { %v5858_v59 = vsel %vm1121_vm5, %v5812_v49, %v5814_v13  ;;  %v5908_v62 = vmul.f32 %v5857_v33, %v9439_v18  ;;  %v5859_v56 = vsel %vm1121_vm5, %v5814_v13, %v5816_v0 }
 0xa8d   :  { %v5909_v46 = vmul.f32 %v5858_v59, %v9431_v48  ;;  %v5910_v2 = vmul.f32 %v5859_v56, %v9446_v41 }
 0xa8e   :  { %5963 = vrot.lane.b32.xlu1 %v5908_v62, %s7743_s25 }
 0xa8f   :  { %5965 = vrot.lane.b32.xlu2 %v5909_v46, %s7743_s25  ;;  %5967 = vrot.lane.b32.xlu0 %v5910_v2, %s7743_s25 }
 0xa92   :  { %v5818_v20 = vpop.permute.xlu0 %5817  ;;  %v5834_v47 = vpop.permute.xlu2 %5833 }
 0xa93   :  { %v5820_v28 = vpop.permute.xlu1 %5819  ;;  %v5860_v17 = vsel %vm1121_vm5, %v5816_v0, %v5818_v20 }
 0xa94   :  { %v5861_v51 = vsel %vm1121_vm5, %v5818_v20, %v5820_v28  ;;  %v5911_v21 = vmul.f32 %v5860_v17, %v9454_v63  ;;  %v5862_v15 = vsel %vm1121_vm5, %v5820_v28, %v5822_v8 }
 0xa95   :  { %v5912_v16 = vmul.f32 %v5861_v51, %v9444_v55  ;;  %v5913_v53 = vmul.f32 %v5862_v15, %v9458_v45 }
 0xa96   :  { %5969 = vrot.lane.b32.xlu1 %v5911_v21, %s7743_s25 }
 0xa97   :  { %5971 = vrot.lane.b32.xlu2 %v5912_v16, %s7743_s25  ;;  %5973 = vrot.lane.b32.xlu0 %v5913_v53, %s7743_s25 }
 0xa9a   :  { %v5824_v4 = vpop.permute.xlu0 %5823  ;;  %v5840_v40 = vpop.permute.xlu2 %5839 }
 0xa9b   :  { %v5826_v61 = vpop.permute.xlu1 %5825  ;;  %v5863_v60 = vsel %vm1121_vm5, %v5822_v8, %v5824_v4 }
 0xa9c   :  { %v5864_v7 = vsel %vm1121_vm5, %v5824_v4, %v5826_v61  ;;  %v5914_v31 = vmul.f32 %v5863_v60, %v9472_v34  ;;  %v5865_v23 = vsel %vm1121_vm5, %v5826_v61, %v5828_v22 }
 0xa9d   :  { %v5915_v54 = vmul.f32 %v5864_v7, %v9468_v27  ;;  %v5916_v9 = vmul.f32 %v5865_v23, %v9475_v30 }
 0xa9e   :  { %5975 = vrot.lane.b32.xlu1 %v5914_v31, %s7743_s25 }
 0xa9f   :  { %5977 = vrot.lane.b32.xlu2 %v5915_v54, %s7743_s25  ;;  %5979 = vrot.lane.b32.xlu0 %v5916_v9, %s7743_s25 }
 0xaa2   :  { %v5830_v50 = vpop.permute.xlu0 %5829  ;;  %v5846_v62 = vpop.permute.xlu2 %5845 }
 0xaa3   :  { %v5832_v11 = vpop.permute.xlu1 %5831  ;;  %v5866_v25 = vsel %vm1121_vm5, %v5828_v22, %v5830_v50 }
 0xaa4   :  { %v5867_v32 = vsel %vm1121_vm5, %v5830_v50, %v5832_v11  ;;  %v5917_v0 = vmul.f32 %v5866_v25, %v9495_v24  ;;  %v5868_v36 = vsel %vm1121_vm5, %v5832_v11, %v5834_v47  ;;  %v6110_v50 = vld [vmem:[#allocation4 + $0x578] sm:$0xff]  ;;  %v6111_v11 = vld [vmem:[#allocation4 + $0x580] sm:$0xff]  ;;  %v6112_v25 = vld [vmem:[#allocation4 + $0x588] sm:$0xff] }
 0xaa5   :  { %v5918_v14 = vmul.f32 %v5867_v32, %v9484_v29  ;;  %v5919_v43 = vmul.f32 %v5868_v36, %v9501_v39  ;;  %v6113_v32 = vld [vmem:[#allocation4 + $0x590] sm:$0xff]  ;;  %v6465_v36 = vld [vmem:[#allocation4 + $0x640] sm:$0xff] }
 0xaa6   :  { %5981 = vrot.lane.b32.xlu1 %v5917_v0, %s7743_s25  ;;  %v6114_v0 = vld [vmem:[#allocation4 + $0x598] sm:$0xff] }
 0xaa7   :  { %5983 = vrot.lane.b32.xlu2 %v5918_v14, %s7743_s25  ;;  %5985 = vrot.lane.b32.xlu0 %v5919_v43, %s7743_s25  ;;  %v6466_v14 = vld [vmem:[#allocation4 + $0x648] sm:$0xff]  ;;  %v6467_v43 = vld [vmem:[#allocation4 + $0x650] sm:$0xff] }
 0xaaa   :  { %v5836_v6 = vpop.permute.xlu0 %5835  ;;  %v5852_v21 = vpop.permute.xlu2 %5851 }
 0xaab   :  { %v5838_v3 = vpop.permute.xlu1 %5837  ;;  %v5869_v44 = vsel %vm1121_vm5, %v5834_v47, %v5836_v6 }
 0xaac   :  { %v5870_v8 = vsel %vm1121_vm5, %v5836_v6, %v5838_v3  ;;  %v5920_v49 = vmul.f32 %v5869_v44, %v9521_v58  ;;  %v5871_v13 = vsel %vm1121_vm5, %v5838_v3, %v5840_v40  ;;  %v6469_v6 = vld [vmem:[#allocation4 + $0x660] sm:$0xff]  ;;  %v6470_v44 = vld [vmem:[#allocation4 + $0x668] sm:$0xff] }
 0xaad   :  { %v5921_v33 = vmul.f32 %v5870_v8, %v9508_v57  ;;  %v5922_v59 = vmul.f32 %v5871_v13, %v9516_v35  ;;  %v6115_v8 = vld [vmem:[#allocation4 + $0x5a0] sm:$0xff] }
 0xaae   :  { %5987 = vrot.lane.b32.xlu1 %v5920_v49, %s7743_s25  ;;  %v6471_v49 = vld [vmem:[#allocation4 + $0x670] sm:$0xff] }
 0xaaf   :  { %5989 = vrot.lane.b32.xlu2 %v5921_v33, %s7743_s25  ;;  %5991 = vrot.lane.b32.xlu0 %v5922_v59, %s7743_s25  ;;  %v6472_v33 = vld [vmem:[#allocation4 + $0x678] sm:$0xff]  ;;  %v6116_v59 = vld [vmem:[#allocation4 + $0x5a8] sm:$0xff] }
 0xab2   :  { %v5842_v56 = vpop.permute.xlu0 %5841 }
 0xab3   :  { %v5844_v46 = vpop.permute.xlu1 %5843  ;;  %v5872_v2 = vsel %vm1121_vm5, %v5840_v40, %v5842_v56  ;;  %v6468_v40 = vld [vmem:[#allocation4 + $0x658] sm:$0xff] }
 0xab4   :  { %v5873_v22 = vsel %vm1121_vm5, %v5842_v56, %v5844_v46  ;;  %v5923_v20 = vmul.f32 %v5872_v2, %v9539_v52  ;;  %v5874_v28 = vsel %vm1121_vm5, %v5844_v46, %v5846_v62  ;;  %v6473_v46 = vld [vmem:[#allocation4 + $0x680] sm:$0xff]  ;;  %v6474_v2 = vld [vmem:[#allocation4 + $0x688] sm:$0xff] }
 0xab5   :  { %v5924_v17 = vmul.f32 %v5873_v22, %v9531_v37  ;;  %v5925_v51 = vmul.f32 %v5874_v28, %v9544_v26  ;;  %v6118_v22 = vld [vmem:[#allocation4 + $0x5b8] sm:$0xff] }
 0xab6   :  { %5993 = vrot.lane.b32.xlu1 %v5923_v20, %s7743_s25 }
 0xab7   :  { %5995 = vrot.lane.b32.xlu2 %v5924_v17, %s7743_s25  ;;  %5997 = vrot.lane.b32.xlu0 %v5925_v51, %s7743_s25 }
 0xaba   :  { %v5848_v15 = vpop.permute.xlu0 %5847 }
 0xabb   :  { %v5850_v16 = vpop.permute.xlu1 %5849  ;;  %v5875_v53 = vsel %vm1121_vm5, %v5846_v62, %v5848_v15  ;;  %v6117_v62 = vld [vmem:[#allocation4 + $0x5b0] sm:$0xff] }
 0xabc   :  { %v5876_v4 = vsel %vm1121_vm5, %v5848_v15, %v5850_v16  ;;  %v5926_v61 = vmul.f32 %v5875_v53, %v9552_v42  ;;  %v5877_v60 = vsel %vm1121_vm5, %v5850_v16, %v5852_v21  ;;  %v6119_v15 = vld [vmem:[#allocation4 + $0x5c0] sm:$0xff]  ;;  %v6475_v16 = vld [vmem:[#allocation4 + $0x690] sm:$0xff]  ;;  %v6476_v53 = vld [vmem:[#allocation4 + $0x698] sm:$0xff] }
 0xabd   :  { %v5927_v47 = vmul.f32 %v5876_v4, %v9562_v10  ;;  %v5928_v7 = vmul.f32 %v5877_v60, %v9566_v19 }
 0xabe   :  { %5999 = vrot.lane.b32.xlu1 %v5926_v61, %s7743_s25 }
 0xabf   :  { %6001 = vrot.lane.b32.xlu2 %v5927_v47, %s7743_s25  ;;  %6003 = vrot.lane.b32.xlu0 %v5928_v7, %s7743_s25 }
 0xac2   :  { %v5854_v31 = vpop.permute.xlu0 %5853 }
 0xac3   :  { %v5878_v23 = vsel %vm1121_vm5, %v5852_v21, %v5854_v31  ;;  %v5930_v54 = vmul.f32 0.0, %v5854_v31 }
 0xac4   :  { %v5929_v9 = vmul.f32 %v5878_v23, %v9576_v5  ;;  %v6120_v23 = vld [vmem:[#allocation4 + $0x5c8] sm:$0xff] }
 0xac6   :  { %6005 = vrot.lane.b32.xlu1 %v5929_v9, %s7743_s25  ;;  %v6477_v9 = vld [vmem:[#allocation4 + $0x6a0] sm:$0xff] }
 0xac7   :  { %6007 = vrot.lane.b32.xlu2 %v5930_v54, %s7743_s25  ;;  %6160 = vrot.lane.b32.xlu0 %v6110_v50, %s7742_s24  ;;  %v6121_v54 = vld [vmem:[#allocation4 + $0x5d0] sm:$0xff] }
 0xace   :  { %6162 = vrot.lane.b32.xlu1 %v6111_v11, %s7742_s24 }
 0xacf   :  { %6164 = vrot.lane.b32.xlu2 %v6112_v25, %s7742_s24  ;;  %6166 = vrot.lane.b32.xlu0 %v6113_v32, %s7742_s24 }
 0xad6   :  { %6168 = vrot.lane.b32.xlu1 %v6114_v0, %s7742_s24 }
 0xad7   :  { %6515 = vrot.lane.b32.xlu2 %v6465_v36, %s7740_s0  ;;  %6517 = vrot.lane.b32.xlu0 %v6466_v14, %s7740_s0  ;;  %v6478_v14 = vld [vmem:[#allocation4 + $0x6a8] sm:$0xff] }
 0xade   :  { %6519 = vrot.lane.b32.xlu1 %v6467_v43, %s7740_s0  ;;  %v6122_v43 = vld [vmem:[#allocation4 + $0x5d8] sm:$0xff] }
 0xadf   :  { %6521 = vrot.lane.b32.xlu2 %v6468_v40, %s7740_s0  ;;  %6523 = vrot.lane.b32.xlu0 %v6469_v6, %s7740_s0  ;;  %v6123_v40 = vld [vmem:[#allocation4 + $0x5e0] sm:$0xff] }
 0xae1   :  { %v5960_v3 = vpop.permute.xlu2 %5959 }
 0xae6   :  { %6525 = vrot.lane.b32.xlu1 %v6470_v44, %s7740_s0 }
 0xae7   :  { %6170 = vrot.lane.b32.xlu2 %v6115_v8, %s7742_s24  ;;  %6527 = vrot.lane.b32.xlu0 %v6471_v49, %s7740_s0 }
 0xae9   :  { %v5966_v13 = vpop.permute.xlu2 %5965 }
 0xaee   :  { %6529 = vrot.lane.b32.xlu1 %v6472_v33, %s7740_s0  ;;  %v6479_v33 = vld [vmem:[#allocation4 + $0x6b0] sm:$0xff] }
 0xaef   :  { %6172 = vrot.lane.b32.xlu2 %v6116_v59, %s7742_s24  ;;  %6174 = vrot.lane.b32.xlu0 %v6117_v62, %s7742_s24  ;;  %v6480_v59 = vld [vmem:[#allocation4 + $0x6b8] sm:$0xff]  ;;  %v6124_v62 = vld [vmem:[#allocation4 + $0x5e8] sm:$0xff] }
 0xaf1   :  { %v5972_v56 = vpop.permute.xlu2 %5971 }
 0xaf6   :  { %6531 = vrot.lane.b32.xlu1 %v6473_v46, %s7740_s0 }
 0xaf7   :  { %6533 = vrot.lane.b32.xlu2 %v6474_v2, %s7740_s0  ;;  %6176 = vrot.lane.b32.xlu0 %v6118_v22, %s7742_s24  ;;  %v5958_v20 = vpop.permute.xlu1 %5957 }
 0xaf8   :  { %v10223_v28 = vsel %vm966_vm4, %v5958_v20, %v5960_v3 }
 0xaf9   :  { %v5962_v17 = vpop.permute.xlu0 %5961  ;;  %v5978_v51 = vpop.permute.xlu2 %5977 }
 0xafa   :  { %v10226_v21 = vsel %vm966_vm4, %v5960_v3, %v5962_v17 }
 0xafe   :  { %6178 = vrot.lane.b32.xlu1 %v6119_v15, %s7742_s24  ;;  %v6481_v15 = vld [vmem:[#allocation4 + $0x6c0] sm:$0xff] }
 0xaff   :  { %6535 = vrot.lane.b32.xlu2 %v6475_v16, %s7740_s0  ;;  %6537 = vrot.lane.b32.xlu0 %v6476_v53, %s7740_s0  ;;  %v6482_v16 = vld [vmem:[#allocation4 + $0x6c8] sm:$0xff] }
 0xb00   :  { %v5964_v4 = vpop.permute.xlu1 %5963 }
 0xb01   :  { %v10232_v61 = vsel %vm966_vm4, %v5962_v17, %v5964_v4  ;;  %v10235_v60 = vsel %vm966_vm4, %v5964_v4, %v5966_v13  ;;  %v5968_v47 = vpop.permute.xlu0 %5967  ;;  %v5984_v7 = vpop.permute.xlu2 %5983 }
 0xb02   :  { %6061 = vst [vmem:[#allocation3 + $0x4c0] sm:$0xff] %v10232_v61  ;;  %v10239_v31 = vsel %vm966_vm4, %v5966_v13, %v5968_v47 }
 0xb03   :  { %6062 = vst [vmem:[#allocation3 + $0x4c8] sm:$0xff] %v10235_v60 }
 0xb04   :  { %6063 = vst [vmem:[#allocation3 + $0x4d0] sm:$0xff] %v10239_v31 }
 0xb06   :  { %6180 = vrot.lane.b32.xlu1 %v6120_v23, %s7742_s24 }
 0xb07   :  { %6182 = vrot.lane.b32.xlu2 %v6121_v54, %s7742_s24  ;;  %6539 = vrot.lane.b32.xlu0 %v6477_v9, %s7740_s0  ;;  %v6126_v9 = vld [vmem:[#allocation4 + $0x5f8] sm:$0xff] }
 0xb08   :  { %v5970_v50 = vpop.permute.xlu1 %5969 }
 0xb09   :  { %v10247_v11 = vsel %vm966_vm4, %v5968_v47, %v5970_v50  ;;  %v10250_v25 = vsel %vm966_vm4, %v5970_v50, %v5972_v56  ;;  %v5974_v32 = vpop.permute.xlu0 %5973  ;;  %v5990_v0 = vpop.permute.xlu2 %5989  ;;  %v6127_v50 = vld [vmem:[#allocation4 + $0x600] sm:$0xff] }
 0xb0a   :  { %6064 = vst [vmem:[#allocation3 + $0x4d8] sm:$0xff] %v10247_v11  ;;  %v10254_v36 = vsel %vm966_vm4, %v5972_v56, %v5974_v32 }
 0xb0b   :  { %6065 = vst [vmem:[#allocation3 + $0x4e0] sm:$0xff] %v10250_v25 }
 0xb0c   :  { %6066 = vst [vmem:[#allocation3 + $0x4e8] sm:$0xff] %v10254_v36 }
 0xb0e   :  { %6541 = vrot.lane.b32.xlu1 %v6478_v14, %s7740_s0 }
 0xb0f   :  { %6184 = vrot.lane.b32.xlu2 %v6122_v43, %s7742_s24  ;;  %6186 = vrot.lane.b32.xlu0 %v6123_v40, %s7742_s24 }
 0xb10   :  { %v5976_v6 = vpop.permute.xlu1 %5975 }
 0xb11   :  { %v6017_v3 = vsel %vm966_vm4, %v5974_v32, %v5976_v6  ;;  %v6018_v44 = vsel %vm966_vm4, %v5976_v6, %v5978_v51  ;;  %v5980_v8 = vpop.permute.xlu0 %5979  ;;  %v5996_v49 = vpop.permute.xlu2 %5995 }
 0xb12   :  { %6067 = vst [vmem:[#allocation3 + $0x4f0] sm:$0xff] %v6017_v3  ;;  %v6019_v13 = vsel %vm966_vm4, %v5978_v51, %v5980_v8  ;;  %v6125_v51 = vld [vmem:[#allocation4 + $0x5f0] sm:$0xff] }
 0xb13   :  { %6068 = vst [vmem:[#allocation3 + $0x4f8] sm:$0xff] %v6018_v44 }
 0xb14   :  { %6069 = vst [vmem:[#allocation3 + $0x500] sm:$0xff] %v6019_v13 }
 0xb16   :  { %6543 = vrot.lane.b32.xlu1 %v6479_v33, %s7740_s0 }
 0xb17   :  { %6545 = vrot.lane.b32.xlu2 %v6480_v59, %s7740_s0  ;;  %6188 = vrot.lane.b32.xlu0 %v6124_v62, %s7742_s24 }
 0xb18   :  { %v5982_v56 = vpop.permute.xlu1 %5981 }
 0xb19   :  { %v6020_v46 = vsel %vm966_vm4, %v5980_v8, %v5982_v56  ;;  %v6021_v2 = vsel %vm966_vm4, %v5982_v56, %v5984_v7  ;;  %v5986_v22 = vpop.permute.xlu0 %5985  ;;  %v6002_v20 = vpop.permute.xlu2 %6001 }
 0xb1a   :  { %6070 = vst [vmem:[#allocation3 + $0x508] sm:$0xff] %v6020_v46  ;;  %v6022_v17 = vsel %vm966_vm4, %v5984_v7, %v5986_v22 }
 0xb1b   :  { %6071 = vst [vmem:[#allocation3 + $0x510] sm:$0xff] %v6021_v2 }
 0xb1c   :  { %6072 = vst [vmem:[#allocation3 + $0x518] sm:$0xff] %v6022_v17 }
 0xb1e   :  { %6190 = vrot.lane.b32.xlu1 %v6125_v51, %s7742_s24 }
 0xb1f   :  { %6547 = vrot.lane.b32.xlu2 %v6481_v15, %s7740_s0  ;;  %6549 = vrot.lane.b32.xlu0 %v6482_v16, %s7740_s0  ;;  %v6484_v16 = vld [vmem:[#allocation4 + $0x6d8] sm:$0xff] }
 0xb20   :  { %v5988_v53 = vpop.permute.xlu1 %5987 }
 0xb21   :  { %v6023_v4 = vsel %vm966_vm4, %v5986_v22, %v5988_v53  ;;  %v6024_v47 = vsel %vm966_vm4, %v5988_v53, %v5990_v0  ;;  %v5992_v23 = vpop.permute.xlu0 %5991  ;;  %v6008_v54 = vpop.permute.xlu2 %6007 }
 0xb22   :  { %6073 = vst [vmem:[#allocation3 + $0x520] sm:$0xff] %v6023_v4  ;;  %v6025_v7 = vsel %vm966_vm4, %v5990_v0, %v5992_v23 }
 0xb23   :  { %6074 = vst [vmem:[#allocation3 + $0x528] sm:$0xff] %v6024_v47 }
 0xb24   :  { %6075 = vst [vmem:[#allocation3 + $0x530] sm:$0xff] %v6025_v7 }
 0xb26   :  { %6192 = vrot.lane.b32.xlu1 %v6126_v9, %s7742_s24 }
 0xb27   :  { %6194 = vrot.lane.b32.xlu2 %v6127_v50, %s7742_s24 }
 0xb28   :  { %v5994_v32 = vpop.permute.xlu1 %5993 }
 0xb29   :  { %v6026_v14 = vsel %vm966_vm4, %v5992_v23, %v5994_v32  ;;  %v6027_v43 = vsel %vm966_vm4, %v5994_v32, %v5996_v49  ;;  %v5998_v40 = vpop.permute.xlu0 %5997  ;;  %v6165_v6 = vpop.permute.xlu2 %6164  ;;  %v6128_v23 = vld [vmem:[#allocation4 + $0x608] sm:$0xff] }
 0xb2a   :  { %6076 = vst [vmem:[#allocation3 + $0x538] sm:$0xff] %v6026_v14  ;;  %v6028_v3 = vsel %vm966_vm4, %v5996_v49, %v5998_v40 }
 0xb2b   :  { %6077 = vst [vmem:[#allocation3 + $0x540] sm:$0xff] %v6027_v43 }
 0xb2c   :  { %6078 = vst [vmem:[#allocation3 + $0x548] sm:$0xff] %v6028_v3  ;;  %v6483_v3 = vld [vmem:[#allocation4 + $0x6d0] sm:$0xff] }
 0xb30   :  { %v6000_v0 = vpop.permute.xlu1 %5999 }
 0xb31   :  { %v6029_v44 = vsel %vm966_vm4, %v5998_v40, %v6000_v0  ;;  %v6030_v8 = vsel %vm966_vm4, %v6000_v0, %v6002_v20  ;;  %v6004_v13 = vpop.permute.xlu0 %6003  ;;  %v6516_v33 = vpop.permute.xlu2 %6515 }
 0xb32   :  { %6079 = vst [vmem:[#allocation3 + $0x550] sm:$0xff] %v6029_v44  ;;  %v6031_v59 = vsel %vm966_vm4, %v6002_v20, %v6004_v13  ;;  %v6615_v62 = vmul.f32 %v6516_v33, %v9417_v38 }
 0xb33   :  { %6080 = vst [vmem:[#allocation3 + $0x558] sm:$0xff] %v6030_v8  ;;  %v6485_v8 = vld [vmem:[#allocation4 + $0x6e0] sm:$0xff] }
 0xb34   :  { %6081 = vst [vmem:[#allocation3 + $0x560] sm:$0xff] %v6031_v59  ;;  %6667 = vrot.lane.b32.xlu0 %v6615_v62, %s7739_s22 }
 0xb38   :  { %v6006_v56 = vpop.permute.xlu1 %6005 }
 0xb39   :  { %v6032_v49 = vsel %vm966_vm4, %v6004_v13, %v6006_v56  ;;  %v6033_v46 = vsel %vm966_vm4, %v6006_v56, %v6008_v54  ;;  %v6161_v2 = vpop.permute.xlu0 %6160  ;;  %v6522_v17 = vpop.permute.xlu2 %6521  ;;  %v6130_v56 = vld [vmem:[#allocation4 + $0x618] sm:$0xff] }
 0xb3a   :  { %6082 = vst [vmem:[#allocation3 + $0x568] sm:$0xff] %v6032_v49  ;;  %v6260_v22 = vmul.f32 %v6161_v2, %v9417_v38  ;;  %v6131_v49 = vld [vmem:[#allocation4 + $0x620] sm:$0xff] }
 0xb3b   :  { %6083 = vst [vmem:[#allocation3 + $0x570] sm:$0xff] %v6033_v46 }
 0xb3c   :  { %6312 = vrot.lane.b32.xlu2 %v6260_v22, %s7741_s23 }
 0xb40   :  { %v6163_v20 = vpop.permute.xlu1 %6162 }
 0xb41   :  { %v6210_v51 = vsel %vm764_vm3, %v6161_v2, %v6163_v20  ;;  %v10291_v15 = vpop.permute.xlu0 %6166  ;;  %v10294_v4 = vpop.permute.xlu2 %6170  ;;  %v6211_v59 = vsel %vm764_vm3, %v6163_v20, %v6165_v6  ;;  %v6486_v20 = vld [vmem:[#allocation4 + $0x6e8] sm:$0xff] }
 0xb42   :  { %v6261_v53 = vmul.f32 %v6210_v51, %v9407_v1  ;;  %v6212_v0 = vsel %vm764_vm3, %v6165_v6, %v10291_v15  ;;  %v6262_v2 = vmul.f32 %v6211_v59, %v9422_v12  ;;  %v6488_v51 = vld [vmem:[#allocation4 + $0x6f8] sm:$0xff] }
 0xb43   :  { %v6263_v13 = vmul.f32 %v6212_v0, %v9439_v18 }
 0xb44   :  { %6314 = vrot.lane.b32.xlu0 %v6261_v53, %s7741_s23  ;;  %6553 = vrot.lane.b32.xlu2 %v6484_v16, %s7740_s0 }
 0xb48   :  { %v10298_v47 = vpop.permute.xlu1 %6168 }
 0xb49   :  { %v6518_v38 = vpop.permute.xlu0 %6517  ;;  %v6173_v9 = vpop.permute.xlu2 %6172 }
 0xb4a   :  { %v6565_v54 = vsel %vm407_vm1, %v6516_v33, %v6518_v38  ;;  %v6129_v33 = vld [vmem:[#allocation4 + $0x610] sm:$0xff] }
 0xb4b   :  { %v6616_v7 = vmul.f32 %v6565_v54, %v9407_v1  ;;  %v6487_v54 = vld [vmem:[#allocation4 + $0x6f0] sm:$0xff] }
 0xb4c   :  { %6196 = vrot.lane.b32.xlu0 %v6128_v23, %s7742_s24  ;;  %v6133_v23 = vld [vmem:[#allocation4 + $0x630] sm:$0xff] }
 0xb4d   :  { %6669 = vrot.lane.b32.xlu1 %v6616_v7, %s7739_s22 }
 0xb50   :  { %v6520_v50 = vpop.permute.xlu1 %6519 }
 0xb51   :  { %v6566_v32 = vsel %vm407_vm1, %v6518_v38, %v6520_v50  ;;  %v6567_v14 = vsel %vm407_vm1, %v6520_v50, %v6522_v17  ;;  %v6524_v1 = vpop.permute.xlu0 %6523  ;;  %v10313_v44 = vpop.permute.xlu2 %6533  ;;  %v6132_v38 = vld [vmem:[#allocation4 + $0x628] sm:$0xff]  ;;  %v6214_v50 = vsel %vm764_vm3, %v10298_v47, %v10294_v4 }
 0xb52   :  { %v6617_v43 = vmul.f32 %v6566_v32, %v9422_v12  ;;  %v6618_v40 = vmul.f32 %v6567_v14, %v9439_v18  ;;  %v6568_v18 = vsel %vm407_vm1, %v6522_v17, %v6524_v1 }
 0xb53   :  { %v6619_v16 = vmul.f32 %v6568_v18, %v9431_v48 }
 0xb54   :  { %6671 = vrot.lane.b32.xlu2 %v6617_v43, %s7739_s22  ;;  %6673 = vrot.lane.b32.xlu0 %v6618_v40, %s7739_s22  ;;  %v6265_v40 = vmul.f32 %v6214_v50, %v9446_v41 }
 0xb55   :  { %6551 = vrot.lane.b32.xlu1 %v6483_v3, %s7740_s0 }
 0xb58   :  { %v6526_v22 = vpop.permute.xlu1 %6525 }
 0xb59   :  { %v6528_v62 = vpop.permute.xlu0 %6527  ;;  %v10320_v46 = vpop.permute.xlu2 %6535  ;;  %v6569_v14 = vsel %vm407_vm1, %v6524_v1, %v6526_v22  ;;  %v6213_v1 = vsel %vm764_vm3, %v10291_v15, %v10298_v47  ;;  %v6134_v47 = vld [vmem:[#allocation4 + $0x638] sm:$0xff] }
 0xb5a   :  { %v6570_v32 = vsel %vm407_vm1, %v6526_v22, %v6528_v62  ;;  %v6620_v0 = vmul.f32 %v6569_v14, %v9446_v41 }
 0xb5b   :  { %v6621_v3 = vmul.f32 %v6570_v32, %v9454_v63 }
 0xb5c   :  { %6318 = vrot.lane.b32.xlu2 %v6263_v13, %s7741_s23  ;;  %6555 = vrot.lane.b32.xlu0 %v6485_v8, %s7740_s0  ;;  %v6215_v13 = vsel %vm764_vm3, %v10294_v4, %v6173_v9 }
 0xb5d   :  { %6198 = vrot.lane.b32.xlu1 %v6129_v33, %s7742_s24  ;;  %v6266_v41 = vmul.f32 %v6215_v13, %v9454_v63  ;;  %v7020_v13 = vld [vmem:[#allocation3 + $0x708] sm:$0xff] }
 0xb5e   :  { %7054 = vmatpush.msra.mxu1 %v7020_v13 }
 0xb60   :  { %v6530_v12 = vpop.permute.xlu1 %6529 }
 0xb61   :  { %v6175_v6 = vpop.permute.xlu0 %6174  ;;  %v10328_v53 = vpop.permute.xlu2 %6182 }
 0xb62   :  { %v6216_v33 = vsel %vm764_vm3, %v6173_v9, %v6175_v6  ;;  %v6571_v9 = vsel %vm407_vm1, %v6528_v62, %v6530_v12 }
 0xb63   :  { %v6622_v18 = vmul.f32 %v6571_v9, %v9444_v55 }
 0xb64   :  { %6200 = vrot.lane.b32.xlu2 %v6130_v56, %s7742_s24  ;;  %6202 = vrot.lane.b32.xlu0 %v6131_v49, %s7742_s24  ;;  %v6267_v56 = vmul.f32 %v6216_v33, %v9444_v55  ;;  %v6574_v33 = vsel %vm407_vm1, %v10313_v44, %v10320_v46 }
 0xb65   :  { %6316 = vrot.lane.b32.xlu1 %v6262_v2, %s7741_s23  ;;  %v6264_v2 = vmul.f32 %v6213_v1, %v9431_v48 }
 0xb68   :  { %v6532_v43 = vpop.permute.xlu1 %6531 }
 0xb69   :  { %v6177_v7 = vpop.permute.xlu0 %6176  ;;  %v10336_v17 = vpop.permute.xlu2 %6184  ;;  %v6572_v4 = vsel %vm407_vm1, %v6530_v12, %v6532_v43 }
 0xb6a   :  { %v6623_v22 = vmul.f32 %v6572_v4, %v9458_v45  ;;  %v6217_v48 = vsel %vm764_vm3, %v6175_v6, %v6177_v7 }
 0xb6b   :  { %v6268_v62 = vmul.f32 %v6217_v48, %v9458_v45  ;;  %v6573_v45 = vsel %vm407_vm1, %v6532_v43, %v10313_v44  ;;  %v7021_v43 = vld [vmem:[#allocation3 + $0x710] sm:$0xff] }
 0xb6c   :  { %6561 = vrot.lane.b32.xlu2 %v6488_v51, %s7740_s0  ;;  %6675 = vrot.lane.b32.xlu0 %v6619_v16, %s7739_s22  ;;  %v6624_v32 = vmul.f32 %v6573_v45, %v9472_v34 }
 0xb6d   :  { %6557 = vrot.lane.b32.xlu1 %v6486_v20, %s7740_s0  ;;  %7074 = vmatpush.msra.mxu2 %v7021_v43  ;;  %v6920_v43 = vld [vmem:[#allocation3 + $0x3e8] sm:$0xff] }
 0xb70   :  { %v6179_v49 = vpop.permute.xlu1 %6178 }
 0xb71   :  { %v6538_v8 = vpop.permute.xlu0 %6537  ;;  %v10355_v59 = vpop.permute.xlu2 %6545  ;;  %v6218_v16 = vsel %vm764_vm3, %v6177_v7, %v6179_v49 }
 0xb72   :  { %v6269_v20 = vmul.f32 %v6218_v16, %v9472_v34  ;;  %v6575_v6 = vsel %vm407_vm1, %v10320_v46, %v6538_v8 }
 0xb73   :  { %v6626_v7 = vmul.f32 %v6575_v6, %v9475_v30 }
 0xb74   :  { %6204 = vrot.lane.b32.xlu2 %v6132_v38, %s7742_s24  ;;  %6206 = vrot.lane.b32.xlu0 %v6133_v23, %s7742_s24  ;;  %v6489_v23 = vld [vmem:[#allocation4 + $0x700] sm:$0xff] }
 0xb75   :  { %6559 = vrot.lane.b32.xlu1 %v6487_v54, %s7740_s0 }
 0xb78   :  { %v6181_v51 = vpop.permute.xlu1 %6180 }
 0xb79   :  { %v6540_v15 = vpop.permute.xlu0 %6539  ;;  %v10366_v63 = vpop.permute.xlu2 %6547  ;;  %v6219_v54 = vsel %vm764_vm3, %v6179_v49, %v6181_v51  ;;  %v6220_v4 = vsel %vm764_vm3, %v6181_v51, %v10328_v53 }
 0xb7a   :  { %v6270_v50 = vmul.f32 %v6219_v54, %v9468_v27 }
 0xb7c   :  { %6679 = vrot.lane.b32.xlu0 %v6621_v3, %s7739_s22  ;;  %6322 = vrot.lane.b32.xlu2 %v6265_v40, %s7741_s23  ;;  %v6576_v3 = vsel %vm407_vm1, %v6538_v8, %v6540_v15 }
 0xb7d   :  { %6677 = vrot.lane.b32.xlu1 %v6620_v0, %s7739_s22  ;;  %v6627_v34 = vmul.f32 %v6576_v3, %v9495_v24 }
 0xb80   :  { %v6542_v55 = vpop.permute.xlu1 %6541 }
 0xb81   :  { %v6187_v12 = vpop.permute.xlu0 %6186  ;;  %v10376_v38 = vpop.permute.xlu2 %6194  ;;  %v6577_v0 = vsel %vm407_vm1, %v6540_v15, %v6542_v55 }
 0xb82   :  { %v6222_v44 = vsel %vm764_vm3, %v10336_v17, %v6187_v12 }
 0xb84   :  { %6326 = vrot.lane.b32.xlu0 %v6267_v56, %s7741_s23  ;;  %6324 = vrot.lane.b32.xlu2 %v6266_v41, %s7741_s23  ;;  %v6628_v41 = vmul.f32 %v6577_v0, %v9484_v29  ;;  %v6625_v56 = vmul.f32 %v6574_v33, %v9468_v27  ;;  %v6273_v27 = vmul.f32 %v6222_v44, %v9484_v29  ;;  %v6870_v44 = vld [vmem:[#allocation3 + $0x258] sm:$0xff] }
 0xb85   :  { %6320 = vrot.lane.b32.xlu1 %v6264_v2, %s7741_s23  ;;  %v7022_v2 = vld [vmem:[#allocation3 + $0x718] sm:$0xff]  ;;  %v6221_v29 = vsel %vm764_vm3, %v10328_v53, %v10336_v17 }
 0xb86   :  { %7094 = vmatpush.msra.mxu3 %v7022_v2 }
 0xb88   :  { %v6544_v1 = vpop.permute.xlu1 %6543 }
 0xb89   :  { %v6189_v14 = vpop.permute.xlu0 %6188  ;;  %v6578_v46 = vsel %vm407_vm1, %v6542_v55, %v6544_v1 }
 0xb8a   :  { %v6629_v9 = vmul.f32 %v6578_v46, %v9501_v39  ;;  %v6223_v48 = vsel %vm764_vm3, %v6187_v12, %v6189_v14 }
 0xb8b   :  { %v6274_v16 = vmul.f32 %v6223_v48, %v9501_v39  ;;  %v7024_v48 = vld [vmem:[#allocation3 + $0x728] sm:$0xff] }
 0xb8c   :  { %6683 = vrot.lane.b32.xlu0 %v6623_v22, %s7739_s22  ;;  %6208 = vrot.lane.b32.xlu2 %v6134_v47, %s7742_s24  ;;  %v6271_v47 = vmul.f32 %v6220_v4, %v9475_v30 }
 0xb8d   :  { %6681 = vrot.lane.b32.xlu1 %v6622_v18, %s7739_s22 }
 0xb90   :  { %v6191_v15 = vpop.permute.xlu1 %6190 }
 0xb91   :  { %v6550_v49 = vpop.permute.xlu0 %6549  ;;  %v6224_v51 = vsel %vm764_vm3, %v6189_v14, %v6191_v15  ;;  %v6580_v14 = vsel %vm407_vm1, %v10355_v59, %v10366_v63 }
 0xb92   :  { %v6275_v30 = vmul.f32 %v6224_v51, %v9521_v58  ;;  %v6581_v53 = vsel %vm407_vm1, %v10366_v63, %v6550_v49 }
 0xb93   :  { %v6632_v55 = vmul.f32 %v6581_v53, %v9516_v35  ;;  %v6921_v53 = vld [vmem:[#allocation3 + $0x3f0] sm:$0xff] }
 0xb94   :  { %6330 = vrot.lane.b32.xlu0 %v6269_v20, %s7741_s23  ;;  %6328 = vrot.lane.b32.xlu2 %v6268_v62, %s7741_s23  ;;  %v6272_v62 = vmul.f32 %v6221_v29, %v9495_v24  ;;  %v6579_v24 = vsel %vm407_vm1, %v6544_v1, %v10355_v59 }
 0xb95   :  { %6563 = vrot.lane.b32.xlu1 %v6489_v23, %s7740_s0  ;;  %v6630_v54 = vmul.f32 %v6579_v24, %v9521_v58  ;;  %v6631_v58 = vmul.f32 %v6580_v14, %v9508_v57  ;;  %v6846_v14 = vld [vmem:[#allocation3 + $0x198] sm:$0xff] }
 0xb96   :  { %v6313_v40 = vpop.permute.xlu2 %6312 }
 0xb98   :  { %v6193_v20 = vpop.permute.xlu1 %6192 }
 0xb99   :  { %v6225_v39 = vsel %vm764_vm3, %v6191_v15, %v6193_v20  ;;  %v6226_v33 = vsel %vm764_vm3, %v6193_v20, %v10376_v38 }
 0xb9a   :  { %v6276_v6 = vmul.f32 %v6225_v39, %v9508_v57  ;;  %v6922_v39 = vld [vmem:[#allocation3 + $0x3f8] sm:$0xff] }
 0xb9c   :  { %6332 = vrot.lane.b32.xlu0 %v6270_v50, %s7741_s23  ;;  %6689 = vrot.lane.b32.xlu2 %v6626_v7, %s7739_s22 }
 0xb9d   :  { %6685 = vrot.lane.b32.xlu1 %v6624_v32, %s7739_s22  ;;  %v7023_v32 = vld [vmem:[#allocation3 + $0x720] sm:$0xff] }
 0xb9e   :  { %v10402_v8 = vpop.permute.xlu2 %6553  ;;  %7114 = vmatpush.msrb.mxu0 %v7023_v32  ;;  %v6872_v32 = vld [vmem:[#allocation3 + $0x268] sm:$0xff] }
 0xba4   :  { %6693 = vrot.lane.b32.xlu0 %v6628_v41, %s7739_s22  ;;  %6691 = vrot.lane.b32.xlu2 %v6627_v34, %s7739_s22  ;;  %v6895_v34 = vld [vmem:[#allocation3 + $0x320] sm:$0xff] }
 0xba5   :  { %6687 = vrot.lane.b32.xlu1 %v6625_v56, %s7739_s22  ;;  %v6277_v56 = vmul.f32 %v6226_v33, %v9516_v35  ;;  %v7026_v33 = vld [vmem:[#allocation3 + $0x738] sm:$0xff] }
 0xba6   :  { %v6668_v22 = vpop.permute.xlu0 %6667 }
 0xbac   :  { %6695 = vrot.lane.b32.xlu0 %v6629_v9, %s7739_s22  ;;  %6338 = vrot.lane.b32.xlu2 %v6273_v27, %s7741_s23  ;;  %v6820_v9 = vld [vmem:[#allocation3 + $0xc8] sm:$0xff] }
 0xbad   :  { %6334 = vrot.lane.b32.xlu1 %v6271_v47, %s7741_s23 }
 0xbae   :  { %v6672_v18 = vpop.permute.xlu2 %6671 }
 0xbb4   :  { %6342 = vrot.lane.b32.xlu0 %v6275_v30, %s7741_s23  ;;  %6340 = vrot.lane.b32.xlu2 %v6274_v16, %s7741_s23 }
 0xbb5   :  { %6336 = vrot.lane.b32.xlu1 %v6272_v62, %s7741_s23 }
 0xbb6   :  { %v10427_v12 = vpop.permute.xlu0 %6314  ;;  %v10429_v23 = vpop.permute.xlu2 %6318 }
 0xbb7   :  { %v6364_v17 = vsel %vm609_vm2, %v6313_v40, %v10427_v12 }
 0xbbc   :  { %6344 = vrot.lane.b32.xlu0 %v6276_v6, %s7741_s23  ;;  %6701 = vrot.lane.b32.xlu2 %v6632_v55, %s7739_s22  ;;  %v6896_v6 = vld [vmem:[#allocation3 + $0x328] sm:$0xff] }
 0xbbd   :  { %6697 = vrot.lane.b32.xlu1 %v6630_v54, %s7739_s22 }
 0xbbe   :  { %v6197_v45 = vpop.permute.xlu0 %6196  ;;  %v6201_v7 = vpop.permute.xlu2 %6200 }
 0xbbf   :  { %v6670_v50 = vpop.permute.xlu1 %6669  ;;  %v6227_v35 = vsel %vm764_vm3, %v10376_v38, %v6197_v45 }
 0xbc0   :  { %v6719_v40 = vsel %vm252_vm0, %v6668_v22, %v6670_v50  ;;  %v6720_v3 = vsel %vm252_vm0, %v6670_v50, %v6672_v18  ;;  %v6278_v51 = vmul.f32 %v6227_v35, %v9539_v52  ;;  %v6871_v50 = vld [vmem:[#allocation3 + $0x260] sm:$0xff] }
 0xbc1   :  { %7055 = vmatpush.msra.mxu1 %v6719_v40  ;;  %7075 = vmatpush.msra.mxu2 %v6720_v3  ;;  %v6847_v40 = vld [vmem:[#allocation3 + $0x1a0] sm:$0xff]  ;;  %v6821_v3 = vld [vmem:[#allocation3 + $0xd0] sm:$0xff] }
 0xbc3   :  { %7056 = vmatpush.msra.mxu1 %v6364_v17 }
 0xbc5   :  { %6699 = vrot.lane.b32.xlu1 %v6631_v58, %s7739_s22  ;;  %7057 = vmatpush.msra.mxu1 %v10223_v28  ;;  %v6822_v58 = vld [vmem:[#allocation3 + $0xd8] sm:$0xff] }
 0xbc6   :  { %v10452_v0 = vpop.permute.xlu0 %6673  ;;  %v10454_v13 = vpop.permute.xlu2 %6561 }
 0xbc7   :  { %v6552_v59 = vpop.permute.xlu1 %6551  ;;  %v6721_v63 = vsel %vm252_vm0, %v6672_v18, %v10452_v0  ;;  %7058 = vmatpush.msra.mxu1 %v6920_v43  ;;  %v6795_v18 = vld [vmem:[#allocation3] sm:$0xff] }
 0xbc8   :  { %v6582_v57 = vsel %vm407_vm1, %v6550_v49, %v6552_v59  ;;  %v6583_v1 = vsel %vm407_vm1, %v6552_v59, %v10402_v8  ;;  %7095 = vmatpush.msra.mxu3 %v6721_v63  ;;  %v6845_v49 = vld [vmem:[#allocation3 + $0x190] sm:$0xff]  ;;  %v6796_v63 = vld [vmem:[#allocation3 + $0x8] sm:$0xff] }
 0xbc9   :  { %v6633_v28 = vmul.f32 %v6582_v57, %v9539_v52  ;;  %v6634_v41 = vmul.f32 %v6583_v1, %v9531_v37  ;;  %7059 = vmatpush.msra.mxu1 %v6895_v34  ;;  %v6797_v34 = vld [vmem:[#allocation3 + $0x10] sm:$0xff] }
 0xbcb   :  { %6703 = vrot.lane.b32.xlu2 %v6633_v28, %s7739_s22  ;;  %6705 = vrot.lane.b32.xlu0 %v6634_v41, %s7739_s22 }
 0xbcc   :  { %7060 = vmatpush.msra.mxu1 %v6870_v44 }
 0xbcd   :  { %6346 = vrot.lane.b32.xlu1 %v6277_v56, %s7741_s23 }
 0xbce   :  { %v6556_v46 = vpop.permute.xlu0 %6555  ;;  %v10469_v2 = vpop.permute.xlu2 %6204  ;;  %7061 = vmatpush.msra.mxu1 %v6845_v49 }
 0xbcf   :  { %v6199_v4 = vpop.permute.xlu1 %6198  ;;  %v6584_v27 = vsel %vm407_vm1, %v10402_v8, %v6556_v46 }
 0xbd0   :  { %v6228_v15 = vsel %vm764_vm3, %v6197_v45, %v6199_v4  ;;  %v6635_v47 = vmul.f32 %v6584_v27, %v9544_v26  ;;  %7062 = vmatpush.msra.mxu1 %v6820_v9  ;;  %v6229_v38 = vsel %vm764_vm3, %v6199_v4, %v6201_v7  ;;  %v10528_v27 = vld [vmem:[%s10798_s3] sm:$0xff] }
 0xbd1   :  { %v6279_v22 = vmul.f32 %v6228_v15, %v9531_v37  ;;  %v6280_v20 = vmul.f32 %v6229_v38, %v9544_v26  ;;  %v6925_v15 = vld [vmem:[#allocation3 + $0x410] sm:$0xff]  ;;  %v6900_v38 = vld [vmem:[#allocation3 + $0x348] sm:$0xff] }
 0xbd2   :  { %7063 = vmatpush.msra.mxu1 %v6795_v18 }
 0xbd3   :  { %6350 = vrot.lane.b32.xlu2 %v6279_v22, %s7741_s23  ;;  %6707 = vrot.lane.b32.xlu0 %v6635_v47, %s7739_s22 }
 0xbd4   :  { %7134 = vmatpush.msrb.mxu1 %v7024_v48 }
 0xbd5   :  { %6348 = vrot.lane.b32.xlu1 %v6278_v51, %s7741_s23  ;;  %7603 = vmatmul.msk.f32.vlgmr.msra.gmra.mxu1 %vm3325_vm8, %v10528_v27 }
 0xbd6   :  { %v6203_v8 = vpop.permute.xlu0 %6202  ;;  %v10483_v29 = vpop.permute.xlu2 %6322 }
 0xbd7   :  { %v6317_v16 = vpop.permute.xlu1 %6316  ;;  %v6230_v37 = vsel %vm764_vm3, %v6201_v7, %v6203_v8 }
 0xbd8   :  { %v6365_v30 = vsel %vm609_vm2, %v10427_v12, %v6317_v16  ;;  %v6366_v52 = vsel %vm609_vm2, %v6317_v16, %v10429_v23  ;;  %v6281_v62 = vmul.f32 %v6230_v37, %v9552_v42  ;;  %v6231_v12 = vsel %vm764_vm3, %v6203_v8, %v10469_v2  ;;  %v6875_v8 = vld [vmem:[#allocation3 + $0x280] sm:$0xff]  ;;  %v6850_v16 = vld [vmem:[#allocation3 + $0x1b8] sm:$0xff] }
 0xbd9   :  { %7076 = vmatpush.msra.mxu2 %v6365_v30  ;;  %7096 = vmatpush.msra.mxu3 %v6366_v52  ;;  %v6282_v45 = vmul.f32 %v6231_v12, %v9562_v10  ;;  %v6898_v52 = vld [vmem:[#allocation3 + $0x338] sm:$0xff]  ;;  %v6873_v12 = vld [vmem:[#allocation3 + $0x270] sm:$0xff] }
 0xbdb   :  { %6354 = vrot.lane.b32.xlu0 %v6281_v62, %s7741_s23  ;;  %6352 = vrot.lane.b32.xlu2 %v6280_v20, %s7741_s23  ;;  %v6825_v20 = vld [vmem:[#allocation3 + $0xf0] sm:$0xff] }
 0xbdc   :  { %7077 = vmatpush.msra.mxu2 %v10226_v21  ;;  %7097 = vmatpush.msra.mxu3 %v10232_v61  ;;  %v6897_v61 = vld [vmem:[#allocation3 + $0x330] sm:$0xff] }
 0xbde   :  { %v6676_v17 = vpop.permute.xlu0 %6675  ;;  %v10498_v24 = vpop.permute.xlu2 %6324  ;;  %7078 = vmatpush.msra.mxu2 %v6921_v53  ;;  %7098 = vmatpush.msra.mxu3 %v6922_v39 }
 0xbdf   :  { %v6558_v26 = vpop.permute.xlu1 %6557  ;;  %v6722_v55 = vsel %vm252_vm0, %v10452_v0, %v6676_v17  ;;  %v6369_v21 = vsel %vm609_vm2, %v10483_v29, %v10498_v24 }
 0xbe0   :  { %v6585_v54 = vsel %vm407_vm1, %v6556_v46, %v6558_v26  ;;  %7079 = vmatpush.msra.mxu2 %v6896_v6  ;;  %7099 = vmatpush.msra.mxu3 %v6897_v61  ;;  %v6823_v6 = vld [vmem:[#allocation3 + $0xe0] sm:$0xff]  ;;  %v6824_v61 = vld [vmem:[#allocation3 + $0xe8] sm:$0xff] }
 0xbe1   :  { %v6636_v7 = vmul.f32 %v6585_v54, %v9552_v42  ;;  %7115 = vmatpush.msrb.mxu0 %v6722_v55  ;;  %v7025_v42 = vld [vmem:[#allocation3 + $0x730] sm:$0xff]  ;;  %v6848_v55 = vld [vmem:[#allocation3 + $0x1a8] sm:$0xff]  ;;  %v7027_v54 = vld [vmem:[#allocation3 + $0x740] sm:$0xff] }
 0xbe2   :  { %7080 = vmatpush.msra.mxu2 %v6871_v50  ;;  %7100 = vmatpush.msra.mxu3 %v6872_v32  ;;  %v6798_v50 = vld [vmem:[#allocation3 + $0x18] sm:$0xff] }
 0xbe3   :  { %6709 = vrot.lane.b32.xlu1 %v6636_v7, %s7739_s22  ;;  %6356 = vrot.lane.b32.xlu0 %v6282_v45, %s7741_s23  ;;  %v6926_v32 = vld [vmem:[#allocation3 + $0x418] sm:$0xff] }
 0xbe4   :  { %7081 = vmatpush.msra.mxu2 %v6846_v14  ;;  %7101 = vmatpush.msra.mxu3 %v6847_v40  ;;  %v7028_v14 = vld [vmem:[#allocation3 + $0x748] sm:$0xff] }
 0xbe6   :  { %v6207_v0 = vpop.permute.xlu0 %6206  ;;  %v10510_v43 = vpop.permute.xlu2 %6208  ;;  %7082 = vmatpush.msra.mxu2 %v6821_v3  ;;  %7102 = vmatpush.msra.mxu3 %v6822_v58  ;;  %v6799_v58 = vld [vmem:[#allocation3 + $0x20] sm:$0xff] }
 0xbe7   :  { %v6560_v59 = vpop.permute.xlu1 %6559  ;;  %v6232_v56 = vsel %vm764_vm3, %v10469_v2, %v6207_v0  ;;  %v6233_v2 = vsel %vm764_vm3, %v6207_v0, %v10510_v43 }
 0xbe8   :  { %v6586_v57 = vsel %vm407_vm1, %v6558_v26, %v6560_v59  ;;  %v6587_v1 = vsel %vm407_vm1, %v6560_v59, %v10454_v13  ;;  %7083 = vmatpush.msra.mxu2 %v6796_v63  ;;  %7103 = vmatpush.msra.mxu3 %v6797_v34  ;;  %v6283_v9 = vmul.f32 %v6232_v56, %v9566_v19  ;;  %v7029_v26 = vld [vmem:[#allocation3 + $0x750] sm:$0xff]  ;;  %v6876_v63 = vld [vmem:[#allocation3 + $0x288] sm:$0xff]  ;;  %v7030_v56 = vld [vmem:[#allocation3 + $0x758] sm:$0xff] }
 0xbe9   :  { %v6637_v28 = vmul.f32 %v6586_v57, %v9562_v10  ;;  %v6638_v41 = vmul.f32 %v6587_v1, %v9566_v19  ;;  %7604 = vmatmul.msk.f32.vlgmr.msra.gmra.mxu2 %vm3325_vm8, %v10528_v27  ;;  %7605 = vmatmul.msk.f32.vlgmr.msra.gmra.mxu3 %vm3325_vm8, %v10528_v27  ;;  %v6284_v51 = vmul.f32 %v6233_v2, %v9576_v5  ;;  %v6826_v57 = vld [vmem:[#allocation3 + $0xf8] sm:$0xff] }
 0xbea   :  { %7154 = vmatpush.msrb.mxu2 %v7025_v42  ;;  %7174 = vmatpush.msrb.mxu3 %v7026_v33  ;;  %v6901_v42 = vld [vmem:[#allocation3 + $0x350] sm:$0xff]  ;;  %v6851_v33 = vld [vmem:[#allocation3 + $0x1c0] sm:$0xff] }
 0xbeb   :  { %6711 = vrot.lane.b32.xlu1 %v6637_v28, %s7739_s22  ;;  %6713 = vrot.lane.b32.xlu2 %v6638_v41, %s7739_s22  ;;  %v6927_v41 = vld [vmem:[#allocation3 + $0x420] sm:$0xff] }
 0xbee   :  { %v6680_v44 = vpop.permute.xlu0 %6679  ;;  %v10521_v49 = vpop.permute.xlu2 %6328 }
 0xbef   :  { %v6678_v46 = vpop.permute.xlu1 %6677 }
 0xbf0   :  { %v6723_v4 = vsel %vm252_vm0, %v6676_v17, %v6678_v46  ;;  %v6724_v10 = vsel %vm252_vm0, %v6678_v46, %v6680_v44  ;;  %v6874_v17 = vld [vmem:[#allocation3 + $0x278] sm:$0xff] }
 0xbf1   :  { %7135 = vmatpush.msrb.mxu1 %v6723_v4  ;;  %7155 = vmatpush.msrb.mxu2 %v6724_v10  ;;  %v6902_v46 = vld [vmem:[#allocation3 + $0x358] sm:$0xff]  ;;  %v6877_v4 = vld [vmem:[#allocation3 + $0x290] sm:$0xff] }
 0xbf2   :  { %v6953_v10 = vld [vmem:[#allocation3 + $0x4f0] sm:$0xff] }
 0xbf3   :  { %6358 = vrot.lane.b32.xlu1 %v6283_v9, %s7741_s23  ;;  %7156 = vmatpush.msrb.mxu2 %v6369_v21  ;;  %v6849_v21 = vld [vmem:[#allocation3 + $0x1b0] sm:$0xff]  ;;  %v6852_v9 = vld [vmem:[#allocation3 + $0x1c8] sm:$0xff] }
 0xbf5   :  { %7157 = vmatpush.msrb.mxu2 %v10247_v11 }
 0xbf6   :  { %v6327_v19 = vpop.permute.xlu0 %6326  ;;  %v10541_v35 = vpop.permute.xlu2 %6689 }
 0xbf7   :  { %v6321_v47 = vpop.permute.xlu1 %6320  ;;  %v6370_v22 = vsel %vm609_vm2, %v10498_v24, %v6327_v19  ;;  %7158 = vmatpush.msrb.mxu2 %v6925_v15  ;;  %v10551_v11 = vsel %vm609_vm2, %v6327_v19, %v10521_v49  ;;  %v6800_v24 = vld [vmem:[#allocation3 + $0x28] sm:$0xff] }
 0xbf8   :  { %v6367_v18 = vsel %vm609_vm2, %v10429_v23, %v6321_v47  ;;  %v6368_v48 = vsel %vm609_vm2, %v6321_v47, %v10483_v29  ;;  %v6923_v23 = vld [vmem:[#allocation3 + $0x400] sm:$0xff]  ;;  %v6924_v29 = vld [vmem:[#allocation3 + $0x408] sm:$0xff] }
 0xbf9   :  { %7116 = vmatpush.msrb.mxu0 %v6367_v18  ;;  %7136 = vmatpush.msrb.mxu1 %v6368_v48  ;;  %v6827_v47 = vld [vmem:[#allocation3 + $0x100] sm:$0xff] }
 0xbfa   :  { %7159 = vmatpush.msrb.mxu2 %v6900_v38  ;;  %v6903_v48 = vld [vmem:[#allocation3 + $0x360] sm:$0xff]  ;;  %v6878_v38 = vld [vmem:[#allocation3 + $0x298] sm:$0xff] }
 0xbfb   :  { %6360 = vrot.lane.b32.xlu1 %v6284_v51, %s7741_s23  ;;  %7117 = vmatpush.msrb.mxu0 %v10235_v60  ;;  %v7031_v51 = vld [vmem:[#allocation3 + $0x760] sm:$0xff] }
 0xbfc   :  { %7137 = vmatpush.msrb.mxu1 %v10239_v31  ;;  %7160 = vmatpush.msrb.mxu2 %v6875_v8  ;;  %v6899_v31 = vld [vmem:[#allocation3 + $0x340] sm:$0xff]  ;;  %v6853_v8 = vld [vmem:[#allocation3 + $0x1d0] sm:$0xff] }
 0xbfd   :  { %7118 = vmatpush.msrb.mxu0 %v6923_v23  ;;  %v6954_v23 = vld [vmem:[#allocation3 + $0x4f8] sm:$0xff] }
 0xbfe   :  { %v10557_v37 = vpop.permute.xlu0 %6683  ;;  %v10559_v30 = vpop.permute.xlu2 %6691  ;;  %7138 = vmatpush.msrb.mxu1 %v6924_v29  ;;  %7161 = vmatpush.msrb.mxu2 %v6850_v16 }
 0xbff   :  { %v6682_v62 = vpop.permute.xlu1 %6681  ;;  %v10564_v60 = vsel %vm252_vm0, %v10541_v35, %v10559_v30  ;;  %7119 = vmatpush.msrb.mxu0 %v6898_v52 }
 0xc00   :  { %v6725_v53 = vsel %vm252_vm0, %v6680_v44, %v6682_v62  ;;  %v6726_v39 = vsel %vm252_vm0, %v6682_v62, %v10557_v37  ;;  %7139 = vmatpush.msrb.mxu1 %v6899_v31  ;;  %7162 = vmatpush.msrb.mxu2 %v6825_v20  ;;  %v7032_v62 = vld [vmem:[#allocation3 + $0x768] sm:$0xff]  ;;  %v6803_v20 = vld [vmem:[#allocation3 + $0x40] sm:$0xff] }
 0xc01   :  { %7120 = vmatpush.msrb.mxu0 %v6873_v12  ;;  %7175 = vmatpush.msrb.mxu3 %v6725_v53  ;;  %v6904_v53 = vld [vmem:[#allocation3 + $0x368] sm:$0xff]  ;;  %v6854_v12 = vld [vmem:[#allocation3 + $0x1d8] sm:$0xff] }
 0xc02   :  { %7140 = vmatpush.msrb.mxu1 %v6874_v17  ;;  %7163 = vmatpush.msrb.mxu2 %v6800_v24  ;;  %v6930_v24 = vld [vmem:[#allocation3 + $0x438] sm:$0xff] }
 0xc03   :  { %7121 = vmatpush.msrb.mxu0 %v6848_v55  ;;  %7176 = vmatpush.msrb.mxu3 %v6370_v22 }
 0xc04   :  { %7141 = vmatpush.msrb.mxu1 %v6849_v21  ;;  %7234 = vmatpush.msra.mxu2 %v7029_v26  ;;  %v6829_v21 = vld [vmem:[#allocation3 + $0x110] sm:$0xff] }
 0xc05   :  { %7122 = vmatpush.msrb.mxu0 %v6823_v6  ;;  %7177 = vmatpush.msrb.mxu3 %v10250_v25 }
 0xc06   :  { %v6331_v45 = vpop.permute.xlu0 %6330  ;;  %v10570_v7 = vpop.permute.xlu2 %6338  ;;  %7142 = vmatpush.msrb.mxu1 %v6824_v61  ;;  %7608 = vmatmul.msk.f32.vlgmr.msrb.gmra.mxu2 %vm3325_vm8, %v10528_v27 }
 0xc07   :  { %v6564_v40 = vpop.permute.xlu1 %6563  ;;  %v6372_v3 = vsel %vm609_vm2, %v10521_v49, %v6331_v45  ;;  %7123 = vmatpush.msrb.mxu0 %v6798_v50  ;;  %7178 = vmatpush.msrb.mxu3 %v6926_v32  ;;  %v6801_v49 = vld [vmem:[#allocation3 + $0x30] sm:$0xff]  ;;  %v6804_v32 = vld [vmem:[#allocation3 + $0x48] sm:$0xff] }
 0xc08   :  { %v6588_v25 = vsel %vm407_vm1, %v10454_v13, %v6564_v40  ;;  %v6640_v0 = vmul.f32 0.0, %v6564_v40  ;;  %7143 = vmatpush.msrb.mxu1 %v6799_v58  ;;  %7606 = vmatmul.msk.f32.vlgmr.msrb.gmra.mxu0 %vm3325_vm8, %v10528_v27  ;;  %v6880_v40 = vld [vmem:[#allocation3 + $0x2a8] sm:$0xff]  ;;  %v6855_v58 = vld [vmem:[#allocation3 + $0x1e0] sm:$0xff] }
 0xc09   :  { %7194 = vmatpush.msra.mxu0 %v7027_v54  ;;  %v6639_v59 = vmul.f32 %v6588_v25, %v9576_v5  ;;  %7179 = vmatpush.msrb.mxu3 %v6901_v42  ;;  %v6905_v54 = vld [vmem:[#allocation3 + $0x370] sm:$0xff] }
 0xc0a   :  { %7214 = vmatpush.msra.mxu1 %v7028_v14  ;;  %6717 = vrot.lane.b32.xlu0 %v6640_v0, %s7739_s22  ;;  %v7033_v14 = vld [vmem:[#allocation3 + $0x770] sm:$0xff]  ;;  %v6931_v0 = vld [vmem:[#allocation3 + $0x440] sm:$0xff] }
 0xc0b   :  { %7195 = vmatpush.msra.mxu0 %v6726_v39  ;;  %6715 = vrot.lane.b32.xlu2 %v6639_v59, %s7739_s22  ;;  %v6955_v39 = vld [vmem:[#allocation3 + $0x500] sm:$0xff]  ;;  %v6957_v25 = vld [vmem:[#allocation3 + $0x510] sm:$0xff]  ;;  %v6932_v59 = vld [vmem:[#allocation3 + $0x448] sm:$0xff] }
 0xc0c   :  { %7180 = vmatpush.msrb.mxu3 %v6876_v63  ;;  %7607 = vmatmul.msk.f32.vlgmr.msrb.gmra.mxu1 %vm3325_vm8, %v10528_v27 }
 0xc0d   :  { %7196 = vmatpush.msra.mxu0 %v10551_v11  ;;  %v6802_v11 = vld [vmem:[#allocation3 + $0x38] sm:$0xff] }
 0xc0e   :  { %7181 = vmatpush.msrb.mxu3 %v6851_v33  ;;  %v10586_v5 = vpop.permute.xlu0 %6332  ;;  %v10588_v13 = vpop.permute.xlu2 %6340  ;;  %v6906_v33 = vld [vmem:[#allocation3 + $0x378] sm:$0xff] }
 0xc0f   :  { %7197 = vmatpush.msra.mxu0 %v10254_v36  ;;  %v6373_v1 = vsel %vm609_vm2, %v6331_v45, %v10586_v5  ;;  %v6686_v34 = vpop.permute.xlu1 %6685  ;;  %v10596_v28 = vsel %vm609_vm2, %v10570_v7, %v10588_v13  ;;  %v6285_v36 = vmul.f32 0.0, %v10510_v43  ;;  %v6928_v43 = vld [vmem:[#allocation3 + $0x428] sm:$0xff] }
 0xc10   :  { %7182 = vmatpush.msrb.mxu3 %v6826_v57  ;;  %v6727_v44 = vsel %vm252_vm0, %v10557_v37, %v6686_v34  ;;  %6427 = vst [vmem:[#allocation3 + $0x5e0] sm:$0xff] %v10596_v28  ;;  %v6929_v37 = vld [vmem:[#allocation3 + $0x430] sm:$0xff] }
 0xc11   :  { %7198 = vmatpush.msra.mxu0 %v6927_v41  ;;  %7215 = vmatpush.msra.mxu1 %v6727_v44  ;;  %v6881_v44 = vld [vmem:[#allocation3 + $0x2b0] sm:$0xff] }
 0xc12   :  { %7183 = vmatpush.msrb.mxu3 %v6801_v49  ;;  %v6882_v49 = vld [vmem:[#allocation3 + $0x2b8] sm:$0xff] }
 0xc13   :  { %7199 = vmatpush.msra.mxu0 %v6902_v46  ;;  %6362 = vrot.lane.b32.xlu2 %v6285_v36, %s7741_s23  ;;  %v6933_v36 = vld [vmem:[#allocation3 + $0x450] sm:$0xff] }
 0xc14   :  { %7254 = vmatpush.msra.mxu3 %v7030_v56  ;;  %7216 = vmatpush.msra.mxu1 %v6372_v3  ;;  %v6956_v3 = vld [vmem:[#allocation3 + $0x508] sm:$0xff]  ;;  %v6958_v56 = vld [vmem:[#allocation3 + $0x518] sm:$0xff]  ;;  %v6857_v46 = vld [vmem:[#allocation3 + $0x1f0] sm:$0xff] }
 0xc15   :  { %7200 = vmatpush.msra.mxu0 %v6877_v4  ;;  %7609 = vmatmul.msk.f32.vlgmr.msrb.gmra.mxu3 %vm3325_vm8, %v10528_v27  ;;  %v6908_v4 = vld [vmem:[#allocation3 + $0x388] sm:$0xff] }
 0xc16   :  { %7217 = vmatpush.msra.mxu1 %v6953_v10  ;;  %v6694_v2 = vpop.permute.xlu0 %6693  ;;  %v10610_v29 = vpop.permute.xlu2 %6701 }
 0xc17   :  { %7201 = vmatpush.msra.mxu0 %v6852_v9  ;;  %v6731_v19 = vsel %vm252_vm0, %v10559_v30, %v6694_v2  ;;  %v6688_v15 = vpop.permute.xlu1 %6687  ;;  %v6831_v9 = vld [vmem:[#allocation3 + $0x120] sm:$0xff] }
 0xc18   :  { %7218 = vmatpush.msra.mxu1 %v6928_v43  ;;  %v6728_v22 = vsel %vm252_vm0, %v6686_v34, %v6688_v15  ;;  %v6729_v18 = vsel %vm252_vm0, %v6688_v15, %v10541_v35  ;;  %v6828_v35 = vld [vmem:[#allocation3 + $0x108] sm:$0xff]  ;;  %v6907_v34 = vld [vmem:[#allocation3 + $0x380] sm:$0xff] }
 0xc19   :  { %7202 = vmatpush.msra.mxu0 %v6827_v47  ;;  %7235 = vmatpush.msra.mxu2 %v6728_v22  ;;  %v6959_v15 = vld [vmem:[#allocation3 + $0x520] sm:$0xff]  ;;  %v6806_v47 = vld [vmem:[#allocation3 + $0x58] sm:$0xff] }
 0xc1a   :  { %7219 = vmatpush.msra.mxu1 %v6903_v48  ;;  %7255 = vmatpush.msra.mxu3 %v6729_v18  ;;  %v6807_v18 = vld [vmem:[#allocation3 + $0x60] sm:$0xff] }
 0xc1b   :  { %7203 = vmatpush.msra.mxu0 %v6802_v11  ;;  %7236 = vmatpush.msra.mxu2 %v6373_v1  ;;  %v6805_v1 = vld [vmem:[#allocation3 + $0x50] sm:$0xff]  ;;  %v7035_v48 = vld [vmem:[#allocation3 + $0x780] sm:$0xff]  ;;  %v7036_v11 = vld [vmem:[#allocation3 + $0x788] sm:$0xff] }
 0xc1c   :  { %7220 = vmatpush.msra.mxu1 %v6878_v38  ;;  %7610 = vmatmul.msk.f32.vlgmr.msra.gmra.mxu0 %vm3325_vm8, %v10528_v27 }
 0xc1d   :  { %7274 = vmatpush.msrb.mxu0 %v7031_v51  ;;  %7237 = vmatpush.msra.mxu2 %v6954_v23  ;;  %v6934_v23 = vld [vmem:[#allocation3 + $0x458] sm:$0xff] }
 0xc1e   :  { %7221 = vmatpush.msra.mxu1 %v6853_v8  ;;  %v10612_v16 = vpop.permute.xlu0 %6695  ;;  %v6858_v8 = vld [vmem:[#allocation3 + $0x1f8] sm:$0xff] }
 0xc1f   :  { %7275 = vmatpush.msrb.mxu0 %v10564_v60  ;;  %v6732_v30 = vsel %vm252_vm0, %v6694_v2, %v10612_v16  ;;  %v6335_v52 = vpop.permute.xlu1 %6334  ;;  %7238 = vmatpush.msra.mxu2 %v6929_v37  ;;  %v6879_v60 = vld [vmem:[#allocation3 + $0x2a0] sm:$0xff]  ;;  %v6832_v2 = vld [vmem:[#allocation3 + $0x128] sm:$0xff] }
 0xc20   :  { %7222 = vmatpush.msra.mxu1 %v6828_v35  ;;  %v6374_v31 = vsel %vm609_vm2, %v10586_v5, %v6335_v52  ;;  %v7034_v5 = vld [vmem:[#allocation3 + $0x778] sm:$0xff]  ;;  %v6909_v35 = vld [vmem:[#allocation3 + $0x390] sm:$0xff]  ;;  %v6808_v37 = vld [vmem:[#allocation3 + $0x68] sm:$0xff] }
 0xc21   :  { %7239 = vmatpush.msra.mxu2 %v6904_v53  ;;  %7256 = vmatpush.msra.mxu3 %v6374_v31  ;;  %v6859_v31 = vld [vmem:[#allocation3 + $0x200] sm:$0xff]  ;;  %v6960_v53 = vld [vmem:[#allocation3 + $0x528] sm:$0xff] }
 0xc22   :  { %7223 = vmatpush.msra.mxu1 %v6803_v20 }
 0xc23   :  { %7240 = vmatpush.msra.mxu2 %v6879_v60  ;;  %7611 = vmatmul.msk.f32.vlgmr.msra.gmra.mxu1 %vm3325_vm8, %v10528_v27 }
 0xc24   :  { %7294 = vmatpush.msrb.mxu1 %v7032_v62  ;;  %7257 = vmatpush.msra.mxu3 %v6955_v39  ;;  %v6834_v39 = vld [vmem:[#allocation3 + $0x138] sm:$0xff] }
 0xc25   :  { %v10623_v17 = vpop.permute.xlu2 %6703  ;;  %7241 = vmatpush.msra.mxu2 %v6854_v12  ;;  %v6935_v12 = vld [vmem:[#allocation3 + $0x460] sm:$0xff] }
 0xc26   :  { %7295 = vmatpush.msrb.mxu1 %v6731_v19  ;;  %v10628_v26 = vsel %vm252_vm0, %v10610_v29, %v10623_v17  ;;  %v6343_v55 = vpop.permute.xlu0 %6342  ;;  %7258 = vmatpush.msra.mxu3 %v6930_v24  ;;  %v6883_v19 = vld [vmem:[#allocation3 + $0x2c0] sm:$0xff]  ;;  %v7038_v24 = vld [vmem:[#allocation3 + $0x798] sm:$0xff] }
 0xc27   :  { %v6378_v6 = vsel %vm609_vm2, %v10588_v13, %v6343_v55  ;;  %v6337_v61 = vpop.permute.xlu1 %6336  ;;  %7242 = vmatpush.msra.mxu2 %v6829_v21  ;;  %v6961_v21 = vld [vmem:[#allocation3 + $0x530] sm:$0xff] }
 0xc28   :  { %6428 = vst [vmem:[#allocation3 + $0x5e8] sm:$0xff] %v6378_v6  ;;  %v6375_v45 = vsel %vm609_vm2, %v6335_v52, %v6337_v61  ;;  %v6376_v50 = vsel %vm609_vm2, %v6337_v61, %v10570_v7  ;;  %7259 = vmatpush.msra.mxu3 %v6905_v54  ;;  %v6830_v7 = vld [vmem:[#allocation3 + $0x118] sm:$0xff]  ;;  %v7037_v52 = vld [vmem:[#allocation3 + $0x790] sm:$0xff]  ;;  %v6936_v54 = vld [vmem:[#allocation3 + $0x468] sm:$0xff] }
 0xc29   :  { %7243 = vmatpush.msra.mxu2 %v6804_v32  ;;  %7276 = vmatpush.msrb.mxu0 %v6375_v45  ;;  %6426 = vst [vmem:[#allocation3 + $0x5d8] sm:$0xff] %v6376_v50  ;;  %v6885_v61 = vld [vmem:[#allocation3 + $0x2d0] sm:$0xff]  ;;  %v6911_v32 = vld [vmem:[#allocation3 + $0x3a0] sm:$0xff] }
 0xc2a   :  { %7260 = vmatpush.msra.mxu3 %v6880_v40  ;;  %7296 = vmatpush.msrb.mxu1 %v6376_v50  ;;  %v6860_v50 = vld [vmem:[#allocation3 + $0x208] sm:$0xff] }
 0xc2b   :  { %7314 = vmatpush.msrb.mxu2 %v7033_v14  ;;  %7277 = vmatpush.msrb.mxu0 %v6956_v3  ;;  %v6835_v3 = vld [vmem:[#allocation3 + $0x140] sm:$0xff] }
 0xc2c   :  { %7261 = vmatpush.msra.mxu3 %v6855_v58  ;;  %7297 = vmatpush.msrb.mxu1 %v6957_v25  ;;  %v6886_v58 = vld [vmem:[#allocation3 + $0x2d8] sm:$0xff] }
 0xc2d   :  { %v10635_v42 = vpop.permute.xlu2 %6350  ;;  %7315 = vmatpush.msrb.mxu2 %v6732_v30  ;;  %7278 = vmatpush.msrb.mxu0 %v6931_v0  ;;  %v6884_v30 = vld [vmem:[#allocation3 + $0x2c8] sm:$0xff]  ;;  %v6962_v25 = vld [vmem:[#allocation3 + $0x538] sm:$0xff]  ;;  %v6963_v0 = vld [vmem:[#allocation3 + $0x540] sm:$0xff] }
 0xc2e   :  { %v10637_v63 = vpop.permute.xlu0 %6344  ;;  %7262 = vmatpush.msra.mxu3 %v6830_v7  ;;  %7298 = vmatpush.msrb.mxu1 %v6932_v59  ;;  %v7039_v7 = vld [vmem:[#allocation3 + $0x7a0] sm:$0xff]  ;;  %v6810_v59 = vld [vmem:[#allocation3 + $0x78] sm:$0xff] }
 0xc2f   :  { %v10641_v13 = vsel %vm609_vm2, %v6343_v55, %v10637_v63  ;;  %v6698_v57 = vpop.permute.xlu1 %6697  ;;  %7316 = vmatpush.msrb.mxu2 %v10596_v28  ;;  %7279 = vmatpush.msrb.mxu0 %v6906_v33  ;;  %v6856_v28 = vld [vmem:[#allocation3 + $0x1e8] sm:$0xff]  ;;  %v6910_v55 = vld [vmem:[#allocation3 + $0x398] sm:$0xff] }
 0xc30   :  { %6429 = vst [vmem:[#allocation3 + $0x5f0] sm:$0xff] %v10641_v13  ;;  %v6733_v41 = vsel %vm252_vm0, %v10612_v16, %v6698_v57  ;;  %7263 = vmatpush.msra.mxu3 %v6805_v1  ;;  %7299 = vmatpush.msrb.mxu1 %v6907_v34  ;;  %v6833_v16 = vld [vmem:[#allocation3 + $0x130] sm:$0xff]  ;;  %v6912_v1 = vld [vmem:[#allocation3 + $0x3a8] sm:$0xff]  ;;  %v6811_v34 = vld [vmem:[#allocation3 + $0x80] sm:$0xff] }
 0xc31   :  { %7317 = vmatpush.msrb.mxu2 %v6958_v56  ;;  %7280 = vmatpush.msrb.mxu0 %v6881_v44  ;;  %v7040_v56 = vld [vmem:[#allocation3 + $0x7a8] sm:$0xff]  ;;  %v6887_v44 = vld [vmem:[#allocation3 + $0x2e0] sm:$0xff] }
 0xc32   :  { %7334 = vmatpush.msrb.mxu3 %v7034_v5  ;;  %7300 = vmatpush.msrb.mxu1 %v6882_v49  ;;  %v6836_v5 = vld [vmem:[#allocation3 + $0x148] sm:$0xff] }
 0xc33   :  { %7318 = vmatpush.msrb.mxu2 %v6933_v36  ;;  %7281 = vmatpush.msrb.mxu0 %v6856_v28  ;;  %v6888_v49 = vld [vmem:[#allocation3 + $0x2e8] sm:$0xff]  ;;  %v6862_v28 = vld [vmem:[#allocation3 + $0x218] sm:$0xff] }
 0xc34   :  { %7335 = vmatpush.msrb.mxu3 %v6733_v41  ;;  %7301 = vmatpush.msrb.mxu1 %v6857_v46  ;;  %v6913_v41 = vld [vmem:[#allocation3 + $0x3b0] sm:$0xff]  ;;  %v6964_v36 = vld [vmem:[#allocation3 + $0x548] sm:$0xff]  ;;  %v6863_v46 = vld [vmem:[#allocation3 + $0x220] sm:$0xff] }
 0xc35   :  { %v10647_v10 = vpop.permute.xlu2 %6352  ;;  %7319 = vmatpush.msrb.mxu2 %v6908_v4  ;;  %7282 = vmatpush.msrb.mxu0 %v6831_v9  ;;  %v6939_v4 = vld [vmem:[#allocation3 + $0x480] sm:$0xff] }
 0xc36   :  { %7336 = vmatpush.msrb.mxu3 %v6378_v6  ;;  %v10652_v43 = vsel %vm609_vm2, %v10635_v42, %v10647_v10  ;;  %7302 = vmatpush.msrb.mxu1 %v6832_v2 }
 0xc37   :  { %6433 = vst [vmem:[#allocation3 + $0x610] sm:$0xff] %v10652_v43  ;;  %v6700_v22 = vpop.permute.xlu1 %6699  ;;  %7320 = vmatpush.msrb.mxu2 %v6883_v19  ;;  %7283 = vmatpush.msrb.mxu0 %v6806_v47  ;;  %v6914_v47 = vld [vmem:[#allocation3 + $0x3b8] sm:$0xff] }
 0xc38   :  { %7337 = vmatpush.msrb.mxu3 %v6959_v15  ;;  %v6734_v51 = vsel %vm252_vm0, %v6698_v57, %v6700_v22  ;;  %v6735_v38 = vsel %vm252_vm0, %v6700_v22, %v10610_v29  ;;  %7303 = vmatpush.msrb.mxu1 %v6807_v18  ;;  %v6812_v22 = vld [vmem:[#allocation3 + $0x88] sm:$0xff]  ;;  %v6813_v18 = vld [vmem:[#allocation3 + $0x90] sm:$0xff] }
 0xc39   :  { %7321 = vmatpush.msrb.mxu2 %v6858_v8  ;;  %7354 = vmatpush.msra.mxu0 %v7035_v48  ;;  %v7041_v48 = vld [vmem:[#allocation3 + $0x7b0] sm:$0xff] }
 0xc3a   :  { %7338 = vmatpush.msrb.mxu3 %v6934_v23  ;;  %7374 = vmatpush.msra.mxu1 %v7036_v11  ;;  %v6889_v11 = vld [vmem:[#allocation3 + $0x2f0] sm:$0xff]  ;;  %v6839_v23 = vld [vmem:[#allocation3 + $0x160] sm:$0xff] }
 0xc3b   :  { %7322 = vmatpush.msrb.mxu2 %v6833_v16  ;;  %7355 = vmatpush.msra.mxu0 %v6734_v51  ;;  %v7042_v51 = vld [vmem:[#allocation3 + $0x7b8] sm:$0xff]  ;;  %v6965_v8 = vld [vmem:[#allocation3 + $0x550] sm:$0xff] }
 0xc3c   :  { %7339 = vmatpush.msrb.mxu3 %v6909_v35  ;;  %7375 = vmatpush.msra.mxu1 %v6735_v38  ;;  %v6864_v38 = vld [vmem:[#allocation3 + $0x228] sm:$0xff] }
 0xc3d   :  { %v6706_v62 = vpop.permute.xlu0 %6705  ;;  %7323 = vmatpush.msrb.mxu2 %v6808_v37  ;;  %7356 = vmatpush.msra.mxu0 %v10641_v13  ;;  %v6938_v13 = vld [vmem:[#allocation3 + $0x478] sm:$0xff]  ;;  %v6940_v37 = vld [vmem:[#allocation3 + $0x488] sm:$0xff] }
 0xc3e   :  { %7340 = vmatpush.msrb.mxu3 %v6884_v30  ;;  %v6737_v29 = vsel %vm252_vm0, %v10623_v17, %v6706_v62  ;;  %7612 = vmatmul.msk.f32.vlgmr.msra.gmra.mxu2 %vm3325_vm8, %v10528_v27  ;;  %v6809_v17 = vld [vmem:[#allocation3 + $0x70] sm:$0xff] }
 0xc3f   :  { %v6347_v20 = vpop.permute.xlu1 %6346  ;;  %7394 = vmatpush.msra.mxu2 %v7037_v52  ;;  %7357 = vmatpush.msra.mxu0 %v6960_v53  ;;  %v6966_v53 = vld [vmem:[#allocation3 + $0x558] sm:$0xff] }
 0xc40   :  { %7341 = vmatpush.msrb.mxu3 %v6859_v31  ;;  %v6380_v60 = vsel %vm609_vm2, %v10637_v63, %v6347_v20  ;;  %7614 = vmatmul.msk.f32.vlgmr.msrb.gmra.mxu0 %vm3325_vm8, %v10528_v27  ;;  %v6861_v63 = vld [vmem:[#allocation3 + $0x210] sm:$0xff]  ;;  %v6915_v31 = vld [vmem:[#allocation3 + $0x3c0] sm:$0xff] }
 0xc41   :  { %7613 = vmatmul.msk.f32.vlgmr.msra.gmra.mxu3 %vm3325_vm8, %v10528_v27  ;;  %6430 = vst [vmem:[#allocation3 + $0x5f8] sm:$0xff] %v6380_v60  ;;  %7395 = vmatpush.msra.mxu2 %v10628_v26 }
 0xc42   :  { %7342 = vmatpush.msrb.mxu3 %v6834_v39  ;;  %7358 = vmatpush.msra.mxu0 %v6935_v12  ;;  %v6941_v39 = vld [vmem:[#allocation3 + $0x490] sm:$0xff] }
 0xc43   :  { %7376 = vmatpush.msra.mxu1 %v6380_v60  ;;  %v6865_v60 = vld [vmem:[#allocation3 + $0x230] sm:$0xff] }
 0xc44   :  { %7343 = vmatpush.msrb.mxu3 %v6809_v17  ;;  %7359 = vmatpush.msra.mxu0 %v6910_v55 }
 0xc45   :  { %7377 = vmatpush.msra.mxu1 %v6961_v21  ;;  %v10670_v6 = vpop.permute.xlu0 %6707  ;;  %v6714_v16 = vpop.permute.xlu2 %6713 }
 0xc46   :  { %7414 = vmatpush.msra.mxu3 %v7038_v24  ;;  %7615 = vmatmul.msk.f32.vlgmr.msrb.gmra.mxu1 %vm3325_vm8, %v10528_v27  ;;  %v6738_v26 = vsel %vm252_vm0, %v6706_v62, %v10670_v6  ;;  %v6814_v62 = vld [vmem:[#allocation3 + $0x98] sm:$0xff]  ;;  %v6840_v24 = vld [vmem:[#allocation3 + $0x168] sm:$0xff] }
 0xc47   :  { %7360 = vmatpush.msra.mxu0 %v6885_v61  ;;  %7378 = vmatpush.msra.mxu1 %v6936_v54  ;;  %v6349_v45 = vpop.permute.xlu1 %6348  ;;  %v6815_v61 = vld [vmem:[#allocation3 + $0xa0] sm:$0xff]  ;;  %v7044_v54 = vld [vmem:[#allocation3 + $0x7c8] sm:$0xff] }
 0xc48   :  { %7415 = vmatpush.msra.mxu3 %v6737_v29  ;;  %7616 = vmatmul.msk.f32.vlgmr.msrb.gmra.mxu2 %vm3325_vm8, %v10528_v27  ;;  %v6381_v14 = vsel %vm609_vm2, %v6347_v20, %v6349_v45  ;;  %v6382_v40 = vsel %vm609_vm2, %v6349_v45, %v10635_v42  ;;  %v6937_v42 = vld [vmem:[#allocation3 + $0x470] sm:$0xff]  ;;  %v7043_v29 = vld [vmem:[#allocation3 + $0x7c0] sm:$0xff]  ;;  %v6890_v20 = vld [vmem:[#allocation3 + $0x2f8] sm:$0xff] }
 0xc49   :  { %7361 = vmatpush.msra.mxu0 %v6860_v50  ;;  %7379 = vmatpush.msra.mxu1 %v6911_v32  ;;  %6431 = vst [vmem:[#allocation3 + $0x600] sm:$0xff] %v6381_v14  ;;  %v6967_v45 = vld [vmem:[#allocation3 + $0x560] sm:$0xff]  ;;  %v6866_v50 = vld [vmem:[#allocation3 + $0x238] sm:$0xff] }
 0xc4a   :  { %7396 = vmatpush.msra.mxu2 %v6381_v14  ;;  %7416 = vmatpush.msra.mxu3 %v6382_v40  ;;  %6432 = vst [vmem:[#allocation3 + $0x608] sm:$0xff] %v6382_v40  ;;  %v6942_v32 = vld [vmem:[#allocation3 + $0x498] sm:$0xff]  ;;  %v6841_v14 = vld [vmem:[#allocation3 + $0x170] sm:$0xff] }
 0xc4b   :  { %7362 = vmatpush.msra.mxu0 %v6835_v3  ;;  %7380 = vmatpush.msra.mxu1 %v6886_v58  ;;  %v6917_v40 = vld [vmem:[#allocation3 + $0x3d0] sm:$0xff] }
 0xc4c   :  { %7397 = vmatpush.msra.mxu2 %v6962_v25  ;;  %7417 = vmatpush.msra.mxu3 %v6963_v0 }
 0xc4d   :  { %7363 = vmatpush.msra.mxu0 %v6810_v59  ;;  %7381 = vmatpush.msra.mxu1 %v6861_v63  ;;  %v6355_v33 = vpop.permute.xlu0 %6354  ;;  %v6892_v59 = vld [vmem:[#allocation3 + $0x308] sm:$0xff] }
 0xc4e   :  { %7398 = vmatpush.msra.mxu2 %v6937_v42  ;;  %v6384_v57 = vsel %vm609_vm2, %v10647_v10, %v6355_v33  ;;  %7418 = vmatpush.msra.mxu3 %v6938_v13  ;;  %v6837_v10 = vld [vmem:[#allocation3 + $0x150] sm:$0xff]  ;;  %v6867_v42 = vld [vmem:[#allocation3 + $0x240] sm:$0xff] }
 0xc4f   :  { %7434 = vmatpush.msrb.mxu0 %v7039_v7  ;;  %7382 = vmatpush.msra.mxu1 %v6836_v5  ;;  %6434 = vst [vmem:[#allocation3 + $0x618] sm:$0xff] %v6384_v57  ;;  %v6816_v7 = vld [vmem:[#allocation3 + $0xa8] sm:$0xff]  ;;  %v6842_v5 = vld [vmem:[#allocation3 + $0x178] sm:$0xff]  ;;  %v6943_v13 = vld [vmem:[#allocation3 + $0x4a0] sm:$0xff] }
 0xc50   :  { %7399 = vmatpush.msra.mxu2 %v6912_v1  ;;  %7419 = vmatpush.msra.mxu3 %v6913_v41  ;;  %v6918_v1 = vld [vmem:[#allocation3 + $0x3d8] sm:$0xff]  ;;  %v6893_v41 = vld [vmem:[#allocation3 + $0x310] sm:$0xff] }
 0xc51   :  { %7435 = vmatpush.msrb.mxu0 %v6738_v26  ;;  %7383 = vmatpush.msra.mxu1 %v6811_v34  ;;  %v6891_v26 = vld [vmem:[#allocation3 + $0x300] sm:$0xff] }
 0xc52   :  { %7400 = vmatpush.msra.mxu2 %v6887_v44  ;;  %7420 = vmatpush.msra.mxu3 %v6888_v49  ;;  %v7065_v63 = vpop.f32.mrf.mxu1  ;;  %v6868_v44 = vld [vmem:[#allocation3 + $0x248] sm:$0xff]  ;;  %v6843_v49 = vld [vmem:[#allocation3 + $0x180] sm:$0xff] }
 0xc53   :  { %7436 = vmatpush.msrb.mxu0 %v10652_v43  ;;  %7454 = vmatpush.msrb.mxu1 %v7040_v56  ;;  %v6838_v43 = vld [vmem:[#allocation3 + $0x158] sm:$0xff]  ;;  %7548 = vst [vmem:[%s10799_s4] sm:$0xff] %v7065_v63 }
 0xc54   :  { %7401 = vmatpush.msra.mxu2 %v6862_v28  ;;  %7421 = vmatpush.msra.mxu3 %v6863_v46  ;;  %v6818_v46 = vld [vmem:[#allocation3 + $0xb8] sm:$0xff] }
 0xc55   :  { %7437 = vmatpush.msrb.mxu0 %v6964_v36  ;;  %v6710_v9 = vpop.permute.xlu1 %6709  ;;  %v6357_v2 = vpop.permute.xlu0 %6356  ;;  %7619 = vmatmul.msk.f32.vlgmr.msra.gmra.mxu1 %vm3325_vm8, %v10528_v27 }
 0xc56   :  { %7618 = vmatmul.msk.f32.vlgmr.msra.gmra.mxu0 %vm3325_vm8, %v10528_v27  ;;  %7402 = vmatpush.msra.mxu2 %v6837_v10  ;;  %v6739_v19 = vsel %vm252_vm0, %v10670_v6, %v6710_v9  ;;  %v6385_v15 = vsel %vm609_vm2, %v6355_v33, %v6357_v2  ;;  %v6916_v6 = vld [vmem:[#allocation3 + $0x3c8] sm:$0xff] }
 0xc57   :  { %7438 = vmatpush.msrb.mxu0 %v6939_v4  ;;  %7422 = vmatpush.msra.mxu3 %v6838_v43  ;;  %6435 = vst [vmem:[#allocation3 + $0x620] sm:$0xff] %v6385_v15  ;;  %v6968_v33 = vld [vmem:[#allocation3 + $0x568] sm:$0xff]  ;;  %v6969_v4 = vld [vmem:[#allocation3 + $0x570] sm:$0xff] }
 0xc58   :  { %7403 = vmatpush.msra.mxu2 %v6812_v22  ;;  %7455 = vmatpush.msrb.mxu1 %v6739_v19  ;;  %v6944_v10 = vld [vmem:[#allocation3 + $0x4a8] sm:$0xff]  ;;  %v6869_v43 = vld [vmem:[#allocation3 + $0x250] sm:$0xff] }
 0xc59   :  { %7439 = vmatpush.msrb.mxu0 %v6914_v47  ;;  %7423 = vmatpush.msra.mxu3 %v6813_v18  ;;  %v6844_v22 = vld [vmem:[#allocation3 + $0x188] sm:$0xff]  ;;  %v6819_v18 = vld [vmem:[#allocation3 + $0xc0] sm:$0xff] }
 0xc5a   :  { %7617 = vmatmul.msk.f32.vlgmr.msrb.gmra.mxu3 %vm3325_vm8, %v10528_v27  ;;  %7456 = vmatpush.msrb.mxu1 %v6384_v57  ;;  %v6817_v57 = vld [vmem:[#allocation3 + $0xb0] sm:$0xff] }
 0xc5b   :  { %7440 = vmatpush.msrb.mxu0 %v6889_v11  ;;  %7474 = vmatpush.msrb.mxu2 %v7041_v48 }
 0xc5c   :  { %7494 = vmatpush.msrb.mxu3 %v7042_v51  ;;  %7457 = vmatpush.msrb.mxu1 %v6965_v8 }
 0xc5d   :  { %7441 = vmatpush.msrb.mxu0 %v6864_v38  ;;  %7620 = vmatmul.msk.f32.vlgmr.msra.gmra.mxu2 %vm3325_vm8, %v10528_v27  ;;  %v6712_v35 = vpop.permute.xlu1 %6711 }
 0xc5e   :  { %v6740_v30 = vsel %vm252_vm0, %v6710_v9, %v6712_v35  ;;  %v6741_v52 = vsel %vm252_vm0, %v6712_v35, %v6714_v16  ;;  %7458 = vmatpush.msrb.mxu1 %v6940_v37  ;;  %v6919_v9 = vld [vmem:[#allocation3 + $0x3e0] sm:$0xff] }
 0xc5f   :  { %7442 = vmatpush.msrb.mxu0 %v6839_v23  ;;  %7475 = vmatpush.msrb.mxu2 %v6740_v30 }
 0xc60   :  { %7459 = vmatpush.msrb.mxu1 %v6915_v31  ;;  %7495 = vmatpush.msrb.mxu3 %v6741_v52 }
 0xc61   :  { %7443 = vmatpush.msrb.mxu0 %v6814_v62  ;;  %7476 = vmatpush.msrb.mxu2 %v6385_v15 }
 0xc62   :  { %7460 = vmatpush.msrb.mxu1 %v6890_v20  ;;  %7621 = vmatmul.msk.f32.vlgmr.msra.gmra.mxu3 %vm3325_vm8, %v10528_v27 }
 0xc63   :  { %7514 = vmatpush.msra.mxu0 %v7043_v29  ;;  %7477 = vmatpush.msrb.mxu2 %v6966_v53 }
 0xc64   :  { %7622 = vmatmul.msk.f32.vlgmr.msrb.gmra.mxu0 %vm3325_vm8, %v10528_v27  ;;  %7461 = vmatpush.msrb.mxu1 %v6865_v60 }
 0xc65   :  { %v6359_v12 = vpop.permute.xlu1 %6358  ;;  %v10701_v17 = vpop.permute.xlu2 %6715  ;;  %7478 = vmatpush.msrb.mxu2 %v6941_v39 }
 0xc66   :  { %v6386_v55 = vsel %vm609_vm2, %v6357_v2, %v6359_v12  ;;  %v6742_v21 = vsel %vm252_vm0, %v6714_v16, %v10701_v17  ;;  %7462 = vmatpush.msrb.mxu1 %v6840_v24  ;;  %v6894_v2 = vld [vmem:[#allocation3 + $0x318] sm:$0xff] }
 0xc67   :  { %6436 = vst [vmem:[#allocation3 + $0x628] sm:$0xff] %v6386_v55  ;;  %7479 = vmatpush.msrb.mxu2 %v6916_v6  ;;  %7496 = vmatpush.msrb.mxu3 %v6386_v55 }
 0xc68   :  { %7463 = vmatpush.msrb.mxu1 %v6815_v61  ;;  %7515 = vmatpush.msra.mxu0 %v6742_v21 }
 0xc69   :  { %7480 = vmatpush.msrb.mxu2 %v6891_v26  ;;  %7497 = vmatpush.msrb.mxu3 %v6967_v45 }
 0xc6a   :  { %7534 = vmatpush.msra.mxu1 %v7044_v54 }
 0xc6b   :  { %7481 = vmatpush.msrb.mxu2 %v6866_v50  ;;  %7498 = vmatpush.msrb.mxu3 %v6942_v32 }
 0xc6c   :  { %7623 = vmatmul.msk.f32.vlgmr.msrb.gmra.mxu1 %vm3325_vm8, %v10528_v27  ;;  %v7085_v34 = vpop.f32.mrf.mxu2  ;;  %v7105_v56 = vpop.f32.mrf.mxu3 }
 0xc6d   :  { %v6361_v3 = vpop.permute.xlu1 %6360  ;;  %v6363_v58 = vpop.permute.xlu2 %6362  ;;  %7482 = vmatpush.msrb.mxu2 %v6841_v14  ;;  %7499 = vmatpush.msrb.mxu3 %v6917_v40  ;;  %7549 = vst [vmem:[%s10799_s4 + $0x8] sm:$0xff] %v7085_v34 }
 0xc6e   :  { %v6387_v25 = vsel %vm609_vm2, %v6359_v12, %v6361_v3  ;;  %v6388_v0 = vsel %vm609_vm2, %v6361_v3, %v6363_v58  ;;  %7550 = vst [vmem:[%s10799_s4 + $0x10] sm:$0xff] %v7105_v56 }
 0xc6f   :  { %6437 = vst [vmem:[#allocation3 + $0x630] sm:$0xff] %v6387_v25  ;;  %7483 = vmatpush.msrb.mxu2 %v6816_v7  ;;  %7500 = vmatpush.msrb.mxu3 %v6892_v59 }
 0xc70   :  { %6438 = vst [vmem:[#allocation3 + $0x638] sm:$0xff] %v6388_v0  ;;  %7516 = vmatpush.msra.mxu0 %v6387_v25  ;;  %7624 = vmatmul.msk.f32.vlgmr.msrb.gmra.mxu2 %vm3325_vm8, %v10528_v27  ;;  %v7709_v27 = vld [vmem:[%s10798_s3] sm:$0xff] }
 0xc71   :  { %7501 = vmatpush.msrb.mxu3 %v6867_v42 }
 0xc72   :  { %7517 = vmatpush.msra.mxu0 %v6968_v33 }
 0xc73   :  { %7502 = vmatpush.msrb.mxu3 %v6842_v5 }
 0xc74   :  { %7518 = vmatpush.msra.mxu0 %v6943_v13 }
 0xc75   :  { %7503 = vmatpush.msrb.mxu3 %v6817_v57 }
 0xc76   :  { %7519 = vmatpush.msra.mxu0 %v6918_v1  ;;  %7625 = vmatmul.msk.f32.vlgmr.msrb.gmra.mxu3 %vm3325_vm8, %v7709_v27 }
 0xc78   :  { %7520 = vmatpush.msra.mxu0 %v6893_v41 }
 0xc7a   :  { %7521 = vmatpush.msra.mxu0 %v6868_v44 }
 0xc7c   :  { %v6718_v36 = vpop.permute.xlu0 %6717  ;;  %7522 = vmatpush.msra.mxu0 %v6843_v49 }
 0xc7d   :  { %v6743_v28 = vsel %vm252_vm0, %v10701_v17, %v6718_v36 }
 0xc7e   :  { %7523 = vmatpush.msra.mxu0 %v6818_v46  ;;  %7535 = vmatpush.msra.mxu1 %v6743_v28 }
 0xc7f   :  { %7626 = vmatmul.msk.f32.vlgmr.msra.gmra.mxu0 %vm3325_vm8, %v7709_v27 }
 0xc80   :  { %7536 = vmatpush.msra.mxu1 %v6388_v0 }
 0xc82   :  { %7537 = vmatpush.msra.mxu1 %v6969_v4 }
 0xc84   :  { %7538 = vmatpush.msra.mxu1 %v6944_v10 }
 0xc85   :  { %v7125_v47 = vpop.f32.mrf.mxu0 }
 0xc86   :  { %7539 = vmatpush.msra.mxu1 %v6919_v9  ;;  %7551 = vst [vmem:[%s10799_s4 + $0x18] sm:$0xff] %v7125_v47 }
 0xc88   :  { %7540 = vmatpush.msra.mxu1 %v6894_v2 }
 0xc89   :  { %v7145_v19 = vpop.f32.mrf.mxu1  ;;  %v7165_v15 = vpop.f32.mrf.mxu2 }
 0xc8a   :  { %7541 = vmatpush.msra.mxu1 %v6869_v43  ;;  %7552 = vst [vmem:[%s10799_s4 + $0x20] sm:$0xff] %v7145_v19 }
 0xc8b   :  { %7553 = vst [vmem:[%s10799_s4 + $0x28] sm:$0xff] %v7165_v15 }
 0xc8c   :  { %7542 = vmatpush.msra.mxu1 %v6844_v22 }
 0xc8e   :  { %7543 = vmatpush.msra.mxu1 %v6819_v18 }
 0xc8f   :  { %7627 = vmatmul.msk.f32.vlgmr.msra.gmra.mxu1 %vm3325_vm8, %v7709_v27 }
 0xc98   :  { %v7185_v48 = vpop.f32.mrf.mxu3 }
 0xc99   :  { %7554 = vst [vmem:[%s10799_s4 + $0x30] sm:$0xff] %v7185_v48  ;;  %v7205_v11 = vpop.f32.mrf.mxu0 }
 0xc9a   :  { %7555 = vst [vmem:[%s10799_s4 + $0x38] sm:$0xff] %v7205_v11 }
 0xca0   :  { %v7225_v51 = vpop.f32.mrf.mxu1 }
 0xca1   :  { %7556 = vst [vmem:[%s10799_s4 + $0x40] sm:$0xff] %v7225_v51 }
 0xcbd   :  { %v7285_v38 = vpop.f32.mrf.mxu0 }
 0xcbe   :  { %7559 = vst [vmem:[%s10799_s4 + $0x58] sm:$0xff] %v7285_v38 }
 0xcc1   :  { %v7245_v8 = vpop.f32.mrf.mxu2 }
 0xcc2   :  { %7557 = vst [vmem:[%s10799_s4 + $0x48] sm:$0xff] %v7245_v8 }
 0xcc3   :  { %v7305_v23 = vpop.f32.mrf.mxu1 }
 0xcc4   :  { %v7265_v16 = vpop.f32.mrf.mxu3  ;;  %7560 = vst [vmem:[%s10799_s4 + $0x60] sm:$0xff] %v7305_v23 }
 0xcc5   :  { %7558 = vst [vmem:[%s10799_s4 + $0x50] sm:$0xff] %v7265_v16 }
 0xccb   :  { %v7325_v35 = vpop.f32.mrf.mxu2 }
 0xccc   :  { %7561 = vst [vmem:[%s10799_s4 + $0x68] sm:$0xff] %v7325_v35 }
 0xcd2   :  { %v7385_v30 = vpop.f32.mrf.mxu1 }
 0xcd3   :  { %v7365_v37 = vpop.f32.mrf.mxu0  ;;  %7564 = vst [vmem:[%s10799_s4 + $0x80] sm:$0xff] %v7385_v30 }
 0xcd4   :  { %7563 = vst [vmem:[%s10799_s4 + $0x78] sm:$0xff] %v7365_v37 }
 0xcdd   :  { %v7345_v52 = vpop.f32.mrf.mxu3 }
 0xcde   :  { %7562 = vst [vmem:[%s10799_s4 + $0x70] sm:$0xff] %v7345_v52 }
 0xce0   :  { %v7405_v62 = vpop.f32.mrf.mxu2 }
 0xce1   :  { %7565 = vst [vmem:[%s10799_s4 + $0x88] sm:$0xff] %v7405_v62  ;;  %v7445_v29 = vpop.f32.mrf.mxu0 }
 0xce2   :  { %7567 = vst [vmem:[%s10799_s4 + $0x98] sm:$0xff] %v7445_v29 }
 0xce5   :  { %v7425_v31 = vpop.f32.mrf.mxu3 }
 0xce6   :  { %7566 = vst [vmem:[%s10799_s4 + $0x90] sm:$0xff] %v7425_v31 }
 0xce9   :  { %v7465_v20 = vpop.f32.mrf.mxu1 }
 0xcea   :  { %7568 = vst [vmem:[%s10799_s4 + $0xa0] sm:$0xff] %v7465_v20 }
 0xcf3   :  { %v7485_v53 = vpop.f32.mrf.mxu2 }
 0xcf4   :  { %7569 = vst [vmem:[%s10799_s4 + $0xa8] sm:$0xff] %v7485_v53 }
 0xcf9   :  { %v7505_v60 = vpop.f32.mrf.mxu3 }
 0xcfa   :  { %7570 = vst [vmem:[%s10799_s4 + $0xb0] sm:$0xff] %v7505_v60 }
 0xcfc   :  { %v7525_v39 = vpop.f32.mrf.mxu0 }
 0xcfd   :  { %7571 = vst [vmem:[%s10799_s4 + $0xb8] sm:$0xff] %v7525_v39 }
 0xd0c   :  { %v7545_v12 = vpop.f32.mrf.mxu1 }
 0xd0d   :  { %7572 = vst [vmem:[%s10799_s4 + $0xc0] sm:$0xff] %v7545_v12 }
 0xd0e   :  { %7577 = vsyncpa [#allocation5], 1 }

</bundles_post_ra>
